<compile_context>
chip_gen: v5e
topology: v5e:2x2
jax: 0.10.0
libtpu: 0.0.40
codegen_flags: <defaults>
</compile_context>

<pallas_src>
import functools

import numpy as np

import jax
import jax.numpy as jnp
from jax import lax
from jax.experimental import pallas as pl
from jax.experimental.pallas import tpu as pltpu

F32 = jnp.float32
TB = 8  # images per grid step (keeps every matmul row-dim a multiple of 8)


# ----------------------------------------------------------------------------
# The fused Pallas kernel: one grid step == TB input images, end to end.
# ----------------------------------------------------------------------------
def _fused_net_kernel(
    x_ref,      # (TB*28, 28)       TB stacked input images (rows = b*28 + h)
    s1_ref,     # (5, TB*24, TB*28) conv1 batched row-shift selectors
    m1_ref,     # (5, 28, 240)      conv1 band matrices, out lane = w*10 + oc
    b1_ref,     # (1, 240)          conv1 bias broadcast over lanes
    ph1_ref,    # (2, TB*12, TB*24) pool-1 even/odd row selectors
    rw1_ref,    # (2, 240, 120)     pool-1 even/odd column selectors
    s2_ref,     # (5, TB*8, TB*12)  conv2 batched row-shift selectors
    m2_ref,     # (5, 120, 160)     conv2 band matrices, cols w*20 + oc
    b2_ref,     # (1, 160)          conv2 bias broadcast over lanes
    ph2_ref,    # (2, TB*4, TB*8)   pool-2 even/odd row selectors
    rw2_ref,    # (2, 160, 80)      pool-2 even/odd column selectors
    g_ref,      # (4, TB, TB*4)     fc1 batch-gather selectors (one per h)
    f1_ref,     # (4, 80, 100)      fc1 weights with the NCHW flatten folded in
    bf1_ref,    # (1, 100)
    w2_ref,     # (100, 30)         fc2 weight (pre-transposed)
    bf2_ref,    # (1, 30)
    w3_ref,     # (30, 10)          fc3 weight (pre-transposed)
    bf3_ref,    # (1, 10)
    o_ref,      # (TB, 10)          log-probabilities
):
    dot = functools.partial(jnp.dot, preferred_element_type=jnp.float32)

    x = x_ref[...]                                           # (TB*28, 28)

    # ---- conv1 + bias: -> (TB*24, 240)  [row = b*24 + h, lane = w*10+oc] ----
    y1 = dot(dot(s1_ref[0], x), m1_ref[0])
    for ki in range(1, 5):
        y1 = y1 + dot(dot(s1_ref[ki], x), m1_ref[ki])
    y1 = y1 + b1_ref[...]

    # ---- max_pool2d(2) + relu: -> (TB*12, 120) ------------------------------
    hp1 = jnp.maximum(dot(ph1_ref[0], y1), dot(ph1_ref[1], y1))
    a1 = jnp.maximum(dot(hp1, rw1_ref[0]), dot(hp1, rw1_ref[1]))
    a1 = jnp.maximum(a1, 0.0)

    # ---- conv2 + bias: -> (TB*8, 160)  [lane = w*20 + oc] -------------------
    y2 = dot(dot(s2_ref[0], a1), m2_ref[0])
    for ki in range(1, 5):
        y2 = y2 + dot(dot(s2_ref[ki], a1), m2_ref[ki])
    y2 = y2 + b2_ref[...]
    # TODO(synk): Dropout2d is identity at inference; training-mode stochastic
    # channel dropout is not implemented.

    # ---- max_pool2d(2) + relu: -> (TB*4, 80) --------------------------------
    hp2 = jnp.maximum(dot(ph2_ref[0], y2), dot(ph2_ref[1], y2))
    a2 = jnp.maximum(dot(hp2, rw2_ref[0]), dot(hp2, rw2_ref[1]))
    a2 = jnp.maximum(a2, 0.0)

    # ---- fc1 (torch's NCHW x.view(-1,320) folded into f1) + relu: (TB,100) --
    h1 = dot(g_ref[0], dot(a2, f1_ref[0]))
    for h in range(1, 4):
        h1 = h1 + dot(g_ref[h], dot(a2, f1_ref[h]))
    h1 = jnp.maximum(h1 + bf1_ref[...], 0.0)

    # ---- fc2 + relu: -> (TB, 30) --------------------------------------------
    h2 = jnp.maximum(dot(h1, w2_ref[...]) + bf2_ref[...], 0.0)

    # ---- fc3 + log_softmax: -> (TB, 10) -------------------------------------
    z = dot(h2, w3_ref[...]) + bf3_ref[...]
    z = z - jnp.max(z, axis=-1, keepdims=True)
    o_ref[...] = z - jnp.log(jnp.sum(jnp.exp(z), axis=-1, keepdims=True))


# ----------------------------------------------------------------------------
# Parameter init (deterministic, same shapes as the PyTorch module)
# ----------------------------------------------------------------------------
def init_params(key):
    ks = jax.random.split(key, 10)

    def uni(k, shape, fan_in):
        bound = 1.0 / jnp.sqrt(float(fan_in))
        return jax.random.uniform(k, shape, F32, -bound, bound)

    return {
        "conv1_w": uni(ks[0], (10, 1, 5, 5), 1 * 5 * 5),
        "conv1_b": uni(ks[1], (10,), 1 * 5 * 5),
        "conv2_w": uni(ks[2], (20, 10, 5, 5), 10 * 5 * 5),
        "conv2_b": uni(ks[3], (20,), 10 * 5 * 5),
        "fc1_w": uni(ks[4], (100, 320), 320),
        "fc1_b": uni(ks[5], (100,), 320),
        "fc2_w": uni(ks[6], (30, 100), 100),
        "fc2_b": uni(ks[7], (30,), 100),
        "fc3_w": uni(ks[8], (10, 30), 30),
        "fc3_b": uni(ks[9], (10,), 30),
    }


# ----------------------------------------------------------------------------
# One-time repacking of torch-layout parameters into kernel matmul operands.
# All selector matrices are built for TB images per grid step.
# ----------------------------------------------------------------------------
def prepare_params(p):
    w1 = p["conv1_w"].astype(F32)   # (10, 1, 5, 5)
    b1 = p["conv1_b"].astype(F32)   # (10,)
    w2 = p["conv2_w"].astype(F32)   # (20, 10, 5, 5)
    b2 = p["conv2_b"].astype(F32)   # (20,)
    fw1, fb1 = p["fc1_w"].astype(F32), p["fc1_b"].astype(F32)   # (100,320)
    fw2, fb2 = p["fc2_w"].astype(F32), p["fc2_b"].astype(F32)   # (30,100)
    fw3, fb3 = p["fc3_w"].astype(F32), p["fc3_b"].astype(F32)   # (10,30)

    def batched_shift_select(h_in, h_out):
        # (5, TB*h_out, TB*h_in): S[ki] @ Xflat picks rows b*h_in + h + ki.
        s = np.zeros((5, TB * h_out, TB * h_in), np.float32)
        hh = np.arange(h_out)
        for ki in range(5):
            for b in range(TB):
                s[ki, b * h_out + hh, b * h_in + hh + ki] = 1.0
        return jnp.asarray(s)

    def tap_indicator(w_in, w_out):
        # (5, w_in, w_out): T[kj, a, w] = 1 iff a == w + kj.
        t = np.zeros((5, w_in, w_out), np.float32)
        for kj in range(5):
            t[kj, np.arange(w_out) + kj, np.arange(w_out)] = 1.0
        return t

    def batched_pool_rows(n_in):
        # (2, TB*n_out, TB*n_in): even/odd row selectors (left-multiply).
        n_out = n_in // 2
        s = np.zeros((2, TB * n_out, TB * n_in), np.float32)
        rr = np.arange(n_out)
        for b in range(TB):
            s[0, b * n_out + rr, b * n_in + 2 * rr] = 1.0
            s[1, b * n_out + rr, b * n_in + 2 * rr + 1] = 1.0
        return jnp.asarray(s)

    def pool_cols(w_in, c):
        # (2, w_in*c, (w_in//2)*c): even/odd column selectors for the
        # (w, c)-interleaved lane layout (right-multiply).
        w_out = w_in // 2
        s = np.zeros((2, w_in * c, w_out * c), np.float32)
        wo = np.repeat(np.arange(w_out), c)
        ci = np.tile(np.arange(c), w_out)
        s[0, (2 * wo) * c + ci, wo * c + ci] = 1.0
        s[1, (2 * wo + 1) * c + ci, wo * c + ci] = 1.0
        return jnp.asarray(s)

    def fc1_batch_gather():
        # (4, TB, TB*4): G[h][b, b*4 + h] = 1 — picks per-image row h of the
        # (TB*4, 100) partial product and drops it at output row b.
        g = np.zeros((4, TB, TB * 4), np.float32)
        for h in range(4):
            for b in range(TB):
                g[h, b, b * 4 + h] = 1.0
        return jnp.asarray(g)

    # conv1 band matrices:  M1[ki][a, w*10+oc] = w1[oc, 0, ki, a-w]
    t1 = jnp.asarray(tap_indicator(28, 24))                  # (5, 28, 24)
    m1 = jnp.stack(
        [jnp.einsum("kaw,ok->awo", t1, w1[:, 0, ki, :]).reshape(28, 240)
         for ki in range(5)], axis=0)                        # (5, 28, 240)
    b1_row = jnp.tile(b1, 24).reshape(1, 240)

    # conv2 band matrices:  M2[ki][a*10+c, w*20+oc] = w2[oc, c, ki, a-w]
    t2 = jnp.asarray(tap_indicator(12, 8))                   # (5, 12, 8)
    m2 = jnp.stack(
        [jnp.einsum("kaw,ock->acwo", t2, w2[:, :, ki, :]).reshape(120, 160)
         for ki in range(5)], axis=0)                        # (5, 120, 160)
    b2_row = jnp.tile(b2, 8).reshape(1, 160)

    # fc1 with torch's NCHW flatten folded in:
    #   f1[h, w*20+c, j] = fw1[j, c*16 + h*4 + w]
    f1 = fw1.reshape(100, 20, 4, 4).transpose(2, 3, 1, 0).reshape(4, 80, 100)

    return dict(
        s1=batched_shift_select(28, 24), m1=m1, b1=b1_row,
        ph1=batched_pool_rows(24), rw1=pool_cols(24, 10),
        s2=batched_shift_select(12, 8), m2=m2, b2=b2_row,
        ph2=batched_pool_rows(8), rw2=pool_cols(8, 20),
        g=fc1_batch_gather(), f1=f1, bf1=fb1.reshape(1, 100),
        w2=fw2.T, bf2=fb2.reshape(1, 30),
        w3=fw3.T, bf3=fb3.reshape(1, 10),
    )


# ----------------------------------------------------------------------------
# Forward pass (mirrors fully_connected_cnn_net2.forward)
# ----------------------------------------------------------------------------
@jax.jit
def forward(prepped, x):
    """x: (N, 1, 28, 28) float32 -> (N, 10) log-probabilities."""
    n = x.shape[0]
    n_pad = ((n + TB - 1) // TB) * TB
    x2 = x.reshape(n, 28, 28).astype(F32)
    if n_pad != n:
        x2 = jnp.pad(x2, ((0, n_pad - n), (0, 0), (0, 0)))
    x_flat = x2.reshape(n_pad * 28, 28)            # rows = b*28 + h

    zero2 = lambda i: (0, 0)
    zero3 = lambda i: (0, 0, 0)

    out = pl.pallas_call(
        _fused_net_kernel,
        out_shape=jax.ShapeDtypeStruct((n_pad, 10), F32),
        grid=(n_pad // TB,),
        in_specs=[
            pl.BlockSpec((TB * 28, 28), lambda i: (i, 0)),    # images
            pl.BlockSpec((5, TB * 24, TB * 28), zero3),       # s1
            pl.BlockSpec((5, 28, 240), zero3),                # m1
            pl.BlockSpec((1, 240), zero2),                    # b1
            pl.BlockSpec((2, TB * 12, TB * 24), zero3),       # ph1
            pl.BlockSpec((2, 240, 120), zero3),               # rw1
            pl.BlockSpec((5, TB * 8, TB * 12), zero3),        # s2
            pl.BlockSpec((5, 120, 160), zero3),               # m2
            pl.BlockSpec((1, 160), zero2),                    # b2
            pl.BlockSpec((2, TB * 4, TB * 8), zero3),         # ph2
            pl.BlockSpec((2, 160, 80), zero3),                # rw2
            pl.BlockSpec((4, TB, TB * 4), zero3),             # g
            pl.BlockSpec((4, 80, 100), zero3),                # f1
            pl.BlockSpec((1, 100), zero2),                    # bf1
            pl.BlockSpec((100, 30), zero2),                   # w2
            pl.BlockSpec((1, 30), zero2),                     # bf2
            pl.BlockSpec((30, 10), zero2),                    # w3
            pl.BlockSpec((1, 10), zero2),                     # bf3
        ],
        out_specs=pl.BlockSpec((TB, 10), lambda i: (i, 0)),
        compiler_params=pltpu.CompilerParams(
            dimension_semantics=("parallel",),
            vmem_limit_bytes=32 * 1024 * 1024,
        ),
    )(x_flat, prepped["s1"], prepped["m1"], prepped["b1"], prepped["ph1"],
      prepped["rw1"], prepped["s2"], prepped["m2"], prepped["b2"],
      prepped["ph2"], prepped["rw2"], prepped["g"], prepped["f1"],
      prepped["bf1"], prepped["w2"], prepped["bf2"], prepped["w3"],
      prepped["bf3"])
    return out[:n]


# ----------------------------------------------------------------------------
# Pure-JAX reference of the original PyTorch module (for self-check only)
# ----------------------------------------------------------------------------
@jax.jit
def reference_forward(params, x):
    n = x.shape[0]

    def conv2d(z, w, b):
        y = lax.conv_general_dilated(
            z, w, (1, 1), "VALID",
            dimension_numbers=("NCHW", "OIHW", "NCHW"))
        return y + b.reshape(1, -1, 1, 1)

    def maxpool2(z):
        return lax.reduce_window(z, -jnp.inf, lax.max,
                                 (1, 1, 2, 2), (1, 1, 2, 2), "VALID")

    y = conv2d(x.astype(F32), params["conv1_w"], params["conv1_b"])
    y = jax.nn.relu(maxpool2(y))
    y = conv2d(y, params["conv2_w"], params["conv2_b"])
    y = jax.nn.relu(maxpool2(y))                      # Dropout2d == identity
    y = y.reshape(n, 320)
    y = jax.nn.relu(y @ params["fc1_w"].T + params["fc1_b"])
    y = jax.nn.relu(y @ params["fc2_w"].T + params["fc2_b"])
    y = y @ params["fc3_w"].T + params["fc3_b"]
    return jax.nn.log_softmax(y, axis=1)


if __name__ == "__main__":
    key = jax.random.PRNGKey(0)
    k_param, k_x = jax.random.split(key)

    params = init_params(k_param)
    prepped = prepare_params(params)
    x = jax.random.normal(k_x, (2, 1, 28, 28), dtype=jnp.float32)

    out = jax.block_until_ready(forward(prepped, x))

    # Self-checks: shape, finiteness, log_softmax normalization, and parity
    # with a pure-JAX reference (loose tolerance allows for MXU default
    # matmul precision differences).
    assert out.shape == (2, 10)
    assert bool(jnp.all(jnp.isfinite(out)))
    row_sums = jnp.sum(jnp.exp(out), axis=1)
    assert bool(jnp.all(jnp.abs(row_sums - 1.0) < 1e-4))

    ref = jax.block_until_ready(reference_forward(params, x))
    max_err = float(jnp.max(jnp.abs(out - ref)))
    assert max_err < 2e-2, f"mismatch vs reference: {max_err}"

    print("KERNEL_OK")
</pallas_src>

<mosaic_0001>
module attributes {stable_mosaic.version = 11 : i64} {
  func.func @_fused_net_kernel(%arg0: i32, %arg1: memref<224x28xf32, #tpu.memory_space<vmem>>, %arg2: memref<5x192x224xf32, #tpu.memory_space<vmem>>, %arg3: memref<5x28x240xf32, #tpu.memory_space<vmem>>, %arg4: memref<1x240xf32, #tpu.memory_space<vmem>>, %arg5: memref<2x96x192xf32, #tpu.memory_space<vmem>>, %arg6: memref<2x240x120xf32, #tpu.memory_space<vmem>>, %arg7: memref<5x64x96xf32, #tpu.memory_space<vmem>>, %arg8: memref<5x120x160xf32, #tpu.memory_space<vmem>>, %arg9: memref<1x160xf32, #tpu.memory_space<vmem>>, %arg10: memref<2x32x64xf32, #tpu.memory_space<vmem>>, %arg11: memref<2x160x80xf32, #tpu.memory_space<vmem>>, %arg12: memref<4x8x32xf32, #tpu.memory_space<vmem>>, %arg13: memref<4x80x100xf32, #tpu.memory_space<vmem>>, %arg14: memref<1x100xf32, #tpu.memory_space<vmem>>, %arg15: memref<100x30xf32, #tpu.memory_space<vmem>>, %arg16: memref<1x30xf32, #tpu.memory_space<vmem>>, %arg17: memref<30x10xf32, #tpu.memory_space<vmem>>, %arg18: memref<1x10xf32, #tpu.memory_space<vmem>>, %arg19: memref<8x10xf32, #tpu.memory_space<vmem>>) attributes {dimension_semantics = [#tpu.dimension_semantics<parallel>], iteration_bounds = array<i64: 1>, scalar_prefetch = 0 : i64, scratch_operands = 0 : i64, tpu.core_type = #tpu.core_type<tc>, window_params = [{transform_indices = @transform_0, window_bounds = array<i64: 224, 28>}, {pipeline_mode = #tpu.pipeline_mode<synchronous>, transform_indices = @transform_1, window_bounds = array<i64: 5, 192, 224>}, {pipeline_mode = #tpu.pipeline_mode<synchronous>, transform_indices = @transform_2, window_bounds = array<i64: 5, 28, 240>}, {pipeline_mode = #tpu.pipeline_mode<synchronous>, transform_indices = @transform_3, window_bounds = array<i64: 1, 240>}, {pipeline_mode = #tpu.pipeline_mode<synchronous>, transform_indices = @transform_4, window_bounds = array<i64: 2, 96, 192>}, {pipeline_mode = #tpu.pipeline_mode<synchronous>, transform_indices = @transform_5, window_bounds = array<i64: 2, 240, 120>}, {pipeline_mode = #tpu.pipeline_mode<synchronous>, transform_indices = @transform_6, window_bounds = array<i64: 5, 64, 96>}, {pipeline_mode = #tpu.pipeline_mode<synchronous>, transform_indices = @transform_7, window_bounds = array<i64: 5, 120, 160>}, {pipeline_mode = #tpu.pipeline_mode<synchronous>, transform_indices = @transform_8, window_bounds = array<i64: 1, 160>}, {pipeline_mode = #tpu.pipeline_mode<synchronous>, transform_indices = @transform_9, window_bounds = array<i64: 2, 32, 64>}, {pipeline_mode = #tpu.pipeline_mode<synchronous>, transform_indices = @transform_10, window_bounds = array<i64: 2, 160, 80>}, {pipeline_mode = #tpu.pipeline_mode<synchronous>, transform_indices = @transform_11, window_bounds = array<i64: 4, 8, 32>}, {pipeline_mode = #tpu.pipeline_mode<synchronous>, transform_indices = @transform_12, window_bounds = array<i64: 4, 80, 100>}, {pipeline_mode = #tpu.pipeline_mode<synchronous>, transform_indices = @transform_13, window_bounds = array<i64: 1, 100>}, {pipeline_mode = #tpu.pipeline_mode<synchronous>, transform_indices = @transform_14, window_bounds = array<i64: 100, 30>}, {pipeline_mode = #tpu.pipeline_mode<synchronous>, transform_indices = @transform_15, window_bounds = array<i64: 1, 30>}, {pipeline_mode = #tpu.pipeline_mode<synchronous>, transform_indices = @transform_16, window_bounds = array<i64: 30, 10>}, {pipeline_mode = #tpu.pipeline_mode<synchronous>, transform_indices = @transform_17, window_bounds = array<i64: 1, 10>}, {transform_indices = @transform_18, window_bounds = array<i64: 8, 10>}]} {
    %c0 = arith.constant 0 : index
    %c0_0 = arith.constant 0 : index
    %0 = vector.load %arg1[%c0, %c0_0] : memref<224x28xf32, #tpu.memory_space<vmem>>, vector<224x28xf32>
    %c0_1 = arith.constant 0 : index
    %c0_2 = arith.constant 0 : index
    %c0_3 = arith.constant 0 : index
    %1 = vector.load %arg2[%c0_1, %c0_2, %c0_3] : memref<5x192x224xf32, #tpu.memory_space<vmem>>, vector<1x192x224xf32>
    %2 = vector.shape_cast %1 : vector<1x192x224xf32> to vector<192x224xf32>
    %cst = arith.constant dense<0.000000e+00> : vector<192x28xf32>
    %3 = tpu.matmul %2, %0, %cst {dimension_numbers = #tpu.dot_dimension_numbers<[1], [0], [0], [1], [0, 0, 1, 1], [], []>} : vector<192x224xf32>, vector<224x28xf32>, vector<192x28xf32> -> vector<192x28xf32>
    %c0_4 = arith.constant 0 : index
    %c0_5 = arith.constant 0 : index
    %c0_6 = arith.constant 0 : index
    %4 = vector.load %arg3[%c0_4, %c0_5, %c0_6] : memref<5x28x240xf32, #tpu.memory_space<vmem>>, vector<1x28x240xf32>
    %5 = vector.shape_cast %4 : vector<1x28x240xf32> to vector<28x240xf32>
    %cst_7 = arith.constant dense<0.000000e+00> : vector<192x240xf32>
    %6 = tpu.matmul %3, %5, %cst_7 {dimension_numbers = #tpu.dot_dimension_numbers<[1], [0], [0], [1], [0, 0, 1, 1], [], []>} : vector<192x28xf32>, vector<28x240xf32>, vector<192x240xf32> -> vector<192x240xf32>
    %c1 = arith.constant 1 : index
    %c0_8 = arith.constant 0 : index
    %c0_9 = arith.constant 0 : index
    %7 = vector.load %arg2[%c1, %c0_8, %c0_9] : memref<5x192x224xf32, #tpu.memory_space<vmem>>, vector<1x192x224xf32>
    %8 = vector.shape_cast %7 : vector<1x192x224xf32> to vector<192x224xf32>
    %cst_10 = arith.constant dense<0.000000e+00> : vector<192x28xf32>
    %9 = tpu.matmul %8, %0, %cst_10 {dimension_numbers = #tpu.dot_dimension_numbers<[1], [0], [0], [1], [0, 0, 1, 1], [], []>} : vector<192x224xf32>, vector<224x28xf32>, vector<192x28xf32> -> vector<192x28xf32>
    %c1_11 = arith.constant 1 : index
    %c0_12 = arith.constant 0 : index
    %c0_13 = arith.constant 0 : index
    %10 = vector.load %arg3[%c1_11, %c0_12, %c0_13] : memref<5x28x240xf32, #tpu.memory_space<vmem>>, vector<1x28x240xf32>
    %11 = vector.shape_cast %10 : vector<1x28x240xf32> to vector<28x240xf32>
    %cst_14 = arith.constant dense<0.000000e+00> : vector<192x240xf32>
    %12 = tpu.matmul %9, %11, %cst_14 {dimension_numbers = #tpu.dot_dimension_numbers<[1], [0], [0], [1], [0, 0, 1, 1], [], []>} : vector<192x28xf32>, vector<28x240xf32>, vector<192x240xf32> -> vector<192x240xf32>
    %13 = arith.addf %6, %12 : vector<192x240xf32>
    %c2 = arith.constant 2 : index
    %c0_15 = arith.constant 0 : index
    %c0_16 = arith.constant 0 : index
    %14 = vector.load %arg2[%c2, %c0_15, %c0_16] : memref<5x192x224xf32, #tpu.memory_space<vmem>>, vector<1x192x224xf32>
    %15 = vector.shape_cast %14 : vector<1x192x224xf32> to vector<192x224xf32>
    %cst_17 = arith.constant dense<0.000000e+00> : vector<192x28xf32>
    %16 = tpu.matmul %15, %0, %cst_17 {dimension_numbers = #tpu.dot_dimension_numbers<[1], [0], [0], [1], [0, 0, 1, 1], [], []>} : vector<192x224xf32>, vector<224x28xf32>, vector<192x28xf32> -> vector<192x28xf32>
    %c2_18 = arith.constant 2 : index
    %c0_19 = arith.constant 0 : index
    %c0_20 = arith.constant 0 : index
    %17 = vector.load %arg3[%c2_18, %c0_19, %c0_20] : memref<5x28x240xf32, #tpu.memory_space<vmem>>, vector<1x28x240xf32>
    %18 = vector.shape_cast %17 : vector<1x28x240xf32> to vector<28x240xf32>
    %cst_21 = arith.constant dense<0.000000e+00> : vector<192x240xf32>
    %19 = tpu.matmul %16, %18, %cst_21 {dimension_numbers = #tpu.dot_dimension_numbers<[1], [0], [0], [1], [0, 0, 1, 1], [], []>} : vector<192x28xf32>, vector<28x240xf32>, vector<192x240xf32> -> vector<192x240xf32>
    %20 = arith.addf %13, %19 : vector<192x240xf32>
    %c3 = arith.constant 3 : index
    %c0_22 = arith.constant 0 : index
    %c0_23 = arith.constant 0 : index
    %21 = vector.load %arg2[%c3, %c0_22, %c0_23] : memref<5x192x224xf32, #tpu.memory_space<vmem>>, vector<1x192x224xf32>
    %22 = vector.shape_cast %21 : vector<1x192x224xf32> to vector<192x224xf32>
    %cst_24 = arith.constant dense<0.000000e+00> : vector<192x28xf32>
    %23 = tpu.matmul %22, %0, %cst_24 {dimension_numbers = #tpu.dot_dimension_numbers<[1], [0], [0], [1], [0, 0, 1, 1], [], []>} : vector<192x224xf32>, vector<224x28xf32>, vector<192x28xf32> -> vector<192x28xf32>
    %c3_25 = arith.constant 3 : index
    %c0_26 = arith.constant 0 : index
    %c0_27 = arith.constant 0 : index
    %24 = vector.load %arg3[%c3_25, %c0_26, %c0_27] : memref<5x28x240xf32, #tpu.memory_space<vmem>>, vector<1x28x240xf32>
    %25 = vector.shape_cast %24 : vector<1x28x240xf32> to vector<28x240xf32>
    %cst_28 = arith.constant dense<0.000000e+00> : vector<192x240xf32>
    %26 = tpu.matmul %23, %25, %cst_28 {dimension_numbers = #tpu.dot_dimension_numbers<[1], [0], [0], [1], [0, 0, 1, 1], [], []>} : vector<192x28xf32>, vector<28x240xf32>, vector<192x240xf32> -> vector<192x240xf32>
    %27 = arith.addf %20, %26 : vector<192x240xf32>
    %c4 = arith.constant 4 : index
    %c0_29 = arith.constant 0 : index
    %c0_30 = arith.constant 0 : index
    %28 = vector.load %arg2[%c4, %c0_29, %c0_30] : memref<5x192x224xf32, #tpu.memory_space<vmem>>, vector<1x192x224xf32>
    %29 = vector.shape_cast %28 : vector<1x192x224xf32> to vector<192x224xf32>
    %cst_31 = arith.constant dense<0.000000e+00> : vector<192x28xf32>
    %30 = tpu.matmul %29, %0, %cst_31 {dimension_numbers = #tpu.dot_dimension_numbers<[1], [0], [0], [1], [0, 0, 1, 1], [], []>} : vector<192x224xf32>, vector<224x28xf32>, vector<192x28xf32> -> vector<192x28xf32>
    %c4_32 = arith.constant 4 : index
    %c0_33 = arith.constant 0 : index
    %c0_34 = arith.constant 0 : index
    %31 = vector.load %arg3[%c4_32, %c0_33, %c0_34] : memref<5x28x240xf32, #tpu.memory_space<vmem>>, vector<1x28x240xf32>
    %32 = vector.shape_cast %31 : vector<1x28x240xf32> to vector<28x240xf32>
    %cst_35 = arith.constant dense<0.000000e+00> : vector<192x240xf32>
    %33 = tpu.matmul %30, %32, %cst_35 {dimension_numbers = #tpu.dot_dimension_numbers<[1], [0], [0], [1], [0, 0, 1, 1], [], []>} : vector<192x28xf32>, vector<28x240xf32>, vector<192x240xf32> -> vector<192x240xf32>
    %34 = arith.addf %27, %33 : vector<192x240xf32>
    %c0_36 = arith.constant 0 : index
    %c0_37 = arith.constant 0 : index
    %35 = vector.load %arg4[%c0_36, %c0_37] : memref<1x240xf32, #tpu.memory_space<vmem>>, vector<1x240xf32>
    %36 = vector.broadcast %35 : vector<1x240xf32> to vector<192x240xf32>
    %37 = arith.addf %34, %36 : vector<192x240xf32>
    %c0_38 = arith.constant 0 : index
    %c0_39 = arith.constant 0 : index
    %c0_40 = arith.constant 0 : index
    %38 = vector.load %arg5[%c0_38, %c0_39, %c0_40] : memref<2x96x192xf32, #tpu.memory_space<vmem>>, vector<1x96x192xf32>
    %39 = vector.shape_cast %38 : vector<1x96x192xf32> to vector<96x192xf32>
    %cst_41 = arith.constant dense<0.000000e+00> : vector<96x240xf32>
    %40 = tpu.matmul %39, %37, %cst_41 {dimension_numbers = #tpu.dot_dimension_numbers<[1], [0], [0], [1], [0, 0, 1, 1], [], []>} : vector<96x192xf32>, vector<192x240xf32>, vector<96x240xf32> -> vector<96x240xf32>
    %c1_42 = arith.constant 1 : index
    %c0_43 = arith.constant 0 : index
    %c0_44 = arith.constant 0 : index
    %41 = vector.load %arg5[%c1_42, %c0_43, %c0_44] : memref<2x96x192xf32, #tpu.memory_space<vmem>>, vector<1x96x192xf32>
    %42 = vector.shape_cast %41 : vector<1x96x192xf32> to vector<96x192xf32>
    %cst_45 = arith.constant dense<0.000000e+00> : vector<96x240xf32>
    %43 = tpu.matmul %42, %37, %cst_45 {dimension_numbers = #tpu.dot_dimension_numbers<[1], [0], [0], [1], [0, 0, 1, 1], [], []>} : vector<96x192xf32>, vector<192x240xf32>, vector<96x240xf32> -> vector<96x240xf32>
    %44 = arith.maximumf %40, %43 : vector<96x240xf32>
    %c0_46 = arith.constant 0 : index
    %c0_47 = arith.constant 0 : index
    %c0_48 = arith.constant 0 : index
    %45 = vector.load %arg6[%c0_46, %c0_47, %c0_48] : memref<2x240x120xf32, #tpu.memory_space<vmem>>, vector<1x240x120xf32>
    %46 = vector.shape_cast %45 : vector<1x240x120xf32> to vector<240x120xf32>
    %cst_49 = arith.constant dense<0.000000e+00> : vector<96x120xf32>
    %47 = tpu.matmul %44, %46, %cst_49 {dimension_numbers = #tpu.dot_dimension_numbers<[1], [0], [0], [1], [0, 0, 1, 1], [], []>} : vector<96x240xf32>, vector<240x120xf32>, vector<96x120xf32> -> vector<96x120xf32>
    %c1_50 = arith.constant 1 : index
    %c0_51 = arith.constant 0 : index
    %c0_52 = arith.constant 0 : index
    %48 = vector.load %arg6[%c1_50, %c0_51, %c0_52] : memref<2x240x120xf32, #tpu.memory_space<vmem>>, vector<1x240x120xf32>
    %49 = vector.shape_cast %48 : vector<1x240x120xf32> to vector<240x120xf32>
    %cst_53 = arith.constant dense<0.000000e+00> : vector<96x120xf32>
    %50 = tpu.matmul %44, %49, %cst_53 {dimension_numbers = #tpu.dot_dimension_numbers<[1], [0], [0], [1], [0, 0, 1, 1], [], []>} : vector<96x240xf32>, vector<240x120xf32>, vector<96x120xf32> -> vector<96x120xf32>
    %51 = arith.maximumf %47, %50 : vector<96x120xf32>
    %cst_54 = arith.constant 0.000000e+00 : f32
    %52 = vector.broadcast %cst_54 : f32 to vector<96x120xf32>
    %53 = arith.maximumf %51, %52 : vector<96x120xf32>
    %c0_55 = arith.constant 0 : index
    %c0_56 = arith.constant 0 : index
    %c0_57 = arith.constant 0 : index
    %54 = vector.load %arg7[%c0_55, %c0_56, %c0_57] : memref<5x64x96xf32, #tpu.memory_space<vmem>>, vector<1x64x96xf32>
    %55 = vector.shape_cast %54 : vector<1x64x96xf32> to vector<64x96xf32>
    %cst_58 = arith.constant dense<0.000000e+00> : vector<64x120xf32>
    %56 = tpu.matmul %55, %53, %cst_58 {dimension_numbers = #tpu.dot_dimension_numbers<[1], [0], [0], [1], [0, 0, 1, 1], [], []>} : vector<64x96xf32>, vector<96x120xf32>, vector<64x120xf32> -> vector<64x120xf32>
    %c0_59 = arith.constant 0 : index
    %c0_60 = arith.constant 0 : index
    %c0_61 = arith.constant 0 : index
    %57 = vector.load %arg8[%c0_59, %c0_60, %c0_61] : memref<5x120x160xf32, #tpu.memory_space<vmem>>, vector<1x120x160xf32>
    %58 = vector.shape_cast %57 : vector<1x120x160xf32> to vector<120x160xf32>
    %cst_62 = arith.constant dense<0.000000e+00> : vector<64x160xf32>
    %59 = tpu.matmul %56, %58, %cst_62 {dimension_numbers = #tpu.dot_dimension_numbers<[1], [0], [0], [1], [0, 0, 1, 1], [], []>} : vector<64x120xf32>, vector<120x160xf32>, vector<64x160xf32> -> vector<64x160xf32>
    %c1_63 = arith.constant 1 : index
    %c0_64 = arith.constant 0 : index
    %c0_65 = arith.constant 0 : index
    %60 = vector.load %arg7[%c1_63, %c0_64, %c0_65] : memref<5x64x96xf32, #tpu.memory_space<vmem>>, vector<1x64x96xf32>
    %61 = vector.shape_cast %60 : vector<1x64x96xf32> to vector<64x96xf32>
    %cst_66 = arith.constant dense<0.000000e+00> : vector<64x120xf32>
    %62 = tpu.matmul %61, %53, %cst_66 {dimension_numbers = #tpu.dot_dimension_numbers<[1], [0], [0], [1], [0, 0, 1, 1], [], []>} : vector<64x96xf32>, vector<96x120xf32>, vector<64x120xf32> -> vector<64x120xf32>
    %c1_67 = arith.constant 1 : index
    %c0_68 = arith.constant 0 : index
    %c0_69 = arith.constant 0 : index
    %63 = vector.load %arg8[%c1_67, %c0_68, %c0_69] : memref<5x120x160xf32, #tpu.memory_space<vmem>>, vector<1x120x160xf32>
    %64 = vector.shape_cast %63 : vector<1x120x160xf32> to vector<120x160xf32>
    %cst_70 = arith.constant dense<0.000000e+00> : vector<64x160xf32>
    %65 = tpu.matmul %62, %64, %cst_70 {dimension_numbers = #tpu.dot_dimension_numbers<[1], [0], [0], [1], [0, 0, 1, 1], [], []>} : vector<64x120xf32>, vector<120x160xf32>, vector<64x160xf32> -> vector<64x160xf32>
    %66 = arith.addf %59, %65 : vector<64x160xf32>
    %c2_71 = arith.constant 2 : index
    %c0_72 = arith.constant 0 : index
    %c0_73 = arith.constant 0 : index
    %67 = vector.load %arg7[%c2_71, %c0_72, %c0_73] : memref<5x64x96xf32, #tpu.memory_space<vmem>>, vector<1x64x96xf32>
    %68 = vector.shape_cast %67 : vector<1x64x96xf32> to vector<64x96xf32>
    %cst_74 = arith.constant dense<0.000000e+00> : vector<64x120xf32>
    %69 = tpu.matmul %68, %53, %cst_74 {dimension_numbers = #tpu.dot_dimension_numbers<[1], [0], [0], [1], [0, 0, 1, 1], [], []>} : vector<64x96xf32>, vector<96x120xf32>, vector<64x120xf32> -> vector<64x120xf32>
    %c2_75 = arith.constant 2 : index
    %c0_76 = arith.constant 0 : index
    %c0_77 = arith.constant 0 : index
    %70 = vector.load %arg8[%c2_75, %c0_76, %c0_77] : memref<5x120x160xf32, #tpu.memory_space<vmem>>, vector<1x120x160xf32>
    %71 = vector.shape_cast %70 : vector<1x120x160xf32> to vector<120x160xf32>
    %cst_78 = arith.constant dense<0.000000e+00> : vector<64x160xf32>
    %72 = tpu.matmul %69, %71, %cst_78 {dimension_numbers = #tpu.dot_dimension_numbers<[1], [0], [0], [1], [0, 0, 1, 1], [], []>} : vector<64x120xf32>, vector<120x160xf32>, vector<64x160xf32> -> vector<64x160xf32>
    %73 = arith.addf %66, %72 : vector<64x160xf32>
    %c3_79 = arith.constant 3 : index
    %c0_80 = arith.constant 0 : index
    %c0_81 = arith.constant 0 : index
    %74 = vector.load %arg7[%c3_79, %c0_80, %c0_81] : memref<5x64x96xf32, #tpu.memory_space<vmem>>, vector<1x64x96xf32>
    %75 = vector.shape_cast %74 : vector<1x64x96xf32> to vector<64x96xf32>
    %cst_82 = arith.constant dense<0.000000e+00> : vector<64x120xf32>
    %76 = tpu.matmul %75, %53, %cst_82 {dimension_numbers = #tpu.dot_dimension_numbers<[1], [0], [0], [1], [0, 0, 1, 1], [], []>} : vector<64x96xf32>, vector<96x120xf32>, vector<64x120xf32> -> vector<64x120xf32>
    %c3_83 = arith.constant 3 : index
    %c0_84 = arith.constant 0 : index
    %c0_85 = arith.constant 0 : index
    %77 = vector.load %arg8[%c3_83, %c0_84, %c0_85] : memref<5x120x160xf32, #tpu.memory_space<vmem>>, vector<1x120x160xf32>
    %78 = vector.shape_cast %77 : vector<1x120x160xf32> to vector<120x160xf32>
    %cst_86 = arith.constant dense<0.000000e+00> : vector<64x160xf32>
    %79 = tpu.matmul %76, %78, %cst_86 {dimension_numbers = #tpu.dot_dimension_numbers<[1], [0], [0], [1], [0, 0, 1, 1], [], []>} : vector<64x120xf32>, vector<120x160xf32>, vector<64x160xf32> -> vector<64x160xf32>
    %80 = arith.addf %73, %79 : vector<64x160xf32>
    %c4_87 = arith.constant 4 : index
    %c0_88 = arith.constant 0 : index
    %c0_89 = arith.constant 0 : index
    %81 = vector.load %arg7[%c4_87, %c0_88, %c0_89] : memref<5x64x96xf32, #tpu.memory_space<vmem>>, vector<1x64x96xf32>
    %82 = vector.shape_cast %81 : vector<1x64x96xf32> to vector<64x96xf32>
    %cst_90 = arith.constant dense<0.000000e+00> : vector<64x120xf32>
    %83 = tpu.matmul %82, %53, %cst_90 {dimension_numbers = #tpu.dot_dimension_numbers<[1], [0], [0], [1], [0, 0, 1, 1], [], []>} : vector<64x96xf32>, vector<96x120xf32>, vector<64x120xf32> -> vector<64x120xf32>
    %c4_91 = arith.constant 4 : index
    %c0_92 = arith.constant 0 : index
    %c0_93 = arith.constant 0 : index
    %84 = vector.load %arg8[%c4_91, %c0_92, %c0_93] : memref<5x120x160xf32, #tpu.memory_space<vmem>>, vector<1x120x160xf32>
    %85 = vector.shape_cast %84 : vector<1x120x160xf32> to vector<120x160xf32>
    %cst_94 = arith.constant dense<0.000000e+00> : vector<64x160xf32>
    %86 = tpu.matmul %83, %85, %cst_94 {dimension_numbers = #tpu.dot_dimension_numbers<[1], [0], [0], [1], [0, 0, 1, 1], [], []>} : vector<64x120xf32>, vector<120x160xf32>, vector<64x160xf32> -> vector<64x160xf32>
    %87 = arith.addf %80, %86 : vector<64x160xf32>
    %c0_95 = arith.constant 0 : index
    %c0_96 = arith.constant 0 : index
    %88 = vector.load %arg9[%c0_95, %c0_96] : memref<1x160xf32, #tpu.memory_space<vmem>>, vector<1x160xf32>
    %89 = vector.broadcast %88 : vector<1x160xf32> to vector<64x160xf32>
    %90 = arith.addf %87, %89 : vector<64x160xf32>
    %c0_97 = arith.constant 0 : index
    %c0_98 = arith.constant 0 : index
    %c0_99 = arith.constant 0 : index
    %91 = vector.load %arg10[%c0_97, %c0_98, %c0_99] : memref<2x32x64xf32, #tpu.memory_space<vmem>>, vector<1x32x64xf32>
    %92 = vector.shape_cast %91 : vector<1x32x64xf32> to vector<32x64xf32>
    %cst_100 = arith.constant dense<0.000000e+00> : vector<32x160xf32>
    %93 = tpu.matmul %92, %90, %cst_100 {dimension_numbers = #tpu.dot_dimension_numbers<[1], [0], [0], [1], [0, 0, 1, 1], [], []>} : vector<32x64xf32>, vector<64x160xf32>, vector<32x160xf32> -> vector<32x160xf32>
    %c1_101 = arith.constant 1 : index
    %c0_102 = arith.constant 0 : index
    %c0_103 = arith.constant 0 : index
    %94 = vector.load %arg10[%c1_101, %c0_102, %c0_103] : memref<2x32x64xf32, #tpu.memory_space<vmem>>, vector<1x32x64xf32>
    %95 = vector.shape_cast %94 : vector<1x32x64xf32> to vector<32x64xf32>
    %cst_104 = arith.constant dense<0.000000e+00> : vector<32x160xf32>
    %96 = tpu.matmul %95, %90, %cst_104 {dimension_numbers = #tpu.dot_dimension_numbers<[1], [0], [0], [1], [0, 0, 1, 1], [], []>} : vector<32x64xf32>, vector<64x160xf32>, vector<32x160xf32> -> vector<32x160xf32>
    %97 = arith.maximumf %93, %96 : vector<32x160xf32>
    %c0_105 = arith.constant 0 : index
    %c0_106 = arith.constant 0 : index
    %c0_107 = arith.constant 0 : index
    %98 = vector.load %arg11[%c0_105, %c0_106, %c0_107] : memref<2x160x80xf32, #tpu.memory_space<vmem>>, vector<1x160x80xf32>
    %99 = vector.shape_cast %98 : vector<1x160x80xf32> to vector<160x80xf32>
    %cst_108 = arith.constant dense<0.000000e+00> : vector<32x80xf32>
    %100 = tpu.matmul %97, %99, %cst_108 {dimension_numbers = #tpu.dot_dimension_numbers<[1], [0], [0], [1], [0, 0, 1, 1], [], []>} : vector<32x160xf32>, vector<160x80xf32>, vector<32x80xf32> -> vector<32x80xf32>
    %c1_109 = arith.constant 1 : index
    %c0_110 = arith.constant 0 : index
    %c0_111 = arith.constant 0 : index
    %101 = vector.load %arg11[%c1_109, %c0_110, %c0_111] : memref<2x160x80xf32, #tpu.memory_space<vmem>>, vector<1x160x80xf32>
    %102 = vector.shape_cast %101 : vector<1x160x80xf32> to vector<160x80xf32>
    %cst_112 = arith.constant dense<0.000000e+00> : vector<32x80xf32>
    %103 = tpu.matmul %97, %102, %cst_112 {dimension_numbers = #tpu.dot_dimension_numbers<[1], [0], [0], [1], [0, 0, 1, 1], [], []>} : vector<32x160xf32>, vector<160x80xf32>, vector<32x80xf32> -> vector<32x80xf32>
    %104 = arith.maximumf %100, %103 : vector<32x80xf32>
    %cst_113 = arith.constant 0.000000e+00 : f32
    %105 = vector.broadcast %cst_113 : f32 to vector<32x80xf32>
    %106 = arith.maximumf %104, %105 : vector<32x80xf32>
    %c0_114 = arith.constant 0 : index
    %c0_115 = arith.constant 0 : index
    %c0_116 = arith.constant 0 : index
    %107 = vector.load %arg12[%c0_114, %c0_115, %c0_116] : memref<4x8x32xf32, #tpu.memory_space<vmem>>, vector<1x8x32xf32>
    %108 = vector.shape_cast %107 : vector<1x8x32xf32> to vector<8x32xf32>
    %c0_117 = arith.constant 0 : index
    %c0_118 = arith.constant 0 : index
    %c0_119 = arith.constant 0 : index
    %109 = vector.load %arg13[%c0_117, %c0_118, %c0_119] : memref<4x80x100xf32, #tpu.memory_space<vmem>>, vector<1x80x100xf32>
    %110 = vector.shape_cast %109 : vector<1x80x100xf32> to vector<80x100xf32>
    %cst_120 = arith.constant dense<0.000000e+00> : vector<32x100xf32>
    %111 = tpu.matmul %106, %110, %cst_120 {dimension_numbers = #tpu.dot_dimension_numbers<[1], [0], [0], [1], [0, 0, 1, 1], [], []>} : vector<32x80xf32>, vector<80x100xf32>, vector<32x100xf32> -> vector<32x100xf32>
    %cst_121 = arith.constant dense<0.000000e+00> : vector<8x100xf32>
    %112 = tpu.matmul %108, %111, %cst_121 {dimension_numbers = #tpu.dot_dimension_numbers<[1], [0], [0], [1], [0, 0, 1, 1], [], []>} : vector<8x32xf32>, vector<32x100xf32>, vector<8x100xf32> -> vector<8x100xf32>
    %c1_122 = arith.constant 1 : index
    %c0_123 = arith.constant 0 : index
    %c0_124 = arith.constant 0 : index
    %113 = vector.load %arg12[%c1_122, %c0_123, %c0_124] : memref<4x8x32xf32, #tpu.memory_space<vmem>>, vector<1x8x32xf32>
    %114 = vector.shape_cast %113 : vector<1x8x32xf32> to vector<8x32xf32>
    %c1_125 = arith.constant 1 : index
    %c0_126 = arith.constant 0 : index
    %c0_127 = arith.constant 0 : index
    %115 = vector.load %arg13[%c1_125, %c0_126, %c0_127] : memref<4x80x100xf32, #tpu.memory_space<vmem>>, vector<1x80x100xf32>
    %116 = vector.shape_cast %115 : vector<1x80x100xf32> to vector<80x100xf32>
    %cst_128 = arith.constant dense<0.000000e+00> : vector<32x100xf32>
    %117 = tpu.matmul %106, %116, %cst_128 {dimension_numbers = #tpu.dot_dimension_numbers<[1], [0], [0], [1], [0, 0, 1, 1], [], []>} : vector<32x80xf32>, vector<80x100xf32>, vector<32x100xf32> -> vector<32x100xf32>
    %cst_129 = arith.constant dense<0.000000e+00> : vector<8x100xf32>
    %118 = tpu.matmul %114, %117, %cst_129 {dimension_numbers = #tpu.dot_dimension_numbers<[1], [0], [0], [1], [0, 0, 1, 1], [], []>} : vector<8x32xf32>, vector<32x100xf32>, vector<8x100xf32> -> vector<8x100xf32>
    %119 = arith.addf %112, %118 : vector<8x100xf32>
    %c2_130 = arith.constant 2 : index
    %c0_131 = arith.constant 0 : index
    %c0_132 = arith.constant 0 : index
    %120 = vector.load %arg12[%c2_130, %c0_131, %c0_132] : memref<4x8x32xf32, #tpu.memory_space<vmem>>, vector<1x8x32xf32>
    %121 = vector.shape_cast %120 : vector<1x8x32xf32> to vector<8x32xf32>
    %c2_133 = arith.constant 2 : index
    %c0_134 = arith.constant 0 : index
    %c0_135 = arith.constant 0 : index
    %122 = vector.load %arg13[%c2_133, %c0_134, %c0_135] : memref<4x80x100xf32, #tpu.memory_space<vmem>>, vector<1x80x100xf32>
    %123 = vector.shape_cast %122 : vector<1x80x100xf32> to vector<80x100xf32>
    %cst_136 = arith.constant dense<0.000000e+00> : vector<32x100xf32>
    %124 = tpu.matmul %106, %123, %cst_136 {dimension_numbers = #tpu.dot_dimension_numbers<[1], [0], [0], [1], [0, 0, 1, 1], [], []>} : vector<32x80xf32>, vector<80x100xf32>, vector<32x100xf32> -> vector<32x100xf32>
    %cst_137 = arith.constant dense<0.000000e+00> : vector<8x100xf32>
    %125 = tpu.matmul %121, %124, %cst_137 {dimension_numbers = #tpu.dot_dimension_numbers<[1], [0], [0], [1], [0, 0, 1, 1], [], []>} : vector<8x32xf32>, vector<32x100xf32>, vector<8x100xf32> -> vector<8x100xf32>
    %126 = arith.addf %119, %125 : vector<8x100xf32>
    %c3_138 = arith.constant 3 : index
    %c0_139 = arith.constant 0 : index
    %c0_140 = arith.constant 0 : index
    %127 = vector.load %arg12[%c3_138, %c0_139, %c0_140] : memref<4x8x32xf32, #tpu.memory_space<vmem>>, vector<1x8x32xf32>
    %128 = vector.shape_cast %127 : vector<1x8x32xf32> to vector<8x32xf32>
    %c3_141 = arith.constant 3 : index
    %c0_142 = arith.constant 0 : index
    %c0_143 = arith.constant 0 : index
    %129 = vector.load %arg13[%c3_141, %c0_142, %c0_143] : memref<4x80x100xf32, #tpu.memory_space<vmem>>, vector<1x80x100xf32>
    %130 = vector.shape_cast %129 : vector<1x80x100xf32> to vector<80x100xf32>
    %cst_144 = arith.constant dense<0.000000e+00> : vector<32x100xf32>
    %131 = tpu.matmul %106, %130, %cst_144 {dimension_numbers = #tpu.dot_dimension_numbers<[1], [0], [0], [1], [0, 0, 1, 1], [], []>} : vector<32x80xf32>, vector<80x100xf32>, vector<32x100xf32> -> vector<32x100xf32>
    %cst_145 = arith.constant dense<0.000000e+00> : vector<8x100xf32>
    %132 = tpu.matmul %128, %131, %cst_145 {dimension_numbers = #tpu.dot_dimension_numbers<[1], [0], [0], [1], [0, 0, 1, 1], [], []>} : vector<8x32xf32>, vector<32x100xf32>, vector<8x100xf32> -> vector<8x100xf32>
    %133 = arith.addf %126, %132 : vector<8x100xf32>
    %c0_146 = arith.constant 0 : index
    %c0_147 = arith.constant 0 : index
    %134 = vector.load %arg14[%c0_146, %c0_147] : memref<1x100xf32, #tpu.memory_space<vmem>>, vector<1x100xf32>
    %135 = vector.broadcast %134 : vector<1x100xf32> to vector<8x100xf32>
    %136 = arith.addf %133, %135 : vector<8x100xf32>
    %cst_148 = arith.constant 0.000000e+00 : f32
    %137 = vector.broadcast %cst_148 : f32 to vector<8x100xf32>
    %138 = arith.maximumf %136, %137 : vector<8x100xf32>
    %c0_149 = arith.constant 0 : index
    %c0_150 = arith.constant 0 : index
    %139 = vector.load %arg15[%c0_149, %c0_150] : memref<100x30xf32, #tpu.memory_space<vmem>>, vector<100x30xf32>
    %cst_151 = arith.constant dense<0.000000e+00> : vector<8x30xf32>
    %140 = tpu.matmul %138, %139, %cst_151 {dimension_numbers = #tpu.dot_dimension_numbers<[1], [0], [0], [1], [0, 0, 1, 1], [], []>} : vector<8x100xf32>, vector<100x30xf32>, vector<8x30xf32> -> vector<8x30xf32>
    %c0_152 = arith.constant 0 : index
    %c0_153 = arith.constant 0 : index
    %141 = vector.load %arg16[%c0_152, %c0_153] : memref<1x30xf32, #tpu.memory_space<vmem>>, vector<1x30xf32>
    %142 = vector.broadcast %141 : vector<1x30xf32> to vector<8x30xf32>
    %143 = arith.addf %140, %142 : vector<8x30xf32>
    %cst_154 = arith.constant 0.000000e+00 : f32
    %144 = vector.broadcast %cst_154 : f32 to vector<8x30xf32>
    %145 = arith.maximumf %143, %144 : vector<8x30xf32>
    %c0_155 = arith.constant 0 : index
    %c0_156 = arith.constant 0 : index
    %146 = vector.load %arg17[%c0_155, %c0_156] : memref<30x10xf32, #tpu.memory_space<vmem>>, vector<30x10xf32>
    %cst_157 = arith.constant dense<0.000000e+00> : vector<8x10xf32>
    %147 = tpu.matmul %145, %146, %cst_157 {dimension_numbers = #tpu.dot_dimension_numbers<[1], [0], [0], [1], [0, 0, 1, 1], [], []>} : vector<8x30xf32>, vector<30x10xf32>, vector<8x10xf32> -> vector<8x10xf32>
    %c0_158 = arith.constant 0 : index
    %c0_159 = arith.constant 0 : index
    %148 = vector.load %arg18[%c0_158, %c0_159] : memref<1x10xf32, #tpu.memory_space<vmem>>, vector<1x10xf32>
    %149 = vector.broadcast %148 : vector<1x10xf32> to vector<8x10xf32>
    %150 = arith.addf %147, %149 : vector<8x10xf32>
    %cst_160 = arith.constant dense<0xFF800000> : vector<8xf32>
    %151 = vector.multi_reduction <maximumf>, %150, %cst_160 [1] : vector<8x10xf32> to vector<8xf32>
    %152 = vector.shape_cast %151 : vector<8xf32> to vector<8x1xf32>
    %153 = vector.broadcast %152 : vector<8x1xf32> to vector<8x10xf32>
    %154 = arith.subf %150, %153 : vector<8x10xf32>
    %155 = math.exp %154 : vector<8x10xf32>
    %cst_161 = arith.constant dense<0.000000e+00> : vector<8xf32>
    %156 = vector.multi_reduction <add>, %155, %cst_161 [1] : vector<8x10xf32> to vector<8xf32>
    %157 = vector.shape_cast %156 : vector<8xf32> to vector<8x1xf32>
    %158 = math.log %157 : vector<8x1xf32>
    %159 = vector.broadcast %158 : vector<8x1xf32> to vector<8x10xf32>
    %160 = arith.subf %154, %159 : vector<8x10xf32>
    %c0_162 = arith.constant 0 : index
    %c0_163 = arith.constant 0 : index
    %161 = vector.load %arg19[%c0_162, %c0_163] : memref<8x10xf32, #tpu.memory_space<vmem>>, vector<8x10xf32>
    tpu.vector_store %arg19[%c0_162, %c0_163], %160 {strides = array<i32>} : memref<8x10xf32, #tpu.memory_space<vmem>>, vector<8x10xf32>,
    return
  }
  func.func @transform_0(%arg0: i32) -> (i32, i32) {
    %c0_i32 = arith.constant 0 : i32
    %c0_i32_0 = arith.constant 0 : i32
    return %arg0, %c0_i32 : i32, i32
  }
  func.func @transform_1(%arg0: i32) -> (i32, i32, i32) {
    %c0_i32 = arith.constant 0 : i32
    %c0_i32_0 = arith.constant 0 : i32
    %c0_i32_1 = arith.constant 0 : i32
    %c0_i32_2 = arith.constant 0 : i32
    return %c0_i32, %c0_i32_0, %c0_i32_1 : i32, i32, i32
  }
  func.func @transform_2(%arg0: i32) -> (i32, i32, i32) {
    %c0_i32 = arith.constant 0 : i32
    %c0_i32_0 = arith.constant 0 : i32
    %c0_i32_1 = arith.constant 0 : i32
    %c0_i32_2 = arith.constant 0 : i32
    return %c0_i32, %c0_i32_0, %c0_i32_1 : i32, i32, i32
  }
  func.func @transform_3(%arg0: i32) -> (i32, i32) {
    %c0_i32 = arith.constant 0 : i32
    %c0_i32_0 = arith.constant 0 : i32
    %c0_i32_1 = arith.constant 0 : i32
    return %c0_i32, %c0_i32_0 : i32, i32
  }
  func.func @transform_4(%arg0: i32) -> (i32, i32, i32) {
    %c0_i32 = arith.constant 0 : i32
    %c0_i32_0 = arith.constant 0 : i32
    %c0_i32_1 = arith.constant 0 : i32
    %c0_i32_2 = arith.constant 0 : i32
    return %c0_i32, %c0_i32_0, %c0_i32_1 : i32, i32, i32
  }
  func.func @transform_5(%arg0: i32) -> (i32, i32, i32) {
    %c0_i32 = arith.constant 0 : i32
    %c0_i32_0 = arith.constant 0 : i32
    %c0_i32_1 = arith.constant 0 : i32
    %c0_i32_2 = arith.constant 0 : i32
    return %c0_i32, %c0_i32_0, %c0_i32_1 : i32, i32, i32
  }
  func.func @transform_6(%arg0: i32) -> (i32, i32, i32) {
    %c0_i32 = arith.constant 0 : i32
    %c0_i32_0 = arith.constant 0 : i32
    %c0_i32_1 = arith.constant 0 : i32
    %c0_i32_2 = arith.constant 0 : i32
    return %c0_i32, %c0_i32_0, %c0_i32_1 : i32, i32, i32
  }
  func.func @transform_7(%arg0: i32) -> (i32, i32, i32) {
    %c0_i32 = arith.constant 0 : i32
    %c0_i32_0 = arith.constant 0 : i32
    %c0_i32_1 = arith.constant 0 : i32
    %c0_i32_2 = arith.constant 0 : i32
    return %c0_i32, %c0_i32_0, %c0_i32_1 : i32, i32, i32
  }
  func.func @transform_8(%arg0: i32) -> (i32, i32) {
    %c0_i32 = arith.constant 0 : i32
    %c0_i32_0 = arith.constant 0 : i32
    %c0_i32_1 = arith.constant 0 : i32
    return %c0_i32, %c0_i32_0 : i32, i32
  }
  func.func @transform_9(%arg0: i32) -> (i32, i32, i32) {
    %c0_i32 = arith.constant 0 : i32
    %c0_i32_0 = arith.constant 0 : i32
    %c0_i32_1 = arith.constant 0 : i32
    %c0_i32_2 = arith.constant 0 : i32
    return %c0_i32, %c0_i32_0, %c0_i32_1 : i32, i32, i32
  }
  func.func @transform_10(%arg0: i32) -> (i32, i32, i32) {
    %c0_i32 = arith.constant 0 : i32
    %c0_i32_0 = arith.constant 0 : i32
    %c0_i32_1 = arith.constant 0 : i32
    %c0_i32_2 = arith.constant 0 : i32
    return %c0_i32, %c0_i32_0, %c0_i32_1 : i32, i32, i32
  }
  func.func @transform_11(%arg0: i32) -> (i32, i32, i32) {
    %c0_i32 = arith.constant 0 : i32
    %c0_i32_0 = arith.constant 0 : i32
    %c0_i32_1 = arith.constant 0 : i32
    %c0_i32_2 = arith.constant 0 : i32
    return %c0_i32, %c0_i32_0, %c0_i32_1 : i32, i32, i32
  }
  func.func @transform_12(%arg0: i32) -> (i32, i32, i32) {
    %c0_i32 = arith.constant 0 : i32
    %c0_i32_0 = arith.constant 0 : i32
    %c0_i32_1 = arith.constant 0 : i32
    %c0_i32_2 = arith.constant 0 : i32
    return %c0_i32, %c0_i32_0, %c0_i32_1 : i32, i32, i32
  }
  func.func @transform_13(%arg0: i32) -> (i32, i32) {
    %c0_i32 = arith.constant 0 : i32
    %c0_i32_0 = arith.constant 0 : i32
    %c0_i32_1 = arith.constant 0 : i32
    return %c0_i32, %c0_i32_0 : i32, i32
  }
  func.func @transform_14(%arg0: i32) -> (i32, i32) {
    %c0_i32 = arith.constant 0 : i32
    %c0_i32_0 = arith.constant 0 : i32
    %c0_i32_1 = arith.constant 0 : i32
    return %c0_i32, %c0_i32_0 : i32, i32
  }
  func.func @transform_15(%arg0: i32) -> (i32, i32) {
    %c0_i32 = arith.constant 0 : i32
    %c0_i32_0 = arith.constant 0 : i32
    %c0_i32_1 = arith.constant 0 : i32
    return %c0_i32, %c0_i32_0 : i32, i32
  }
  func.func @transform_16(%arg0: i32) -> (i32, i32) {
    %c0_i32 = arith.constant 0 : i32
    %c0_i32_0 = arith.constant 0 : i32
    %c0_i32_1 = arith.constant 0 : i32
    return %c0_i32, %c0_i32_0 : i32, i32
  }
  func.func @transform_17(%arg0: i32) -> (i32, i32) {
    %c0_i32 = arith.constant 0 : i32
    %c0_i32_0 = arith.constant 0 : i32
    %c0_i32_1 = arith.constant 0 : i32
    return %c0_i32, %c0_i32_0 : i32, i32
  }
  func.func @transform_18(%arg0: i32) -> (i32, i32) {
    %c0_i32 = arith.constant 0 : i32
    %c0_i32_0 = arith.constant 0 : i32
    return %arg0, %c0_i32 : i32, i32
  }
}

</mosaic_0001>

<bundles_post_ra>
// kernel: forward.1
= control target key start
LH: loop header
LB: loop body
LE: loop exit
PB: predicated region body
PF: predicated region fallthrough
CT: control target
= control target key end

     0   :  { %s11118_s0 = inlined_call_operand.vmem [shape: f32[224,28], index: 0, kind: input, shape index: {}]   ;;  %s11119_s1 = inlined_call_operand.vmem [shape: f32[5,192,224], index: 1, kind: input, shape index: {}]   ;;  %s11120_s2 = inlined_call_operand.hbm [shape: f32[5,28,240], index: 2, kind: input, shape index: {}]   ;;  %s11121_s3 = inlined_call_operand.vmem [shape: f32[1,240], index: 3, kind: input, shape index: {}]   ;;  %s11122_s4 = inlined_call_operand.vmem [shape: f32[2,96,192], index: 4, kind: input, shape index: {}]   ;;  %s11123_s5 = inlined_call_operand.hbm [shape: f32[2,240,120], index: 5, kind: input, shape index: {}]   ;;  %s11124_s6 = inlined_call_operand.hbm [shape: f32[5,64,96], index: 6, kind: input, shape index: {}]   ;;  %s11125_s7 = inlined_call_operand.vmem [shape: f32[5,120,160], index: 7, kind: input, shape index: {}]   ;;  %s11126_s8 = inlined_call_operand.vmem [shape: f32[1,160], index: 8, kind: input, shape index: {}]   ;;  %s11127_s9 = inlined_call_operand.hbm [shape: f32[2,32,64], index: 9, kind: input, shape index: {}]   ;;  %s11128_s10 = inlined_call_operand.hbm [shape: f32[2,160,80], index: 10, kind: input, shape index: {}]   ;;  %s11129_s11 = inlined_call_operand.vmem [shape: f32[4,8,32], index: 11, kind: input, shape index: {}]   ;;  %s11130_s12 = inlined_call_operand.hbm [shape: f32[4,80,100], index: 12, kind: input, shape index: {}]   ;;  %s11131_s13 = inlined_call_operand.vmem [shape: f32[1,100], index: 13, kind: input, shape index: {}]   ;;  %s11132_s14 = inlined_call_operand.vmem [shape: f32[100,30], index: 14, kind: input, shape index: {}]   ;;  %s11133_s15 = inlined_call_operand.vmem [shape: f32[1,30], index: 15, kind: input, shape index: {}]   ;;  %s11134_s16 = inlined_call_operand.vmem [shape: f32[30,10], index: 16, kind: input, shape index: {}]   ;;  %s11135_s17 = inlined_call_operand.vmem [shape: f32[1,10], index: 17, kind: input, shape index: {}]   ;;  %s11136_s18 = inlined_call_operand.vmem [shape: f32[8,10], index: 18, kind: output, shape index: {}]  }
   0x1   :  { %11139 = sst [smem:[#allocation116_spill]] %s11118_s0 }
   0x2   :  { %11140 = sst [smem:[#allocation117_spill]] %s11119_s1 }
   0x3   :  { %11141 = sst [smem:[#allocation118_spill]] %s11120_s2 }
   0x4   :  { %23 = vsyncpa [#allocation3], 0 }
   0x5   :  { %24 = vsyncpa [#allocation5], 0 }
   0x6   :  { %25 = vsyncpa [#allocation8], 0  ;;  %s52_s29 = sshll.u32 %s11123_s5, 4  ;;  %s53_s29 = int_to_ptr.hbm [resolvable:$true] %s52_s29 }
   0x7   :  { %26 = vsyncpa [#allocation11], 0  ;;  %s7091_s30 = smov [#allocation4]   ;;  %s82_s20 = sshll.u32 %s11127_s9, 4  ;;  %s83_s20 = int_to_ptr.hbm [resolvable:$true] %s82_s20 }
   0x8   :  { %s54_s0 = sshll.u32 %s7091_s30, 4  ;;  %s7092_s21 = smov 128   ;;  %s55_s0 = int_to_ptr.vmem [resolvable:$true] %s54_s0 }
   0x9   :  { %s7093_s22 = smov 8   ;;  %s7094_s2 = smov [#allocation7]  }
   0xa   :  { %60 = dma.hbm_to_vmem [thread:$0]  %s53_s29, 7680, %s55_s0, [#allocation5], %s7092_s21, %s7092_s21, %s7093_s22  }
   0xb   :  { %s84_s23 = sshll.u32 %s7094_s2, 4  ;;  %s11142_s25 = sld [smem:[#allocation118_spill]]  ;;  %s85_s23 = int_to_ptr.vmem [resolvable:$true] %s84_s23 }
   0xc   :  { %90 = dma.hbm_to_vmem [thread:$0]  %s83_s20, 1024, %s85_s23, [#allocation8], %s7092_s21, %s7092_s21, %s7093_s22  }
   0xd   :  { %s7095_s9 = smov [#allocation2]   ;;  %s65_s29 = sshll.u32 %s11124_s6, 4  ;;  %s66_s29 = int_to_ptr.hbm [resolvable:$true] %s65_s29 }
   0xe   :  { %s37_s27 = sshll.u32 %s7095_s9, 4  ;;  %s7096_s0 = smov 256   ;;  %s38_s27 = int_to_ptr.vmem [resolvable:$true] %s37_s27 }
   0xf   :  { %s7097_s19 = smov 16   ;;  %s7098_s1 = smov [#allocation6]  }
  0x10   :  { %s67_s2 = sshll.u32 %s7098_s1, 4  ;;  %s110_s6 = sshll.u32 %s11130_s12, 4  ;;  %s68_s2 = int_to_ptr.vmem [resolvable:$true] %s67_s2  ;;  %s111_s6 = int_to_ptr.hbm [resolvable:$true] %s110_s6 }
  0x11   :  { %s35_s26 = sshll.u32 %s11142_s25, 4  ;;  %s95_s25 = sshll.u32 %s11128_s10, 4  ;;  %s36_s26 = int_to_ptr.hbm [resolvable:$true] %s35_s26  ;;  %s96_s25 = int_to_ptr.hbm [resolvable:$true] %s95_s25 }
  0x12   :  { %43 = dma.hbm_to_vmem [thread:$0]  %s36_s26, 5120, %s38_s27, [#allocation3], %s7096_s0, %s7096_s0, %s7097_s19  }
  0x13   :  { %73 = dma.hbm_to_vmem [thread:$0]  %s66_s29, 5120, %s68_s2, [#allocation5], %s7092_s21, %s7092_s21, %s7093_s22  }
  0x14   :  { %s7099_s9 = smov [#allocation9]   ;;  %s7100_s26 = smov [#allocation10]  }
  0x15   :  { %s97_s28 = sshll.u32 %s7099_s9, 4  ;;  %s112_s10 = sshll.u32 %s7100_s26, 4  ;;  %s98_s28 = int_to_ptr.vmem [resolvable:$true] %s97_s28  ;;  %s113_s10 = int_to_ptr.vmem [resolvable:$true] %s112_s10 }
  0x16   :  { %103 = dma.hbm_to_vmem [thread:$0]  %s96_s25, 5120, %s98_s28, [#allocation8], %s7092_s21, %s7092_s21, %s7093_s22  }
  0x17   :  { %118 = dma.hbm_to_vmem [thread:$0]  %s111_s6, 5120, %s113_s10, [#allocation11], %s7092_s21, %s7092_s21, %s7093_s22  }
  0x18   :  { %7083 = dma.done.wait [#allocation3], 5120  }
  0x19   :  { %7084 = vsyncadd [#allocation3], 4294962176 }
  0x1a   :  { %7085 = dma.done.wait [#allocation5], 12800  }
  0x1b   :  { %7086 = vsyncadd [#allocation5], 4294954496 }
  0x1c   :  { %7087 = dma.done.wait [#allocation8], 6144  }
  0x1d   :  { %7088 = vsyncadd [#allocation8], 4294961152 }
  0x1e   :  { %7089 = dma.done.wait [#allocation11], 5120  }
  0x1f   :  { %7090 = vsyncadd [#allocation11], 4294962176  ;;  %s11143_s30 = sld [smem:[#allocation116_spill]]  ;;  %vm229_vm0 = vcmask 785408   ;;  %vm869_vm1 = vcmask 1043456   ;;  %vm796_vm2 = vcmask 228352  }
  0x20   :  { %s11144_s20 = sld [smem:[#allocation117_spill]]  ;;  %vm3224_vm3 = vcmask 523264   ;;  %vm3800_vm4 = vcmask 916480   ;;  %vm4312_vm5 = vcmask 982016   ;;  %vm5405_vm6 = vcmask 261120  }
  0x21   :  { %vm5574_vm7 = vcmask 654336   ;;  %vm5899_vm8 = vcmask 1045504   ;;  %vm5859_vm9 = vcmask 818176   ;;  %vm5895_vm10 = vcmask 244736  }
  0x22   :  { %vm5923_vm11 = vcmask 80896  }
  0x25   :  { %v7232_v0 = vld [vmem:[%s11143_s30 + $0x78] sm:$0xff]  ;;  %v7242_v2 = vld [vmem:[%s11143_s30 + $0x70] sm:$0xff]  ;;  %v7256_v4 = vld [vmem:[%s11143_s30 + $0x68] sm:$0xff] }
  0x26   :  { %v7237_v1 = vld [vmem:[%s11143_s30 + $0xd8] sm:$0xff]  ;;  %302 = vmatpush.msra.mxu0 %v7232_v0  ;;  %v7249_v3 = vld [vmem:[%s11143_s30 + $0xd0] sm:$0xff]  ;;  %609 = vmatpush.msra.mxu2 %v7232_v0  ;;  %v7261_v5 = vld [vmem:[%s11143_s30 + $0xc8] sm:$0xff] }
  0x27   :  { %395 = vmatpush.msra.mxu1 %v7237_v1  ;;  %702 = vmatpush.msra.mxu3 %v7237_v1  ;;  %v7270_v6 = vld [vmem:[%s11143_s30 + $0x60] sm:$0xff]  ;;  %v7284_v8 = vld [vmem:[%s11143_s30 + $0x58] sm:$0xff]  ;;  %v7298_v10 = vld [vmem:[%s11143_s30 + $0x50] sm:$0xff] }
  0x28   :  { %303 = vmatpush.msra.mxu0 %v7242_v2  ;;  %610 = vmatpush.msra.mxu2 %v7242_v2  ;;  %v7275_v7 = vld [vmem:[%s11143_s30 + $0xc0] sm:$0xff]  ;;  %v7289_v9 = vld [vmem:[%s11143_s30 + $0xb8] sm:$0xff]  ;;  %v7303_v11 = vld [vmem:[%s11143_s30 + $0xb0] sm:$0xff] }
  0x29   :  { %396 = vmatpush.msra.mxu1 %v7249_v3  ;;  %703 = vmatpush.msra.mxu3 %v7249_v3  ;;  %v7312_v12 = vld [vmem:[%s11143_s30 + $0x48] sm:$0xff]  ;;  %v7326_v14 = vld [vmem:[%s11143_s30 + $0x40] sm:$0xff]  ;;  %v7340_v16 = vld [vmem:[%s11143_s30 + $0x38] sm:$0xff] }
  0x2a   :  { %304 = vmatpush.msra.mxu0 %v7256_v4  ;;  %611 = vmatpush.msra.mxu2 %v7256_v4  ;;  %v7317_v13 = vld [vmem:[%s11143_s30 + $0xa8] sm:$0xff]  ;;  %v7331_v15 = vld [vmem:[%s11143_s30 + $0xa0] sm:$0xff]  ;;  %v7345_v17 = vld [vmem:[%s11143_s30 + $0x98] sm:$0xff] }
  0x2b   :  { %397 = vmatpush.msra.mxu1 %v7261_v5  ;;  %704 = vmatpush.msra.mxu3 %v7261_v5  ;;  %v7354_v18 = vld [vmem:[%s11143_s30 + $0x30] sm:$0xff]  ;;  %v7368_v20 = vld [vmem:[%s11143_s30 + $0x28] sm:$0xff]  ;;  %v7382_v22 = vld [vmem:[%s11143_s30 + $0x20] sm:$0xff] }
  0x2c   :  { %305 = vmatpush.msra.mxu0 %v7270_v6  ;;  %612 = vmatpush.msra.mxu2 %v7270_v6  ;;  %v7359_v19 = vld [vmem:[%s11143_s30 + $0x90] sm:$0xff]  ;;  %v7373_v21 = vld [vmem:[%s11143_s30 + $0x88] sm:$0xff]  ;;  %v7387_v23 = vld [vmem:[%s11143_s30 + $0x80] sm:$0xff] }
  0x2d   :  { %398 = vmatpush.msra.mxu1 %v7275_v7  ;;  %705 = vmatpush.msra.mxu3 %v7275_v7  ;;  %v182_v24 = vld [vmem:[%s11144_s20 + $0x8] sm:$0xff]  ;;  %v7404_v26 = vld [vmem:[%s11143_s30 + $0x18] sm:$0xff]  ;;  %v7413_v27 = vld [vmem:[%s11143_s30 + $0x10] sm:$0xff] }
  0x2e   :  { %306 = vmatpush.msra.mxu0 %v7284_v8  ;;  %613 = vmatpush.msra.mxu2 %v7284_v8  ;;  %v5970_v25 = vld [vmem:[%s11144_s20 + $0x188] sm:$0xff]  ;;  %v7427_v29 = vld [vmem:[%s11143_s30] sm:$0xff]  ;;  %v184_v31 = vld [vmem:[%s11144_s20 + $0x18] sm:$0xff] }
  0x2f   :  { %399 = vmatpush.msra.mxu1 %v7289_v9  ;;  %706 = vmatpush.msra.mxu3 %v7289_v9  ;;  %v7420_v28 = vld [vmem:[%s11143_s30 + $0x8] sm:$0xff]  ;;  %v181_v30 = vld [vmem:[%s11144_s20] sm:$0xff]  ;;  %v5972_v33 = vld [vmem:[%s11144_s20 + $0x198] sm:$0xff] }
  0x30   :  { %307 = vmatpush.msra.mxu0 %v7298_v10  ;;  %614 = vmatpush.msra.mxu2 %v7298_v10  ;;  %v5969_v32 = vld [vmem:[%s11144_s20 + $0x180] sm:$0xff]  ;;  %v183_v34 = vld [vmem:[%s11144_s20 + $0x10] sm:$0xff]  ;;  %v186_v35 = vld [vmem:[%s11144_s20 + $0x28] sm:$0xff] }
  0x31   :  { %400 = vmatpush.msra.mxu1 %v7303_v11  ;;  %707 = vmatpush.msra.mxu3 %v7303_v11  ;;  %v5971_v36 = vld [vmem:[%s11144_s20 + $0x190] sm:$0xff]  ;;  %v5974_v37 = vld [vmem:[%s11144_s20 + $0x1a8] sm:$0xff]  ;;  %v185_v38 = vld [vmem:[%s11144_s20 + $0x20] sm:$0xff] }
  0x32   :  { %308 = vmatpush.msra.mxu0 %v7312_v12  ;;  %615 = vmatpush.msra.mxu2 %v7312_v12  ;;  %v188_v39 = vld [vmem:[%s11144_s20 + $0x38] sm:$0xff]  ;;  %v5973_v40 = vld [vmem:[%s11144_s20 + $0x1a0] sm:$0xff]  ;;  %v187_v42 = vld [vmem:[%s11144_s20 + $0x30] sm:$0xff] }
  0x33   :  { %401 = vmatpush.msra.mxu1 %v7317_v13  ;;  %708 = vmatpush.msra.mxu3 %v7317_v13  ;;  %v5976_v41 = vld [vmem:[%s11144_s20 + $0x1b8] sm:$0xff]  ;;  %v190_v43 = vld [vmem:[%s11144_s20 + $0x48] sm:$0xff]  ;;  %v5975_v44 = vld [vmem:[%s11144_s20 + $0x1b0] sm:$0xff] }
  0x34   :  { %309 = vmatpush.msra.mxu0 %v7326_v14  ;;  %616 = vmatpush.msra.mxu2 %v7326_v14  ;;  %v5978_v45 = vld [vmem:[%s11144_s20 + $0x1c8] sm:$0xff]  ;;  %v189_v46 = vld [vmem:[%s11144_s20 + $0x40] sm:$0xff]  ;;  %v192_v47 = vld [vmem:[%s11144_s20 + $0x58] sm:$0xff] }
  0x35   :  { %402 = vmatpush.msra.mxu1 %v7331_v15  ;;  %709 = vmatpush.msra.mxu3 %v7331_v15  ;;  %v5977_v48 = vld [vmem:[%s11144_s20 + $0x1c0] sm:$0xff]  ;;  %v5980_v49 = vld [vmem:[%s11144_s20 + $0x1d8] sm:$0xff]  ;;  %v191_v50 = vld [vmem:[%s11144_s20 + $0x50] sm:$0xff] }
  0x36   :  { %310 = vmatpush.msra.mxu0 %v7340_v16  ;;  %617 = vmatpush.msra.mxu2 %v7340_v16  ;;  %v194_v51 = vld [vmem:[%s11144_s20 + $0x68] sm:$0xff]  ;;  %v5979_v52 = vld [vmem:[%s11144_s20 + $0x1d0] sm:$0xff]  ;;  %v193_v54 = vld [vmem:[%s11144_s20 + $0x60] sm:$0xff] }
  0x37   :  { %403 = vmatpush.msra.mxu1 %v7345_v17  ;;  %710 = vmatpush.msra.mxu3 %v7345_v17  ;;  %v5982_v53 = vld [vmem:[%s11144_s20 + $0x1e8] sm:$0xff]  ;;  %v196_v55 = vld [vmem:[%s11144_s20 + $0x78] sm:$0xff]  ;;  %v5981_v56 = vld [vmem:[%s11144_s20 + $0x1e0] sm:$0xff] }
  0x38   :  { %311 = vmatpush.msra.mxu0 %v7354_v18  ;;  %618 = vmatpush.msra.mxu2 %v7354_v18  ;;  %v5984_v57 = vld [vmem:[%s11144_s20 + $0x1f8] sm:$0xff]  ;;  %v195_v58 = vld [vmem:[%s11144_s20 + $0x70] sm:$0xff]  ;;  %v198_v59 = vld [vmem:[%s11144_s20 + $0x88] sm:$0xff] }
  0x39   :  { %404 = vmatpush.msra.mxu1 %v7359_v19  ;;  %711 = vmatpush.msra.mxu3 %v7359_v19  ;;  %v5983_v60 = vld [vmem:[%s11144_s20 + $0x1f0] sm:$0xff]  ;;  %v5986_v61 = vld [vmem:[%s11144_s20 + $0x208] sm:$0xff]  ;;  %v197_v62 = vld [vmem:[%s11144_s20 + $0x80] sm:$0xff] }
  0x3a   :  { %312 = vmatpush.msra.mxu0 %v7368_v20  ;;  %619 = vmatpush.msra.mxu2 %v7368_v20  ;;  %v200_v63 = vld [vmem:[%s11144_s20 + $0x98] sm:$0xff] }
  0x3b   :  { %405 = vmatpush.msra.mxu1 %v7373_v21  ;;  %712 = vmatpush.msra.mxu3 %v7373_v21 }
  0x3c   :  { %313 = vmatpush.msra.mxu0 %v7382_v22  ;;  %620 = vmatpush.msra.mxu2 %v7382_v22 }
  0x3d   :  { %406 = vmatpush.msra.mxu1 %v7387_v23  ;;  %713 = vmatpush.msra.mxu3 %v7387_v23 }
  0x3e   :  { %5945 = vmatmul.msk.f32.vlgmr.msra.gmra.mxu1 %vm229_vm0, %v182_v24  ;;  %6017 = vmatmul.msk.f32.vlgmr.msra.gmra.mxu3 %vm229_vm0, %v5970_v25  ;;  %v5985_v24 = vld [vmem:[%s11144_s20 + $0x200] sm:$0xff]  ;;  %v5988_v25 = vld [vmem:[%s11144_s20 + $0x218] sm:$0xff] }
  0x3f   :  { %314 = vmatpush.msra.mxu0 %v7404_v26  ;;  %621 = vmatpush.msra.mxu2 %v7404_v26 }
  0x41   :  { %315 = vmatpush.msra.mxu0 %v7413_v27  ;;  %622 = vmatpush.msra.mxu2 %v7413_v27 }
  0x43   :  { %316 = vmatpush.msra.mxu0 %v7420_v28  ;;  %623 = vmatpush.msra.mxu2 %v7420_v28 }
  0x45   :  { %317 = vmatpush.msra.mxu0 %v7427_v29  ;;  %624 = vmatpush.msra.mxu2 %v7427_v29 }
  0x46   :  { %318 = vmatmul.f32.vlgmr.msra.gmra.mxu0 %v181_v30  ;;  %5946 = vmatmul.msk.f32.gmra.mxu1 %vm229_vm0, %v184_v31  ;;  %v199_v30 = vld [vmem:[%s11144_s20 + $0x90] sm:$0xff]  ;;  %v202_v31 = vld [vmem:[%s11144_s20 + $0xa8] sm:$0xff] }
  0x47   :  { %625 = vmatmul.f32.vlgmr.msra.gmra.mxu2 %v5969_v32  ;;  %6018 = vmatmul.msk.f32.gmra.mxu3 %vm229_vm0, %v5972_v33  ;;  %v5987_v32 = vld [vmem:[%s11144_s20 + $0x210] sm:$0xff]  ;;  %v5990_v33 = vld [vmem:[%s11144_s20 + $0x228] sm:$0xff] }
  0x4e   :  { %321 = vmatmul.f32.gmra.mxu0 %v183_v34  ;;  %5947 = vmatmul.msk.f32.gmra.mxu1 %vm229_vm0, %v186_v35  ;;  %v201_v34 = vld [vmem:[%s11144_s20 + $0xa0] sm:$0xff]  ;;  %v204_v35 = vld [vmem:[%s11144_s20 + $0xb8] sm:$0xff] }
  0x4f   :  { %628 = vmatmul.f32.gmra.mxu2 %v5971_v36  ;;  %6019 = vmatmul.msk.f32.gmra.mxu3 %vm229_vm0, %v5974_v37  ;;  %v5989_v36 = vld [vmem:[%s11144_s20 + $0x220] sm:$0xff]  ;;  %v5992_v37 = vld [vmem:[%s11144_s20 + $0x238] sm:$0xff] }
  0x56   :  { %324 = vmatmul.f32.gmra.mxu0 %v185_v38  ;;  %5948 = vmatmul.msk.f32.gmra.mxu1 %vm229_vm0, %v188_v39  ;;  %v203_v38 = vld [vmem:[%s11144_s20 + $0xb0] sm:$0xff]  ;;  %v206_v39 = vld [vmem:[%s11144_s20 + $0xc8] sm:$0xff] }
  0x57   :  { %631 = vmatmul.f32.gmra.mxu2 %v5973_v40  ;;  %6020 = vmatmul.msk.f32.gmra.mxu3 %vm229_vm0, %v5976_v41  ;;  %v5991_v40 = vld [vmem:[%s11144_s20 + $0x230] sm:$0xff]  ;;  %v5994_v41 = vld [vmem:[%s11144_s20 + $0x248] sm:$0xff] }
  0x5e   :  { %327 = vmatmul.f32.gmra.mxu0 %v187_v42  ;;  %5949 = vmatmul.msk.f32.gmra.mxu1 %vm229_vm0, %v190_v43  ;;  %v205_v42 = vld [vmem:[%s11144_s20 + $0xc0] sm:$0xff]  ;;  %v208_v43 = vld [vmem:[%s11144_s20 + $0xd8] sm:$0xff] }
  0x5f   :  { %634 = vmatmul.f32.gmra.mxu2 %v5975_v44  ;;  %6021 = vmatmul.msk.f32.gmra.mxu3 %vm229_vm0, %v5978_v45  ;;  %v5993_v44 = vld [vmem:[%s11144_s20 + $0x240] sm:$0xff]  ;;  %v5996_v45 = vld [vmem:[%s11144_s20 + $0x258] sm:$0xff] }
  0x66   :  { %330 = vmatmul.f32.gmra.mxu0 %v189_v46  ;;  %5950 = vmatmul.msk.f32.gmra.mxu1 %vm229_vm0, %v192_v47  ;;  %v207_v46 = vld [vmem:[%s11144_s20 + $0xd0] sm:$0xff]  ;;  %v210_v47 = vld [vmem:[%s11144_s20 + $0xe8] sm:$0xff] }
  0x67   :  { %637 = vmatmul.f32.gmra.mxu2 %v5977_v48  ;;  %6022 = vmatmul.msk.f32.gmra.mxu3 %vm229_vm0, %v5980_v49  ;;  %v5995_v48 = vld [vmem:[%s11144_s20 + $0x250] sm:$0xff]  ;;  %v5998_v49 = vld [vmem:[%s11144_s20 + $0x268] sm:$0xff] }
  0x6e   :  { %333 = vmatmul.f32.gmra.mxu0 %v191_v50  ;;  %5951 = vmatmul.msk.f32.gmra.mxu1 %vm229_vm0, %v194_v51  ;;  %v209_v50 = vld [vmem:[%s11144_s20 + $0xe0] sm:$0xff]  ;;  %v212_v51 = vld [vmem:[%s11144_s20 + $0xf8] sm:$0xff] }
  0x6f   :  { %640 = vmatmul.f32.gmra.mxu2 %v5979_v52  ;;  %6023 = vmatmul.msk.f32.gmra.mxu3 %vm229_vm0, %v5982_v53  ;;  %v5997_v52 = vld [vmem:[%s11144_s20 + $0x260] sm:$0xff]  ;;  %v6000_v53 = vld [vmem:[%s11144_s20 + $0x278] sm:$0xff] }
  0x76   :  { %336 = vmatmul.f32.gmra.mxu0 %v193_v54  ;;  %5952 = vmatmul.msk.f32.gmra.mxu1 %vm229_vm0, %v196_v55  ;;  %v211_v55 = vld [vmem:[%s11144_s20 + $0xf0] sm:$0xff] }
  0x77   :  { %643 = vmatmul.f32.gmra.mxu2 %v5981_v56  ;;  %6024 = vmatmul.msk.f32.gmra.mxu3 %vm229_vm0, %v5984_v57  ;;  %v214_v56 = vld [vmem:[%s11144_s20 + $0x108] sm:$0xff]  ;;  %v5999_v57 = vld [vmem:[%s11144_s20 + $0x270] sm:$0xff] }
  0x7e   :  { %339 = vmatmul.f32.gmra.mxu0 %v195_v58  ;;  %5953 = vmatmul.msk.f32.gmra.mxu1 %vm229_vm0, %v198_v59  ;;  %v6002_v58 = vld [vmem:[%s11144_s20 + $0x288] sm:$0xff] }
  0x7f   :  { %646 = vmatmul.f32.gmra.mxu2 %v5983_v60  ;;  %6025 = vmatmul.msk.f32.gmra.mxu3 %vm229_vm0, %v5986_v61  ;;  %v213_v61 = vld [vmem:[%s11144_s20 + $0x100] sm:$0xff] }
  0x86   :  { %342 = vmatmul.f32.gmra.mxu0 %v197_v62  ;;  %5954 = vmatmul.msk.f32.gmra.mxu1 %vm229_vm0, %v200_v63  ;;  %v216_v62 = vld [vmem:[%s11144_s20 + $0x118] sm:$0xff]  ;;  %v6001_v63 = vld [vmem:[%s11144_s20 + $0x280] sm:$0xff] }
  0x87   :  { %649 = vmatmul.f32.gmra.mxu2 %v5985_v24  ;;  %6026 = vmatmul.msk.f32.gmra.mxu3 %vm229_vm0, %v5988_v25  ;;  %v6004_v24 = vld [vmem:[%s11144_s20 + $0x298] sm:$0xff] }
  0x8e   :  { %345 = vmatmul.f32.gmra.mxu0 %v199_v30  ;;  %5955 = vmatmul.msk.f32.gmra.mxu1 %vm229_vm0, %v202_v31 }
  0x8f   :  { %652 = vmatmul.f32.gmra.mxu2 %v5987_v32  ;;  %6027 = vmatmul.msk.f32.gmra.mxu3 %vm229_vm0, %v5990_v33  ;;  %v215_v32 = vld [vmem:[%s11144_s20 + $0x110] sm:$0xff]  ;;  %v218_v33 = vld [vmem:[%s11144_s20 + $0x128] sm:$0xff] }
  0x96   :  { %348 = vmatmul.f32.gmra.mxu0 %v201_v34  ;;  %5956 = vmatmul.msk.f32.gmra.mxu1 %vm229_vm0, %v204_v35  ;;  %v6003_v34 = vld [vmem:[%s11144_s20 + $0x290] sm:$0xff]  ;;  %v6006_v35 = vld [vmem:[%s11144_s20 + $0x2a8] sm:$0xff] }
  0x97   :  { %655 = vmatmul.f32.gmra.mxu2 %v5989_v36  ;;  %6028 = vmatmul.msk.f32.gmra.mxu3 %vm229_vm0, %v5992_v37  ;;  %v795_v36 = vld [vmem:[#allocation2 + $0x78] sm:$0xf] }
  0x98   :  { %6066 = vmatpush.msk.msrb.mxu3 %vm869_vm1, %v795_v36 }
  0x9e   :  { %351 = vmatmul.f32.gmra.mxu0 %v203_v38  ;;  %5957 = vmatmul.msk.f32.gmra.mxu1 %vm229_vm0, %v206_v39 }
  0x9f   :  { %658 = vmatmul.f32.gmra.mxu2 %v5991_v40  ;;  %6029 = vmatmul.msk.f32.gmra.mxu3 %vm229_vm0, %v5994_v41  ;;  %v217_v40 = vld [vmem:[%s11144_s20 + $0x120] sm:$0xff]  ;;  %v220_v41 = vld [vmem:[%s11144_s20 + $0x138] sm:$0xff] }
  0xa6   :  { %354 = vmatmul.f32.gmra.mxu0 %v205_v42  ;;  %5958 = vmatmul.msk.f32.gmra.mxu1 %vm229_vm0, %v208_v43  ;;  %v6005_v42 = vld [vmem:[%s11144_s20 + $0x2a0] sm:$0xff]  ;;  %v6008_v43 = vld [vmem:[%s11144_s20 + $0x2b8] sm:$0xff] }
  0xa7   :  { %661 = vmatmul.f32.gmra.mxu2 %v5993_v44  ;;  %6030 = vmatmul.msk.f32.gmra.mxu3 %vm229_vm0, %v5996_v45  ;;  %v794_v44 = vld [vmem:[#allocation2 + $0x70] sm:$0xf] }
  0xa8   :  { %6041 = vmatpush.msk.msrb.mxu1 %vm869_vm1, %v794_v44  ;;  %v6012_v44 = vld [vmem:[%s11144_s20 + $0x2d8] sm:$0xff] }
  0xae   :  { %357 = vmatmul.f32.gmra.mxu0 %v207_v46  ;;  %5959 = vmatmul.msk.f32.gmra.mxu1 %vm229_vm0, %v210_v47  ;;  %v792_v46 = vld [vmem:[#allocation2 + $0x60] sm:$0xff]  ;;  %v793_v47 = vld [vmem:[#allocation2 + $0x68] sm:$0xff] }
  0xaf   :  { %664 = vmatmul.f32.gmra.mxu2 %v5995_v48  ;;  %6031 = vmatmul.msk.f32.gmra.mxu3 %vm229_vm0, %v5998_v49  ;;  %v219_v49 = vld [vmem:[%s11144_s20 + $0x130] sm:$0xff] }
  0xb0   :  { %889 = vmatpush.msrb.mxu1 %v792_v46  ;;  %978 = vmatpush.msrb.mxu3 %v793_v47  ;;  %v480_v46 = vld [vmem:[#allocation2] sm:$0xff]  ;;  %v481_v47 = vld [vmem:[#allocation2 + $0x8] sm:$0xff] }
  0xb6   :  { %360 = vmatmul.f32.gmra.mxu0 %v209_v50  ;;  %5960 = vmatmul.msk.f32.gmra.mxu1 %vm229_vm0, %v212_v51  ;;  %v222_v51 = vld [vmem:[%s11144_s20 + $0x148] sm:$0xff] }
  0xb7   :  { %667 = vmatmul.f32.gmra.mxu2 %v5997_v52  ;;  %6032 = vmatmul.msk.f32.gmra.mxu3 %vm229_vm0, %v6000_v53  ;;  %v790_v52 = vld [vmem:[#allocation2 + $0x50] sm:$0xff]  ;;  %v791_v53 = vld [vmem:[#allocation2 + $0x58] sm:$0xff] }
  0xb8   :  { %890 = vmatpush.msrb.mxu1 %v790_v52  ;;  %979 = vmatpush.msrb.mxu3 %v791_v53 }
  0xbb   :  { %v7643_v54 = vpop.f32.mrf.mxu1 }
  0xbe   :  { %363 = vmatmul.f32.gmra.mxu0 %v211_v55  ;;  %5961 = vmatmul.msk.f32.gmra.mxu1 %vm229_vm0, %v214_v56  ;;  %v6007_v55 = vld [vmem:[%s11144_s20 + $0x2b0] sm:$0xff]  ;;  %v6010_v56 = vld [vmem:[%s11144_s20 + $0x2c8] sm:$0xff] }
  0xbf   :  { %670 = vmatmul.f32.gmra.mxu2 %v5999_v57  ;;  %6033 = vmatmul.msk.f32.gmra.mxu3 %vm229_vm0, %v6002_v58  ;;  %v788_v58 = vld [vmem:[#allocation2 + $0x40] sm:$0xff] }
  0xc0   :  { %891 = vmatpush.msrb.mxu1 %v788_v58  ;;  %v6011_v58 = vld [vmem:[%s11144_s20 + $0x2d0] sm:$0xff] }
  0xc1   :  { %v7659_v59 = vpop.f32.mrf.mxu3 }
  0xc2   :  { %1431 = vmatpush.msra.mxu1 %v7232_v0 }
  0xc3   :  { %v7661_v60 = vpop.f32.mrf.mxu1  ;;  %v7700_v38 = vpop.f32.mrf.mxu0 }
  0xc4   :  { %1432 = vmatpush.msra.mxu1 %v7242_v2 }
  0xc6   :  { %366 = vmatmul.f32.gmra.mxu0 %v213_v61  ;;  %5962 = vmatmul.msk.f32.gmra.mxu1 %vm229_vm0, %v216_v62  ;;  %v789_v61 = vld [vmem:[#allocation2 + $0x48] sm:$0xff] }
  0xc7   :  { %673 = vmatmul.f32.gmra.mxu2 %v6001_v63  ;;  %6034 = vmatmul.msk.f32.gmra.mxu3 %vm229_vm0, %v6004_v24  ;;  %v486_v63 = vld [vmem:[#allocation2 + $0x30] sm:$0xf]  ;;  %v487_v24 = vld [vmem:[#allocation2 + $0x38] sm:$0xf] }
  0xc8   :  { %980 = vmatpush.msrb.mxu3 %v789_v61  ;;  %6091 = vmatpush.msk.msrb.mxu0 %vm869_vm1, %v486_v63  ;;  %v6014_v61 = vld [vmem:[%s11144_s20 + $0x2e8] sm:$0xff] }
  0xc9   :  { %6116 = vmatpush.msk.msrb.mxu2 %vm869_vm1, %v487_v24  ;;  %1433 = vmatpush.msra.mxu1 %v7256_v4 }
  0xca   :  { %v7677_v25 = vpop.f32.mrf.mxu3  ;;  %v7679_v30 = vpop.f32.mrf.mxu2  ;;  %1524 = vmatpush.msra.mxu3 %v7237_v1 }
  0xcb   :  { %v7681_v31 = vpop.f32.mrf.mxu1  ;;  %v7737_v57 = vpop.f32.mrf.mxu0  ;;  %1434 = vmatpush.msra.mxu1 %v7270_v6 }
  0xcc   :  { %1525 = vmatpush.msra.mxu3 %v7249_v3 }
  0xcd   :  { %1435 = vmatpush.msra.mxu1 %v7284_v8 }
  0xce   :  { %369 = vmatmul.f32.gmra.mxu0 %v215_v32  ;;  %5963 = vmatmul.msk.f32.gmra.mxu1 %vm229_vm0, %v218_v33  ;;  %v484_v32 = vld [vmem:[#allocation2 + $0x20] sm:$0xff]  ;;  %v485_v33 = vld [vmem:[#allocation2 + $0x28] sm:$0xff] }
  0xcf   :  { %676 = vmatmul.f32.gmra.mxu2 %v6003_v34  ;;  %6035 = vmatmul.msk.f32.gmra.mxu3 %vm229_vm0, %v6006_v35  ;;  %v221_v35 = vld [vmem:[%s11144_s20 + $0x140] sm:$0xff] }
  0xd0   :  { %1145 = vmatpush.msrb.mxu0 %v484_v32  ;;  %1234 = vmatpush.msrb.mxu2 %v485_v33 }
  0xd1   :  { %1526 = vmatpush.msra.mxu3 %v7261_v5  ;;  %1436 = vmatpush.msra.mxu1 %v7298_v10 }
  0xd2   :  { %v7698_v37 = vpop.f32.mrf.mxu3  ;;  %v7716_v45 = vpop.f32.mrf.mxu2 }
  0xd3   :  { %v7702_v39 = vpop.f32.mrf.mxu1  ;;  %1527 = vmatpush.msra.mxu3 %v7275_v7  ;;  %1437 = vmatpush.msra.mxu1 %v7312_v12 }
  0xd5   :  { %1528 = vmatpush.msra.mxu3 %v7289_v9  ;;  %1438 = vmatpush.msra.mxu1 %v7326_v14 }
  0xd6   :  { %372 = vmatmul.f32.gmra.mxu0 %v217_v40  ;;  %5964 = vmatmul.msk.f32.gmra.mxu1 %vm229_vm0, %v220_v41  ;;  %v224_v40 = vld [vmem:[%s11144_s20 + $0x158] sm:$0xff]  ;;  %v482_v41 = vld [vmem:[#allocation2 + $0x10] sm:$0xff] }
  0xd7   :  { %679 = vmatmul.f32.gmra.mxu2 %v6005_v42  ;;  %6036 = vmatmul.msk.f32.gmra.mxu3 %vm229_vm0, %v6008_v43  ;;  %v483_v42 = vld [vmem:[#allocation2 + $0x18] sm:$0xff]  ;;  %v6009_v43 = vld [vmem:[%s11144_s20 + $0x2c0] sm:$0xff] }
  0xd8   :  { %1146 = vmatpush.msrb.mxu0 %v482_v41  ;;  %1235 = vmatpush.msrb.mxu2 %v483_v42  ;;  %v6013_v41 = vld [vmem:[%s11144_s20 + $0x2e0] sm:$0xff]  ;;  %v6016_v42 = vld [vmem:[%s11144_s20 + $0x2f8] sm:$0xff] }
  0xd9   :  { %1529 = vmatpush.msra.mxu3 %v7303_v11  ;;  %1439 = vmatpush.msra.mxu1 %v7340_v16 }
  0xda   :  { %v7721_v48 = vpop.f32.mrf.mxu3  ;;  %v7740_v62 = vpop.f32.mrf.mxu2  ;;  %1147 = vmatpush.msrb.mxu0 %v480_v46  ;;  %1236 = vmatpush.msrb.mxu2 %v481_v47  ;;  %v227_v47 = vld [vmem:[%s11144_s20 + $0x170] sm:$0xff] }
  0xdb   :  { %v7726_v50 = vpop.f32.mrf.mxu1  ;;  %1530 = vmatpush.msra.mxu3 %v7317_v13  ;;  %1440 = vmatpush.msra.mxu1 %v7354_v18 }
  0xdd   :  { %1531 = vmatpush.msra.mxu3 %v7331_v15  ;;  %1441 = vmatpush.msra.mxu1 %v7368_v20 }
  0xde   :  { %375 = vmatmul.f32.gmra.mxu0 %v219_v49  ;;  %5965 = vmatmul.msk.f32.gmra.mxu1 %vm229_vm0, %v222_v51  ;;  %v7766_v49 = vpop.f32.mrf.mxu0 }
  0xdf   :  { %682 = vmatmul.f32.gmra.mxu2 %v6007_v55  ;;  %6037 = vmatmul.msk.f32.gmra.mxu3 %vm229_vm0, %v6010_v56  ;;  %v223_v55 = vld [vmem:[%s11144_s20 + $0x150] sm:$0xff]  ;;  %v226_v56 = vld [vmem:[%s11144_s20 + $0x168] sm:$0xff] }
  0xe0   :  { %1532 = vmatpush.msra.mxu3 %v7345_v17  ;;  %1442 = vmatpush.msra.mxu1 %v7382_v22 }
  0xe2   :  { %v7745_v34 = vpop.f32.mrf.mxu3  ;;  %v7769_v51 = vpop.f32.mrf.mxu2  ;;  %1533 = vmatpush.msra.mxu3 %v7359_v19  ;;  %1443 = vmatpush.msra.mxu1 %v7404_v26 }
  0xe3   :  { %v7752_v36 = vpop.f32.mrf.mxu1 }
  0xe4   :  { %1534 = vmatpush.msra.mxu3 %v7373_v21  ;;  %1444 = vmatpush.msra.mxu1 %v7413_v27 }
  0xe6   :  { %378 = vmatmul.f32.gmra.mxu0 %v221_v35  ;;  %5966 = vmatmul.msk.f32.gmra.mxu1 %vm229_vm0, %v224_v40  ;;  %v7797_v63 = vpop.f32.mrf.mxu0  ;;  %v225_v35 = vld [vmem:[%s11144_s20 + $0x160] sm:$0xff]  ;;  %v228_v40 = vld [vmem:[%s11144_s20 + $0x178] sm:$0xff] }
  0xe7   :  { %685 = vmatmul.f32.gmra.mxu2 %v6009_v43  ;;  %6038 = vmatmul.msk.f32.gmra.mxu3 %vm229_vm0, %v6012_v44 }
  0xe8   :  { %1535 = vmatpush.msra.mxu3 %v7387_v23  ;;  %1445 = vmatpush.msra.mxu1 %v7420_v28 }
  0xea   :  { %v7773_v52 = vpop.f32.mrf.mxu3  ;;  %v7803_v32 = vpop.f32.mrf.mxu2  ;;  %1446 = vmatpush.msra.mxu1 %v7427_v29 }
  0xeb   :  { %v7775_v53 = vpop.f32.mrf.mxu1 }
  0xee   :  { %381 = vmatmul.f32.gmra.mxu0 %v223_v55  ;;  %5967 = vmatmul.msk.f32.gmra.mxu1 %vm229_vm0, %v226_v56  ;;  %v7829_v44 = vpop.f32.mrf.mxu0  ;;  %v716_v55 = vadd.f32 %v7659_v59, %v7679_v30  ;;  %v6015_v56 = vld [vmem:[%s11144_s20 + $0x2f0] sm:$0xff] }
  0xef   :  { %688 = vmatmul.f32.gmra.mxu2 %v6011_v58  ;;  %6039 = vmatmul.msk.f32.gmra.mxu3 %vm229_vm0, %v6014_v61  ;;  %v409_v61 = vadd.f32 %v7643_v54, %v7700_v38  ;;  %v412_v54 = vadd.f32 %v7661_v60, %v7737_v57  ;;  %v725_v60 = vadd.f32 %v7721_v48, %v7769_v51 }
  0xf2   :  { %v7799_v24 = vpop.f32.mrf.mxu3  ;;  %v7843_v58 = vpop.f32.mrf.mxu2 }
  0xf3   :  { %v7805_v33 = vpop.f32.mrf.mxu1 }
  0xf6   :  { %384 = vmatmul.f32.gmra.mxu0 %v225_v35  ;;  %5968 = vmatmul.msk.f32.gmra.mxu1 %vm229_vm0, %v228_v40  ;;  %v719_v35 = vadd.f32 %v7677_v25, %v7716_v45  ;;  %v7861_v40 = vpop.f32.mrf.mxu0  ;;  %v722_v25 = vadd.f32 %v7698_v37, %v7740_v62 }
  0xf7   :  { %691 = vmatmul.f32.gmra.mxu2 %v6013_v41  ;;  %6040 = vmatmul.msk.f32.gmra.mxu3 %vm229_vm0, %v6016_v42 }
  0xfa   :  { %v7825_v43 = vpop.f32.mrf.mxu3 }
  0xfb   :  { %v7831_v46 = vpop.f32.mrf.mxu1 }
  0xfe   :  { %387 = vmatmul.f32.gmra.mxu0 %v227_v47  ;;  %6042 = vmatmul.msk.f32.vlgmr.msrb.gmra.mxu1 %vm796_vm2, %v716_v55 }
  0xff   :  { %694 = vmatmul.f32.gmra.mxu2 %v6015_v56  ;;  %6067 = vmatmul.msk.f32.vlgmr.msrb.gmra.mxu3 %vm796_vm2, %v716_v55 }
 0x100   :  { %2136 = vmatpush.msrb.mxu3 %v7237_v1  ;;  %v7866_v1 = vpop.f32.mrf.mxu2  ;;  %2043 = vmatpush.msrb.mxu1 %v7232_v0 }
 0x102   :  { %v7850_v59 = vpop.f32.mrf.mxu3  ;;  %2137 = vmatpush.msrb.mxu3 %v7249_v3  ;;  %2044 = vmatpush.msrb.mxu1 %v7242_v2 }
 0x103   :  { %v7853_v30 = vpop.f32.mrf.mxu1 }
 0x104   :  { %2138 = vmatpush.msrb.mxu3 %v7261_v5  ;;  %2045 = vmatpush.msrb.mxu1 %v7256_v4 }
 0x106   :  { %6043 = vmatmul.msk.f32.gmra.mxu1 %vm796_vm2, %v719_v35  ;;  %6092 = vmatmul.msk.f32.vlgmr.msrb.gmra.mxu0 %vm796_vm2, %v409_v61 }
 0x107   :  { %6068 = vmatmul.msk.f32.gmra.mxu3 %vm796_vm2, %v719_v35  ;;  %6117 = vmatmul.msk.f32.vlgmr.msrb.gmra.mxu2 %vm796_vm2, %v409_v61 }
 0x108   :  { %2139 = vmatpush.msrb.mxu3 %v7275_v7  ;;  %v7887_v7 = vpop.f32.mrf.mxu0  ;;  %v647_v0 = vpop.f32.mrf.mxu2  ;;  %2046 = vmatpush.msrb.mxu1 %v7270_v6 }
 0x10a   :  { %v7872_v3 = vpop.f32.mrf.mxu3  ;;  %2140 = vmatpush.msrb.mxu3 %v7289_v9  ;;  %2047 = vmatpush.msrb.mxu1 %v7284_v8 }
 0x10b   :  { %v7876_v5 = vpop.f32.mrf.mxu1 }
 0x10c   :  { %2141 = vmatpush.msrb.mxu3 %v7303_v11  ;;  %v415_v11 = vadd.f32 %v7681_v31, %v7766_v49  ;;  %2048 = vmatpush.msrb.mxu1 %v7298_v10  ;;  %v734_v31 = vadd.f32 %v7799_v24, %v7866_v1 }
 0x10e   :  { %6044 = vmatmul.msk.f32.gmra.mxu1 %vm796_vm2, %v722_v25  ;;  %6093 = vmatmul.msk.f32.gmra.mxu0 %vm796_vm2, %v412_v54 }
 0x10f   :  { %6069 = vmatmul.msk.f32.gmra.mxu3 %vm796_vm2, %v722_v25  ;;  %6118 = vmatmul.msk.f32.gmra.mxu2 %vm796_vm2, %v412_v54 }
 0x110   :  { %2142 = vmatpush.msrb.mxu3 %v7317_v13  ;;  %v340_v4 = vpop.f32.mrf.mxu0  ;;  %2049 = vmatpush.msrb.mxu1 %v7312_v12  ;;  %v650_v8 = vpop.f32.mrf.mxu2 }
 0x111   :  { %v740_v57 = vadd.f32 %v7850_v59, %v650_v8 }
 0x112   :  { %v7893_v9 = vpop.f32.mrf.mxu3  ;;  %2143 = vmatpush.msrb.mxu3 %v7331_v15  ;;  %v418_v15 = vadd.f32 %v7702_v39, %v7797_v63  ;;  %2050 = vmatpush.msrb.mxu1 %v7326_v14  ;;  %v421_v14 = vadd.f32 %v7726_v50, %v7829_v44  ;;  %v737_v39 = vadd.f32 %v7825_v43, %v647_v0 }
 0x113   :  { %v7897_v2 = vpop.f32.mrf.mxu1  ;;  %v430_v50 = vadd.f32 %v7805_v33, %v340_v4 }
 0x114   :  { %2144 = vmatpush.msrb.mxu3 %v7345_v17  ;;  %v728_v17 = vadd.f32 %v7745_v34, %v7803_v32  ;;  %2051 = vmatpush.msrb.mxu1 %v7340_v16 }
 0x116   :  { %6045 = vmatmul.msk.f32.gmra.mxu1 %vm796_vm2, %v725_v60  ;;  %6094 = vmatmul.msk.f32.gmra.mxu0 %vm796_vm2, %v415_v11 }
 0x117   :  { %6070 = vmatmul.msk.f32.gmra.mxu3 %vm796_vm2, %v725_v60  ;;  %6119 = vmatmul.msk.f32.gmra.mxu2 %vm796_vm2, %v415_v11 }
 0x118   :  { %2145 = vmatpush.msrb.mxu3 %v7359_v19  ;;  %2052 = vmatpush.msrb.mxu1 %v7354_v18  ;;  %v343_v12 = vpop.f32.mrf.mxu0 }
 0x119   :  { %v433_v51 = vadd.f32 %v7831_v46, %v343_v12 }
 0x11a   :  { %v7911_v6 = vpop.f32.mrf.mxu3  ;;  %2146 = vmatpush.msrb.mxu3 %v7373_v21  ;;  %v731_v21 = vadd.f32 %v7773_v52, %v7843_v58  ;;  %2053 = vmatpush.msrb.mxu1 %v7368_v20  ;;  %v424_v20 = vadd.f32 %v7752_v36, %v7861_v40 }
 0x11b   :  { %v7915_v13 = vpop.f32.mrf.mxu1 }
 0x11c   :  { %2147 = vmatpush.msrb.mxu3 %v7387_v23  ;;  %v653_v23 = vpop.f32.mrf.mxu2  ;;  %2054 = vmatpush.msrb.mxu1 %v7382_v22 }
 0x11d   :  { %v743_v52 = vadd.f32 %v7872_v3, %v653_v23 }
 0x11e   :  { %6046 = vmatmul.msk.f32.gmra.mxu1 %vm796_vm2, %v728_v17  ;;  %6095 = vmatmul.msk.f32.gmra.mxu0 %vm796_vm2, %v418_v15 }
 0x11f   :  { %6071 = vmatmul.msk.f32.gmra.mxu3 %vm796_vm2, %v728_v17  ;;  %6120 = vmatmul.msk.f32.gmra.mxu2 %vm796_vm2, %v418_v15 }
 0x120   :  { %2055 = vmatpush.msrb.mxu1 %v7404_v26  ;;  %v346_v37 = vpop.f32.mrf.mxu0 }
 0x121   :  { %v436_v32 = vadd.f32 %v7853_v30, %v346_v37 }
 0x122   :  { %v7928_v10 = vpop.f32.mrf.mxu3  ;;  %2056 = vmatpush.msrb.mxu1 %v7413_v27  ;;  %v427_v27 = vadd.f32 %v7775_v53, %v7887_v7 }
 0x123   :  { %v7931_v19 = vpop.f32.mrf.mxu1 }
 0x124   :  { %v656_v22 = vpop.f32.mrf.mxu2  ;;  %2057 = vmatpush.msrb.mxu1 %v7420_v28 }
 0x125   :  { %v746_v33 = vadd.f32 %v7893_v9, %v656_v22 }
 0x126   :  { %6047 = vmatmul.msk.f32.gmra.mxu1 %vm796_vm2, %v731_v21  ;;  %6096 = vmatmul.msk.f32.gmra.mxu0 %vm796_vm2, %v421_v14 }
 0x127   :  { %6072 = vmatmul.msk.f32.gmra.mxu3 %vm796_vm2, %v731_v21  ;;  %6121 = vmatmul.msk.f32.gmra.mxu2 %vm796_vm2, %v421_v14 }
 0x128   :  { %2058 = vmatpush.msrb.mxu1 %v7427_v29  ;;  %v349_v45 = vpop.f32.mrf.mxu0 }
 0x129   :  { %v439_v44 = vadd.f32 %v7876_v5, %v349_v45 }
 0x12a   :  { %v7943_v16 = vpop.f32.mrf.mxu3 }
 0x12b   :  { %v7946_v18 = vpop.f32.mrf.mxu1 }
 0x12c   :  { %v659_v28 = vpop.f32.mrf.mxu2 }
 0x12d   :  { %v749_v46 = vadd.f32 %v7911_v6, %v659_v28 }
 0x12e   :  { %6048 = vmatmul.msk.f32.gmra.mxu1 %vm796_vm2, %v734_v31  ;;  %6097 = vmatmul.msk.f32.gmra.mxu0 %vm796_vm2, %v424_v20 }
 0x12f   :  { %6073 = vmatmul.msk.f32.gmra.mxu3 %vm796_vm2, %v734_v31  ;;  %6122 = vmatmul.msk.f32.gmra.mxu2 %vm796_vm2, %v424_v20 }
 0x130   :  { %v352_v62 = vpop.f32.mrf.mxu0 }
 0x131   :  { %v442_v59 = vadd.f32 %v7897_v2, %v352_v62 }
 0x132   :  { %v7958_v26 = vpop.f32.mrf.mxu3 }
 0x133   :  { %v7961_v38 = vpop.f32.mrf.mxu1 }
 0x134   :  { %v662_v36 = vpop.f32.mrf.mxu2 }
 0x135   :  { %v752_v30 = vadd.f32 %v7928_v10, %v662_v36 }
 0x136   :  { %6049 = vmatmul.msk.f32.gmra.mxu1 %vm796_vm2, %v737_v39  ;;  %6098 = vmatmul.msk.f32.gmra.mxu0 %vm796_vm2, %v427_v27 }
 0x137   :  { %6074 = vmatmul.msk.f32.gmra.mxu3 %vm796_vm2, %v737_v39  ;;  %6123 = vmatmul.msk.f32.gmra.mxu2 %vm796_vm2, %v427_v27 }
 0x138   :  { %v355_v63 = vpop.f32.mrf.mxu0 }
 0x139   :  { %v445_v3 = vadd.f32 %v7915_v13, %v355_v63 }
 0x13a   :  { %v7970_v48 = vpop.f32.mrf.mxu3 }
 0x13b   :  { %v7972_v29 = vpop.f32.mrf.mxu1 }
 0x13c   :  { %v665_v41 = vpop.f32.mrf.mxu2 }
 0x13d   :  { %v755_v5 = vadd.f32 %v7943_v16, %v665_v41 }
 0x13e   :  { %6050 = vmatmul.msk.f32.gmra.mxu1 %vm796_vm2, %v740_v57  ;;  %6099 = vmatmul.msk.f32.gmra.mxu0 %vm796_vm2, %v430_v50 }
 0x13f   :  { %6075 = vmatmul.msk.f32.gmra.mxu3 %vm796_vm2, %v740_v57  ;;  %6124 = vmatmul.msk.f32.gmra.mxu2 %vm796_vm2, %v430_v50 }
 0x140   :  { %v358_v47 = vpop.f32.mrf.mxu0 }
 0x141   :  { %v448_v9 = vadd.f32 %v7931_v19, %v358_v47 }
 0x142   :  { %v7980_v34 = vpop.f32.mrf.mxu3 }
 0x143   :  { %v7982_v49 = vpop.f32.mrf.mxu1 }
 0x144   :  { %v668_v55 = vpop.f32.mrf.mxu2 }
 0x145   :  { %v758_v2 = vadd.f32 %v7958_v26, %v668_v55 }
 0x146   :  { %6051 = vmatmul.msk.f32.gmra.mxu1 %vm796_vm2, %v743_v52  ;;  %6100 = vmatmul.msk.f32.gmra.mxu0 %vm796_vm2, %v433_v51 }
 0x147   :  { %6076 = vmatmul.msk.f32.gmra.mxu3 %vm796_vm2, %v743_v52  ;;  %6125 = vmatmul.msk.f32.gmra.mxu2 %vm796_vm2, %v433_v51 }
 0x148   :  { %v361_v61 = vpop.f32.mrf.mxu0 }
 0x149   :  { %v451_v6 = vadd.f32 %v7946_v18, %v361_v61 }
 0x14a   :  { %v7990_v53 = vpop.f32.mrf.mxu3 }
 0x14b   :  { %v7992_v24 = vpop.f32.mrf.mxu1 }
 0x14c   :  { %v671_v35 = vpop.f32.mrf.mxu2 }
 0x14d   :  { %v761_v8 = vadd.f32 %v7970_v48, %v671_v35  ;;  %v6141_v35 = vld [vmem:[%s11144_s20 + $0x300] sm:$0xff] }
 0x14e   :  { %6052 = vmatmul.msk.f32.gmra.mxu1 %vm796_vm2, %v746_v33  ;;  %6101 = vmatmul.msk.f32.gmra.mxu0 %vm796_vm2, %v436_v32 }
 0x14f   :  { %6077 = vmatmul.msk.f32.gmra.mxu3 %vm796_vm2, %v746_v33  ;;  %6126 = vmatmul.msk.f32.gmra.mxu2 %vm796_vm2, %v436_v32 }
 0x150   :  { %v364_v54 = vpop.f32.mrf.mxu0 }
 0x151   :  { %v454_v10 = vadd.f32 %v7961_v38, %v364_v54 }
 0x152   :  { %v8000_v42 = vpop.f32.mrf.mxu3 }
 0x153   :  { %v8002_v43 = vpop.f32.mrf.mxu1 }
 0x154   :  { %v674_v7 = vpop.f32.mrf.mxu2 }
 0x155   :  { %v764_v12 = vadd.f32 %v7980_v34, %v674_v7  ;;  %v6914_v7 = vld [vmem:[%s11143_s30 + $0xd0] sm:$0xff] }
 0x156   :  { %6053 = vmatmul.msk.f32.gmra.mxu1 %vm796_vm2, %v749_v46  ;;  %6102 = vmatmul.msk.f32.gmra.mxu0 %vm796_vm2, %v439_v44 }
 0x157   :  { %6078 = vmatmul.msk.f32.gmra.mxu3 %vm796_vm2, %v749_v46  ;;  %6127 = vmatmul.msk.f32.gmra.mxu2 %vm796_vm2, %v439_v44 }
 0x158   :  { %v367_v60 = vpop.f32.mrf.mxu0 }
 0x159   :  { %v457_v16 = vadd.f32 %v7972_v29, %v367_v60  ;;  %v6916_v60 = vld [vmem:[%s11143_s30 + $0xc8] sm:$0xff] }
 0x15a   :  { %v8010_v56 = vpop.f32.mrf.mxu3 }
 0x15b   :  { %v8012_v58 = vpop.f32.mrf.mxu1 }
 0x15c   :  { %v677_v13 = vpop.f32.mrf.mxu2 }
 0x15d   :  { %v767_v18 = vadd.f32 %v7990_v53, %v677_v13  ;;  %v6920_v13 = vld [vmem:[%s11143_s30 + $0x58] sm:$0xff] }
 0x15e   :  { %6054 = vmatmul.msk.f32.gmra.mxu1 %vm796_vm2, %v752_v30  ;;  %6103 = vmatmul.msk.f32.gmra.mxu0 %vm796_vm2, %v442_v59 }
 0x15f   :  { %6079 = vmatmul.msk.f32.gmra.mxu3 %vm796_vm2, %v752_v30  ;;  %6128 = vmatmul.msk.f32.gmra.mxu2 %vm796_vm2, %v442_v59 }
 0x160   :  { %v370_v19 = vpop.f32.mrf.mxu0 }
 0x161   :  { %v460_v26 = vadd.f32 %v7982_v49, %v370_v19  ;;  %v6145_v19 = vld [vmem:[%s11144_s20 + $0x320] sm:$0xff] }
 0x162   :  { %v8020_v40 = vpop.f32.mrf.mxu3 }
 0x163   :  { %v8022_v1 = vpop.f32.mrf.mxu1 }
 0x164   :  { %v680_v14 = vpop.f32.mrf.mxu2 }
 0x165   :  { %v770_v38 = vadd.f32 %v8000_v42, %v680_v14  ;;  %v6922_v14 = vld [vmem:[%s11143_s30 + $0x50] sm:$0xff] }
 0x166   :  { %6055 = vmatmul.msk.f32.gmra.mxu1 %vm796_vm2, %v755_v5  ;;  %6104 = vmatmul.msk.f32.gmra.mxu0 %vm796_vm2, %v445_v3 }
 0x167   :  { %6080 = vmatmul.msk.f32.gmra.mxu3 %vm796_vm2, %v755_v5  ;;  %6129 = vmatmul.msk.f32.gmra.mxu2 %vm796_vm2, %v445_v3  ;;  %v6911_v3 = vld [vmem:[%s11143_s30 + $0x78] sm:$0xff] }
 0x168   :  { %v373_v20 = vpop.f32.mrf.mxu0  ;;  %v6912_v5 = vld [vmem:[%s11143_s30 + $0xd8] sm:$0xff] }
 0x169   :  { %v463_v48 = vadd.f32 %v7992_v24, %v373_v20  ;;  %v6924_v20 = vld [vmem:[%s11143_s30 + $0x48] sm:$0xff] }
 0x16a   :  { %v8030_v25 = vpop.f32.mrf.mxu3 }
 0x16b   :  { %v8032_v0 = vpop.f32.mrf.mxu1 }
 0x16c   :  { %v683_v31 = vpop.f32.mrf.mxu2 }
 0x16d   :  { %v773_v29 = vadd.f32 %v8010_v56, %v683_v31  ;;  %v6925_v31 = vld [vmem:[%s11143_s30 + $0xa0] sm:$0xff] }
 0x16e   :  { %6056 = vmatmul.msk.f32.gmra.mxu1 %vm796_vm2, %v758_v2  ;;  %6105 = vmatmul.msk.f32.gmra.mxu0 %vm796_vm2, %v448_v9 }
 0x16f   :  { %6081 = vmatmul.msk.f32.gmra.mxu3 %vm796_vm2, %v758_v2  ;;  %6130 = vmatmul.msk.f32.gmra.mxu2 %vm796_vm2, %v448_v9  ;;  %v6143_v9 = vld [vmem:[%s11144_s20 + $0x310] sm:$0xff]  ;;  %v6144_v2 = vld [vmem:[%s11144_s20 + $0x318] sm:$0xff] }
 0x170   :  { %v376_v27 = vpop.f32.mrf.mxu0 }
 0x171   :  { %v466_v34 = vadd.f32 %v8002_v43, %v376_v27  ;;  %v6928_v27 = vld [vmem:[%s11143_s30 + $0x38] sm:$0xff] }
 0x172   :  { %v8040_v11 = vpop.f32.mrf.mxu3 }
 0x173   :  { %v8042_v4 = vpop.f32.mrf.mxu1 }
 0x174   :  { %v686_v45 = vpop.f32.mrf.mxu2 }
 0x175   :  { %v776_v36 = vadd.f32 %v8020_v40, %v686_v45 }
 0x176   :  { %6057 = vmatmul.msk.f32.gmra.mxu1 %vm796_vm2, %v761_v8  ;;  %6106 = vmatmul.msk.f32.gmra.mxu0 %vm796_vm2, %v451_v6 }
 0x177   :  { %6082 = vmatmul.msk.f32.gmra.mxu3 %vm796_vm2, %v761_v8  ;;  %6131 = vmatmul.msk.f32.gmra.mxu2 %vm796_vm2, %v451_v6  ;;  %v6918_v6 = vld [vmem:[%s11143_s30 + $0x60] sm:$0xff]  ;;  %v6919_v8 = vld [vmem:[%s11143_s30 + $0xb8] sm:$0xff] }
 0x178   :  { %v379_v57 = vpop.f32.mrf.mxu0 }
 0x179   :  { %v469_v53 = vadd.f32 %v8012_v58, %v379_v57  ;;  %v6147_v57 = vld [vmem:[%s11144_s20 + $0x330] sm:$0xff] }
 0x17a   :  { %v8050_v15 = vpop.f32.mrf.mxu3 }
 0x17b   :  { %v8052_v17 = vpop.f32.mrf.mxu1 }
 0x17c   :  { %11145 = vst [vmem:[#allocation16_spill] sm:$0xff] %v8052_v17  ;;  %v689_v49 = vpop.f32.mrf.mxu2  ;;  %v6174_v17 = vld [vmem:[%s11144_s20 + $0x408] sm:$0xff] }
 0x17d   :  { %v779_v63 = vadd.f32 %v8030_v25, %v689_v49  ;;  %v6913_v25 = vld [vmem:[%s11143_s30 + $0x70] sm:$0xff]  ;;  %v6148_v49 = vld [vmem:[%s11144_s20 + $0x338] sm:$0xff] }
 0x17e   :  { %6058 = vmatmul.msk.f32.gmra.mxu1 %vm796_vm2, %v764_v12  ;;  %6107 = vmatmul.msk.f32.gmra.mxu0 %vm796_vm2, %v454_v10 }
 0x17f   :  { %6083 = vmatmul.msk.f32.gmra.mxu3 %vm796_vm2, %v764_v12  ;;  %6132 = vmatmul.msk.f32.gmra.mxu2 %vm796_vm2, %v454_v10  ;;  %v6921_v10 = vld [vmem:[%s11143_s30 + $0xb0] sm:$0xff] }
 0x180   :  { %v382_v24 = vpop.f32.mrf.mxu0 }
 0x181   :  { %v472_v42 = vadd.f32 %v8022_v1, %v382_v24  ;;  %v6142_v1 = vld [vmem:[%s11144_s20 + $0x308] sm:$0xff]  ;;  %v6933_v24 = vld [vmem:[%s11143_s30 + $0x80] sm:$0xff] }
 0x182   :  { %v8060_v21 = vpop.f32.mrf.mxu3 }
 0x183   :  { %v8062_v23 = vpop.f32.mrf.mxu1 }
 0x184   :  { %11146 = vst [vmem:[#allocation17_spill] sm:$0xff] %v8062_v23  ;;  %v692_v32 = vpop.f32.mrf.mxu2 }
 0x185   :  { %v782_v43 = vadd.f32 %v8040_v11, %v692_v32  ;;  %v6915_v11 = vld [vmem:[%s11143_s30 + $0x68] sm:$0xff]  ;;  %v6934_v32 = vld [vmem:[%s11143_s30 + $0x20] sm:$0xff] }
 0x186   :  { %6059 = vmatmul.msk.f32.gmra.mxu1 %vm796_vm2, %v767_v18  ;;  %6108 = vmatmul.msk.f32.gmra.mxu0 %vm796_vm2, %v457_v16 }
 0x187   :  { %6084 = vmatmul.msk.f32.gmra.mxu3 %vm796_vm2, %v767_v18  ;;  %6133 = vmatmul.msk.f32.gmra.mxu2 %vm796_vm2, %v457_v16  ;;  %v6146_v16 = vld [vmem:[%s11144_s20 + $0x328] sm:$0xff] }
 0x188   :  { %v385_v44 = vpop.f32.mrf.mxu0  ;;  %v6923_v18 = vld [vmem:[%s11143_s30 + $0xa8] sm:$0xff] }
 0x189   :  { %v475_v56 = vadd.f32 %v8032_v0, %v385_v44 }
 0x18a   :  { %v8070_v37 = vpop.f32.mrf.mxu3 }
 0x18b   :  { %v8072_v22 = vpop.f32.mrf.mxu1 }
 0x18c   :  { %11147 = vst [vmem:[#allocation18_spill] sm:$0xff] %v8072_v22  ;;  %v695_v46 = vpop.f32.mrf.mxu2  ;;  %v6175_v22 = vld [vmem:[%s11144_s20 + $0x410] sm:$0xff] }
 0x18d   :  { %v785_v58 = vadd.f32 %v8050_v15, %v695_v46 }
 0x18e   :  { %6060 = vmatmul.msk.f32.gmra.mxu1 %vm796_vm2, %v770_v38  ;;  %6109 = vmatmul.msk.f32.gmra.mxu0 %vm796_vm2, %v460_v26 }
 0x18f   :  { %6085 = vmatmul.msk.f32.gmra.mxu3 %vm796_vm2, %v770_v38  ;;  %6134 = vmatmul.msk.f32.gmra.mxu2 %vm796_vm2, %v460_v26  ;;  %v6926_v26 = vld [vmem:[%s11143_s30 + $0x40] sm:$0xff]  ;;  %v6927_v38 = vld [vmem:[%s11143_s30 + $0x98] sm:$0xff] }
 0x190   :  { %v388_v59 = vpop.f32.mrf.mxu0 }
 0x191   :  { %v478_v40 = vadd.f32 %v8042_v4, %v388_v59  ;;  %v6917_v4 = vld [vmem:[%s11143_s30 + $0xc0] sm:$0xff]  ;;  %v6150_v59 = vld [vmem:[%s11144_s20 + $0x348] sm:$0xff] }
 0x192   :  { %v8080_v39 = vpop.f32.mrf.mxu3 }
 0x193   :  { %v8082_v28 = vpop.f32.mrf.mxu1 }
 0x194   :  { %11148 = vst [vmem:[#allocation19_spill] sm:$0xff] %v8082_v28  ;;  %v6177_v28 = vld [vmem:[%s11144_s20 + $0x420] sm:$0xff] }
 0x196   :  { %6061 = vmatmul.msk.f32.gmra.mxu1 %vm796_vm2, %v773_v29  ;;  %6110 = vmatmul.msk.f32.gmra.mxu0 %vm796_vm2, %v463_v48 }
 0x197   :  { %6086 = vmatmul.msk.f32.gmra.mxu3 %vm796_vm2, %v773_v29  ;;  %6135 = vmatmul.msk.f32.gmra.mxu2 %vm796_vm2, %v463_v48  ;;  %v6929_v48 = vld [vmem:[%s11143_s30 + $0x90] sm:$0xff] }
 0x19a   :  { %v8090_v50 = vpop.f32.mrf.mxu3 }
 0x19b   :  { %v8092_v62 = vpop.f32.mrf.mxu1 }
 0x19c   :  { %11149 = vst [vmem:[#allocation20_spill] sm:$0xff] %v8092_v62  ;;  %v6178_v62 = vld [vmem:[%s11144_s20 + $0x428] sm:$0xff] }
 0x19e   :  { %6062 = vmatmul.msk.f32.gmra.mxu1 %vm796_vm2, %v776_v36  ;;  %6111 = vmatmul.msk.f32.gmra.mxu0 %vm796_vm2, %v466_v34 }
 0x19f   :  { %6087 = vmatmul.msk.f32.gmra.mxu3 %vm796_vm2, %v776_v36  ;;  %6136 = vmatmul.msk.f32.gmra.mxu2 %vm796_vm2, %v466_v34  ;;  %v6930_v34 = vld [vmem:[%s11143_s30 + $0x30] sm:$0xff]  ;;  %v8233_v36 = vpop.f32.mrf.mxu0 }
 0x1a0   :  { %11157 = vst [vmem:[#allocation28_spill] sm:$0xff] %v8233_v36 }
 0x1a2   :  { %v8100_v51 = vpop.f32.mrf.mxu3 }
 0x1a3   :  { %v8102_v52 = vpop.f32.mrf.mxu1 }
 0x1a4   :  { %11150 = vst [vmem:[#allocation21_spill] sm:$0xff] %v8102_v52 }
 0x1a6   :  { %6063 = vmatmul.msk.f32.gmra.mxu1 %vm796_vm2, %v779_v63  ;;  %6112 = vmatmul.msk.f32.gmra.mxu0 %vm796_vm2, %v469_v53 }
 0x1a7   :  { %6088 = vmatmul.msk.f32.gmra.mxu3 %vm796_vm2, %v779_v63  ;;  %6137 = vmatmul.msk.f32.gmra.mxu2 %vm796_vm2, %v469_v53  ;;  %v6931_v53 = vld [vmem:[%s11143_s30 + $0x88] sm:$0xff] }
 0x1a8   :  { %v6932_v63 = vld [vmem:[%s11143_s30 + $0x28] sm:$0xff] }
 0x1aa   :  { %v8110_v33 = vpop.f32.mrf.mxu3 }
 0x1ab   :  { %v8112_v41 = vpop.f32.mrf.mxu1 }
 0x1ac   :  { %11151 = vst [vmem:[#allocation22_spill] sm:$0xff] %v8112_v41  ;;  %v6184_v41 = vld [vmem:[%s11144_s20 + $0x458] sm:$0xff] }
 0x1ae   :  { %6064 = vmatmul.msk.f32.gmra.mxu1 %vm796_vm2, %v782_v43  ;;  %6113 = vmatmul.msk.f32.gmra.mxu0 %vm796_vm2, %v472_v42 }
 0x1af   :  { %6089 = vmatmul.msk.f32.gmra.mxu3 %vm796_vm2, %v782_v43  ;;  %6138 = vmatmul.msk.f32.gmra.mxu2 %vm796_vm2, %v472_v42  ;;  %v6935_v42 = vld [vmem:[%s11143_s30 + $0x18] sm:$0xff]  ;;  %v8254_v43 = vpop.f32.mrf.mxu2 }
 0x1b2   :  { %v8120_v47 = vpop.f32.mrf.mxu3 }
 0x1b3   :  { %v8122_v55 = vpop.f32.mrf.mxu1 }
 0x1b4   :  { %11152 = vst [vmem:[#allocation23_spill] sm:$0xff] %v8122_v55  ;;  %v6186_v55 = vld [vmem:[%s11144_s20 + $0x468] sm:$0xff] }
 0x1b6   :  { %6065 = vmatmul.msk.f32.gmra.mxu1 %vm796_vm2, %v785_v58  ;;  %6114 = vmatmul.msk.f32.gmra.mxu0 %vm796_vm2, %v475_v56 }
 0x1b7   :  { %6090 = vmatmul.msk.f32.gmra.mxu3 %vm796_vm2, %v785_v58  ;;  %6139 = vmatmul.msk.f32.gmra.mxu2 %vm796_vm2, %v475_v56  ;;  %v6149_v56 = vld [vmem:[%s11144_s20 + $0x340] sm:$0xff]  ;;  %v6936_v58 = vld [vmem:[%s11143_s30 + $0x10] sm:$0xff] }
 0x1ba   :  { %v8130_v30 = vpop.f32.mrf.mxu3 }
 0x1bb   :  { %v8132_v61 = vpop.f32.mrf.mxu1 }
 0x1bc   :  { %11153 = vst [vmem:[#allocation24_spill] sm:$0xff] %v8132_v61  ;;  %v6188_v61 = vld [vmem:[%s11144_s20 + $0x478] sm:$0xff] }
 0x1be   :  { %6115 = vmatmul.msk.f32.gmra.mxu0 %vm796_vm2, %v478_v40  ;;  %1447 = vmatmul.f32.vlgmr.msra.gmra.mxu1 %v6141_v35  ;;  %v6937_v35 = vld [vmem:[%s11143_s30 + $0x8] sm:$0xff] }
 0x1bf   :  { %6140 = vmatmul.msk.f32.gmra.mxu2 %vm796_vm2, %v478_v40  ;;  %6189 = vmatmul.msk.f32.vlgmr.msra.gmra.mxu3 %vm229_vm0, %v6142_v1  ;;  %v8272_v40 = vpop.f32.mrf.mxu0  ;;  %v6938_v1 = vld [vmem:[%s11143_s30] sm:$0xff] }
 0x1c0   :  { %2655 = vmatpush.msra.mxu1 %v6911_v3  ;;  %2748 = vmatpush.msra.mxu3 %v6912_v5  ;;  %11159 = vst [vmem:[#allocation30_spill] sm:$0xff] %v8272_v40 }
 0x1c2   :  { %v8150_v54 = vpop.f32.mrf.mxu3  ;;  %2656 = vmatpush.msra.mxu1 %v6913_v25  ;;  %2749 = vmatpush.msra.mxu3 %v6914_v7  ;;  %v6151_v25 = vld [vmem:[%s11144_s20 + $0x350] sm:$0xff]  ;;  %v8285_v7 = vpop.f32.mrf.mxu2 }
 0x1c3   :  { %v8158_v0 = vpop.f32.mrf.mxu1 }
 0x1c4   :  { %11154 = vst [vmem:[#allocation25_spill] sm:$0xff] %v8158_v0  ;;  %2657 = vmatpush.msra.mxu1 %v6915_v11  ;;  %2750 = vmatpush.msra.mxu3 %v6916_v60  ;;  %v6266_v0 = vld [vmem:[%s11144_s20 + $0x498] sm:$0xff] }
 0x1c6   :  { %1450 = vmatmul.f32.gmra.mxu1 %v6143_v9  ;;  %2751 = vmatpush.msra.mxu3 %v6917_v4  ;;  %v6152_v9 = vld [vmem:[%s11144_s20 + $0x358] sm:$0xff]  ;;  %v6153_v4 = vld [vmem:[%s11144_s20 + $0x360] sm:$0xff] }
 0x1c7   :  { %6190 = vmatmul.msk.f32.gmra.mxu3 %vm229_vm0, %v6144_v2  ;;  %2658 = vmatpush.msra.mxu1 %v6918_v6  ;;  %v8291_v2 = vpop.f32.mrf.mxu0  ;;  %v6154_v6 = vld [vmem:[%s11144_s20 + $0x368] sm:$0xff] }
 0x1c8   :  { %2752 = vmatpush.msra.mxu3 %v6919_v8  ;;  %11161 = vst [vmem:[#allocation32_spill] sm:$0xff] %v8291_v2 }
 0x1c9   :  { %2659 = vmatpush.msra.mxu1 %v6920_v13 }
 0x1ca   :  { %v8185_v15 = vpop.f32.mrf.mxu3  ;;  %2753 = vmatpush.msra.mxu3 %v6921_v10  ;;  %v8303_v8 = vpop.f32.mrf.mxu2 }
 0x1cb   :  { %v8190_v12 = vpop.f32.mrf.mxu1  ;;  %2660 = vmatpush.msra.mxu1 %v6922_v14  ;;  %v6155_v14 = vld [vmem:[%s11144_s20 + $0x370] sm:$0xff] }
 0x1cc   :  { %11155 = vst [vmem:[#allocation26_spill] sm:$0xff] %v8190_v12  ;;  %2754 = vmatpush.msra.mxu3 %v6923_v18  ;;  %v6272_v12 = vld [vmem:[%s11144_s20 + $0x4c8] sm:$0xff] }
 0x1cd   :  { %2661 = vmatpush.msra.mxu1 %v6924_v20 }
 0x1ce   :  { %1453 = vmatmul.f32.gmra.mxu1 %v6145_v19  ;;  %2755 = vmatpush.msra.mxu3 %v6925_v31 }
 0x1cf   :  { %6191 = vmatmul.msk.f32.gmra.mxu3 %vm229_vm0, %v6146_v16  ;;  %2662 = vmatpush.msra.mxu1 %v6926_v26  ;;  %v8306_v13 = vpop.f32.mrf.mxu0  ;;  %v6156_v16 = vld [vmem:[%s11144_s20 + $0x378] sm:$0xff]  ;;  %v6157_v26 = vld [vmem:[%s11144_s20 + $0x380] sm:$0xff] }
 0x1d0   :  { %2756 = vmatpush.msra.mxu3 %v6927_v38  ;;  %11162 = vst [vmem:[#allocation33_spill] sm:$0xff] %v8306_v13  ;;  %v6176_v13 = vld [vmem:[%s11144_s20 + $0x418] sm:$0xff] }
 0x1d1   :  { %2663 = vmatpush.msra.mxu1 %v6928_v27  ;;  %v6158_v27 = vld [vmem:[%s11144_s20 + $0x388] sm:$0xff] }
 0x1d2   :  { %v8220_v45 = vpop.f32.mrf.mxu3  ;;  %2757 = vmatpush.msra.mxu3 %v6929_v48  ;;  %v8319_v18 = vpop.f32.mrf.mxu2 }
 0x1d3   :  { %v8225_v29 = vpop.f32.mrf.mxu1  ;;  %2664 = vmatpush.msra.mxu1 %v6930_v34 }
 0x1d4   :  { %11156 = vst [vmem:[#allocation27_spill] sm:$0xff] %v8225_v29  ;;  %2758 = vmatpush.msra.mxu3 %v6931_v53  ;;  %v6160_v53 = vld [vmem:[%s11144_s20 + $0x398] sm:$0xff]  ;;  %v6276_v29 = vld [vmem:[%s11144_s20 + $0x4e8] sm:$0xff] }
 0x1d5   :  { %2665 = vmatpush.msra.mxu1 %v6932_v63 }
 0x1d6   :  { %1456 = vmatmul.f32.gmra.mxu1 %v6147_v57  ;;  %2759 = vmatpush.msra.mxu3 %v6933_v24 }
 0x1d7   :  { %6192 = vmatmul.msk.f32.gmra.mxu3 %vm229_vm0, %v6148_v49  ;;  %2666 = vmatpush.msra.mxu1 %v6934_v32  ;;  %v8328_v38 = vpop.f32.mrf.mxu0  ;;  %v6159_v49 = vld [vmem:[%s11144_s20 + $0x390] sm:$0xff] }
 0x1d8   :  { %11164 = vst [vmem:[#allocation35_spill] sm:$0xff] %v8328_v38 }
 0x1d9   :  { %2667 = vmatpush.msra.mxu1 %v6935_v42  ;;  %v6161_v42 = vld [vmem:[%s11144_s20 + $0x3a0] sm:$0xff] }
 0x1da   :  { %v8256_v44 = vpop.f32.mrf.mxu3  ;;  %v8334_v48 = vpop.f32.mrf.mxu2 }
 0x1db   :  { %v8258_v46 = vpop.f32.mrf.mxu1  ;;  %2668 = vmatpush.msra.mxu1 %v6936_v58  ;;  %v6162_v58 = vld [vmem:[%s11144_s20 + $0x3a8] sm:$0xff] }
 0x1dc   :  { %11158 = vst [vmem:[#allocation29_spill] sm:$0xff] %v8258_v46  ;;  %v6282_v46 = vld [vmem:[%s11144_s20 + $0x518] sm:$0xff] }
 0x1dd   :  { %2669 = vmatpush.msra.mxu1 %v6937_v35 }
 0x1de   :  { %1459 = vmatmul.f32.gmra.mxu1 %v6149_v56 }
 0x1df   :  { %6193 = vmatmul.msk.f32.gmra.mxu3 %vm229_vm0, %v6150_v59  ;;  %2670 = vmatpush.msra.mxu1 %v6938_v1  ;;  %v8346_v63 = vpop.f32.mrf.mxu0 }
 0x1e0   :  { %11166 = vst [vmem:[#allocation37_spill] sm:$0xff] %v8346_v63  ;;  %v6180_v63 = vld [vmem:[%s11144_s20 + $0x438] sm:$0xff] }
 0x1e2   :  { %v8278_v3 = vpop.f32.mrf.mxu3  ;;  %v8356_v56 = vpop.f32.mrf.mxu2 }
 0x1e3   :  { %v8280_v5 = vpop.f32.mrf.mxu1 }
 0x1e4   :  { %11160 = vst [vmem:[#allocation31_spill] sm:$0xff] %v8280_v5  ;;  %v6283_v5 = vld [vmem:[%s11144_s20 + $0x520] sm:$0xff] }
 0x1e6   :  { %1462 = vmatmul.f32.gmra.mxu1 %v6151_v25  ;;  %v6163_v25 = vld [vmem:[%s11144_s20 + $0x3b0] sm:$0xff] }
 0x1e7   :  { %6194 = vmatmul.msk.f32.gmra.mxu3 %vm229_vm0, %v6152_v9  ;;  %v8362_v59 = vpop.f32.mrf.mxu0  ;;  %v6164_v9 = vld [vmem:[%s11144_s20 + $0x3b8] sm:$0xff] }
 0x1e8   :  { %11168 = vst [vmem:[#allocation39_spill] sm:$0xff] %v8362_v59  ;;  %v6182_v59 = vld [vmem:[%s11144_s20 + $0x448] sm:$0xff] }
 0x1ea   :  { %v8293_v11 = vpop.f32.mrf.mxu3 }
 0x1eb   :  { %v8295_v60 = vpop.f32.mrf.mxu1 }
 0x1ee   :  { %1465 = vmatmul.f32.gmra.mxu1 %v6153_v4  ;;  %v1617_v4 = vld [vmem:[#allocation2 + $0xb8] sm:$0xf] }
 0x1ef   :  { %6195 = vmatmul.msk.f32.gmra.mxu3 %vm229_vm0, %v6154_v6  ;;  %6238 = vmatpush.msk.msra.mxu2 %vm869_vm1, %v1617_v4  ;;  %v8375_v6 = vpop.f32.mrf.mxu2  ;;  %v1613_v4 = vld [vmem:[#allocation2 + $0x98] sm:$0xff] }
 0x1f2   :  { %v8308_v10 = vpop.f32.mrf.mxu3 }
 0x1f3   :  { %v8310_v19 = vpop.f32.mrf.mxu1 }
 0x1f6   :  { %1468 = vmatmul.f32.gmra.mxu1 %v6155_v14  ;;  %v8378_v14 = vpop.f32.mrf.mxu0 }
 0x1f7   :  { %6196 = vmatmul.msk.f32.gmra.mxu3 %vm229_vm0, %v6156_v16  ;;  %11170 = vst [vmem:[#allocation41_spill] sm:$0xff] %v8378_v14  ;;  %v6185_v14 = vld [vmem:[%s11144_s20 + $0x460] sm:$0xff] }
 0x1fa   :  { %v8321_v20 = vpop.f32.mrf.mxu3 }
 0x1fb   :  { %v8323_v31 = vpop.f32.mrf.mxu1 }
 0x1fc   :  { %11163 = vst [vmem:[#allocation34_spill] sm:$0xff] %v8323_v31 }
 0x1fe   :  { %1471 = vmatmul.f32.gmra.mxu1 %v6157_v26 }
 0x1ff   :  { %6197 = vmatmul.msk.f32.gmra.mxu3 %vm229_vm0, %v6158_v27  ;;  %v6165_v27 = vld [vmem:[%s11144_s20 + $0x3c0] sm:$0xff] }
 0x202   :  { %v8336_v57 = vpop.f32.mrf.mxu3 }
 0x203   :  { %v8338_v34 = vpop.f32.mrf.mxu1 }
 0x204   :  { %11165 = vst [vmem:[#allocation36_spill] sm:$0xff] %v8338_v34 }
 0x206   :  { %1474 = vmatmul.f32.gmra.mxu1 %v6159_v49  ;;  %v6166_v49 = vld [vmem:[%s11144_s20 + $0x3c8] sm:$0xff] }
 0x207   :  { %6198 = vmatmul.msk.f32.gmra.mxu3 %vm229_vm0, %v6160_v53  ;;  %v1616_v53 = vld [vmem:[#allocation2 + $0xb0] sm:$0xf] }
 0x208   :  { %6213 = vmatpush.msk.msra.mxu0 %vm869_vm1, %v1616_v53  ;;  %v1610_v53 = vld [vmem:[#allocation2 + $0x80] sm:$0xff] }
 0x20a   :  { %v8349_v24 = vpop.f32.mrf.mxu3 }
 0x20b   :  { %v8351_v32 = vpop.f32.mrf.mxu1 }
 0x20c   :  { %11167 = vst [vmem:[#allocation38_spill] sm:$0xff] %v8351_v32  ;;  %v8401_v32 = vpop.f32.mrf.mxu0 }
 0x20d   :  { %11173 = vst [vmem:[#allocation44_spill] sm:$0xff] %v8401_v32 }
 0x20e   :  { %1477 = vmatmul.f32.gmra.mxu1 %v6161_v42  ;;  %v1614_v42 = vld [vmem:[#allocation2 + $0xa0] sm:$0xff] }
 0x20f   :  { %6199 = vmatmul.msk.f32.gmra.mxu3 %vm229_vm0, %v6162_v58  ;;  %v1615_v58 = vld [vmem:[#allocation2 + $0xa8] sm:$0xff]  ;;  %1709 = vmatpush.msra.mxu0 %v1614_v42  ;;  %v6168_v42 = vld [vmem:[%s11144_s20 + $0x3d8] sm:$0xff] }
 0x210   :  { %1798 = vmatpush.msra.mxu2 %v1615_v58 }
 0x212   :  { %v8364_v35 = vpop.f32.mrf.mxu3  ;;  %1799 = vmatpush.msra.mxu2 %v1613_v4 }
 0x213   :  { %v8366_v1 = vpop.f32.mrf.mxu1 }
 0x214   :  { %11169 = vst [vmem:[#allocation40_spill] sm:$0xff] %v8366_v1  ;;  %v6169_v1 = vld [vmem:[%s11144_s20 + $0x3e0] sm:$0xff] }
 0x216   :  { %1480 = vmatmul.f32.gmra.mxu1 %v6163_v25  ;;  %v8392_v25 = vpop.f32.mrf.mxu2 }
 0x217   :  { %6200 = vmatmul.msk.f32.gmra.mxu3 %vm229_vm0, %v6164_v9  ;;  %v1612_v9 = vld [vmem:[#allocation2 + $0x90] sm:$0xff] }
 0x218   :  { %1710 = vmatpush.msra.mxu0 %v1612_v9 }
 0x21a   :  { %v8380_v16 = vpop.f32.mrf.mxu3  ;;  %1711 = vmatpush.msra.mxu0 %v1610_v53 }
 0x21b   :  { %v8382_v26 = vpop.f32.mrf.mxu1 }
 0x21c   :  { %11171 = vst [vmem:[#allocation42_spill] sm:$0xff] %v8382_v26  ;;  %v6170_v26 = vld [vmem:[%s11144_s20 + $0x3e8] sm:$0xff] }
 0x21e   :  { %1483 = vmatmul.f32.gmra.mxu1 %v6165_v27  ;;  %v6167_v27 = vld [vmem:[%s11144_s20 + $0x3d0] sm:$0xff]  ;;  %v8407_v58 = vpop.f32.mrf.mxu2 }
 0x21f   :  { %6201 = vmatmul.msk.f32.gmra.mxu3 %vm229_vm0, %v6166_v49  ;;  %v1611_v49 = vld [vmem:[#allocation2 + $0x88] sm:$0xff] }
 0x220   :  { %1800 = vmatpush.msra.mxu2 %v1611_v49  ;;  %v6171_v49 = vld [vmem:[%s11144_s20 + $0x3f0] sm:$0xff] }
 0x222   :  { %v8394_v31 = vpop.f32.mrf.mxu3 }
 0x223   :  { %v8396_v34 = vpop.f32.mrf.mxu1 }
 0x224   :  { %11172 = vst [vmem:[#allocation43_spill] sm:$0xff] %v8396_v34  ;;  %v8419_v34 = vpop.f32.mrf.mxu0 }
 0x225   :  { %11175 = vst [vmem:[#allocation46_spill] sm:$0xff] %v8419_v34 }
 0x226   :  { %1486 = vmatmul.f32.gmra.mxu1 %v6167_v27 }
 0x227   :  { %6202 = vmatmul.msk.f32.gmra.mxu3 %vm229_vm0, %v6168_v42  ;;  %v8429_v42 = vpop.f32.mrf.mxu2 }
 0x22a   :  { %v8409_v9 = vpop.f32.mrf.mxu3 }
 0x22b   :  { %v8411_v4 = vpop.f32.mrf.mxu1 }
 0x22c   :  { %11174 = vst [vmem:[#allocation45_spill] sm:$0xff] %v8411_v4  ;;  %v6172_v4 = vld [vmem:[%s11144_s20 + $0x3f8] sm:$0xff] }
 0x22e   :  { %1489 = vmatmul.f32.gmra.mxu1 %v6169_v1  ;;  %v8435_v1 = vpop.f32.mrf.mxu0 }
 0x22f   :  { %6203 = vmatmul.msk.f32.gmra.mxu3 %vm229_vm0, %v6170_v26  ;;  %11177 = vst [vmem:[#allocation48_spill] sm:$0xff] %v8435_v1  ;;  %v8445_v40 = vpop.f32.mrf.mxu2  ;;  %v6270_v1 = vld [vmem:[%s11144_s20 + $0x4b8] sm:$0xff] }
 0x232   :  { %v8422_v27 = vpop.f32.mrf.mxu3 }
 0x233   :  { %v8424_v53 = vpop.f32.mrf.mxu1 }
 0x234   :  { %11176 = vst [vmem:[#allocation47_spill] sm:$0xff] %v8424_v53  ;;  %v6173_v53 = vld [vmem:[%s11144_s20 + $0x400] sm:$0xff] }
 0x236   :  { %1492 = vmatmul.f32.gmra.mxu1 %v6171_v49  ;;  %v8448_v49 = vpop.f32.mrf.mxu0 }
 0x237   :  { %6204 = vmatmul.msk.f32.gmra.mxu3 %vm229_vm0, %v6172_v4  ;;  %11178 = vst [vmem:[#allocation49_spill] sm:$0xff] %v8448_v49 }
 0x23a   :  { %v8437_v26 = vpop.f32.mrf.mxu3 }
 0x23b   :  { %v1448_v36 = vpop.f32.mrf.mxu1 }
 0x23e   :  { %1495 = vmatmul.f32.gmra.mxu1 %v6173_v53  ;;  %v8464_v38 = vpop.f32.mrf.mxu0 }
 0x23f   :  { %6205 = vmatmul.msk.f32.gmra.mxu3 %vm229_vm0, %v6174_v17  ;;  %v8459_v17 = vpop.f32.mrf.mxu2  ;;  %11179 = vst [vmem:[#allocation50_spill] sm:$0xff] %v8464_v38  ;;  %v6280_v38 = vld [vmem:[%s11144_s20 + $0x508] sm:$0xff] }
 0x242   :  { %v1537_v4 = vpop.f32.mrf.mxu3 }
 0x243   :  { %v1538_v23 = vadd.f32 %v1537_v4, %v1448_v36  ;;  %v1451_v2 = vpop.f32.mrf.mxu1 }
 0x245   :  { %6214 = vmatmul.msk.f32.vlgmr.msra.gmra.mxu0 %vm796_vm2, %v1538_v23  ;;  %6239 = vmatmul.msk.f32.vlgmr.msra.gmra.mxu2 %vm796_vm2, %v1538_v23 }
 0x246   :  { %1498 = vmatmul.f32.gmra.mxu1 %v6175_v22 }
 0x247   :  { %6206 = vmatmul.msk.f32.gmra.mxu3 %vm229_vm0, %v6176_v13  ;;  %v8472_v23 = vpop.f32.mrf.mxu2 }
 0x24a   :  { %v1540_v53 = vpop.f32.mrf.mxu3 }
 0x24b   :  { %v1541_v36 = vadd.f32 %v1540_v53, %v1451_v2  ;;  %v1454_v4 = vpop.f32.mrf.mxu1  ;;  %v6179_v53 = vld [vmem:[%s11144_s20 + $0x430] sm:$0xff] }
 0x24d   :  { %6215 = vmatmul.msk.f32.gmra.mxu0 %vm796_vm2, %v1541_v36  ;;  %6240 = vmatmul.msk.f32.gmra.mxu2 %vm796_vm2, %v1541_v36 }
 0x24e   :  { %1501 = vmatmul.f32.gmra.mxu1 %v6177_v28  ;;  %v8482_v28 = vpop.f32.mrf.mxu0 }
 0x24f   :  { %6207 = vmatmul.msk.f32.gmra.mxu3 %vm229_vm0, %v6178_v62  ;;  %11180 = vst [vmem:[#allocation51_spill] sm:$0xff] %v8482_v28  ;;  %v8488_v52 = vpop.f32.mrf.mxu2 }
 0x252   :  { %v1543_v22 = vpop.f32.mrf.mxu3 }
 0x253   :  { %v1544_v2 = vadd.f32 %v1543_v22, %v1454_v4  ;;  %v1457_v13 = vpop.f32.mrf.mxu1  ;;  %v6181_v22 = vld [vmem:[%s11144_s20 + $0x440] sm:$0xff] }
 0x255   :  { %6216 = vmatmul.msk.f32.gmra.mxu0 %vm796_vm2, %v1544_v2  ;;  %6241 = vmatmul.msk.f32.gmra.mxu2 %vm796_vm2, %v1544_v2 }
 0x256   :  { %1504 = vmatmul.f32.gmra.mxu1 %v6179_v53 }
 0x257   :  { %6208 = vmatmul.msk.f32.gmra.mxu3 %vm229_vm0, %v6180_v63  ;;  %v8496_v63 = vpop.f32.mrf.mxu0 }
 0x25a   :  { %v1546_v62 = vpop.f32.mrf.mxu3 }
 0x25b   :  { %v1547_v36 = vadd.f32 %v1546_v62, %v1457_v13  ;;  %v1460_v4 = vpop.f32.mrf.mxu1  ;;  %v6183_v62 = vld [vmem:[%s11144_s20 + $0x450] sm:$0xff] }
 0x25d   :  { %6217 = vmatmul.msk.f32.gmra.mxu0 %vm796_vm2, %v1547_v36  ;;  %6242 = vmatmul.msk.f32.gmra.mxu2 %vm796_vm2, %v1547_v36  ;;  %v8506_v36 = vpop.f32.mrf.mxu2 }
 0x25e   :  { %1507 = vmatmul.f32.gmra.mxu1 %v6181_v22 }
 0x25f   :  { %6209 = vmatmul.msk.f32.gmra.mxu3 %vm229_vm0, %v6182_v59  ;;  %v8509_v59 = vpop.f32.mrf.mxu0 }
 0x262   :  { %v1549_v2 = vpop.f32.mrf.mxu3 }
 0x263   :  { %v1550_v13 = vadd.f32 %v1549_v2, %v1460_v4  ;;  %v1463_v53 = vpop.f32.mrf.mxu1 }
 0x265   :  { %6218 = vmatmul.msk.f32.gmra.mxu0 %vm796_vm2, %v1550_v13  ;;  %6243 = vmatmul.msk.f32.gmra.mxu2 %vm796_vm2, %v1550_v13 }
 0x266   :  { %1510 = vmatmul.f32.gmra.mxu1 %v6183_v62 }
 0x267   :  { %6210 = vmatmul.msk.f32.gmra.mxu3 %vm229_vm0, %v6184_v41  ;;  %v8520_v41 = vpop.f32.mrf.mxu2  ;;  %v8525_v32 = vpop.f32.mrf.mxu0 }
 0x268   :  { %11181 = vst [vmem:[#allocation52_spill] sm:$0xff] %v8525_v32  ;;  %v6264_v32 = vld [vmem:[%s11144_s20 + $0x488] sm:$0xff] }
 0x26a   :  { %v1552_v4 = vpop.f32.mrf.mxu3 }
 0x26b   :  { %v1553_v22 = vadd.f32 %v1552_v4, %v1463_v53  ;;  %v1466_v2 = vpop.f32.mrf.mxu1  ;;  %v6187_v4 = vld [vmem:[%s11144_s20 + $0x470] sm:$0xff] }
 0x26d   :  { %6219 = vmatmul.msk.f32.gmra.mxu0 %vm796_vm2, %v1553_v22  ;;  %6244 = vmatmul.msk.f32.gmra.mxu2 %vm796_vm2, %v1553_v22 }
 0x26e   :  { %1513 = vmatmul.f32.gmra.mxu1 %v6185_v14 }
 0x26f   :  { %6211 = vmatmul.msk.f32.gmra.mxu3 %vm229_vm0, %v6186_v55  ;;  %v8533_v55 = vpop.f32.mrf.mxu2 }
 0x272   :  { %v1555_v13 = vpop.f32.mrf.mxu3 }
 0x273   :  { %v1556_v53 = vadd.f32 %v1555_v13, %v1466_v2  ;;  %v1469_v62 = vpop.f32.mrf.mxu1  ;;  %v6263_v13 = vld [vmem:[%s11144_s20 + $0x480] sm:$0xff] }
 0x275   :  { %6220 = vmatmul.msk.f32.gmra.mxu0 %vm796_vm2, %v1556_v53  ;;  %6245 = vmatmul.msk.f32.gmra.mxu2 %vm796_vm2, %v1556_v53  ;;  %v8543_v53 = vpop.f32.mrf.mxu0 }
 0x276   :  { %1516 = vmatmul.f32.gmra.mxu1 %v6187_v4  ;;  %11182 = vst [vmem:[#allocation53_spill] sm:$0xff] %v8543_v53  ;;  %v6268_v53 = vld [vmem:[%s11144_s20 + $0x4a8] sm:$0xff] }
 0x277   :  { %6212 = vmatmul.msk.f32.gmra.mxu3 %vm229_vm0, %v6188_v61  ;;  %v8549_v34 = vpop.f32.mrf.mxu2 }
 0x27a   :  { %v1558_v14 = vpop.f32.mrf.mxu3 }
 0x27b   :  { %v1559_v22 = vadd.f32 %v1558_v14, %v1469_v62  ;;  %v1472_v2 = vpop.f32.mrf.mxu1  ;;  %v6265_v14 = vld [vmem:[%s11144_s20 + $0x490] sm:$0xff] }
 0x27d   :  { %6221 = vmatmul.msk.f32.gmra.mxu0 %vm796_vm2, %v1559_v22  ;;  %6246 = vmatmul.msk.f32.gmra.mxu2 %vm796_vm2, %v1559_v22 }
 0x27e   :  { %2059 = vmatmul.f32.vlgmr.msrb.gmra.mxu1 %v6263_v13 }
 0x27f   :  { %6311 = vmatmul.msk.f32.vlgmr.msrb.gmra.mxu3 %vm229_vm0, %v6264_v32  ;;  %v8557_v32 = vpop.f32.mrf.mxu0 }
 0x280   :  { %11183 = vst [vmem:[#allocation54_spill] sm:$0xff] %v8557_v32  ;;  %v6269_v32 = vld [vmem:[%s11144_s20 + $0x4b0] sm:$0xff] }
 0x282   :  { %v1561_v61 = vpop.f32.mrf.mxu3 }
 0x283   :  { %v1562_v62 = vadd.f32 %v1561_v61, %v1472_v2  ;;  %v1475_v4 = vpop.f32.mrf.mxu1  ;;  %v6267_v61 = vld [vmem:[%s11144_s20 + $0x4a0] sm:$0xff] }
 0x285   :  { %6222 = vmatmul.msk.f32.gmra.mxu0 %vm796_vm2, %v1562_v62  ;;  %6247 = vmatmul.msk.f32.gmra.mxu2 %vm796_vm2, %v1562_v62  ;;  %v8567_v62 = vpop.f32.mrf.mxu2 }
 0x286   :  { %2062 = vmatmul.f32.gmra.mxu1 %v6265_v14 }
 0x287   :  { %6312 = vmatmul.msk.f32.gmra.mxu3 %vm229_vm0, %v6266_v0  ;;  %v8570_v0 = vpop.f32.mrf.mxu0 }
 0x288   :  { %11184 = vst [vmem:[#allocation55_spill] sm:$0xff] %v8570_v0 }
 0x28a   :  { %v1564_v22 = vpop.f32.mrf.mxu3 }
 0x28b   :  { %v1565_v2 = vadd.f32 %v1564_v22, %v1475_v4  ;;  %v1478_v13 = vpop.f32.mrf.mxu1 }
 0x28d   :  { %6223 = vmatmul.msk.f32.gmra.mxu0 %vm796_vm2, %v1565_v2  ;;  %6248 = vmatmul.msk.f32.gmra.mxu2 %vm796_vm2, %v1565_v2 }
 0x28e   :  { %2065 = vmatmul.f32.gmra.mxu1 %v6267_v61 }
 0x28f   :  { %6313 = vmatmul.msk.f32.gmra.mxu3 %vm229_vm0, %v6268_v53  ;;  %v8581_v53 = vpop.f32.mrf.mxu2  ;;  %v8586_v0 = vpop.f32.mrf.mxu0 }
 0x290   :  { %11185 = vst [vmem:[#allocation56_spill] sm:$0xff] %v8586_v0  ;;  %v6274_v0 = vld [vmem:[%s11144_s20 + $0x4d8] sm:$0xff] }
 0x292   :  { %v1567_v4 = vpop.f32.mrf.mxu3 }
 0x293   :  { %v1568_v14 = vadd.f32 %v1567_v4, %v1478_v13  ;;  %v1481_v22 = vpop.f32.mrf.mxu1  ;;  %v6271_v4 = vld [vmem:[%s11144_s20 + $0x4c0] sm:$0xff] }
 0x295   :  { %6224 = vmatmul.msk.f32.gmra.mxu0 %vm796_vm2, %v1568_v14  ;;  %6249 = vmatmul.msk.f32.gmra.mxu2 %vm796_vm2, %v1568_v14 }
 0x296   :  { %2068 = vmatmul.f32.gmra.mxu1 %v6269_v32 }
 0x297   :  { %6314 = vmatmul.msk.f32.gmra.mxu3 %vm229_vm0, %v6270_v1  ;;  %v8594_v1 = vpop.f32.mrf.mxu2 }
 0x29a   :  { %v1570_v2 = vpop.f32.mrf.mxu3 }
 0x29b   :  { %v1571_v13 = vadd.f32 %v1570_v2, %v1481_v22  ;;  %v1484_v61 = vpop.f32.mrf.mxu1  ;;  %v6273_v2 = vld [vmem:[%s11144_s20 + $0x4d0] sm:$0xff] }
 0x29d   :  { %6225 = vmatmul.msk.f32.gmra.mxu0 %vm796_vm2, %v1571_v13  ;;  %6250 = vmatmul.msk.f32.gmra.mxu2 %vm796_vm2, %v1571_v13  ;;  %v8604_v13 = vpop.f32.mrf.mxu0 }
 0x29e   :  { %2071 = vmatmul.f32.gmra.mxu1 %v6271_v4  ;;  %11186 = vst [vmem:[#allocation57_spill] sm:$0xff] %v8604_v13  ;;  %v6278_v13 = vld [vmem:[%s11144_s20 + $0x4f8] sm:$0xff] }
 0x29f   :  { %6315 = vmatmul.msk.f32.gmra.mxu3 %vm229_vm0, %v6272_v12  ;;  %v8610_v49 = vpop.f32.mrf.mxu2 }
 0x2a2   :  { %v1573_v32 = vpop.f32.mrf.mxu3 }
 0x2a3   :  { %v1574_v14 = vadd.f32 %v1573_v32, %v1484_v61  ;;  %v1487_v22 = vpop.f32.mrf.mxu1  ;;  %v6275_v32 = vld [vmem:[%s11144_s20 + $0x4e0] sm:$0xff] }
 0x2a5   :  { %6226 = vmatmul.msk.f32.gmra.mxu0 %vm796_vm2, %v1574_v14  ;;  %6251 = vmatmul.msk.f32.gmra.mxu2 %vm796_vm2, %v1574_v14 }
 0x2a6   :  { %2074 = vmatmul.f32.gmra.mxu1 %v6273_v2 }
 0x2a7   :  { %6316 = vmatmul.msk.f32.gmra.mxu3 %vm229_vm0, %v6274_v0  ;;  %v8618_v0 = vpop.f32.mrf.mxu0 }
 0x2a8   :  { %11187 = vst [vmem:[#allocation58_spill] sm:$0xff] %v8618_v0  ;;  %v6279_v0 = vld [vmem:[%s11144_s20 + $0x500] sm:$0xff] }
 0x2aa   :  { %v1576_v12 = vpop.f32.mrf.mxu3 }
 0x2ab   :  { %v1577_v61 = vadd.f32 %v1576_v12, %v1487_v22  ;;  %v1490_v4 = vpop.f32.mrf.mxu1  ;;  %v6277_v12 = vld [vmem:[%s11144_s20 + $0x4f0] sm:$0xff] }
 0x2ad   :  { %6227 = vmatmul.msk.f32.gmra.mxu0 %vm796_vm2, %v1577_v61  ;;  %6252 = vmatmul.msk.f32.gmra.mxu2 %vm796_vm2, %v1577_v61  ;;  %v8628_v61 = vpop.f32.mrf.mxu2 }
 0x2ae   :  { %2077 = vmatmul.f32.gmra.mxu1 %v6275_v32 }
 0x2af   :  { %6317 = vmatmul.msk.f32.gmra.mxu3 %vm229_vm0, %v6276_v29  ;;  %v8631_v29 = vpop.f32.mrf.mxu0 }
 0x2b0   :  { %11188 = vst [vmem:[#allocation59_spill] sm:$0xff] %v8631_v29  ;;  %v6281_v29 = vld [vmem:[%s11144_s20 + $0x510] sm:$0xff] }
 0x2b2   :  { %v1579_v14 = vpop.f32.mrf.mxu3 }
 0x2b3   :  { %v1580_v22 = vadd.f32 %v1579_v14, %v1490_v4  ;;  %v1493_v2 = vpop.f32.mrf.mxu1 }
 0x2b5   :  { %6228 = vmatmul.msk.f32.gmra.mxu0 %vm796_vm2, %v1580_v22  ;;  %6253 = vmatmul.msk.f32.gmra.mxu2 %vm796_vm2, %v1580_v22 }
 0x2b6   :  { %2080 = vmatmul.f32.gmra.mxu1 %v6277_v12 }
 0x2b7   :  { %6318 = vmatmul.msk.f32.gmra.mxu3 %vm229_vm0, %v6278_v13  ;;  %v8642_v13 = vpop.f32.mrf.mxu2 }
 0x2ba   :  { %v1582_v4 = vpop.f32.mrf.mxu3 }
 0x2bb   :  { %v1583_v32 = vadd.f32 %v1582_v4, %v1493_v2  ;;  %v1496_v14 = vpop.f32.mrf.mxu1 }
 0x2bd   :  { %6229 = vmatmul.msk.f32.gmra.mxu0 %vm796_vm2, %v1583_v32  ;;  %6254 = vmatmul.msk.f32.gmra.mxu2 %vm796_vm2, %v1583_v32 }
 0x2be   :  { %2083 = vmatmul.f32.gmra.mxu1 %v6279_v0 }
 0x2bf   :  { %6319 = vmatmul.msk.f32.gmra.mxu3 %vm229_vm0, %v6280_v38  ;;  %v1239_v38 = vadd.f32 %v8254_v43, %v8060_v21  ;;  %v1242_v21 = vadd.f32 %v8285_v7, %v8070_v37  ;;  %v2229_v37 = vld [vmem:[#allocation2 + $0xf8] sm:$0xf]  ;;  %v1245_v7 = vadd.f32 %v8303_v8, %v8080_v39  ;;  %v2228_v39 = vld [vmem:[#allocation2 + $0xf0] sm:$0xf]  ;;  %v1248_v8 = vadd.f32 %v8319_v18, %v8090_v50  ;;  %v2222_v18 = vld [vmem:[#allocation2 + $0xc0] sm:$0xff] }
 0x2c0   :  { %6360 = vmatpush.msk.msrb.mxu2 %vm869_vm1, %v2229_v37  ;;  %6335 = vmatpush.msk.msrb.mxu0 %vm869_vm1, %v2228_v39  ;;  %v6289_v50 = vld [vmem:[%s11144_s20 + $0x550] sm:$0xff] }
 0x2c2   :  { %v1585_v22 = vpop.f32.mrf.mxu3  ;;  %v8644_v2 = vpop.f32.mrf.mxu0 }
 0x2c3   :  { %11189 = vst [vmem:[#allocation60_spill] sm:$0xff] %v8644_v2  ;;  %v1586_v12 = vadd.f32 %v1585_v22, %v1496_v14  ;;  %v1499_v4 = vpop.f32.mrf.mxu1 }
 0x2c5   :  { %6230 = vmatmul.msk.f32.gmra.mxu0 %vm796_vm2, %v1586_v12  ;;  %6255 = vmatmul.msk.f32.gmra.mxu2 %vm796_vm2, %v1586_v12 }
 0x2c6   :  { %2086 = vmatmul.f32.gmra.mxu1 %v6281_v29  ;;  %v6284_v29 = vld [vmem:[%s11144_s20 + $0x528] sm:$0xff] }
 0x2c7   :  { %6320 = vmatmul.msk.f32.gmra.mxu3 %vm229_vm0, %v6282_v46 }
 0x2c8   :  { %v1802_v0 = vpop.f32.mrf.mxu2 }
 0x2c9   :  { %v8657_v32 = vadd.f32 %v1802_v0, %v1239_v38 }
 0x2ca   :  { %v1588_v14 = vpop.f32.mrf.mxu3  ;;  %v8659_v22 = vpop.f32.mrf.mxu0 }
 0x2cb   :  { %11190 = vst [vmem:[#allocation61_spill] sm:$0xff] %v8659_v22  ;;  %v1589_v2 = vadd.f32 %v1588_v14, %v1499_v4  ;;  %v1502_v28 = vpop.f32.mrf.mxu1  ;;  %v6285_v14 = vld [vmem:[%s11144_s20 + $0x530] sm:$0xff] }
 0x2cd   :  { %6231 = vmatmul.msk.f32.gmra.mxu0 %vm796_vm2, %v1589_v2  ;;  %6256 = vmatmul.msk.f32.gmra.mxu2 %vm796_vm2, %v1589_v2 }
 0x2ce   :  { %2089 = vmatmul.f32.gmra.mxu1 %v6283_v5  ;;  %v6286_v5 = vld [vmem:[%s11144_s20 + $0x538] sm:$0xff] }
 0x2cf   :  { %6321 = vmatmul.msk.f32.gmra.mxu3 %vm229_vm0, %v6284_v29 }
 0x2d0   :  { %v1805_v43 = vpop.f32.mrf.mxu2 }
 0x2d1   :  { %v8672_v46 = vadd.f32 %v1805_v43, %v1242_v21 }
 0x2d2   :  { %v1591_v12 = vpop.f32.mrf.mxu3  ;;  %v8674_v4 = vpop.f32.mrf.mxu0 }
 0x2d3   :  { %11191 = vst [vmem:[#allocation62_spill] sm:$0xff] %v8674_v4  ;;  %v1592_v38 = vadd.f32 %v1591_v12, %v1502_v28  ;;  %v1505_v0 = vpop.f32.mrf.mxu1  ;;  %v3146_v4 = vld [vmem:[%s11121_s3] sm:$0x3] }
 0x2d5   :  { %6232 = vmatmul.msk.f32.gmra.mxu0 %vm796_vm2, %v1592_v38  ;;  %6257 = vmatmul.msk.f32.gmra.mxu2 %vm796_vm2, %v1592_v38  ;;  %v6287_v38 = vld [vmem:[%s11144_s20 + $0x540] sm:$0xff] }
 0x2d6   :  { %2092 = vmatmul.f32.gmra.mxu1 %v6285_v14  ;;  %v6288_v14 = vld [vmem:[%s11144_s20 + $0x548] sm:$0xff] }
 0x2d7   :  { %6322 = vmatmul.msk.f32.gmra.mxu3 %vm229_vm0, %v6286_v5  ;;  %v2227_v5 = vld [vmem:[#allocation2 + $0xe8] sm:$0xff] }
 0x2d8   :  { %v1808_v28 = vpop.f32.mrf.mxu2  ;;  %2410 = vmatpush.msrb.mxu2 %v2227_v5 }
 0x2d9   :  { %v8688_v2 = vadd.f32 %v1808_v28, %v1245_v7  ;;  %v2224_v28 = vld [vmem:[#allocation2 + $0xd0] sm:$0xff] }
 0x2da   :  { %v1594_v29 = vpop.f32.mrf.mxu3  ;;  %v8690_v21 = vpop.f32.mrf.mxu0 }
 0x2db   :  { %v1595_v43 = vadd.f32 %v1594_v29, %v1505_v0  ;;  %v1508_v12 = vpop.f32.mrf.mxu1  ;;  %v2226_v0 = vld [vmem:[#allocation2 + $0xe0] sm:$0xff]  ;;  %v2225_v29 = vld [vmem:[#allocation2 + $0xd8] sm:$0xff] }
 0x2dc   :  { %2321 = vmatpush.msrb.mxu0 %v2226_v0  ;;  %2411 = vmatpush.msrb.mxu2 %v2225_v29 }
 0x2dd   :  { %6233 = vmatmul.msk.f32.gmra.mxu0 %vm796_vm2, %v1595_v43  ;;  %6258 = vmatmul.msk.f32.gmra.mxu2 %vm796_vm2, %v1595_v43 }
 0x2de   :  { %2095 = vmatmul.f32.gmra.mxu1 %v6287_v38  ;;  %2322 = vmatpush.msrb.mxu0 %v2224_v28 }
 0x2df   :  { %6323 = vmatmul.msk.f32.gmra.mxu3 %vm229_vm0, %v6288_v14  ;;  %v2223_v14 = vld [vmem:[#allocation2 + $0xc8] sm:$0xff] }
 0x2e0   :  { %v1811_v37 = vpop.f32.mrf.mxu2  ;;  %2323 = vmatpush.msrb.mxu0 %v2222_v18  ;;  %2412 = vmatpush.msrb.mxu2 %v2223_v14  ;;  %v6291_v18 = vld [vmem:[%s11144_s20 + $0x560] sm:$0xff] }
 0x2e1   :  { %v8704_v7 = vadd.f32 %v1811_v37, %v1248_v8  ;;  %v6290_v8 = vld [vmem:[%s11144_s20 + $0x558] sm:$0xff] }
 0x2e2   :  { %v1597_v22 = vpop.f32.mrf.mxu3  ;;  %v8706_v43 = vpop.f32.mrf.mxu0 }
 0x2e3   :  { %v1598_v38 = vadd.f32 %v1597_v22, %v1508_v12  ;;  %v1511_v39 = vpop.f32.mrf.mxu1  ;;  %v1251_v22 = vadd.f32 %v8334_v48, %v8100_v51  ;;  %v1254_v51 = vadd.f32 %v8356_v56, %v8110_v33  ;;  %v1257_v33 = vadd.f32 %v8375_v6, %v8120_v47 }
 0x2e4   :  { %v1260_v47 = vadd.f32 %v8392_v25, %v8130_v30  ;;  %v1263_v30 = vadd.f32 %v8407_v58, %v8150_v54  ;;  %v1266_v54 = vadd.f32 %v8429_v42, %v8185_v15  ;;  %v1269_v15 = vadd.f32 %v8445_v40, %v8220_v45 }
 0x2e5   :  { %6234 = vmatmul.msk.f32.gmra.mxu0 %vm796_vm2, %v1598_v38  ;;  %6259 = vmatmul.msk.f32.gmra.mxu2 %vm796_vm2, %v1598_v38  ;;  %v6292_v38 = vld [vmem:[%s11144_s20 + $0x568] sm:$0xff]  ;;  %v1272_v45 = vadd.f32 %v8459_v17, %v8256_v44  ;;  %v1275_v44 = vadd.f32 %v8472_v23, %v8278_v3  ;;  %v1278_v3 = vadd.f32 %v8488_v52, %v8293_v11 }
 0x2e6   :  { %2098 = vmatmul.f32.gmra.mxu1 %v6289_v50  ;;  %v1281_v52 = vadd.f32 %v8506_v36, %v8308_v10  ;;  %v1284_v10 = vadd.f32 %v8520_v41, %v8321_v20  ;;  %v1287_v20 = vadd.f32 %v8533_v55, %v8336_v57  ;;  %v1290_v57 = vadd.f32 %v8549_v34, %v8349_v24 }
 0x2e7   :  { %6324 = vmatmul.msk.f32.gmra.mxu3 %vm229_vm0, %v6290_v8  ;;  %v1293_v34 = vadd.f32 %v8567_v62, %v8364_v35  ;;  %v1296_v35 = vadd.f32 %v8581_v53, %v8380_v16  ;;  %v1299_v16 = vadd.f32 %v8594_v1, %v8394_v31  ;;  %v1302_v31 = vadd.f32 %v8610_v49, %v8409_v9 }
 0x2e8   :  { %v1814_v12 = vpop.f32.mrf.mxu2  ;;  %v1305_v9 = vadd.f32 %v8628_v61, %v8422_v27  ;;  %v1308_v27 = vadd.f32 %v8642_v13, %v8437_v26 }
 0x2e9   :  { %v8719_v0 = vadd.f32 %v1814_v12, %v1251_v22  ;;  %v6293_v12 = vld [vmem:[%s11144_s20 + $0x570] sm:$0xff] }
 0x2ea   :  { %v1600_v5 = vpop.f32.mrf.mxu3  ;;  %v8721_v37 = vpop.f32.mrf.mxu0 }
 0x2eb   :  { %v1601_v28 = vadd.f32 %v1600_v5, %v1511_v39  ;;  %v1514_v29 = vpop.f32.mrf.mxu1  ;;  %v6294_v5 = vld [vmem:[%s11144_s20 + $0x578] sm:$0xff] }
 0x2ed   :  { %6235 = vmatmul.msk.f32.gmra.mxu0 %vm796_vm2, %v1601_v28  ;;  %6260 = vmatmul.msk.f32.gmra.mxu2 %vm796_vm2, %v1601_v28 }
 0x2ee   :  { %2101 = vmatmul.f32.gmra.mxu1 %v6291_v18 }
 0x2ef   :  { %6325 = vmatmul.msk.f32.gmra.mxu3 %vm229_vm0, %v6292_v38 }
 0x2f0   :  { %v1817_v48 = vpop.f32.mrf.mxu2 }
 0x2f1   :  { %v8734_v39 = vadd.f32 %v1817_v48, %v1254_v51  ;;  %v6295_v48 = vld [vmem:[%s11144_s20 + $0x580] sm:$0xff] }
 0x2f2   :  { %v1603_v50 = vpop.f32.mrf.mxu3  ;;  %v8736_v14 = vpop.f32.mrf.mxu0 }
 0x2f3   :  { %v1604_v8 = vadd.f32 %v1603_v50, %v1514_v29  ;;  %v1517_v22 = vpop.f32.mrf.mxu1  ;;  %v6296_v50 = vld [vmem:[%s11144_s20 + $0x588] sm:$0xff] }
 0x2f5   :  { %6236 = vmatmul.msk.f32.gmra.mxu0 %vm796_vm2, %v1604_v8  ;;  %6261 = vmatmul.msk.f32.gmra.mxu2 %vm796_vm2, %v1604_v8 }
 0x2f6   :  { %2104 = vmatmul.f32.gmra.mxu1 %v6293_v12 }
 0x2f7   :  { %6326 = vmatmul.msk.f32.gmra.mxu3 %vm229_vm0, %v6294_v5 }
 0x2f8   :  { %v1820_v56 = vpop.f32.mrf.mxu2 }
 0x2f9   :  { %v8749_v28 = vadd.f32 %v1820_v56, %v1257_v33  ;;  %v6297_v56 = vld [vmem:[%s11144_s20 + $0x590] sm:$0xff] }
 0x2fa   :  { %v1606_v29 = vpop.f32.mrf.mxu3  ;;  %v8751_v18 = vpop.f32.mrf.mxu0 }
 0x2fb   :  { %v1607_v38 = vadd.f32 %v1606_v29, %v1517_v22  ;;  %v2060_v51 = vpop.f32.mrf.mxu1  ;;  %v6298_v29 = vld [vmem:[%s11144_s20 + $0x598] sm:$0xff] }
 0x2fd   :  { %6237 = vmatmul.msk.f32.gmra.mxu0 %vm796_vm2, %v1607_v38  ;;  %6262 = vmatmul.msk.f32.gmra.mxu2 %vm796_vm2, %v1607_v38 }
 0x2fe   :  { %2107 = vmatmul.f32.gmra.mxu1 %v6295_v48 }
 0x2ff   :  { %6327 = vmatmul.msk.f32.gmra.mxu3 %vm229_vm0, %v6296_v50 }
 0x300   :  { %v1823_v6 = vpop.f32.mrf.mxu2 }
 0x301   :  { %v8764_v8 = vadd.f32 %v1823_v6, %v1260_v47  ;;  %v6299_v6 = vld [vmem:[%s11144_s20 + $0x5a0] sm:$0xff] }
 0x302   :  { %v8766_v22 = vpop.f32.mrf.mxu0  ;;  %v2149_v12 = vpop.f32.mrf.mxu3 }
 0x303   :  { %v2150_v5 = vadd.f32 %v2149_v12, %v2060_v51  ;;  %v2063_v33 = vpop.f32.mrf.mxu1  ;;  %v6300_v12 = vld [vmem:[%s11144_s20 + $0x5a8] sm:$0xff] }
 0x305   :  { %6336 = vmatmul.msk.f32.vlgmr.msrb.gmra.mxu0 %vm796_vm2, %v2150_v5  ;;  %6361 = vmatmul.msk.f32.vlgmr.msrb.gmra.mxu2 %vm796_vm2, %v2150_v5 }
 0x306   :  { %2110 = vmatmul.f32.gmra.mxu1 %v6297_v56 }
 0x307   :  { %6328 = vmatmul.msk.f32.gmra.mxu3 %vm229_vm0, %v6298_v29 }
 0x308   :  { %v1826_v25 = vpop.f32.mrf.mxu2 }
 0x309   :  { %v8779_v38 = vadd.f32 %v1826_v25, %v1263_v30  ;;  %v6301_v25 = vld [vmem:[%s11144_s20 + $0x5b0] sm:$0xff] }
 0x30a   :  { %v8781_v51 = vpop.f32.mrf.mxu0  ;;  %v2152_v48 = vpop.f32.mrf.mxu3 }
 0x30b   :  { %v2153_v50 = vadd.f32 %v2152_v48, %v2063_v33  ;;  %v2066_v47 = vpop.f32.mrf.mxu1  ;;  %v6302_v48 = vld [vmem:[%s11144_s20 + $0x5b8] sm:$0xff] }
 0x30d   :  { %6337 = vmatmul.msk.f32.gmra.mxu0 %vm796_vm2, %v2153_v50  ;;  %6362 = vmatmul.msk.f32.gmra.mxu2 %vm796_vm2, %v2153_v50 }
 0x30e   :  { %2113 = vmatmul.f32.gmra.mxu1 %v6299_v6 }
 0x30f   :  { %6329 = vmatmul.msk.f32.gmra.mxu3 %vm229_vm0, %v6300_v12 }
 0x310   :  { %v1829_v58 = vpop.f32.mrf.mxu2 }
 0x311   :  { %v8794_v5 = vadd.f32 %v1829_v58, %v1266_v54  ;;  %v6303_v58 = vld [vmem:[%s11144_s20 + $0x5c0] sm:$0xff] }
 0x312   :  { %v8796_v33 = vpop.f32.mrf.mxu0  ;;  %v2155_v56 = vpop.f32.mrf.mxu3 }
 0x313   :  { %v2156_v29 = vadd.f32 %v2155_v56, %v2066_v47  ;;  %v2069_v30 = vpop.f32.mrf.mxu1  ;;  %v6304_v56 = vld [vmem:[%s11144_s20 + $0x5c8] sm:$0xff] }
 0x315   :  { %6338 = vmatmul.msk.f32.gmra.mxu0 %vm796_vm2, %v2156_v29  ;;  %6363 = vmatmul.msk.f32.gmra.mxu2 %vm796_vm2, %v2156_v29 }
 0x316   :  { %2116 = vmatmul.f32.gmra.mxu1 %v6301_v25 }
 0x317   :  { %6330 = vmatmul.msk.f32.gmra.mxu3 %vm229_vm0, %v6302_v48 }
 0x318   :  { %v1832_v42 = vpop.f32.mrf.mxu2 }
 0x319   :  { %v8809_v50 = vadd.f32 %v1832_v42, %v1269_v15  ;;  %v6305_v42 = vld [vmem:[%s11144_s20 + $0x5d0] sm:$0xff] }
 0x31a   :  { %v8811_v47 = vpop.f32.mrf.mxu0  ;;  %v2158_v6 = vpop.f32.mrf.mxu3 }
 0x31b   :  { %v2159_v12 = vadd.f32 %v2158_v6, %v2069_v30  ;;  %v2072_v54 = vpop.f32.mrf.mxu1  ;;  %v6306_v6 = vld [vmem:[%s11144_s20 + $0x5d8] sm:$0xff] }
 0x31d   :  { %6339 = vmatmul.msk.f32.gmra.mxu0 %vm796_vm2, %v2159_v12  ;;  %6364 = vmatmul.msk.f32.gmra.mxu2 %vm796_vm2, %v2159_v12 }
 0x31e   :  { %2119 = vmatmul.f32.gmra.mxu1 %v6303_v58 }
 0x31f   :  { %6331 = vmatmul.msk.f32.gmra.mxu3 %vm229_vm0, %v6304_v56 }
 0x320   :  { %v1835_v40 = vpop.f32.mrf.mxu2 }
 0x321   :  { %v8824_v29 = vadd.f32 %v1835_v40, %v1272_v45  ;;  %v6307_v40 = vld [vmem:[%s11144_s20 + $0x5e0] sm:$0xff] }
 0x322   :  { %v8826_v30 = vpop.f32.mrf.mxu0  ;;  %v2161_v25 = vpop.f32.mrf.mxu3 }
 0x323   :  { %v2162_v48 = vadd.f32 %v2161_v25, %v2072_v54  ;;  %v2075_v15 = vpop.f32.mrf.mxu1  ;;  %v6308_v25 = vld [vmem:[%s11144_s20 + $0x5e8] sm:$0xff] }
 0x325   :  { %6340 = vmatmul.msk.f32.gmra.mxu0 %vm796_vm2, %v2162_v48  ;;  %6365 = vmatmul.msk.f32.gmra.mxu2 %vm796_vm2, %v2162_v48 }
 0x326   :  { %2122 = vmatmul.f32.gmra.mxu1 %v6305_v42 }
 0x327   :  { %6332 = vmatmul.msk.f32.gmra.mxu3 %vm229_vm0, %v6306_v6 }
 0x328   :  { %v1838_v17 = vpop.f32.mrf.mxu2 }
 0x329   :  { %v8839_v12 = vadd.f32 %v1838_v17, %v1275_v44  ;;  %v6309_v17 = vld [vmem:[%s11144_s20 + $0x5f0] sm:$0xff] }
 0x32a   :  { %v8841_v54 = vpop.f32.mrf.mxu0  ;;  %v2164_v58 = vpop.f32.mrf.mxu3 }
 0x32b   :  { %v2165_v56 = vadd.f32 %v2164_v58, %v2075_v15  ;;  %v2078_v45 = vpop.f32.mrf.mxu1  ;;  %v6310_v58 = vld [vmem:[%s11144_s20 + $0x5f8] sm:$0xff] }
 0x32d   :  { %6341 = vmatmul.msk.f32.gmra.mxu0 %vm796_vm2, %v2165_v56  ;;  %6366 = vmatmul.msk.f32.gmra.mxu2 %vm796_vm2, %v2165_v56 }
 0x32e   :  { %2125 = vmatmul.f32.gmra.mxu1 %v6307_v40 }
 0x32f   :  { %6333 = vmatmul.msk.f32.gmra.mxu3 %vm229_vm0, %v6308_v25 }
 0x330   :  { %v1841_v23 = vpop.f32.mrf.mxu2 }
 0x331   :  { %v8854_v48 = vadd.f32 %v1841_v23, %v1278_v3  ;;  %v6385_v23 = vld [vmem:[%s11144_s20 + $0x600] sm:$0xff] }
 0x332   :  { %v8856_v15 = vpop.f32.mrf.mxu0  ;;  %v2167_v42 = vpop.f32.mrf.mxu3 }
 0x333   :  { %v2168_v6 = vadd.f32 %v2167_v42, %v2078_v45  ;;  %v2081_v44 = vpop.f32.mrf.mxu1  ;;  %v6386_v42 = vld [vmem:[%s11144_s20 + $0x608] sm:$0xff] }
 0x335   :  { %6342 = vmatmul.msk.f32.gmra.mxu0 %vm796_vm2, %v2168_v6  ;;  %6367 = vmatmul.msk.f32.gmra.mxu2 %vm796_vm2, %v2168_v6 }
 0x336   :  { %2128 = vmatmul.f32.gmra.mxu1 %v6309_v17 }
 0x337   :  { %6334 = vmatmul.msk.f32.gmra.mxu3 %vm229_vm0, %v6310_v58 }
 0x338   :  { %v1844_v11 = vpop.f32.mrf.mxu2 }
 0x339   :  { %v8869_v56 = vadd.f32 %v1844_v11, %v1281_v52  ;;  %v6387_v11 = vld [vmem:[%s11144_s20 + $0x610] sm:$0xff] }
 0x33a   :  { %v8871_v45 = vpop.f32.mrf.mxu0  ;;  %v2170_v40 = vpop.f32.mrf.mxu3 }
 0x33b   :  { %v2171_v25 = vadd.f32 %v2170_v40, %v2081_v44  ;;  %v2084_v3 = vpop.f32.mrf.mxu1  ;;  %v6388_v40 = vld [vmem:[%s11144_s20 + $0x618] sm:$0xff] }
 0x33d   :  { %6343 = vmatmul.msk.f32.gmra.mxu0 %vm796_vm2, %v2171_v25  ;;  %6368 = vmatmul.msk.f32.gmra.mxu2 %vm796_vm2, %v2171_v25 }
 0x33e   :  { %2671 = vmatmul.f32.vlgmr.msra.gmra.mxu1 %v6385_v23 }
 0x33f   :  { %6433 = vmatmul.msk.f32.vlgmr.msra.gmra.mxu3 %vm229_vm0, %v6386_v42 }
 0x340   :  { %v1847_v36 = vpop.f32.mrf.mxu2 }
 0x341   :  { %v8884_v6 = vadd.f32 %v1847_v36, %v1284_v10  ;;  %v6389_v36 = vld [vmem:[%s11144_s20 + $0x620] sm:$0xff] }
 0x342   :  { %v8886_v44 = vpop.f32.mrf.mxu0  ;;  %v2173_v17 = vpop.f32.mrf.mxu3 }
 0x343   :  { %11192 = vst [vmem:[#allocation63_spill] sm:$0xff] %v8886_v44  ;;  %v2174_v58 = vadd.f32 %v2173_v17, %v2084_v3  ;;  %v2087_v52 = vpop.f32.mrf.mxu1  ;;  %v6390_v17 = vld [vmem:[%s11144_s20 + $0x628] sm:$0xff]  ;;  %v6409_v44 = vld [vmem:[%s11144_s20 + $0x6c0] sm:$0xff] }
 0x345   :  { %6344 = vmatmul.msk.f32.gmra.mxu0 %vm796_vm2, %v2174_v58  ;;  %6369 = vmatmul.msk.f32.gmra.mxu2 %vm796_vm2, %v2174_v58 }
 0x346   :  { %2674 = vmatmul.f32.gmra.mxu1 %v6387_v11 }
 0x347   :  { %6434 = vmatmul.msk.f32.gmra.mxu3 %vm229_vm0, %v6388_v40 }
 0x348   :  { %v1850_v41 = vpop.f32.mrf.mxu2 }
 0x349   :  { %v8899_v25 = vadd.f32 %v1850_v41, %v1287_v20  ;;  %v6391_v41 = vld [vmem:[%s11144_s20 + $0x630] sm:$0xff] }
 0x34a   :  { %v8901_v3 = vpop.f32.mrf.mxu0  ;;  %v2176_v23 = vpop.f32.mrf.mxu3 }
 0x34b   :  { %11193 = vst [vmem:[#allocation64_spill] sm:$0xff] %v8901_v3  ;;  %v2177_v42 = vadd.f32 %v2176_v23, %v2087_v52  ;;  %v2090_v10 = vpop.f32.mrf.mxu1  ;;  %v6392_v23 = vld [vmem:[%s11144_s20 + $0x638] sm:$0xff] }
 0x34d   :  { %6345 = vmatmul.msk.f32.gmra.mxu0 %vm796_vm2, %v2177_v42  ;;  %6370 = vmatmul.msk.f32.gmra.mxu2 %vm796_vm2, %v2177_v42 }
 0x34e   :  { %2677 = vmatmul.f32.gmra.mxu1 %v6389_v36 }
 0x34f   :  { %6435 = vmatmul.msk.f32.gmra.mxu3 %vm229_vm0, %v6390_v17 }
 0x350   :  { %v1853_v55 = vpop.f32.mrf.mxu2 }
 0x351   :  { %v8914_v58 = vadd.f32 %v1853_v55, %v1290_v57  ;;  %v6393_v55 = vld [vmem:[%s11144_s20 + $0x640] sm:$0xff] }
 0x352   :  { %v8916_v52 = vpop.f32.mrf.mxu0  ;;  %v2179_v11 = vpop.f32.mrf.mxu3 }
 0x353   :  { %11194 = vst [vmem:[#allocation65_spill] sm:$0xff] %v8916_v52  ;;  %v2180_v40 = vadd.f32 %v2179_v11, %v2090_v10  ;;  %v2093_v20 = vpop.f32.mrf.mxu1  ;;  %v6394_v11 = vld [vmem:[%s11144_s20 + $0x648] sm:$0xff] }
 0x355   :  { %6346 = vmatmul.msk.f32.gmra.mxu0 %vm796_vm2, %v2180_v40  ;;  %6371 = vmatmul.msk.f32.gmra.mxu2 %vm796_vm2, %v2180_v40 }
 0x356   :  { %2680 = vmatmul.f32.gmra.mxu1 %v6391_v41 }
 0x357   :  { %6436 = vmatmul.msk.f32.gmra.mxu3 %vm229_vm0, %v6392_v23 }
 0x358   :  { %v1856_v24 = vpop.f32.mrf.mxu2 }
 0x359   :  { %v8929_v42 = vadd.f32 %v1856_v24, %v1293_v34  ;;  %v6395_v24 = vld [vmem:[%s11144_s20 + $0x650] sm:$0xff] }
 0x35a   :  { %v8931_v10 = vpop.f32.mrf.mxu0  ;;  %v2182_v36 = vpop.f32.mrf.mxu3 }
 0x35b   :  { %11195 = vst [vmem:[#allocation66_spill] sm:$0xff] %v8931_v10  ;;  %v2183_v17 = vadd.f32 %v2182_v36, %v2093_v20  ;;  %v2096_v57 = vpop.f32.mrf.mxu1  ;;  %v6396_v36 = vld [vmem:[%s11144_s20 + $0x658] sm:$0xff]  ;;  %v2835_v10 = vld [vmem:[#allocation2 + $0x108] sm:$0xff] }
 0x35d   :  { %6347 = vmatmul.msk.f32.gmra.mxu0 %vm796_vm2, %v2183_v17  ;;  %6372 = vmatmul.msk.f32.gmra.mxu2 %vm796_vm2, %v2183_v17 }
 0x35e   :  { %2683 = vmatmul.f32.gmra.mxu1 %v6393_v55 }
 0x35f   :  { %6437 = vmatmul.msk.f32.gmra.mxu3 %vm229_vm0, %v6394_v11 }
 0x360   :  { %v1859_v62 = vpop.f32.mrf.mxu2 }
 0x361   :  { %v8944_v40 = vadd.f32 %v1859_v62, %v1296_v35  ;;  %v6397_v62 = vld [vmem:[%s11144_s20 + $0x660] sm:$0xff] }
 0x362   :  { %v8946_v20 = vpop.f32.mrf.mxu0  ;;  %v2185_v41 = vpop.f32.mrf.mxu3 }
 0x363   :  { %11196 = vst [vmem:[#allocation67_spill] sm:$0xff] %v8946_v20  ;;  %v2186_v23 = vadd.f32 %v2185_v41, %v2096_v57  ;;  %v2099_v34 = vpop.f32.mrf.mxu1  ;;  %v6398_v41 = vld [vmem:[%s11144_s20 + $0x668] sm:$0xff]  ;;  %v6419_v20 = vld [vmem:[%s11144_s20 + $0x710] sm:$0xff] }
 0x365   :  { %6348 = vmatmul.msk.f32.gmra.mxu0 %vm796_vm2, %v2186_v23  ;;  %6373 = vmatmul.msk.f32.gmra.mxu2 %vm796_vm2, %v2186_v23 }
 0x366   :  { %2686 = vmatmul.f32.gmra.mxu1 %v6395_v24 }
 0x367   :  { %6438 = vmatmul.msk.f32.gmra.mxu3 %vm229_vm0, %v6396_v36 }
 0x368   :  { %v1862_v53 = vpop.f32.mrf.mxu2 }
 0x369   :  { %v8959_v17 = vadd.f32 %v1862_v53, %v1299_v16  ;;  %v6399_v53 = vld [vmem:[%s11144_s20 + $0x670] sm:$0xff] }
 0x36a   :  { %v8961_v57 = vpop.f32.mrf.mxu0  ;;  %v2188_v55 = vpop.f32.mrf.mxu3 }
 0x36b   :  { %11197 = vst [vmem:[#allocation68_spill] sm:$0xff] %v8961_v57  ;;  %v2189_v11 = vadd.f32 %v2188_v55, %v2099_v34  ;;  %v2102_v35 = vpop.f32.mrf.mxu1  ;;  %v6400_v55 = vld [vmem:[%s11144_s20 + $0x678] sm:$0xff]  ;;  %v6421_v57 = vld [vmem:[%s11144_s20 + $0x720] sm:$0xff] }
 0x36d   :  { %6349 = vmatmul.msk.f32.gmra.mxu0 %vm796_vm2, %v2189_v11  ;;  %6374 = vmatmul.msk.f32.gmra.mxu2 %vm796_vm2, %v2189_v11 }
 0x36e   :  { %2689 = vmatmul.f32.gmra.mxu1 %v6397_v62 }
 0x36f   :  { %6439 = vmatmul.msk.f32.gmra.mxu3 %vm229_vm0, %v6398_v41 }
 0x370   :  { %v1865_v1 = vpop.f32.mrf.mxu2 }
 0x371   :  { %v8974_v23 = vadd.f32 %v1865_v1, %v1302_v31  ;;  %v6401_v1 = vld [vmem:[%s11144_s20 + $0x680] sm:$0xff] }
 0x372   :  { %v8976_v34 = vpop.f32.mrf.mxu0  ;;  %v2191_v24 = vpop.f32.mrf.mxu3 }
 0x373   :  { %11198 = vst [vmem:[#allocation69_spill] sm:$0xff] %v8976_v34  ;;  %v2192_v36 = vadd.f32 %v2191_v24, %v2102_v35  ;;  %v2105_v16 = vpop.f32.mrf.mxu1  ;;  %v6402_v24 = vld [vmem:[%s11144_s20 + $0x688] sm:$0xff]  ;;  %v6425_v34 = vld [vmem:[%s11144_s20 + $0x740] sm:$0xff] }
 0x375   :  { %6350 = vmatmul.msk.f32.gmra.mxu0 %vm796_vm2, %v2192_v36  ;;  %6375 = vmatmul.msk.f32.gmra.mxu2 %vm796_vm2, %v2192_v36 }
 0x376   :  { %2692 = vmatmul.f32.gmra.mxu1 %v6399_v53 }
 0x377   :  { %6440 = vmatmul.msk.f32.gmra.mxu3 %vm229_vm0, %v6400_v55 }
 0x378   :  { %v1868_v49 = vpop.f32.mrf.mxu2 }
 0x379   :  { %v8989_v11 = vadd.f32 %v1868_v49, %v1305_v9  ;;  %v6403_v49 = vld [vmem:[%s11144_s20 + $0x690] sm:$0xff] }
 0x37a   :  { %v8991_v35 = vpop.f32.mrf.mxu0  ;;  %v2194_v62 = vpop.f32.mrf.mxu3 }
 0x37b   :  { %11199 = vst [vmem:[#allocation70_spill] sm:$0xff] %v8991_v35  ;;  %v2195_v41 = vadd.f32 %v2194_v62, %v2105_v16  ;;  %v2108_v31 = vpop.f32.mrf.mxu1  ;;  %v6404_v62 = vld [vmem:[%s11144_s20 + $0x698] sm:$0xff]  ;;  %v6423_v35 = vld [vmem:[%s11144_s20 + $0x730] sm:$0xff] }
 0x37d   :  { %6351 = vmatmul.msk.f32.gmra.mxu0 %vm796_vm2, %v2195_v41  ;;  %6376 = vmatmul.msk.f32.gmra.mxu2 %vm796_vm2, %v2195_v41 }
 0x37e   :  { %2695 = vmatmul.f32.gmra.mxu1 %v6401_v1 }
 0x37f   :  { %6441 = vmatmul.msk.f32.gmra.mxu3 %vm229_vm0, %v6402_v24 }
 0x380   :  { %v1871_v61 = vpop.f32.mrf.mxu2 }
 0x381   :  { %v9004_v36 = vadd.f32 %v1871_v61, %v1308_v27  ;;  %v6405_v27 = vld [vmem:[%s11144_s20 + $0x6a0] sm:$0xff]  ;;  %v6406_v61 = vld [vmem:[%s11144_s20 + $0x6a8] sm:$0xff] }
 0x382   :  { %v2197_v16 = vpop.f32.mrf.mxu3  ;;  %v9006_v53 = vpop.f32.mrf.mxu0 }
 0x383   :  { %11200 = vst [vmem:[#allocation71_spill] sm:$0xff] %v9006_v53  ;;  %v2198_v55 = vadd.f32 %v2197_v16, %v2108_v31  ;;  %v2111_v9 = vpop.f32.mrf.mxu1 }
 0x385   :  { %6352 = vmatmul.msk.f32.gmra.mxu0 %vm796_vm2, %v2198_v55  ;;  %6377 = vmatmul.msk.f32.gmra.mxu2 %vm796_vm2, %v2198_v55 }
 0x386   :  { %2698 = vmatmul.f32.gmra.mxu1 %v6403_v49 }
 0x387   :  { %6442 = vmatmul.msk.f32.gmra.mxu3 %vm229_vm0, %v6404_v62 }
 0x388   :  { %v2414_v26 = vpop.f32.mrf.mxu2 }
 0x389   :  { %v9018_v13 = vadd.f32 %v2414_v26, %v8657_v32  ;;  %v6407_v26 = vld [vmem:[%s11144_s20 + $0x6b0] sm:$0xff] }
 0x38a   :  { %v2200_v41 = vpop.f32.mrf.mxu3  ;;  %v9020_v31 = vpop.f32.mrf.mxu0 }
 0x38b   :  { %11201 = vst [vmem:[#allocation72_spill] sm:$0xff] %v9018_v13  ;;  %v2201_v1 = vadd.f32 %v2200_v41, %v2111_v9  ;;  %v2114_v24 = vpop.f32.mrf.mxu1  ;;  %v6408_v41 = vld [vmem:[%s11144_s20 + $0x6b8] sm:$0xff]  ;;  %v6427_v13 = vld [vmem:[%s11144_s20 + $0x750] sm:$0xff] }
 0x38c   :  { %11202 = vst [vmem:[#allocation73_spill] sm:$0xff] %v9020_v31  ;;  %v1195_v31 = vadd.f32 %v8509_v59, %v8310_v19  ;;  %v11249_v59 = vld [vmem:[#allocation27_spill] sm:$0xff] }
 0x38d   :  { %6353 = vmatmul.msk.f32.gmra.mxu0 %vm796_vm2, %v2201_v1  ;;  %6378 = vmatmul.msk.f32.gmra.mxu2 %vm796_vm2, %v2201_v1  ;;  %v2841_v1 = vld [vmem:[#allocation2 + $0x138] sm:$0xf] }
 0x38e   :  { %2701 = vmatmul.f32.gmra.mxu1 %v6405_v27  ;;  %6482 = vmatpush.msk.msra.mxu2 %vm869_vm1, %v2841_v1 }
 0x38f   :  { %6443 = vmatmul.msk.f32.gmra.mxu3 %vm229_vm0, %v6406_v61 }
 0x390   :  { %v2417_v32 = vpop.f32.mrf.mxu2 }
 0x391   :  { %v9032_v16 = vadd.f32 %v2417_v32, %v8672_v46 }
 0x392   :  { %v2203_v55 = vpop.f32.mrf.mxu3  ;;  %v9034_v9 = vpop.f32.mrf.mxu0 }
 0x393   :  { %11203 = vst [vmem:[#allocation74_spill] sm:$0xff] %v9032_v16  ;;  %v2204_v49 = vadd.f32 %v2203_v55, %v2114_v24  ;;  %v2117_v62 = vpop.f32.mrf.mxu1  ;;  %v6429_v16 = vld [vmem:[%s11144_s20 + $0x760] sm:$0xff] }
 0x394   :  { %11204 = vst [vmem:[#allocation75_spill] sm:$0xff] %v9034_v9 }
 0x395   :  { %6354 = vmatmul.msk.f32.gmra.mxu0 %vm796_vm2, %v2204_v49  ;;  %6379 = vmatmul.msk.f32.gmra.mxu2 %vm796_vm2, %v2204_v49  ;;  %v6410_v49 = vld [vmem:[%s11144_s20 + $0x6c8] sm:$0xff] }
 0x396   :  { %2704 = vmatmul.f32.gmra.mxu1 %v6407_v26  ;;  %v2840_v26 = vld [vmem:[#allocation2 + $0x130] sm:$0xf] }
 0x397   :  { %6444 = vmatmul.msk.f32.gmra.mxu3 %vm229_vm0, %v6408_v41  ;;  %6457 = vmatpush.msk.msra.mxu0 %vm869_vm1, %v2840_v26  ;;  %v2834_v26 = vld [vmem:[#allocation2 + $0x100] sm:$0xff] }
 0x398   :  { %v2420_v46 = vpop.f32.mrf.mxu2 }
 0x399   :  { %v9047_v24 = vadd.f32 %v2420_v46, %v8688_v2  ;;  %v2838_v2 = vld [vmem:[#allocation2 + $0x120] sm:$0xff]  ;;  %v2836_v46 = vld [vmem:[#allocation2 + $0x110] sm:$0xff] }
 0x39a   :  { %v2206_v27 = vpop.f32.mrf.mxu3  ;;  %v9049_v61 = vpop.f32.mrf.mxu0  ;;  %2933 = vmatpush.msra.mxu0 %v2838_v2 }
 0x39b   :  { %11205 = vst [vmem:[#allocation76_spill] sm:$0xff] %v9047_v24  ;;  %v2207_v32 = vadd.f32 %v2206_v27, %v2117_v62  ;;  %v2120_v55 = vpop.f32.mrf.mxu1  ;;  %v2839_v62 = vld [vmem:[#allocation2 + $0x128] sm:$0xff]  ;;  %v2837_v27 = vld [vmem:[#allocation2 + $0x118] sm:$0xff]  ;;  %v6431_v24 = vld [vmem:[%s11144_s20 + $0x770] sm:$0xff] }
 0x39c   :  { %11206 = vst [vmem:[#allocation77_spill] sm:$0xff] %v9049_v61  ;;  %3022 = vmatpush.msra.mxu2 %v2839_v62  ;;  %2934 = vmatpush.msra.mxu0 %v2836_v46 }
 0x39d   :  { %6355 = vmatmul.msk.f32.gmra.mxu0 %vm796_vm2, %v2207_v32  ;;  %6380 = vmatmul.msk.f32.gmra.mxu2 %vm796_vm2, %v2207_v32 }
 0x39e   :  { %2707 = vmatmul.f32.gmra.mxu1 %v6409_v44  ;;  %3023 = vmatpush.msra.mxu2 %v2837_v27  ;;  %v6414_v27 = vld [vmem:[%s11144_s20 + $0x6e8] sm:$0xff] }
 0x39f   :  { %6445 = vmatmul.msk.f32.gmra.mxu3 %vm229_vm0, %v6410_v49  ;;  %v6411_v49 = vld [vmem:[%s11144_s20 + $0x6d0] sm:$0xff]  ;;  %2935 = vmatpush.msra.mxu0 %v2834_v26 }
 0x3a0   :  { %v2423_v41 = vpop.f32.mrf.mxu2  ;;  %3024 = vmatpush.msra.mxu2 %v2835_v10  ;;  %v6413_v10 = vld [vmem:[%s11144_s20 + $0x6e0] sm:$0xff] }
 0x3a1   :  { %v9062_v1 = vadd.f32 %v2423_v41, %v8704_v7  ;;  %v6412_v7 = vld [vmem:[%s11144_s20 + $0x6d8] sm:$0xff] }
 0x3a2   :  { %v2209_v3 = vpop.f32.mrf.mxu3  ;;  %v9064_v52 = vpop.f32.mrf.mxu0 }
 0x3a3   :  { %11207 = vst [vmem:[#allocation78_spill] sm:$0xff] %v9062_v1  ;;  %v2210_v44 = vadd.f32 %v2209_v3, %v2120_v55  ;;  %v2123_v32 = vpop.f32.mrf.mxu1 }
 0x3a4   :  { %11208 = vst [vmem:[#allocation79_spill] sm:$0xff] %v9064_v52 }
 0x3a5   :  { %6356 = vmatmul.msk.f32.gmra.mxu0 %vm796_vm2, %v2210_v44  ;;  %6381 = vmatmul.msk.f32.gmra.mxu2 %vm796_vm2, %v2210_v44 }
 0x3a6   :  { %2710 = vmatmul.f32.gmra.mxu1 %v6411_v49 }
 0x3a7   :  { %6446 = vmatmul.msk.f32.gmra.mxu3 %vm229_vm0, %v6412_v7 }
 0x3a8   :  { %v2426_v3 = vpop.f32.mrf.mxu2 }
 0x3a9   :  { %v9076_v55 = vadd.f32 %v2426_v3, %v8719_v0  ;;  %v6415_v3 = vld [vmem:[%s11144_s20 + $0x6f0] sm:$0xff] }
 0x3aa   :  { %v2212_v2 = vpop.f32.mrf.mxu3  ;;  %v9078_v62 = vpop.f32.mrf.mxu0 }
 0x3ab   :  { %11209 = vst [vmem:[#allocation80_spill] sm:$0xff] %v9076_v55  ;;  %v2213_v41 = vadd.f32 %v2212_v2, %v2123_v32  ;;  %v2126_v46 = vpop.f32.mrf.mxu1  ;;  %v6416_v2 = vld [vmem:[%s11144_s20 + $0x6f8] sm:$0xff] }
 0x3ad   :  { %6357 = vmatmul.msk.f32.gmra.mxu0 %vm796_vm2, %v2213_v41  ;;  %6382 = vmatmul.msk.f32.gmra.mxu2 %vm796_vm2, %v2213_v41 }
 0x3ae   :  { %2713 = vmatmul.f32.gmra.mxu1 %v6413_v10 }
 0x3af   :  { %6447 = vmatmul.msk.f32.gmra.mxu3 %vm229_vm0, %v6414_v27 }
 0x3b0   :  { %v2429_v0 = vpop.f32.mrf.mxu2 }
 0x3b1   :  { %v9090_v44 = vadd.f32 %v2429_v0, %v8734_v39 }
 0x3b2   :  { %v2215_v32 = vpop.f32.mrf.mxu3  ;;  %v9092_v49 = vpop.f32.mrf.mxu0 }
 0x3b3   :  { %11210 = vst [vmem:[#allocation81_spill] sm:$0xff] %v9090_v44  ;;  %v2216_v26 = vadd.f32 %v2215_v32, %v2126_v46  ;;  %v2129_v7 = vpop.f32.mrf.mxu1  ;;  %v6417_v32 = vld [vmem:[%s11144_s20 + $0x700] sm:$0xff] }
 0x3b5   :  { %6358 = vmatmul.msk.f32.gmra.mxu0 %vm796_vm2, %v2216_v26  ;;  %6383 = vmatmul.msk.f32.gmra.mxu2 %vm796_vm2, %v2216_v26  ;;  %v6418_v26 = vld [vmem:[%s11144_s20 + $0x708] sm:$0xff] }
 0x3b6   :  { %2716 = vmatmul.f32.gmra.mxu1 %v6415_v3 }
 0x3b7   :  { %6448 = vmatmul.msk.f32.gmra.mxu3 %vm229_vm0, %v6416_v2 }
 0x3b8   :  { %v2432_v39 = vpop.f32.mrf.mxu2 }
 0x3b9   :  { %v9104_v41 = vadd.f32 %v2432_v39, %v8749_v28 }
 0x3ba   :  { %v2218_v46 = vpop.f32.mrf.mxu3  ;;  %v9106_v10 = vpop.f32.mrf.mxu0 }
 0x3bb   :  { %11211 = vst [vmem:[#allocation82_spill] sm:$0xff] %v9104_v41  ;;  %v2219_v27 = vadd.f32 %v2218_v46, %v2129_v7  ;;  %v2672_v0 = vpop.f32.mrf.mxu1  ;;  %v11246_v41 = vld [vmem:[#allocation51_spill] sm:$0xff] }
 0x3bd   :  { %6359 = vmatmul.msk.f32.gmra.mxu0 %vm796_vm2, %v2219_v27  ;;  %6384 = vmatmul.msk.f32.gmra.mxu2 %vm796_vm2, %v2219_v27  ;;  %v6420_v27 = vld [vmem:[%s11144_s20 + $0x718] sm:$0xff] }
 0x3be   :  { %2719 = vmatmul.f32.gmra.mxu1 %v6417_v32 }
 0x3bf   :  { %6449 = vmatmul.msk.f32.gmra.mxu3 %vm229_vm0, %v6418_v26 }
 0x3c0   :  { %v2435_v28 = vpop.f32.mrf.mxu2 }
 0x3c1   :  { %v9118_v3 = vadd.f32 %v2435_v28, %v8764_v8 }
 0x3c2   :  { %v9120_v7 = vpop.f32.mrf.mxu0  ;;  %v2761_v2 = vpop.f32.mrf.mxu3 }
 0x3c3   :  { %11212 = vst [vmem:[#allocation83_spill] sm:$0xff] %v9118_v3  ;;  %v2762_v39 = vadd.f32 %v2761_v2, %v2672_v0  ;;  %v2675_v46 = vpop.f32.mrf.mxu1  ;;  %v11247_v3 = vld [vmem:[#allocation29_spill] sm:$0xff] }
 0x3c5   :  { %6458 = vmatmul.msk.f32.vlgmr.msra.gmra.mxu0 %vm796_vm2, %v2762_v39  ;;  %6483 = vmatmul.msk.f32.vlgmr.msra.gmra.mxu2 %vm796_vm2, %v2762_v39  ;;  %v6422_v39 = vld [vmem:[%s11144_s20 + $0x728] sm:$0xff] }
 0x3c6   :  { %2722 = vmatmul.f32.gmra.mxu1 %v6419_v20 }
 0x3c7   :  { %6450 = vmatmul.msk.f32.gmra.mxu3 %vm229_vm0, %v6420_v27 }
 0x3c8   :  { %v2438_v8 = vpop.f32.mrf.mxu2 }
 0x3c9   :  { %v9132_v32 = vadd.f32 %v2438_v8, %v8779_v38 }
 0x3ca   :  { %v9134_v0 = vpop.f32.mrf.mxu0  ;;  %v2764_v26 = vpop.f32.mrf.mxu3 }
 0x3cb   :  { %11213 = vst [vmem:[#allocation84_spill] sm:$0xff] %v9132_v32  ;;  %v2765_v28 = vadd.f32 %v2764_v26, %v2675_v46  ;;  %v2678_v2 = vpop.f32.mrf.mxu1  ;;  %v11251_v32 = vld [vmem:[#allocation26_spill] sm:$0xff] }
 0x3cd   :  { %6459 = vmatmul.msk.f32.gmra.mxu0 %vm796_vm2, %v2765_v28  ;;  %6484 = vmatmul.msk.f32.gmra.mxu2 %vm796_vm2, %v2765_v28  ;;  %v6424_v28 = vld [vmem:[%s11144_s20 + $0x738] sm:$0xff] }
 0x3ce   :  { %2725 = vmatmul.f32.gmra.mxu1 %v6421_v57 }
 0x3cf   :  { %6451 = vmatmul.msk.f32.gmra.mxu3 %vm229_vm0, %v6422_v39 }
 0x3d0   :  { %v2441_v38 = vpop.f32.mrf.mxu2 }
 0x3d1   :  { %v9146_v20 = vadd.f32 %v2441_v38, %v8794_v5 }
 0x3d2   :  { %v9148_v46 = vpop.f32.mrf.mxu0  ;;  %v2767_v27 = vpop.f32.mrf.mxu3 }
 0x3d3   :  { %v2768_v8 = vadd.f32 %v2767_v27, %v2678_v2  ;;  %v2681_v26 = vpop.f32.mrf.mxu1 }
 0x3d5   :  { %6460 = vmatmul.msk.f32.gmra.mxu0 %vm796_vm2, %v2768_v8  ;;  %6485 = vmatmul.msk.f32.gmra.mxu2 %vm796_vm2, %v2768_v8  ;;  %v6426_v8 = vld [vmem:[%s11144_s20 + $0x748] sm:$0xff] }
 0x3d6   :  { %2728 = vmatmul.f32.gmra.mxu1 %v6423_v35 }
 0x3d7   :  { %6452 = vmatmul.msk.f32.gmra.mxu3 %vm229_vm0, %v6424_v28 }
 0x3d8   :  { %v2444_v5 = vpop.f32.mrf.mxu2 }
 0x3d9   :  { %v9160_v57 = vadd.f32 %v2444_v5, %v8809_v50 }
 0x3da   :  { %v9162_v2 = vpop.f32.mrf.mxu0  ;;  %v2770_v39 = vpop.f32.mrf.mxu3 }
 0x3db   :  { %v2771_v38 = vadd.f32 %v2770_v39, %v2681_v26  ;;  %v2684_v27 = vpop.f32.mrf.mxu1 }
 0x3dd   :  { %6461 = vmatmul.msk.f32.gmra.mxu0 %vm796_vm2, %v2771_v38  ;;  %6486 = vmatmul.msk.f32.gmra.mxu2 %vm796_vm2, %v2771_v38  ;;  %v6428_v38 = vld [vmem:[%s11144_s20 + $0x758] sm:$0xff] }
 0x3de   :  { %2731 = vmatmul.f32.gmra.mxu1 %v6425_v34 }
 0x3df   :  { %6453 = vmatmul.msk.f32.gmra.mxu3 %vm229_vm0, %v6426_v8 }
 0x3e0   :  { %v2447_v50 = vpop.f32.mrf.mxu2 }
 0x3e1   :  { %v9174_v35 = vadd.f32 %v2447_v50, %v8824_v29 }
 0x3e2   :  { %v9176_v26 = vpop.f32.mrf.mxu0  ;;  %v2773_v28 = vpop.f32.mrf.mxu3 }
 0x3e3   :  { %v2774_v5 = vadd.f32 %v2773_v28, %v2684_v27  ;;  %v2687_v39 = vpop.f32.mrf.mxu1 }
 0x3e5   :  { %6462 = vmatmul.msk.f32.gmra.mxu0 %vm796_vm2, %v2774_v5  ;;  %6487 = vmatmul.msk.f32.gmra.mxu2 %vm796_vm2, %v2774_v5  ;;  %v6430_v5 = vld [vmem:[%s11144_s20 + $0x768] sm:$0xff] }
 0x3e6   :  { %2734 = vmatmul.f32.gmra.mxu1 %v6427_v13 }
 0x3e7   :  { %6454 = vmatmul.msk.f32.gmra.mxu3 %vm229_vm0, %v6428_v38 }
 0x3e8   :  { %v2450_v29 = vpop.f32.mrf.mxu2 }
 0x3e9   :  { %v9188_v34 = vadd.f32 %v2450_v29, %v8839_v12 }
 0x3ea   :  { %v9190_v27 = vpop.f32.mrf.mxu0  ;;  %v2776_v8 = vpop.f32.mrf.mxu3 }
 0x3eb   :  { %v2777_v50 = vadd.f32 %v2776_v8, %v2687_v39  ;;  %v2690_v28 = vpop.f32.mrf.mxu1 }
 0x3ed   :  { %6463 = vmatmul.msk.f32.gmra.mxu0 %vm796_vm2, %v2777_v50  ;;  %6488 = vmatmul.msk.f32.gmra.mxu2 %vm796_vm2, %v2777_v50  ;;  %v6432_v50 = vld [vmem:[%s11144_s20 + $0x778] sm:$0xff] }
 0x3ee   :  { %2737 = vmatmul.f32.gmra.mxu1 %v6429_v16 }
 0x3ef   :  { %6455 = vmatmul.msk.f32.gmra.mxu3 %vm229_vm0, %v6430_v5 }
 0x3f0   :  { %v2453_v12 = vpop.f32.mrf.mxu2 }
 0x3f1   :  { %v9202_v13 = vadd.f32 %v2453_v12, %v8854_v48 }
 0x3f2   :  { %v9204_v39 = vpop.f32.mrf.mxu0  ;;  %v2779_v38 = vpop.f32.mrf.mxu3 }
 0x3f3   :  { %v2780_v29 = vadd.f32 %v2779_v38, %v2690_v28  ;;  %v2693_v8 = vpop.f32.mrf.mxu1 }
 0x3f5   :  { %6464 = vmatmul.msk.f32.gmra.mxu0 %vm796_vm2, %v2780_v29  ;;  %6489 = vmatmul.msk.f32.gmra.mxu2 %vm796_vm2, %v2780_v29 }
 0x3f6   :  { %2740 = vmatmul.f32.gmra.mxu1 %v6431_v24 }
 0x3f7   :  { %6456 = vmatmul.msk.f32.gmra.mxu3 %vm229_vm0, %v6432_v50 }
 0x3f8   :  { %v2456_v48 = vpop.f32.mrf.mxu2 }
 0x3f9   :  { %v9216_v16 = vadd.f32 %v2456_v48, %v8869_v56 }
 0x3fa   :  { %v9218_v28 = vpop.f32.mrf.mxu0  ;;  %v2782_v5 = vpop.f32.mrf.mxu3 }
 0x3fb   :  { %v2783_v12 = vadd.f32 %v2782_v5, %v2693_v8  ;;  %v2696_v38 = vpop.f32.mrf.mxu1 }
 0x3fd   :  { %6465 = vmatmul.msk.f32.gmra.mxu0 %vm796_vm2, %v2783_v12  ;;  %6490 = vmatmul.msk.f32.gmra.mxu2 %vm796_vm2, %v2783_v12 }
 0x400   :  { %v2459_v1 = vpop.f32.mrf.mxu2 }
 0x401   :  { %v9223_v55 = vadd.f32 %v2459_v1, %v8884_v6 }
 0x402   :  { %v9225_v24 = vpop.f32.mrf.mxu0  ;;  %v2785_v29 = vpop.f32.mrf.mxu3 }
 0x403   :  { %11214 = vst [vmem:[#allocation85_spill] sm:$0xff] %v9225_v24  ;;  %v2786_v50 = vadd.f32 %v2785_v29, %v2696_v38  ;;  %v2699_v53 = vpop.f32.mrf.mxu1 }
 0x405   :  { %6466 = vmatmul.msk.f32.gmra.mxu0 %vm796_vm2, %v2786_v50  ;;  %6491 = vmatmul.msk.f32.gmra.mxu2 %vm796_vm2, %v2786_v50 }
 0x408   :  { %v2462_v56 = vpop.f32.mrf.mxu2 }
 0x409   :  { %v9230_v8 = vadd.f32 %v2462_v56, %v8899_v25 }
 0x40a   :  { %v9232_v48 = vpop.f32.mrf.mxu0  ;;  %v2788_v5 = vpop.f32.mrf.mxu3 }
 0x40b   :  { %11215 = vst [vmem:[#allocation86_spill] sm:$0xff] %v9230_v8  ;;  %v2789_v12 = vadd.f32 %v2788_v5, %v2699_v53  ;;  %v2702_v44 = vpop.f32.mrf.mxu1 }
 0x40c   :  { %11216 = vst [vmem:[#allocation87_spill] sm:$0xff] %v9232_v48 }
 0x40d   :  { %6467 = vmatmul.msk.f32.gmra.mxu0 %vm796_vm2, %v2789_v12  ;;  %6492 = vmatmul.msk.f32.gmra.mxu2 %vm796_vm2, %v2789_v12 }
 0x410   :  { %v2465_v6 = vpop.f32.mrf.mxu2 }
 0x411   :  { %v9237_v1 = vadd.f32 %v2465_v6, %v8914_v58 }
 0x412   :  { %v9239_v38 = vpop.f32.mrf.mxu0  ;;  %v2791_v29 = vpop.f32.mrf.mxu3 }
 0x413   :  { %11217 = vst [vmem:[#allocation88_spill] sm:$0xff] %v9237_v1  ;;  %v2792_v50 = vadd.f32 %v2791_v29, %v2702_v44  ;;  %v2705_v24 = vpop.f32.mrf.mxu1 }
 0x414   :  { %11218 = vst [vmem:[#allocation89_spill] sm:$0xff] %v9239_v38 }
 0x415   :  { %6468 = vmatmul.msk.f32.gmra.mxu0 %vm796_vm2, %v2792_v50  ;;  %6493 = vmatmul.msk.f32.gmra.mxu2 %vm796_vm2, %v2792_v50 }
 0x418   :  { %v2468_v25 = vpop.f32.mrf.mxu2 }
 0x419   :  { %v9244_v53 = vadd.f32 %v2468_v25, %v8929_v42 }
 0x41a   :  { %v9246_v56 = vpop.f32.mrf.mxu0  ;;  %v2794_v5 = vpop.f32.mrf.mxu3 }
 0x41b   :  { %11219 = vst [vmem:[#allocation90_spill] sm:$0xff] %v9244_v53  ;;  %v2795_v12 = vadd.f32 %v2794_v5, %v2705_v24  ;;  %v2708_v8 = vpop.f32.mrf.mxu1 }
 0x41c   :  { %11220 = vst [vmem:[#allocation91_spill] sm:$0xff] %v9246_v56 }
 0x41d   :  { %6469 = vmatmul.msk.f32.gmra.mxu0 %vm796_vm2, %v2795_v12  ;;  %6494 = vmatmul.msk.f32.gmra.mxu2 %vm796_vm2, %v2795_v12 }
 0x420   :  { %v2471_v58 = vpop.f32.mrf.mxu2 }
 0x421   :  { %v9251_v44 = vadd.f32 %v2471_v58, %v8944_v40 }
 0x422   :  { %v9253_v6 = vpop.f32.mrf.mxu0  ;;  %v2797_v29 = vpop.f32.mrf.mxu3 }
 0x423   :  { %11221 = vst [vmem:[#allocation92_spill] sm:$0xff] %v9251_v44  ;;  %v2798_v50 = vadd.f32 %v2797_v29, %v2708_v8  ;;  %v2711_v1 = vpop.f32.mrf.mxu1 }
 0x424   :  { %11222 = vst [vmem:[#allocation93_spill] sm:$0xff] %v9253_v6 }
 0x425   :  { %6470 = vmatmul.msk.f32.gmra.mxu0 %vm796_vm2, %v2798_v50  ;;  %6495 = vmatmul.msk.f32.gmra.mxu2 %vm796_vm2, %v2798_v50 }
 0x428   :  { %v2474_v42 = vpop.f32.mrf.mxu2 }
 0x429   :  { %v9258_v24 = vadd.f32 %v2474_v42, %v8959_v17 }
 0x42a   :  { %v9260_v25 = vpop.f32.mrf.mxu0  ;;  %v2800_v5 = vpop.f32.mrf.mxu3 }
 0x42b   :  { %11223 = vst [vmem:[#allocation94_spill] sm:$0xff] %v9258_v24  ;;  %v2801_v12 = vadd.f32 %v2800_v5, %v2711_v1  ;;  %v2714_v53 = vpop.f32.mrf.mxu1 }
 0x42c   :  { %11224 = vst [vmem:[#allocation95_spill] sm:$0xff] %v9260_v25 }
 0x42d   :  { %6471 = vmatmul.msk.f32.gmra.mxu0 %vm796_vm2, %v2801_v12  ;;  %6496 = vmatmul.msk.f32.gmra.mxu2 %vm796_vm2, %v2801_v12 }
 0x430   :  { %v2477_v40 = vpop.f32.mrf.mxu2 }
 0x431   :  { %v9265_v8 = vadd.f32 %v2477_v40, %v8974_v23 }
 0x432   :  { %v9267_v58 = vpop.f32.mrf.mxu0  ;;  %v2803_v29 = vpop.f32.mrf.mxu3 }
 0x433   :  { %11225 = vst [vmem:[#allocation96_spill] sm:$0xff] %v9265_v8  ;;  %v2804_v50 = vadd.f32 %v2803_v29, %v2714_v53  ;;  %v2717_v44 = vpop.f32.mrf.mxu1 }
 0x434   :  { %11226 = vst [vmem:[#allocation97_spill] sm:$0xff] %v9267_v58 }
 0x435   :  { %6472 = vmatmul.msk.f32.gmra.mxu0 %vm796_vm2, %v2804_v50  ;;  %6497 = vmatmul.msk.f32.gmra.mxu2 %vm796_vm2, %v2804_v50 }
 0x438   :  { %v2480_v17 = vpop.f32.mrf.mxu2 }
 0x439   :  { %v9272_v1 = vadd.f32 %v2480_v17, %v8989_v11 }
 0x43a   :  { %v9274_v42 = vpop.f32.mrf.mxu0  ;;  %v2806_v5 = vpop.f32.mrf.mxu3 }
 0x43b   :  { %11227 = vst [vmem:[#allocation98_spill] sm:$0xff] %v9272_v1  ;;  %v2807_v12 = vadd.f32 %v2806_v5, %v2717_v44  ;;  %v2720_v24 = vpop.f32.mrf.mxu1 }
 0x43c   :  { %11228 = vst [vmem:[#allocation99_spill] sm:$0xff] %v9274_v42 }
 0x43d   :  { %6473 = vmatmul.msk.f32.gmra.mxu0 %vm796_vm2, %v2807_v12  ;;  %6498 = vmatmul.msk.f32.gmra.mxu2 %vm796_vm2, %v2807_v12 }
 0x440   :  { %v2483_v23 = vpop.f32.mrf.mxu2 }
 0x441   :  { %v9279_v53 = vadd.f32 %v2483_v23, %v9004_v36 }
 0x442   :  { %v2809_v40 = vpop.f32.mrf.mxu3  ;;  %v9281_v29 = vpop.f32.mrf.mxu0 }
 0x443   :  { %11229 = vst [vmem:[#allocation100_spill] sm:$0xff] %v9279_v53  ;;  %v2810_v50 = vadd.f32 %v2809_v40, %v2720_v24  ;;  %v2723_v8 = vpop.f32.mrf.mxu1 }
 0x444   :  { %11230 = vst [vmem:[#allocation101_spill] sm:$0xff] %v9281_v29 }
 0x445   :  { %6474 = vmatmul.msk.f32.gmra.mxu0 %vm796_vm2, %v2810_v50  ;;  %6499 = vmatmul.msk.f32.gmra.mxu2 %vm796_vm2, %v2810_v50 }
 0x448   :  { %v9285_v11 = vpop.f32.mrf.mxu2 }
 0x449   :  { %11231 = vst [vmem:[#allocation102_spill] sm:$0xff] %v9285_v11 }
 0x44a   :  { %v2812_v44 = vpop.f32.mrf.mxu3  ;;  %v9287_v17 = vpop.f32.mrf.mxu0 }
 0x44b   :  { %11232 = vst [vmem:[#allocation103_spill] sm:$0xff] %v9287_v17  ;;  %v2813_v5 = vadd.f32 %v2812_v44, %v2723_v8  ;;  %v2726_v12 = vpop.f32.mrf.mxu1 }
 0x44d   :  { %6475 = vmatmul.msk.f32.gmra.mxu0 %vm796_vm2, %v2813_v5  ;;  %6500 = vmatmul.msk.f32.gmra.mxu2 %vm796_vm2, %v2813_v5 }
 0x450   :  { %v9291_v36 = vpop.f32.mrf.mxu2 }
 0x451   :  { %11233 = vst [vmem:[#allocation104_spill] sm:$0xff] %v9291_v36 }
 0x452   :  { %v2815_v23 = vpop.f32.mrf.mxu3  ;;  %v9293_v24 = vpop.f32.mrf.mxu0 }
 0x453   :  { %11234 = vst [vmem:[#allocation105_spill] sm:$0xff] %v9293_v24  ;;  %v2816_v40 = vadd.f32 %v2815_v23, %v2726_v12  ;;  %v2729_v48 = vpop.f32.mrf.mxu1  ;;  %v1192_v24 = vadd.f32 %v8496_v63, %v8295_v60 }
 0x455   :  { %6476 = vmatmul.msk.f32.gmra.mxu0 %vm796_vm2, %v2816_v40  ;;  %6501 = vmatmul.msk.f32.gmra.mxu2 %vm796_vm2, %v2816_v40  ;;  %v1902_v9 = vadd.f32 %v8856_v15, %v1192_v24 }
 0x457   :  { %v2514_v63 = vadd.f32 %v9204_v39, %v1902_v9 }
 0x458   :  { %v9297_v50 = vpop.f32.mrf.mxu2 }
 0x459   :  { %11235 = vst [vmem:[#allocation106_spill] sm:$0xff] %v9297_v50 }
 0x45a   :  { %v2818_v53 = vpop.f32.mrf.mxu3  ;;  %v9299_v8 = vpop.f32.mrf.mxu0 }
 0x45b   :  { %11236 = vst [vmem:[#allocation107_spill] sm:$0xff] %v9299_v8  ;;  %v2819_v44 = vadd.f32 %v2818_v53, %v2729_v48  ;;  %v2732_v1 = vpop.f32.mrf.mxu1 }
 0x45d   :  { %6477 = vmatmul.msk.f32.gmra.mxu0 %vm796_vm2, %v2819_v44  ;;  %6502 = vmatmul.msk.f32.gmra.mxu2 %vm796_vm2, %v2819_v44 }
 0x460   :  { %v9303_v5 = vpop.f32.mrf.mxu2 }
 0x461   :  { %11237 = vst [vmem:[#allocation108_spill] sm:$0xff] %v9303_v5 }
 0x462   :  { %v2821_v38 = vpop.f32.mrf.mxu3  ;;  %v9305_v12 = vpop.f32.mrf.mxu0 }
 0x463   :  { %11238 = vst [vmem:[#allocation109_spill] sm:$0xff] %v9305_v12  ;;  %v2822_v23 = vadd.f32 %v2821_v38, %v2732_v1  ;;  %v2735_v56 = vpop.f32.mrf.mxu1  ;;  %v11248_v12 = vld [vmem:[#allocation50_spill] sm:$0xff] }
 0x464   :  { %v1186_v61 = vadd.f32 %v11248_v12, %v11247_v3  ;;  %v9359_v3 = vperm.slane %v3146_v4, 0 }
 0x465   :  { %6478 = vmatmul.msk.f32.gmra.mxu0 %vm796_vm2, %v2822_v23  ;;  %6503 = vmatmul.msk.f32.gmra.mxu2 %vm796_vm2, %v2822_v23 }
 0x466   :  { %v1898_v15 = vadd.f32 %v8826_v30, %v1186_v61  ;;  %v11254_v30 = vld [vmem:[#allocation46_spill] sm:$0xff] }
 0x468   :  { %v9309_v40 = vpop.f32.mrf.mxu2  ;;  %v2510_v9 = vadd.f32 %v9176_v26, %v1898_v15 }
 0x469   :  { %11239 = vst [vmem:[#allocation110_spill] sm:$0xff] %v9309_v40 }
 0x46a   :  { %v2824_v6 = vpop.f32.mrf.mxu3  ;;  %v9311_v48 = vpop.f32.mrf.mxu0 }
 0x46b   :  { %11240 = vst [vmem:[#allocation111_spill] sm:$0xff] %v9311_v48  ;;  %v2825_v53 = vadd.f32 %v2824_v6, %v2735_v56  ;;  %v2738_v44 = vpop.f32.mrf.mxu1  ;;  %v11252_v48 = vld [vmem:[#allocation48_spill] sm:$0xff] }
 0x46c   :  { %v1180_v52 = vadd.f32 %v11252_v48, %v11251_v32  ;;  %v11256_v32 = vld [vmem:[#allocation44_spill] sm:$0xff] }
 0x46d   :  { %6479 = vmatmul.msk.f32.gmra.mxu0 %vm796_vm2, %v2825_v53  ;;  %6504 = vmatmul.msk.f32.gmra.mxu2 %vm796_vm2, %v2825_v53 }
 0x470   :  { %v9315_v25 = vpop.f32.mrf.mxu2 }
 0x471   :  { %11241 = vst [vmem:[#allocation112_spill] sm:$0xff] %v9315_v25 }
 0x472   :  { %v2827_v42 = vpop.f32.mrf.mxu3  ;;  %v9317_v38 = vpop.f32.mrf.mxu0 }
 0x473   :  { %v2828_v1 = vadd.f32 %v2827_v42, %v2738_v44  ;;  %v2741_v58 = vpop.f32.mrf.mxu1 }
 0x475   :  { %6480 = vmatmul.msk.f32.gmra.mxu0 %vm796_vm2, %v2828_v1  ;;  %6505 = vmatmul.msk.f32.gmra.mxu2 %vm796_vm2, %v2828_v1 }
 0x478   :  { %v9321_v23 = vpop.f32.mrf.mxu2 }
 0x479   :  { %11242 = vst [vmem:[#allocation113_spill] sm:$0xff] %v9321_v23  ;;  %v11245_v23 = vld [vmem:[#allocation31_spill] sm:$0xff] }
 0x47a   :  { %v2830_v11 = vpop.f32.mrf.mxu3  ;;  %v9323_v56 = vpop.f32.mrf.mxu0  ;;  %v1189_v8 = vadd.f32 %v11246_v41, %v11245_v23  ;;  %v11250_v41 = vld [vmem:[#allocation49_spill] sm:$0xff] }
 0x47b   :  { %v2831_v6 = vadd.f32 %v2830_v11, %v2741_v58  ;;  %v1183_v23 = vadd.f32 %v11250_v41, %v11249_v59  ;;  %v11258_v41 = vld [vmem:[#allocation41_spill] sm:$0xff] }
 0x47c   :  { %v1900_v60 = vadd.f32 %v8841_v54, %v1189_v8  ;;  %v11253_v8 = vld [vmem:[#allocation25_spill] sm:$0xff] }
 0x47d   :  { %6481 = vmatmul.msk.f32.gmra.mxu0 %vm796_vm2, %v2831_v6  ;;  %6506 = vmatmul.msk.f32.gmra.mxu2 %vm796_vm2, %v2831_v6  ;;  %v1896_v54 = vadd.f32 %v8811_v47, %v1183_v23  ;;  %v1177_v61 = vadd.f32 %v11254_v30, %v11253_v8  ;;  %v11255_v47 = vld [vmem:[#allocation24_spill] sm:$0xff]  ;;  %v11264_v30 = vld [vmem:[#allocation35_spill] sm:$0xff] }
 0x47e   :  { %v1174_v26 = vadd.f32 %v11256_v32, %v11255_v47  ;;  %v11263_v8 = vld [vmem:[#allocation20_spill] sm:$0xff] }
 0x480   :  { %v9327_v53 = vpop.f32.mrf.mxu2 }
 0x481   :  { %11243 = vst [vmem:[#allocation114_spill] sm:$0xff] %v9327_v53  ;;  %v1904_v53 = vadd.f32 %v8871_v45, %v1195_v31  ;;  %v2512_v31 = vadd.f32 %v9190_v27, %v1900_v60  ;;  %v1894_v27 = vadd.f32 %v8796_v33, %v1180_v52 }
 0x482   :  { %v9329_v36 = vpop.f32.mrf.mxu0 }
 0x483   :  { %v2516_v19 = vadd.f32 %v9218_v28, %v1904_v53  ;;  %v2508_v53 = vadd.f32 %v9162_v2, %v1896_v54  ;;  %v2506_v48 = vadd.f32 %v9148_v46, %v1894_v27  ;;  %v11262_v54 = vld [vmem:[#allocation37_spill] sm:$0xff] }
 0x488   :  { %v9331_v42 = vpop.f32.mrf.mxu2 }
 0x489   :  { %11244 = vst [vmem:[#allocation115_spill] sm:$0xff] %v9331_v42 }
 0x48a   :  { %v2964_v44 = vpop.f32.mrf.mxu0 }
 0x490   :  { %v9333_v50 = vpop.f32.mrf.mxu2 }
 0x492   :  { %v2967_v1 = vpop.f32.mrf.mxu0 }
 0x493   :  { %v3118_v15 = vadd.f32 %v2967_v1, %v2506_v48  ;;  %v11268_v48 = vld [vmem:[#allocation32_spill] sm:$0xff] }
 0x498   :  { %v9335_v5 = vpop.f32.mrf.mxu2 }
 0x49a   :  { %v2970_v29 = vpop.f32.mrf.mxu0 }
 0x49b   :  { %v3120_v59 = vadd.f32 %v2970_v29, %v2508_v53 }
 0x49d   :  { %v9407_v1 = vadd.f32 %v9359_v3, %v3120_v59 }
 0x4a0   :  { %v9337_v40 = vpop.f32.mrf.mxu2 }
 0x4a2   :  { %v2973_v58 = vpop.f32.mrf.mxu0 }
 0x4a8   :  { %v3062_v11 = vpop.f32.mrf.mxu2 }
 0x4aa   :  { %v2976_v17 = vpop.f32.mrf.mxu0 }
 0x4ab   :  { %v3124_v39 = vadd.f32 %v2976_v17, %v2512_v31  ;;  %v1892_v17 = vadd.f32 %v8781_v51, %v1177_v61  ;;  %v1890_v51 = vadd.f32 %v8766_v22, %v1174_v26 }
 0x4ad   :  { %v9383_v33 = vadd.f32 %v9359_v3, %v3124_v39  ;;  %v2504_v46 = vadd.f32 %v9134_v0, %v1892_v17  ;;  %v2502_v0 = vadd.f32 %v9120_v7, %v1890_v51  ;;  %v9421_v39 = vadd.f32 %v9359_v3, %v3118_v15  ;;  %v11273_v51 = vld [vmem:[#allocation17_spill] sm:$0xff]  ;;  %v11275_v15 = vld [vmem:[#allocation62_spill] sm:$0xff] }
 0x4b0   :  { %v3065_v25 = vpop.f32.mrf.mxu2 }
 0x4b2   :  { %v2979_v6 = vpop.f32.mrf.mxu0 }
 0x4b3   :  { %v3126_v24 = vadd.f32 %v2979_v6, %v2514_v63  ;;  %v3122_v6 = vadd.f32 %v2973_v58, %v2510_v9  ;;  %v9380_v63 = vperm.slane %v3146_v4, 1  ;;  %v11257_v58 = vld [vmem:[#allocation23_spill] sm:$0xff] }
 0x4b4   :  { %v1171_v23 = vadd.f32 %v11258_v41, %v11257_v58 }
 0x4b5   :  { %v9373_v60 = vadd.f32 %v9359_v3, %v3126_v24  ;;  %v9395_v29 = vadd.f32 %v9359_v3, %v3122_v6  ;;  %v3116_v24 = vadd.f32 %v2964_v44, %v2504_v46  ;;  %v3114_v44 = vadd.f32 %v9329_v36, %v2502_v0  ;;  %v11266_v6 = vld [vmem:[#allocation33_spill] sm:$0xff]  ;;  %v11274_v46 = vld [vmem:[#allocation30_spill] sm:$0xff] }
 0x4b6   :  { %v1888_v22 = vadd.f32 %v8751_v18, %v1171_v23 }
 0x4b8   :  { %v3068_v42 = vpop.f32.mrf.mxu2  ;;  %v2500_v7 = vadd.f32 %v9106_v10, %v1888_v22 }
 0x4b9   :  { %v3127_v52 = vadd.f32 %v3068_v42, %v9216_v16  ;;  %v11260_v42 = vld [vmem:[#allocation39_spill] sm:$0xff] }
 0x4ba   :  { %v2982_v45 = vpop.f32.mrf.mxu0  ;;  %v3112_v61 = vadd.f32 %v9323_v56, %v2500_v7 }
 0x4bb   :  { %v3128_v12 = vadd.f32 %v2982_v45, %v2516_v19  ;;  %v3125_v45 = vadd.f32 %v3065_v25, %v9202_v13  ;;  %v9411_v13 = vadd.f32 %v9380_v63, %v3127_v52  ;;  %v11261_v25 = vld [vmem:[#allocation21_spill] sm:$0xff]  ;;  %v11270_v52 = vld [vmem:[#allocation111_spill] sm:$0xff] }
 0x4bc   :  { %v1165_v9 = vadd.f32 %v11262_v54, %v11261_v25  ;;  %v9470_v58 = vadd.f32 %v9359_v3, %v3112_v61 }
 0x4bd   :  { %v9366_v28 = vadd.f32 %v9359_v3, %v3128_v12  ;;  %v3123_v12 = vadd.f32 %v3062_v11, %v9188_v34  ;;  %v3121_v34 = vadd.f32 %v9337_v40, %v9174_v35  ;;  %v9426_v11 = vadd.f32 %v9380_v63, %v3125_v45 }
 0x4be   :  { %v1884_v10 = vadd.f32 %v8721_v37, %v1165_v9  ;;  %v9438_v35 = vadd.f32 %v9359_v3, %v3116_v24  ;;  %v3119_v40 = vadd.f32 %v9335_v5, %v9160_v57  ;;  %v11265_v37 = vld [vmem:[#allocation19_spill] sm:$0xff]  ;;  %v9455_v57 = vadd.f32 %v9359_v3, %v3114_v44  ;;  %v11280_v9 = vld [vmem:[#allocation16_spill] sm:$0xff]  ;;  %v11282_v44 = vld [vmem:[#allocation61_spill] sm:$0xff] }
 0x4bf   :  { %3261 = vmatpush.msrb.mxu1 %v9366_v28  ;;  %v9443_v53 = vadd.f32 %v9380_v63, %v3123_v12  ;;  %v3117_v5 = vadd.f32 %v9333_v50, %v9146_v20  ;;  %v9460_v17 = vadd.f32 %v9380_v63, %v3121_v34  ;;  %v11271_v20 = vld [vmem:[#allocation84_spill] sm:$0xff]  ;;  %v11272_v50 = vld [vmem:[#allocation115_spill] sm:$0xff]  ;;  %v11279_v12 = vld [vmem:[#allocation114_spill] sm:$0xff] }
 0x4c0   :  { %v3071_v19 = vpop.f32.mrf.mxu2  ;;  %v2496_v47 = vadd.f32 %v9078_v62, %v1884_v10  ;;  %v3115_v41 = vadd.f32 %v11272_v50, %v11271_v20  ;;  %v9475_v23 = vadd.f32 %v9380_v63, %v3119_v40  ;;  %v11278_v24 = vld [vmem:[#allocation83_spill] sm:$0xff]  ;;  %v11285_v40 = vld [vmem:[#allocation82_spill] sm:$0xff] }
 0x4c1   :  { %v3129_v2 = vadd.f32 %v3071_v19, %v9223_v55  ;;  %3262 = vmatpush.msrb.mxu1 %v9373_v60  ;;  %v11259_v55 = vld [vmem:[#allocation22_spill] sm:$0xff]  ;;  %v11269_v19 = vld [vmem:[#allocation79_spill] sm:$0xff]  ;;  %v3113_v25 = vadd.f32 %v11279_v12, %v11278_v24  ;;  %v9490_v54 = vadd.f32 %v9380_v63, %v3117_v5  ;;  %v11298_v12 = vld [vmem:[#allocation108_spill] sm:$0xff] }
 0x4c2   :  { %v9392_v4 = vpop.f32.mrf.mxu0  ;;  %v1168_v31 = vadd.f32 %v11260_v42, %v11259_v55  ;;  %v11276_v55 = vld [vmem:[#allocation77_spill] sm:$0xff]  ;;  %v11292_v20 = vld [vmem:[#allocation71_spill] sm:$0xff]  ;;  %v11297_v24 = vld [vmem:[#allocation78_spill] sm:$0xff] }
 0x4c3   :  { %v9399_v16 = vadd.f32 %v9380_v63, %v3129_v2  ;;  %3263 = vmatpush.msrb.mxu1 %v9383_v33  ;;  %v3108_v2 = vadd.f32 %v11270_v52, %v2496_v47 }
 0x4c4   :  { %v1886_v18 = vadd.f32 %v8736_v14, %v1168_v31  ;;  %v1162_v14 = vadd.f32 %v11264_v30, %v11263_v8  ;;  %v11277_v31 = vld [vmem:[#allocation109_spill] sm:$0xff]  ;;  %v11283_v8 = vld [vmem:[#allocation75_spill] sm:$0xff] }
 0x4c5   :  { %3264 = vmatpush.msrb.mxu1 %v9395_v29  ;;  %3367 = vmatpush.msrb.mxu0 %v9399_v16  ;;  %v9502_v61 = vadd.f32 %v9359_v3, %v3108_v2  ;;  %v3167_v2 = vadd.f32 %v9380_v63, %v3113_v25  ;;  %v3105_v25 = vadd.f32 %v11298_v12, %v11297_v24  ;;  %v11320_v24 = vld [vmem:[#allocation67_spill] sm:$0xff] }
 0x4c6   :  { %v2498_v36 = vadd.f32 %v9092_v49, %v1886_v18  ;;  %v1159_v49 = vadd.f32 %v11266_v6, %v11265_v37  ;;  %v1882_v56 = vadd.f32 %v8706_v43, %v1162_v14  ;;  %v11267_v43 = vld [vmem:[#allocation18_spill] sm:$0xff]  ;;  %v11281_v18 = vld [vmem:[#allocation28_spill] sm:$0xff]  ;;  %v11284_v14 = vld [vmem:[#allocation107_spill] sm:$0xff] }
 0x4c7   :  { %3265 = vmatpush.msrb.mxu1 %v9407_v1  ;;  %3368 = vmatpush.msrb.mxu0 %v9411_v13  ;;  %v1156_v62 = vadd.f32 %v11268_v48, %v11267_v43  ;;  %v1150_v7 = vadd.f32 %v11281_v18, %v11280_v9  ;;  %v11286_v37 = vld [vmem:[#allocation113_spill] sm:$0xff]  ;;  %v11321_v12 = vld [vmem:[#allocation95_spill] sm:$0xff] }
 0x4c8   :  { %v9435_v27 = vpop.f32.mrf.mxu2  ;;  %v3110_v32 = vadd.f32 %v9317_v38, %v2498_v36  ;;  %v1880_v38 = vadd.f32 %v8690_v21, %v1159_v49  ;;  %v2494_v59 = vadd.f32 %v11269_v19, %v1882_v56  ;;  %v1153_v21 = vadd.f32 %v11274_v46, %v11273_v51  ;;  %v11287_v56 = vld [vmem:[#allocation60_spill] sm:$0xff]  ;;  %v11289_v43 = vld [vmem:[#allocation105_spill] sm:$0xff] }
 0x4c9   :  { %3266 = vmatpush.msrb.mxu1 %v9421_v39  ;;  %3369 = vmatpush.msrb.mxu0 %v9426_v11  ;;  %v1878_v45 = vadd.f32 %v11275_v15, %v1156_v62  ;;  %v3111_v6 = vadd.f32 %v11286_v37, %v11285_v40  ;;  %v9507_v49 = vadd.f32 %v9380_v63, %v3115_v41  ;;  %v11290_v19 = vld [vmem:[#allocation81_spill] sm:$0xff]  ;;  %v11293_v41 = vld [vmem:[#allocation103_spill] sm:$0xff]  ;;  %v11295_v15 = vld [vmem:[#allocation110_spill] sm:$0xff] }
 0x4ca   :  { %v9452_v26 = vpop.f32.mrf.mxu0  ;;  %v2492_v42 = vadd.f32 %v11276_v55, %v1880_v38  ;;  %v3106_v22 = vadd.f32 %v11277_v31, %v2494_v59  ;;  %v9485_v0 = vadd.f32 %v9359_v3, %v3110_v32  ;;  %v1876_v34 = vadd.f32 %v11282_v44, %v1153_v21  ;;  %v11288_v32 = vld [vmem:[#allocation73_spill] sm:$0xff]  ;;  %v11291_v59 = vld [vmem:[#allocation112_spill] sm:$0xff]  ;;  %v11301_v40 = vld [vmem:[#allocation74_spill] sm:$0xff] }
 0x4cb   :  { %3267 = vmatpush.msrb.mxu1 %v9438_v35  ;;  %3370 = vmatpush.msrb.mxu0 %v9443_v53  ;;  %v2490_v30 = vadd.f32 %v11283_v8, %v1878_v45  ;;  %v1874_v47 = vadd.f32 %v11287_v56, %v1150_v7  ;;  %v3109_v52 = vadd.f32 %v11291_v59, %v11290_v19  ;;  %v11294_v21 = vld [vmem:[#allocation80_spill] sm:$0xff] }
 0x4cc   :  { %v3104_v10 = vadd.f32 %v11284_v14, %v2492_v42  ;;  %v2488_v5 = vadd.f32 %v11288_v32, %v1876_v34  ;;  %v9517_v38 = vadd.f32 %v9359_v3, %v3106_v22  ;;  %v3107_v45 = vadd.f32 %v11295_v15, %v11294_v21  ;;  %v11296_v42 = vld [vmem:[#allocation101_spill] sm:$0xff]  ;;  %v11299_v44 = vld [vmem:[#allocation76_spill] sm:$0xff]  ;;  %v11300_v34 = vld [vmem:[#allocation106_spill] sm:$0xff] }
 0x4cd   :  { %3268 = vmatpush.msrb.mxu1 %v9455_v57  ;;  %3371 = vmatpush.msrb.mxu0 %v9460_v17  ;;  %v3102_v48 = vadd.f32 %v11289_v43, %v2490_v30  ;;  %v2486_v50 = vadd.f32 %v11292_v20, %v1874_v47  ;;  %v3165_v55 = vadd.f32 %v9380_v63, %v3111_v6  ;;  %v11302_v37 = vld [vmem:[#allocation104_spill] sm:$0xff]  ;;  %v11304_v32 = vld [vmem:[#allocation102_spill] sm:$0xff] }
 0x4ce   :  { %v3100_v51 = vadd.f32 %v11293_v41, %v2488_v5  ;;  %v9527_v46 = vadd.f32 %v9359_v3, %v3104_v10  ;;  %v3163_v9 = vadd.f32 %v9380_v63, %v3109_v52  ;;  %v3103_v8 = vadd.f32 %v11300_v34, %v11299_v44  ;;  %v11303_v47 = vld [vmem:[#allocation72_spill] sm:$0xff]  ;;  %v11322_v34 = vld [vmem:[#allocation38_spill] sm:$0xff] }
 0x4cf   :  { %3269 = vmatpush.msrb.mxu1 %v9470_v58  ;;  %3372 = vmatpush.msrb.mxu0 %v9475_v23  ;;  %v3098_v31 = vadd.f32 %v11296_v42, %v2486_v50  ;;  %v9535_v22 = vadd.f32 %v9359_v3, %v3102_v48  ;;  %v9549_v30 = vadd.f32 %v9380_v63, %v3107_v45  ;;  %v11315_v50 = vld [vmem:[#allocation68_spill] sm:$0xff] }
 0x4d0   :  { %v9499_v36 = vpop.f32.mrf.mxu2  ;;  %v9544_v7 = vadd.f32 %v9359_v3, %v3100_v51  ;;  %v3101_v6 = vadd.f32 %v11302_v37, %v11301_v40  ;;  %v9560_v56 = vadd.f32 %v9380_v63, %v3105_v25  ;;  %v3099_v5 = vadd.f32 %v11304_v32, %v11303_v47  ;;  %v11316_v51 = vld [vmem:[#allocation97_spill] sm:$0xff]  ;;  %v11318_v45 = vld [vmem:[#allocation40_spill] sm:$0xff]  ;;  %v11324_v37 = vld [vmem:[#allocation66_spill] sm:$0xff] }
 0x4d1   :  { %3270 = vmatpush.msrb.mxu1 %v9485_v0  ;;  %3373 = vmatpush.msrb.mxu0 %v9490_v54  ;;  %v9555_v10 = vadd.f32 %v9359_v3, %v3098_v31  ;;  %v9567_v43 = vadd.f32 %v9380_v63, %v3103_v8  ;;  %v11323_v8 = vld [vmem:[#allocation54_spill] sm:$0xff] }
 0x4d2   :  { %v9514_v62 = vpop.f32.mrf.mxu0  ;;  %v9573_v48 = vadd.f32 %v9380_v63, %v3101_v6  ;;  %v9580_v59 = vadd.f32 %v9380_v63, %v3099_v5  ;;  %v1204_v40 = vadd.f32 %v11323_v8, %v11322_v34 }
 0x4d3   :  { %3271 = vmatpush.msrb.mxu1 %v9502_v61  ;;  %3374 = vmatpush.msrb.mxu0 %v9507_v49 }
 0x4d5   :  { %3272 = vmatpush.msrb.mxu1 %v9517_v38  ;;  %3375 = vmatpush.msrb.mxu0 %v3167_v2 }
 0x4d7   :  { %3273 = vmatpush.msrb.mxu1 %v9527_v46  ;;  %3376 = vmatpush.msrb.mxu0 %v3165_v55 }
 0x4d8   :  { %v9541_v18 = vpop.f32.mrf.mxu2 }
 0x4d9   :  { %3274 = vmatpush.msrb.mxu1 %v9535_v22  ;;  %3377 = vmatpush.msrb.mxu0 %v3163_v9 }
 0x4da   :  { %v9552_v14 = vpop.f32.mrf.mxu0 }
 0x4db   :  { %3275 = vmatpush.msrb.mxu1 %v9544_v7  ;;  %3378 = vmatpush.msrb.mxu0 %v9549_v30 }
 0x4dd   :  { %3276 = vmatpush.msrb.mxu1 %v9555_v10  ;;  %3379 = vmatpush.msrb.mxu0 %v9560_v56 }
 0x4df   :  { %3534 = vmatpush.msra.mxu1 %v9366_v28  ;;  %3380 = vmatpush.msrb.mxu0 %v9567_v43 }
 0x4e0   :  { %v9576_v19 = vpop.f32.mrf.mxu2 }
 0x4e1   :  { %3535 = vmatpush.msra.mxu1 %v9373_v60  ;;  %3381 = vmatpush.msrb.mxu0 %v9573_v48 }
 0x4e2   :  { %v9583_v52 = vpop.f32.mrf.mxu0 }
 0x4e3   :  { %3536 = vmatpush.msra.mxu1 %v9383_v33  ;;  %3382 = vmatpush.msrb.mxu0 %v9580_v59 }
 0x4e5   :  { %3537 = vmatpush.msra.mxu1 %v9395_v29  ;;  %3640 = vmatpush.msra.mxu0 %v9399_v16  ;;  %v3200_v16 = vld [vmem:[%s11122_s4] sm:$0xff] }
 0x4e6   :  { %3383 = vmatmul.f32.vlgmr.msrb.gmra.mxu0 %v3200_v16  ;;  %3277 = vmatmul.f32.vlgmr.msrb.gmra.mxu1 %v3200_v16  ;;  %v11327_v16 = vld [vmem:[#allocation53_spill] sm:$0xff] }
 0x4e7   :  { %3538 = vmatpush.msra.mxu1 %v9407_v1  ;;  %3641 = vmatpush.msra.mxu0 %v9411_v13  ;;  %v11305_v1 = vld [vmem:[#allocation45_spill] sm:$0xff]  ;;  %v11306_v13 = vld [vmem:[#allocation58_spill] sm:$0xff] }
 0x4e8   :  { %v9591_v28 = vpop.f32.mrf.mxu2 }
 0x4e9   :  { %3539 = vmatpush.msra.mxu1 %v9421_v39  ;;  %3642 = vmatpush.msra.mxu0 %v9426_v11  ;;  %v1216_v39 = vadd.f32 %v11306_v13, %v11305_v1  ;;  %v11307_v11 = vld [vmem:[#allocation47_spill] sm:$0xff]  ;;  %v11328_v13 = vld [vmem:[#allocation65_spill] sm:$0xff] }
 0x4ea   :  { %v3000_v60 = vpop.f32.mrf.mxu0 }
 0x4eb   :  { %3540 = vmatpush.msra.mxu1 %v9438_v35  ;;  %3643 = vmatpush.msra.mxu0 %v9443_v53  ;;  %v11308_v35 = vld [vmem:[#allocation59_spill] sm:$0xff] }
 0x4ec   :  { %v1219_v53 = vadd.f32 %v11308_v35, %v11307_v11 }
 0x4ed   :  { %3541 = vmatpush.msra.mxu1 %v9455_v57  ;;  %3644 = vmatpush.msra.mxu0 %v9460_v17  ;;  %v11309_v57 = vld [vmem:[#allocation43_spill] sm:$0xff]  ;;  %v11310_v17 = vld [vmem:[#allocation57_spill] sm:$0xff] }
 0x4ef   :  { %3542 = vmatpush.msra.mxu1 %v9470_v58  ;;  %3645 = vmatpush.msra.mxu0 %v9475_v23  ;;  %v1213_v58 = vadd.f32 %v11310_v17, %v11309_v57  ;;  %v11311_v23 = vld [vmem:[#allocation69_spill] sm:$0xff]  ;;  %v11332_v17 = vld [vmem:[#allocation64_spill] sm:$0xff] }
 0x4f0   :  { %v9601_v33 = vpop.f32.mrf.mxu2 }
 0x4f1   :  { %3543 = vmatpush.msra.mxu1 %v9485_v0  ;;  %3646 = vmatpush.msra.mxu0 %v9490_v54  ;;  %v1918_v0 = vadd.f32 %v11311_v23, %v1216_v39  ;;  %v11312_v54 = vld [vmem:[#allocation70_spill] sm:$0xff]  ;;  %v1916_v41 = vadd.f32 %v11315_v50, %v1213_v58  ;;  %v1910_v39 = vadd.f32 %v11328_v13, %v1204_v40  ;;  %v11333_v23 = vld [vmem:[#allocation89_spill] sm:$0xff]  ;;  %v11336_v50 = vld [vmem:[#allocation63_spill] sm:$0xff] }
 0x4f2   :  { %v3003_v29 = vpop.f32.mrf.mxu0  ;;  %v11343_v40 = vld [vmem:[#allocation88_spill] sm:$0xff]  ;;  %v3214_v13 = vld [vmem:[%s11122_s4 + $0x70] sm:$0xff] }
 0x4f3   :  { %3544 = vmatpush.msra.mxu1 %v9502_v61  ;;  %3647 = vmatpush.msra.mxu0 %v9507_v49  ;;  %v1920_v61 = vadd.f32 %v11312_v54, %v1219_v53  ;;  %v2530_v21 = vadd.f32 %v11316_v51, %v1918_v0  ;;  %v2528_v25 = vadd.f32 %v11321_v12, %v1916_v41  ;;  %v11330_v53 = vld [vmem:[#allocation34_spill] sm:$0xff]  ;;  %v11337_v51 = vld [vmem:[#allocation87_spill] sm:$0xff] }
 0x4f4   :  { %v2522_v0 = vadd.f32 %v11333_v23, %v1910_v39  ;;  %v3211_v39 = vld [vmem:[%s11122_s4 + $0x58] sm:$0xff]  ;;  %v3221_v23 = vld [vmem:[%s11122_s4 + $0xa8] sm:$0xff] }
 0x4f5   :  { %3545 = vmatpush.msra.mxu1 %v9517_v38  ;;  %3648 = vmatpush.msra.mxu0 %v3167_v2  ;;  %v11313_v38 = vld [vmem:[#allocation42_spill] sm:$0xff]  ;;  %v11314_v2 = vld [vmem:[#allocation56_spill] sm:$0xff]  ;;  %v3140_v32 = vadd.f32 %v3000_v60, %v2528_v25 }
 0x4f6   :  { %v1210_v20 = vadd.f32 %v11314_v2, %v11313_v38  ;;  %v11331_v60 = vld [vmem:[#allocation52_spill] sm:$0xff]  ;;  %v11334_v38 = vld [vmem:[#allocation98_spill] sm:$0xff] }
 0x4f7   :  { %3546 = vmatpush.msra.mxu1 %v9527_v46  ;;  %3649 = vmatpush.msra.mxu0 %v3165_v55  ;;  %v11317_v46 = vld [vmem:[#allocation99_spill] sm:$0xff]  ;;  %v1198_v57 = vadd.f32 %v11331_v60, %v11330_v53  ;;  %v3220_v53 = vld [vmem:[%s11122_s4 + $0xa0] sm:$0xff]  ;;  %v3217_v60 = vld [vmem:[%s11122_s4 + $0x88] sm:$0xff] }
 0x4f8   :  { %v3092_v49 = vpop.f32.mrf.mxu2  ;;  %v2532_v15 = vadd.f32 %v11317_v46, %v1920_v61  ;;  %v11319_v55 = vld [vmem:[#allocation55_spill] sm:$0xff]  ;;  %v3134_v46 = vadd.f32 %v9514_v62, %v2522_v0  ;;  %v6533_v0 = vld [vmem:[%s11122_s4 + $0xd0] sm:$0xff] }
 0x4f9   :  { %3547 = vmatpush.msra.mxu1 %v9535_v22  ;;  %3650 = vmatpush.msra.mxu0 %v3163_v9  ;;  %v1207_v42 = vadd.f32 %v11319_v55, %v11318_v45  ;;  %v1914_v22 = vadd.f32 %v11320_v24, %v1210_v20  ;;  %v3142_v9 = vadd.f32 %v3003_v29, %v2530_v21  ;;  %v11326_v29 = vld [vmem:[#allocation36_spill] sm:$0xff]  ;;  %v11340_v24 = vld [vmem:[#allocation94_spill] sm:$0xff] }
 0x4fa   :  { %v3006_v31 = vpop.f32.mrf.mxu0  ;;  %v1201_v1 = vadd.f32 %v11327_v16, %v11326_v29  ;;  %v3143_v2 = vadd.f32 %v3092_v49, %v11334_v38  ;;  %v1906_v41 = vadd.f32 %v11336_v50, %v1198_v57  ;;  %v11339_v49 = vld [vmem:[#allocation85_spill] sm:$0xff]  ;;  %v3139_v62 = vadd.f32 %v9591_v28, %v11340_v24  ;;  %v11342_v28 = vld [vmem:[#allocation90_spill] sm:$0xff]  ;;  %v3207_v29 = vld [vmem:[%s11122_s4 + $0x38] sm:$0xff] }
 0x4fb   :  { %3548 = vmatpush.msra.mxu1 %v9544_v7  ;;  %3651 = vmatpush.msra.mxu0 %v9549_v30  ;;  %v3144_v44 = vadd.f32 %v3006_v31, %v2532_v15  ;;  %v1912_v6 = vadd.f32 %v11324_v37, %v1207_v42  ;;  %v3202_v7 = vld [vmem:[%s11122_s4 + $0x10] sm:$0xff]  ;;  %v11325_v30 = vld [vmem:[#allocation93_spill] sm:$0xff]  ;;  %v3196_v35 = vadd.f32 %v9359_v3, %v3142_v9  ;;  %v3204_v31 = vld [vmem:[%s11122_s4 + $0x20] sm:$0xff] }
 0x4fc   :  { %v2526_v47 = vadd.f32 %v11325_v30, %v1914_v22  ;;  %3386 = vmatmul.f32.gmra.mxu0 %v3202_v7  ;;  %3280 = vmatmul.f32.gmra.mxu1 %v3202_v7  ;;  %v1908_v58 = vadd.f32 %v11332_v17, %v1201_v1  ;;  %v2518_v55 = vadd.f32 %v11339_v49, %v1906_v41  ;;  %v11344_v7 = vld [vmem:[#allocation86_spill] sm:$0xff]  ;;  %v3212_v16 = vld [vmem:[%s11122_s4 + $0x60] sm:$0xff]  ;;  %v3209_v1 = vld [vmem:[%s11122_s4 + $0x48] sm:$0xff] }
 0x4fd   :  { %3549 = vmatpush.msra.mxu1 %v9555_v10  ;;  %3652 = vmatpush.msra.mxu0 %v9560_v56  ;;  %v3198_v5 = vadd.f32 %v9359_v3, %v3144_v44  ;;  %v11329_v10 = vld [vmem:[#allocation91_spill] sm:$0xff]  ;;  %v3197_v22 = vadd.f32 %v9380_v63, %v3143_v2  ;;  %v3188_v12 = vadd.f32 %v9359_v3, %v3134_v46  ;;  %v3222_v57 = vld [vmem:[%s11122_s4 + $0xb0] sm:$0xff]  ;;  %v6539_v50 = vld [vmem:[%s11122_s4 + $0x100] sm:$0xff] }
 0x4fe   :  { %v2524_v56 = vadd.f32 %v11329_v10, %v1912_v6  ;;  %v3138_v11 = vadd.f32 %v9583_v52, %v2526_v47  ;;  %v11335_v52 = vld [vmem:[#allocation100_spill] sm:$0xff]  ;;  %v2520_v21 = vadd.f32 %v11337_v51, %v1908_v58  ;;  %v3135_v34 = vadd.f32 %v9541_v18, %v11342_v28  ;;  %v3201_v6 = vld [vmem:[%s11122_s4 + $0x8] sm:$0xff]  ;;  %v3219_v17 = vld [vmem:[%s11122_s4 + $0x98] sm:$0xff] }
 0x4ff   :  { %3653 = vmatpush.msra.mxu0 %v9567_v43  ;;  %3322 = vmatpush.msrb.mxu3 %v3198_v5  ;;  %v3194_v43 = vadd.f32 %v9359_v3, %v3140_v32  ;;  %v3193_v8 = vadd.f32 %v9380_v63, %v3139_v62  ;;  %v3133_v37 = vadd.f32 %v9499_v36, %v11343_v40  ;;  %v3208_v32 = vld [vmem:[%s11122_s4 + $0x40] sm:$0xff]  ;;  %v6537_v38 = vld [vmem:[%s11122_s4 + $0xf0] sm:$0xff]  ;;  %v6536_v51 = vld [vmem:[%s11122_s4 + $0xe8] sm:$0xff] }
 0x500   :  { %v3095_v54 = vpop.f32.mrf.mxu2  ;;  %v3136_v61 = vadd.f32 %v9552_v14, %v2524_v56  ;;  %v3192_v15 = vadd.f32 %v9359_v3, %v3138_v11  ;;  %v3132_v42 = vadd.f32 %v9452_v26, %v2520_v21  ;;  %v11341_v26 = vld [vmem:[#allocation92_spill] sm:$0xff]  ;;  %v3131_v18 = vadd.f32 %v9435_v27, %v11344_v7  ;;  %v3203_v27 = vld [vmem:[%s11122_s4 + $0x18] sm:$0xff]  ;;  %v3213_v56 = vld [vmem:[%s11122_s4 + $0x68] sm:$0xff] }
 0x501   :  { %3654 = vmatpush.msra.mxu0 %v9573_v48  ;;  %v3145_v20 = vadd.f32 %v3095_v54, %v11335_v52  ;;  %3323 = vmatpush.msrb.mxu3 %v3196_v35  ;;  %v11338_v48 = vld [vmem:[#allocation96_spill] sm:$0xff]  ;;  %v3137_v25 = vadd.f32 %v9576_v19, %v11341_v26  ;;  %v3189_v30 = vadd.f32 %v9380_v63, %v3135_v34  ;;  %v3218_v11 = vld [vmem:[%s11122_s4 + $0x90] sm:$0xff]  ;;  %v3223_v54 = vld [vmem:[%s11122_s4 + $0xb8] sm:$0xff] }
 0x502   :  { %v3141_v14 = vadd.f32 %v9601_v33, %v11338_v48  ;;  %v3130_v33 = vadd.f32 %v9392_v4, %v2518_v55  ;;  %v3186_v44 = vadd.f32 %v9359_v3, %v3132_v42  ;;  %v3187_v36 = vadd.f32 %v9380_v63, %v3133_v37  ;;  %v3216_v10 = vld [vmem:[%s11122_s4 + $0x80] sm:$0xff]  ;;  %v6534_v52 = vld [vmem:[%s11122_s4 + $0xd8] sm:$0xff]  ;;  %v6541_v46 = vld [vmem:[%s11122_s4 + $0x110] sm:$0xff] }
 0x503   :  { %3655 = vmatpush.msra.mxu0 %v9580_v59  ;;  %v3199_v45 = vadd.f32 %v9380_v63, %v3145_v20  ;;  %3324 = vmatpush.msrb.mxu3 %v3194_v43  ;;  %v3190_v59 = vadd.f32 %v9359_v3, %v3136_v61  ;;  %v3191_v19 = vadd.f32 %v9380_v63, %v3137_v25  ;;  %v6531_v58 = vld [vmem:[%s11122_s4 + $0xc0] sm:$0xff]  ;;  %v6538_v48 = vld [vmem:[%s11122_s4 + $0xf8] sm:$0xff]  ;;  %v6540_v49 = vld [vmem:[%s11122_s4 + $0x108] sm:$0xff] }
 0x504   :  { %3389 = vmatmul.f32.gmra.mxu0 %v3204_v31  ;;  %3283 = vmatmul.f32.gmra.mxu1 %v3204_v31  ;;  %v3195_v9 = vadd.f32 %v9380_v63, %v3141_v14  ;;  %v3184_v4 = vadd.f32 %v9359_v3, %v3130_v33  ;;  %v3206_v3 = vld [vmem:[%s11122_s4 + $0x30] sm:$0xff]  ;;  %v3185_v47 = vadd.f32 %v9380_v63, %v3131_v18  ;;  %v3205_v63 = vld [vmem:[%s11122_s4 + $0x28] sm:$0xff]  ;;  %v6535_v61 = vld [vmem:[%s11122_s4 + $0xe0] sm:$0xff] }
 0x505   :  { %3325 = vmatpush.msrb.mxu3 %v3192_v15  ;;  %3428 = vmatpush.msrb.mxu2 %v3199_v45  ;;  %v6545_v42 = vld [vmem:[%s11122_s4 + $0x130] sm:$0xff]  ;;  %v6542_v24 = vld [vmem:[%s11122_s4 + $0x118] sm:$0xff]  ;;  %v6544_v25 = vld [vmem:[%s11122_s4 + $0x128] sm:$0xff] }
 0x506   :  { %v6551_v37 = vld [vmem:[%s11122_s4 + $0x160] sm:$0xff]  ;;  %v6548_v18 = vld [vmem:[%s11122_s4 + $0x148] sm:$0xff] }
 0x507   :  { %3326 = vmatpush.msrb.mxu3 %v3190_v59  ;;  %3429 = vmatpush.msrb.mxu2 %v3197_v22 }
 0x509   :  { %3327 = vmatpush.msrb.mxu3 %v3188_v12  ;;  %3430 = vmatpush.msrb.mxu2 %v3195_v9 }
 0x50b   :  { %3328 = vmatpush.msrb.mxu3 %v3186_v44  ;;  %3431 = vmatpush.msrb.mxu2 %v3193_v8 }
 0x50c   :  { %3392 = vmatmul.f32.gmra.mxu0 %v3206_v3  ;;  %3286 = vmatmul.f32.gmra.mxu1 %v3206_v3  ;;  %v6553_v3 = vld [vmem:[%s11122_s4 + $0x170] sm:$0xff] }
 0x50d   :  { %3329 = vmatpush.msrb.mxu3 %v3184_v4  ;;  %3432 = vmatpush.msrb.mxu2 %v3191_v19 }
 0x50e   :  { %6507 = vmatmul.msk.f32.vlgmr.msrb.gmra.mxu3 %vm3224_vm3, %v3201_v6 }
 0x50f   :  { %3595 = vmatpush.msra.mxu3 %v3198_v5  ;;  %3433 = vmatpush.msrb.mxu2 %v3189_v30  ;;  %v3210_v5 = vld [vmem:[%s11122_s4 + $0x50] sm:$0xff] }
 0x511   :  { %3596 = vmatpush.msra.mxu3 %v3196_v35  ;;  %3434 = vmatpush.msrb.mxu2 %v3187_v36  ;;  %v3215_v35 = vld [vmem:[%s11122_s4 + $0x78] sm:$0xff] }
 0x513   :  { %3597 = vmatpush.msra.mxu3 %v3194_v43  ;;  %3435 = vmatpush.msrb.mxu2 %v3185_v47  ;;  %v6532_v43 = vld [vmem:[%s11122_s4 + $0xc8] sm:$0xff] }
 0x514   :  { %6519 = vmatmul.msk.f32.vlgmr.msrb.gmra.mxu2 %vm3224_vm3, %v3201_v6  ;;  %3395 = vmatmul.f32.gmra.mxu0 %v3208_v32 }
 0x515   :  { %3598 = vmatpush.msra.mxu3 %v3192_v15  ;;  %3701 = vmatpush.msra.mxu2 %v3199_v45  ;;  %v6543_v45 = vld [vmem:[%s11122_s4 + $0x120] sm:$0xff] }
 0x516   :  { %6508 = vmatmul.msk.f32.gmra.mxu3 %vm3224_vm3, %v3203_v27  ;;  %3289 = vmatmul.f32.gmra.mxu1 %v3208_v32  ;;  %v6550_v32 = vld [vmem:[%s11122_s4 + $0x158] sm:$0xff] }
 0x517   :  { %3599 = vmatpush.msra.mxu3 %v3190_v59  ;;  %3702 = vmatpush.msra.mxu2 %v3197_v22  ;;  %v6547_v22 = vld [vmem:[%s11122_s4 + $0x140] sm:$0xff] }
 0x519   :  { %3600 = vmatpush.msra.mxu3 %v3188_v12  ;;  %3703 = vmatpush.msra.mxu2 %v3195_v9 }
 0x51b   :  { %3601 = vmatpush.msra.mxu3 %v3186_v44  ;;  %3704 = vmatpush.msra.mxu2 %v3193_v8  ;;  %v6549_v44 = vld [vmem:[%s11122_s4 + $0x150] sm:$0xff] }
 0x51c   :  { %6520 = vmatmul.msk.f32.gmra.mxu2 %vm3224_vm3, %v3203_v27  ;;  %3398 = vmatmul.f32.gmra.mxu0 %v3210_v5 }
 0x51d   :  { %3602 = vmatpush.msra.mxu3 %v3184_v4  ;;  %3705 = vmatpush.msra.mxu2 %v3191_v19  ;;  %v6546_v4 = vld [vmem:[%s11122_s4 + $0x138] sm:$0xff] }
 0x51e   :  { %6509 = vmatmul.msk.f32.gmra.mxu3 %vm3224_vm3, %v3205_v63  ;;  %3292 = vmatmul.f32.gmra.mxu1 %v3210_v5 }
 0x51f   :  { %3706 = vmatpush.msra.mxu2 %v3189_v30 }
 0x521   :  { %3707 = vmatpush.msra.mxu2 %v3187_v36 }
 0x523   :  { %3708 = vmatpush.msra.mxu2 %v3185_v47 }
 0x524   :  { %6521 = vmatmul.msk.f32.gmra.mxu2 %vm3224_vm3, %v3205_v63  ;;  %3401 = vmatmul.f32.gmra.mxu0 %v3212_v16 }
 0x526   :  { %6510 = vmatmul.msk.f32.gmra.mxu3 %vm3224_vm3, %v3207_v29  ;;  %3295 = vmatmul.f32.gmra.mxu1 %v3212_v16  ;;  %v3785_v16 = vld [vmem:[#allocation4 + $0x78] sm:$0xff] }
 0x527   :  { %3837 = vmatpush.msrb.mxu1 %v3785_v16  ;;  %v3794_v16 = vld [vmem:[#allocation4 + $0xc0] sm:$0xff] }
 0x52c   :  { %6522 = vmatmul.msk.f32.gmra.mxu2 %vm3224_vm3, %v3207_v29  ;;  %3404 = vmatmul.f32.gmra.mxu0 %v3214_v13 }
 0x52e   :  { %6511 = vmatmul.msk.f32.gmra.mxu3 %vm3224_vm3, %v3209_v1  ;;  %3298 = vmatmul.f32.gmra.mxu1 %v3214_v13  ;;  %v3784_v13 = vld [vmem:[#allocation4 + $0x70] sm:$0xff] }
 0x52f   :  { %3838 = vmatpush.msrb.mxu1 %v3784_v13  ;;  %v3968_v13 = vld [vmem:[#allocation4 + $0x1b0] sm:$0xff] }
 0x534   :  { %6523 = vmatmul.msk.f32.gmra.mxu2 %vm3224_vm3, %v3209_v1  ;;  %3407 = vmatmul.f32.gmra.mxu0 %v3216_v10  ;;  %v3959_v1 = vld [vmem:[#allocation4 + $0x168] sm:$0xff] }
 0x535   :  { %3974 = vmatpush.msrb.mxu0 %v3959_v1 }
 0x536   :  { %6512 = vmatmul.msk.f32.gmra.mxu3 %vm3224_vm3, %v3211_v39  ;;  %3301 = vmatmul.f32.gmra.mxu1 %v3216_v10 }
 0x53c   :  { %6524 = vmatmul.msk.f32.gmra.mxu2 %vm3224_vm3, %v3211_v39  ;;  %3410 = vmatmul.f32.gmra.mxu0 %v3218_v11  ;;  %v3958_v39 = vld [vmem:[#allocation4 + $0x160] sm:$0xff] }
 0x53d   :  { %3975 = vmatpush.msrb.mxu0 %v3958_v39  ;;  %v3951_v39 = vld [vmem:[#allocation4 + $0x128] sm:$0xff] }
 0x53e   :  { %6513 = vmatmul.msk.f32.gmra.mxu3 %vm3224_vm3, %v3213_v56  ;;  %3304 = vmatmul.f32.gmra.mxu1 %v3218_v11  ;;  %v3957_v11 = vld [vmem:[#allocation4 + $0x158] sm:$0xff] }
 0x53f   :  { %3976 = vmatpush.msrb.mxu0 %v3957_v11  ;;  %v3793_v11 = vld [vmem:[#allocation4 + $0xb8] sm:$0xff] }
 0x544   :  { %6525 = vmatmul.msk.f32.gmra.mxu2 %vm3224_vm3, %v3213_v56  ;;  %3413 = vmatmul.f32.gmra.mxu0 %v3220_v53  ;;  %v3783_v56 = vld [vmem:[#allocation4 + $0x68] sm:$0xff] }
 0x545   :  { %3839 = vmatpush.msrb.mxu1 %v3783_v56 }
 0x546   :  { %6514 = vmatmul.msk.f32.gmra.mxu3 %vm3224_vm3, %v3215_v35  ;;  %3307 = vmatmul.f32.gmra.mxu1 %v3220_v53 }
 0x54c   :  { %6526 = vmatmul.msk.f32.gmra.mxu2 %vm3224_vm3, %v3215_v35  ;;  %3416 = vmatmul.f32.gmra.mxu0 %v3222_v57  ;;  %v6552_v35 = vld [vmem:[%s11122_s4 + $0x168] sm:$0xff] }
 0x54e   :  { %6515 = vmatmul.msk.f32.gmra.mxu3 %vm3224_vm3, %v3217_v60  ;;  %3310 = vmatmul.f32.gmra.mxu1 %v3222_v57  ;;  %v3956_v57 = vld [vmem:[#allocation4 + $0x150] sm:$0xff] }
 0x54f   :  { %3977 = vmatpush.msrb.mxu0 %v3956_v57  ;;  %v3950_v57 = vld [vmem:[#allocation4 + $0x120] sm:$0xff] }
 0x554   :  { %6527 = vmatmul.msk.f32.gmra.mxu2 %vm3224_vm3, %v3217_v60  ;;  %3656 = vmatmul.f32.vlgmr.msra.gmra.mxu0 %v6531_v58  ;;  %v3782_v60 = vld [vmem:[#allocation4 + $0x60] sm:$0xff] }
 0x555   :  { %3840 = vmatpush.msrb.mxu1 %v3782_v60  ;;  %v3967_v60 = vld [vmem:[#allocation4 + $0x1a8] sm:$0xff] }
 0x556   :  { %6516 = vmatmul.msk.f32.gmra.mxu3 %vm3224_vm3, %v3219_v17  ;;  %3550 = vmatmul.f32.vlgmr.msra.gmra.mxu1 %v6531_v58  ;;  %v3781_v58 = vld [vmem:[#allocation4 + $0x58] sm:$0xff] }
 0x557   :  { %3841 = vmatpush.msrb.mxu1 %v3781_v58  ;;  %v3775_v58 = vld [vmem:[#allocation4 + $0x28] sm:$0xff] }
 0x55c   :  { %6528 = vmatmul.msk.f32.gmra.mxu2 %vm3224_vm3, %v3219_v17  ;;  %3659 = vmatmul.f32.gmra.mxu0 %v6533_v0 }
 0x55e   :  { %6517 = vmatmul.msk.f32.gmra.mxu3 %vm3224_vm3, %v3221_v23  ;;  %3553 = vmatmul.f32.gmra.mxu1 %v6533_v0  ;;  %v3799_v0 = vld [vmem:[#allocation4 + $0xe8] sm:$0xff] }
 0x55f   :  { %3892 = vmatpush.msrb.mxu3 %v3799_v0 }
 0x563   :  { %v9796_v2 = vpop.f32.mrf.mxu1  ;;  %v9802_v20 = vpop.f32.mrf.mxu0 }
 0x564   :  { %6529 = vmatmul.msk.f32.gmra.mxu2 %vm3224_vm3, %v3221_v23  ;;  %3662 = vmatmul.f32.gmra.mxu0 %v6535_v61  ;;  %v3955_v23 = vld [vmem:[#allocation4 + $0x148] sm:$0xff] }
 0x565   :  { %3978 = vmatpush.msrb.mxu0 %v3955_v23  ;;  %v3949_v23 = vld [vmem:[#allocation4 + $0x118] sm:$0xff] }
 0x566   :  { %6518 = vmatmul.msk.f32.gmra.mxu3 %vm3224_vm3, %v3223_v54  ;;  %3556 = vmatmul.f32.gmra.mxu1 %v6535_v61  ;;  %v3798_v61 = vld [vmem:[#allocation4 + $0xe0] sm:$0xff] }
 0x567   :  { %3893 = vmatpush.msrb.mxu3 %v3798_v61  ;;  %v3966_v61 = vld [vmem:[#allocation4 + $0x1a0] sm:$0xff] }
 0x56c   :  { %6530 = vmatmul.msk.f32.gmra.mxu2 %vm3224_vm3, %v3223_v54  ;;  %3665 = vmatmul.f32.gmra.mxu0 %v6537_v38  ;;  %v3973_v54 = vld [vmem:[#allocation4 + $0x1d8] sm:$0xff] }
 0x56d   :  { %4029 = vmatpush.msrb.mxu2 %v3973_v54  ;;  %v3792_v54 = vld [vmem:[#allocation4 + $0xb0] sm:$0xff] }
 0x56e   :  { %6555 = vmatmul.msk.f32.vlgmr.msra.gmra.mxu3 %vm3224_vm3, %v6532_v43  ;;  %3559 = vmatmul.f32.gmra.mxu1 %v6537_v38  ;;  %v3972_v38 = vld [vmem:[#allocation4 + $0x1d0] sm:$0xff] }
 0x56f   :  { %4030 = vmatpush.msrb.mxu2 %v3972_v38  ;;  %v3774_v38 = vld [vmem:[#allocation4 + $0x20] sm:$0xff] }
 0x574   :  { %6567 = vmatmul.msk.f32.vlgmr.msra.gmra.mxu2 %vm3224_vm3, %v6532_v43  ;;  %3668 = vmatmul.f32.gmra.mxu0 %v6539_v50 }
 0x576   :  { %6556 = vmatmul.msk.f32.gmra.mxu3 %vm3224_vm3, %v6534_v52  ;;  %3562 = vmatmul.f32.gmra.mxu1 %v6539_v50  ;;  %v3797_v50 = vld [vmem:[#allocation4 + $0xd8] sm:$0xff] }
 0x577   :  { %3894 = vmatpush.msrb.mxu3 %v3797_v50  ;;  %v3791_v50 = vld [vmem:[#allocation4 + $0xa8] sm:$0xff] }
 0x579   :  { %v9808_v41 = vpop.f32.mrf.mxu1  ;;  %v9814_v21 = vpop.f32.mrf.mxu0 }
 0x57c   :  { %6568 = vmatmul.msk.f32.gmra.mxu2 %vm3224_vm3, %v6534_v52  ;;  %3671 = vmatmul.f32.gmra.mxu0 %v6541_v46 }
 0x57e   :  { %6557 = vmatmul.msk.f32.gmra.mxu3 %vm3224_vm3, %v6536_v51  ;;  %3565 = vmatmul.f32.gmra.mxu1 %v6541_v46  ;;  %v3780_v46 = vld [vmem:[#allocation4 + $0x50] sm:$0xff] }
 0x57f   :  { %3842 = vmatpush.msrb.mxu1 %v3780_v46 }
 0x581   :  { %v9820_v15 = vpop.f32.mrf.mxu1  ;;  %v9826_v14 = vpop.f32.mrf.mxu0 }
 0x584   :  { %6569 = vmatmul.msk.f32.gmra.mxu2 %vm3224_vm3, %v6536_v51  ;;  %3674 = vmatmul.f32.gmra.mxu0 %v6543_v45  ;;  %v3971_v51 = vld [vmem:[#allocation4 + $0x1c8] sm:$0xff] }
 0x585   :  { %4031 = vmatpush.msrb.mxu2 %v3971_v51  ;;  %v3965_v51 = vld [vmem:[#allocation4 + $0x198] sm:$0xff] }
 0x586   :  { %6558 = vmatmul.msk.f32.gmra.mxu3 %vm3224_vm3, %v6538_v48  ;;  %3568 = vmatmul.f32.gmra.mxu1 %v6543_v45  ;;  %v3779_v45 = vld [vmem:[#allocation4 + $0x48] sm:$0xff] }
 0x587   :  { %3843 = vmatpush.msrb.mxu1 %v3779_v45  ;;  %v3790_v45 = vld [vmem:[#allocation4 + $0xa0] sm:$0xff] }
 0x589   :  { %v9836_v55 = vpop.f32.mrf.mxu0  ;;  %v9841_v31 = vpop.f32.mrf.mxu1 }
 0x58c   :  { %6570 = vmatmul.msk.f32.gmra.mxu2 %vm3224_vm3, %v6538_v48  ;;  %3677 = vmatmul.f32.gmra.mxu0 %v6545_v42  ;;  %v3954_v48 = vld [vmem:[#allocation4 + $0x140] sm:$0xff] }
 0x58d   :  { %3979 = vmatpush.msrb.mxu0 %v3954_v48  ;;  %v3948_v48 = vld [vmem:[#allocation4 + $0x110] sm:$0xff] }
 0x58e   :  { %6559 = vmatmul.msk.f32.gmra.mxu3 %vm3224_vm3, %v6540_v49  ;;  %3571 = vmatmul.f32.gmra.mxu1 %v6545_v42 }
 0x591   :  { %v9844_v59 = vpop.f32.mrf.mxu3  ;;  %v9850_v62 = vpop.f32.mrf.mxu0 }
 0x593   :  { %v9855_v33 = vpop.f32.mrf.mxu1 }
 0x594   :  { %6571 = vmatmul.msk.f32.gmra.mxu2 %vm3224_vm3, %v6540_v49  ;;  %3680 = vmatmul.f32.gmra.mxu0 %v6547_v22  ;;  %v6554_v49 = vld [vmem:[%s11122_s4 + $0x178] sm:$0xff] }
 0x596   :  { %6560 = vmatmul.msk.f32.gmra.mxu3 %vm3224_vm3, %v6542_v24  ;;  %3574 = vmatmul.f32.gmra.mxu1 %v6547_v22  ;;  %v3778_v22 = vld [vmem:[#allocation4 + $0x40] sm:$0xff] }
 0x597   :  { %v9857_v12 = vpop.f32.mrf.mxu2  ;;  %3844 = vmatpush.msrb.mxu1 %v3778_v22  ;;  %v3964_v22 = vld [vmem:[#allocation4 + $0x190] sm:$0xff] }
 0x599   :  { %v9860_v26 = vpop.f32.mrf.mxu3  ;;  %v9866_v9 = vpop.f32.mrf.mxu0 }
 0x59b   :  { %v9871_v28 = vpop.f32.mrf.mxu1 }
 0x59c   :  { %6572 = vmatmul.msk.f32.gmra.mxu2 %vm3224_vm3, %v6542_v24  ;;  %3683 = vmatmul.f32.gmra.mxu0 %v6549_v44  ;;  %v3953_v24 = vld [vmem:[#allocation4 + $0x138] sm:$0xff] }
 0x59d   :  { %3980 = vmatpush.msrb.mxu0 %v3953_v24 }
 0x59e   :  { %6561 = vmatmul.msk.f32.gmra.mxu3 %vm3224_vm3, %v6544_v25  ;;  %3577 = vmatmul.f32.gmra.mxu1 %v6549_v44  ;;  %v3796_v44 = vld [vmem:[#allocation4 + $0xd0] sm:$0xff] }
 0x59f   :  { %v9873_v34 = vpop.f32.mrf.mxu2  ;;  %3895 = vmatpush.msrb.mxu3 %v3796_v44  ;;  %v3947_v44 = vld [vmem:[#allocation4 + $0x108] sm:$0xff] }
 0x5a1   :  { %v9876_v8 = vpop.f32.mrf.mxu3  ;;  %v9882_v40 = vpop.f32.mrf.mxu0 }
 0x5a3   :  { %v9887_v19 = vpop.f32.mrf.mxu1 }
 0x5a4   :  { %6573 = vmatmul.msk.f32.gmra.mxu2 %vm3224_vm3, %v6544_v25  ;;  %3686 = vmatmul.f32.gmra.mxu0 %v6551_v37 }
 0x5a6   :  { %6562 = vmatmul.msk.f32.gmra.mxu3 %vm3224_vm3, %v6546_v4  ;;  %3580 = vmatmul.f32.gmra.mxu1 %v6551_v37  ;;  %v3952_v37 = vld [vmem:[#allocation4 + $0x130] sm:$0xff] }
 0x5a7   :  { %v9889_v6 = vpop.f32.mrf.mxu2  ;;  %3981 = vmatpush.msrb.mxu0 %v3952_v37  ;;  %v3772_v37 = vld [vmem:[#allocation4 + $0x10] sm:$0xff] }
 0x5a9   :  { %v9892_v7 = vpop.f32.mrf.mxu3  ;;  %v9898_v30 = vpop.f32.mrf.mxu0  ;;  %3982 = vmatpush.msrb.mxu0 %v3951_v39 }
 0x5ab   :  { %v9903_v36 = vpop.f32.mrf.mxu1  ;;  %3983 = vmatpush.msrb.mxu0 %v3950_v57  ;;  %v3944_v57 = vld [vmem:[#allocation4 + $0xf0] sm:$0xff] }
 0x5ac   :  { %6574 = vmatmul.msk.f32.gmra.mxu2 %vm3224_vm3, %v6546_v4  ;;  %3689 = vmatmul.f32.gmra.mxu0 %v6553_v3  ;;  %v3970_v4 = vld [vmem:[#allocation4 + $0x1c0] sm:$0xff] }
 0x5ad   :  { %4032 = vmatpush.msrb.mxu2 %v3970_v4  ;;  %3984 = vmatpush.msrb.mxu0 %v3949_v23  ;;  %v3789_v4 = vld [vmem:[#allocation4 + $0x98] sm:$0xff] }
 0x5ae   :  { %6563 = vmatmul.msk.f32.gmra.mxu3 %vm3224_vm3, %v6548_v18  ;;  %3583 = vmatmul.f32.gmra.mxu1 %v6553_v3  ;;  %v3969_v3 = vld [vmem:[#allocation4 + $0x1b8] sm:$0xff] }
 0x5af   :  { %v9905_v47 = vpop.f32.mrf.mxu2  ;;  %4033 = vmatpush.msrb.mxu2 %v3969_v3  ;;  %3985 = vmatpush.msrb.mxu0 %v3948_v48  ;;  %v3946_v3 = vld [vmem:[#allocation4 + $0x100] sm:$0xff]  ;;  %v3961_v23 = vld [vmem:[#allocation4 + $0x178] sm:$0xff] }
 0x5b1   :  { %v9908_v27 = vpop.f32.mrf.mxu3  ;;  %v9919_v29 = vpop.f32.mrf.mxu0  ;;  %4034 = vmatpush.msrb.mxu2 %v3968_v13  ;;  %3986 = vmatpush.msrb.mxu0 %v3947_v44  ;;  %v3945_v13 = vld [vmem:[#allocation4 + $0xf8] sm:$0xff] }
 0x5b3   :  { %v9914_v63 = vpop.f32.mrf.mxu1  ;;  %4035 = vmatpush.msrb.mxu2 %v3967_v60  ;;  %3987 = vmatpush.msrb.mxu0 %v3946_v3  ;;  %v3770_v60 = vld [vmem:[#allocation4] sm:$0xff] }
 0x5b4   :  { %6575 = vmatmul.msk.f32.gmra.mxu2 %vm3224_vm3, %v6548_v18  ;;  %v3795_v18 = vld [vmem:[#allocation4 + $0xc8] sm:$0xff] }
 0x5b5   :  { %3896 = vmatpush.msrb.mxu3 %v3795_v18  ;;  %4036 = vmatpush.msrb.mxu2 %v3966_v61  ;;  %v3963_v18 = vld [vmem:[#allocation4 + $0x188] sm:$0xff]  ;;  %v3786_v61 = vld [vmem:[#allocation4 + $0x80] sm:$0xff] }
 0x5b6   :  { %6564 = vmatmul.msk.f32.gmra.mxu3 %vm3224_vm3, %v6550_v32  ;;  %3988 = vmatpush.msrb.mxu0 %v3945_v13 }
 0x5b7   :  { %v9916_v5 = vpop.f32.mrf.mxu2  ;;  %3897 = vmatpush.msrb.mxu3 %v3794_v16  ;;  %4037 = vmatpush.msrb.mxu2 %v3965_v51  ;;  %v3771_v16 = vld [vmem:[#allocation4 + $0x8] sm:$0xff] }
 0x5b8   :  { %3989 = vmatpush.msrb.mxu0 %v3944_v57  ;;  %v3438_v57 = vadd.f32 %v9857_v12, %v9802_v20  ;;  %v3441_v20 = vadd.f32 %v9873_v34, %v9814_v21  ;;  %v3444_v21 = vadd.f32 %v9889_v6, %v9826_v14 }
 0x5b9   :  { %v9921_v10 = vpop.f32.mrf.mxu3  ;;  %v9932_v43 = vpop.f32.mrf.mxu0  ;;  %3898 = vmatpush.msrb.mxu3 %v3793_v11  ;;  %4038 = vmatpush.msrb.mxu2 %v3964_v22  ;;  %v3788_v11 = vld [vmem:[#allocation4 + $0x90] sm:$0xff] }
 0x5bb   :  { %v9927_v53 = vpop.f32.mrf.mxu1  ;;  %3899 = vmatpush.msrb.mxu3 %v3792_v54  ;;  %4039 = vmatpush.msrb.mxu2 %v3963_v18 }
 0x5bc   :  { %6576 = vmatmul.msk.f32.gmra.mxu2 %vm3224_vm3, %v6550_v32  ;;  %v3777_v32 = vld [vmem:[#allocation4 + $0x38] sm:$0xff] }
 0x5bd   :  { %3845 = vmatpush.msrb.mxu1 %v3777_v32  ;;  %3900 = vmatpush.msrb.mxu3 %v3791_v50 }
 0x5be   :  { %6565 = vmatmul.msk.f32.gmra.mxu3 %vm3224_vm3, %v6552_v35 }
 0x5bf   :  { %v9929_v17 = vpop.f32.mrf.mxu2  ;;  %3901 = vmatpush.msrb.mxu3 %v3790_v45 }
 0x5c1   :  { %v9934_v52 = vpop.f32.mrf.mxu3  ;;  %v9947_v56 = vpop.f32.mrf.mxu0  ;;  %3902 = vmatpush.msrb.mxu3 %v3789_v4 }
 0x5c3   :  { %v9940_v42 = vpop.f32.mrf.mxu1  ;;  %3903 = vmatpush.msrb.mxu3 %v3788_v11 }
 0x5c4   :  { %6577 = vmatmul.msk.f32.gmra.mxu2 %vm3224_vm3, %v6552_v35  ;;  %v3776_v35 = vld [vmem:[#allocation4 + $0x30] sm:$0xff] }
 0x5c5   :  { %3846 = vmatpush.msrb.mxu1 %v3776_v35  ;;  %v3962_v35 = vld [vmem:[#allocation4 + $0x180] sm:$0xff] }
 0x5c6   :  { %6566 = vmatmul.msk.f32.gmra.mxu3 %vm3224_vm3, %v6554_v49  ;;  %4040 = vmatpush.msrb.mxu2 %v3962_v35 }
 0x5c7   :  { %v9942_v25 = vpop.f32.mrf.mxu2  ;;  %3847 = vmatpush.msrb.mxu1 %v3775_v58  ;;  %v3787_v58 = vld [vmem:[#allocation4 + $0x88] sm:$0xff] }
 0x5c8   :  { %3904 = vmatpush.msrb.mxu3 %v3787_v58  ;;  %4041 = vmatpush.msrb.mxu2 %v3961_v23 }
 0x5c9   :  { %v9945_v1 = vpop.f32.mrf.mxu3  ;;  %3848 = vmatpush.msrb.mxu1 %v3774_v38  ;;  %v9956_v32 = vpop.f32.mrf.mxu0  ;;  %v3960_v38 = vld [vmem:[#allocation4 + $0x170] sm:$0xff] }
 0x5ca   :  { %11345 = vst [vmem:[#allocation31_spill] sm:$0xff] %v9956_v32  ;;  %3905 = vmatpush.msrb.mxu3 %v3786_v61  ;;  %4042 = vmatpush.msrb.mxu2 %v3960_v38 }
 0x5cb   :  { %v9952_v46 = vpop.f32.mrf.mxu1 }
 0x5cc   :  { %6578 = vmatmul.msk.f32.gmra.mxu2 %vm3224_vm3, %v6554_v49  ;;  %v3773_v49 = vld [vmem:[#allocation4 + $0x18] sm:$0xff] }
 0x5cd   :  { %3849 = vmatpush.msrb.mxu1 %v3773_v49 }
 0x5cf   :  { %v9950_v0 = vpop.f32.mrf.mxu2  ;;  %3850 = vmatpush.msrb.mxu1 %v3772_v37 }
 0x5d1   :  { %v9954_v24 = vpop.f32.mrf.mxu3  ;;  %3851 = vmatpush.msrb.mxu1 %v3771_v16  ;;  %v3657_v48 = vpop.f32.mrf.mxu0  ;;  %v3332_v16 = vadd.f32 %v9844_v59, %v9796_v2 }
 0x5d3   :  { %v3551_v50 = vpop.f32.mrf.mxu1  ;;  %3852 = vmatpush.msrb.mxu1 %v3770_v60 }
 0x5d7   :  { %v9958_v39 = vpop.f32.mrf.mxu2 }
 0x5d9   :  { %v9960_v54 = vpop.f32.mrf.mxu3  ;;  %v3660_v44 = vpop.f32.mrf.mxu0 }
 0x5db   :  { %v3554_v49 = vpop.f32.mrf.mxu1 }
 0x5df   :  { %v9962_v51 = vpop.f32.mrf.mxu2 }
 0x5e1   :  { %v9964_v45 = vpop.f32.mrf.mxu3  ;;  %v3663_v11 = vpop.f32.mrf.mxu0 }
 0x5e3   :  { %v3557_v37 = vpop.f32.mrf.mxu1 }
 0x5e7   :  { %v9966_v22 = vpop.f32.mrf.mxu2 }
 0x5e9   :  { %v9968_v4 = vpop.f32.mrf.mxu3  ;;  %v3666_v59 = vpop.f32.mrf.mxu0 }
 0x5eb   :  { %v3560_v23 = vpop.f32.mrf.mxu1 }
 0x5ef   :  { %v9970_v18 = vpop.f32.mrf.mxu2 }
 0x5f0   :  { %11346 = vst [vmem:[#allocation51_spill] sm:$0xff] %v9970_v18  ;;  %v3335_v18 = vadd.f32 %v9860_v26, %v9808_v41  ;;  %v3338_v41 = vadd.f32 %v9876_v8, %v9820_v15 }
 0x5f1   :  { %v3604_v3 = vpop.f32.mrf.mxu3 }
 0x5f2   :  { %v3605_v13 = vadd.f32 %v3604_v3, %v3551_v50 }
 0x5f4   :  { %v3746_v35 = vmax.f32 %v3332_v16, %v3605_v13  ;;  %v3563_v16 = vpop.f32.mrf.mxu1 }
 0x5f6   :  { %3853 = vmatmul.f32.vlgmr.msrb.gmra.mxu1 %v3746_v35  ;;  %3990 = vmatmul.f32.vlgmr.msrb.gmra.mxu0 %v3746_v35  ;;  %v3341_v35 = vadd.f32 %v9892_v7, %v9841_v31  ;;  %v3344_v31 = vadd.f32 %v9908_v27, %v9855_v33 }
 0x5f7   :  { %v3710_v60 = vpop.f32.mrf.mxu2 }
 0x5f8   :  { %v3711_v58 = vadd.f32 %v3710_v60, %v3657_v48 }
 0x5f9   :  { %v3607_v38 = vpop.f32.mrf.mxu3 }
 0x5fa   :  { %v3747_v61 = vmax.f32 %v3438_v57, %v3711_v58  ;;  %v3608_v32 = vadd.f32 %v3607_v38, %v3554_v49  ;;  %v3447_v57 = vadd.f32 %v9905_v47, %v9836_v55  ;;  %v3450_v55 = vadd.f32 %v9916_v5, %v9850_v62 }
 0x5fc   :  { %6579 = vmatmul.msk.f32.vlgmr.msrb.gmra.mxu3 %vm3800_vm4, %v3747_v61  ;;  %6591 = vmatmul.msk.f32.vlgmr.msrb.gmra.mxu2 %vm3800_vm4, %v3747_v61  ;;  %v3748_v2 = vmax.f32 %v3335_v18, %v3608_v32  ;;  %v3669_v18 = vpop.f32.mrf.mxu0  ;;  %v3566_v8 = vpop.f32.mrf.mxu1 }
 0x5fe   :  { %3856 = vmatmul.f32.gmra.mxu1 %v3748_v2  ;;  %3993 = vmatmul.f32.gmra.mxu0 %v3748_v2 }
 0x5ff   :  { %v3713_v50 = vpop.f32.mrf.mxu2 }
 0x600   :  { %v3714_v12 = vadd.f32 %v3713_v50, %v3660_v44  ;;  %v3347_v50 = vadd.f32 %v9921_v10, %v9871_v28  ;;  %v3350_v28 = vadd.f32 %v9934_v52, %v9887_v19  ;;  %v3353_v19 = vadd.f32 %v9945_v1, %v9903_v36 }
 0x601   :  { %v3610_v3 = vpop.f32.mrf.mxu3 }
 0x602   :  { %v3749_v48 = vmax.f32 %v3441_v20, %v3714_v12  ;;  %v3611_v26 = vadd.f32 %v3610_v3, %v3557_v37 }
 0x604   :  { %6580 = vmatmul.msk.f32.gmra.mxu3 %vm3800_vm4, %v3749_v48  ;;  %6592 = vmatmul.msk.f32.gmra.mxu2 %vm3800_vm4, %v3749_v48  ;;  %v3750_v32 = vmax.f32 %v3338_v41, %v3611_v26  ;;  %v3672_v6 = vpop.f32.mrf.mxu0  ;;  %v3569_v61 = vpop.f32.mrf.mxu1  ;;  %v3453_v48 = vadd.f32 %v9929_v17, %v9866_v9  ;;  %v3456_v9 = vadd.f32 %v9942_v25, %v9882_v40 }
 0x605   :  { %v3459_v40 = vadd.f32 %v9950_v0, %v9898_v30 }
 0x606   :  { %3859 = vmatmul.f32.gmra.mxu1 %v3750_v32  ;;  %3996 = vmatmul.f32.gmra.mxu0 %v3750_v32 }
 0x607   :  { %v3716_v49 = vpop.f32.mrf.mxu2 }
 0x608   :  { %v3717_v34 = vadd.f32 %v3716_v49, %v3663_v11 }
 0x609   :  { %v3613_v13 = vpop.f32.mrf.mxu3 }
 0x60a   :  { %v3751_v44 = vmax.f32 %v3444_v21, %v3717_v34  ;;  %v3614_v15 = vadd.f32 %v3613_v13, %v3560_v23 }
 0x60c   :  { %6581 = vmatmul.msk.f32.gmra.mxu3 %vm3800_vm4, %v3751_v44  ;;  %6593 = vmatmul.msk.f32.gmra.mxu2 %vm3800_vm4, %v3751_v44  ;;  %v3752_v37 = vmax.f32 %v3341_v35, %v3614_v15  ;;  %v3675_v27 = vpop.f32.mrf.mxu0  ;;  %v3572_v5 = vpop.f32.mrf.mxu1 }
 0x60e   :  { %3862 = vmatmul.f32.gmra.mxu1 %v3752_v37  ;;  %3999 = vmatmul.f32.gmra.mxu0 %v3752_v37 }
 0x60f   :  { %v3719_v60 = vpop.f32.mrf.mxu2 }
 0x610   :  { %v3720_v14 = vadd.f32 %v3719_v60, %v3666_v59 }
 0x611   :  { %v3616_v58 = vpop.f32.mrf.mxu3 }
 0x612   :  { %v3753_v11 = vmax.f32 %v3447_v57, %v3720_v14  ;;  %v3617_v7 = vadd.f32 %v3616_v58, %v3563_v16  ;;  %v3462_v57 = vadd.f32 %v9958_v39, %v9919_v29  ;;  %v3465_v29 = vadd.f32 %v9962_v51, %v9932_v43 }
 0x614   :  { %6582 = vmatmul.msk.f32.gmra.mxu3 %vm3800_vm4, %v3753_v11  ;;  %6594 = vmatmul.msk.f32.gmra.mxu2 %vm3800_vm4, %v3753_v11  ;;  %v3754_v23 = vmax.f32 %v3344_v31, %v3617_v7  ;;  %v3678_v26 = vpop.f32.mrf.mxu0  ;;  %v3575_v21 = vpop.f32.mrf.mxu1 }
 0x616   :  { %3865 = vmatmul.f32.gmra.mxu1 %v3754_v23  ;;  %4002 = vmatmul.f32.gmra.mxu0 %v3754_v23 }
 0x617   :  { %v3722_v38 = vpop.f32.mrf.mxu2 }
 0x618   :  { %v3723_v47 = vadd.f32 %v3722_v38, %v3669_v18 }
 0x619   :  { %v3619_v59 = vpop.f32.mrf.mxu3 }
 0x61a   :  { %v3755_v2 = vmax.f32 %v3450_v55, %v3723_v47  ;;  %v3620_v33 = vadd.f32 %v3619_v59, %v3566_v8  ;;  %v3356_v8 = vadd.f32 %v9954_v24, %v9914_v63  ;;  %v3359_v63 = vadd.f32 %v9960_v54, %v9927_v53 }
 0x61b   :  { %v3468_v47 = vadd.f32 %v9966_v22, %v9947_v56 }
 0x61c   :  { %6583 = vmatmul.msk.f32.gmra.mxu3 %vm3800_vm4, %v3755_v2  ;;  %6595 = vmatmul.msk.f32.gmra.mxu2 %vm3800_vm4, %v3755_v2  ;;  %v3756_v20 = vmax.f32 %v3347_v50, %v3620_v33  ;;  %v3681_v13 = vpop.f32.mrf.mxu0  ;;  %v3578_v1 = vpop.f32.mrf.mxu1 }
 0x61e   :  { %3868 = vmatmul.f32.gmra.mxu1 %v3756_v20  ;;  %4005 = vmatmul.f32.gmra.mxu0 %v3756_v20  ;;  %v11347_v20 = vld [vmem:[#allocation31_spill] sm:$0xff] }
 0x61f   :  { %v3725_v12 = vpop.f32.mrf.mxu2 }
 0x620   :  { %v3726_v62 = vadd.f32 %v3725_v12, %v3672_v6  ;;  %v11348_v12 = vld [vmem:[#allocation51_spill] sm:$0xff] }
 0x621   :  { %v3622_v16 = vpop.f32.mrf.mxu3  ;;  %v3471_v56 = vadd.f32 %v11348_v12, %v11347_v20 }
 0x622   :  { %v3757_v3 = vmax.f32 %v3453_v48, %v3726_v62  ;;  %v3623_v10 = vadd.f32 %v3622_v16, %v3569_v61  ;;  %v3362_v61 = vadd.f32 %v9964_v45, %v9940_v42  ;;  %v3365_v42 = vadd.f32 %v9968_v4, %v9952_v46 }
 0x624   :  { %6584 = vmatmul.msk.f32.gmra.mxu3 %vm3800_vm4, %v3757_v3  ;;  %6596 = vmatmul.msk.f32.gmra.mxu2 %vm3800_vm4, %v3757_v3  ;;  %v3758_v41 = vmax.f32 %v3350_v28, %v3623_v10  ;;  %v3684_v0 = vpop.f32.mrf.mxu0  ;;  %v3581_v58 = vpop.f32.mrf.mxu1 }
 0x626   :  { %3871 = vmatmul.f32.gmra.mxu1 %v3758_v41  ;;  %4008 = vmatmul.f32.gmra.mxu0 %v3758_v41 }
 0x627   :  { %v3728_v32 = vpop.f32.mrf.mxu2 }
 0x628   :  { %v3729_v17 = vadd.f32 %v3728_v32, %v3675_v27 }
 0x629   :  { %v3625_v18 = vpop.f32.mrf.mxu3 }
 0x62a   :  { %v3759_v49 = vmax.f32 %v3456_v9, %v3729_v17  ;;  %v3626_v52 = vadd.f32 %v3625_v18, %v3572_v5 }
 0x62c   :  { %6585 = vmatmul.msk.f32.gmra.mxu3 %vm3800_vm4, %v3759_v49  ;;  %6597 = vmatmul.msk.f32.gmra.mxu2 %vm3800_vm4, %v3759_v49  ;;  %v3760_v34 = vmax.f32 %v3353_v19, %v3626_v52  ;;  %v3687_v53 = vpop.f32.mrf.mxu0  ;;  %v3584_v51 = vpop.f32.mrf.mxu1 }
 0x62e   :  { %3874 = vmatmul.f32.gmra.mxu1 %v3760_v34  ;;  %4011 = vmatmul.f32.gmra.mxu0 %v3760_v34 }
 0x62f   :  { %v3731_v44 = vpop.f32.mrf.mxu2 }
 0x630   :  { %v3732_v25 = vadd.f32 %v3731_v44, %v3678_v26 }
 0x631   :  { %v3628_v15 = vpop.f32.mrf.mxu3 }
 0x632   :  { %v3761_v35 = vmax.f32 %v3459_v40, %v3732_v25  ;;  %v3629_v36 = vadd.f32 %v3628_v15, %v3575_v21  ;;  %v6647_v25 = vld [vmem:[%s11125_s7 + $0x1d0] sm:$0xff] }
 0x633   :  { %4338 = vmatpush.msra.mxu0 %v6647_v25 }
 0x634   :  { %6586 = vmatmul.msk.f32.gmra.mxu3 %vm3800_vm4, %v3761_v35  ;;  %6598 = vmatmul.msk.f32.gmra.mxu2 %vm3800_vm4, %v3761_v35  ;;  %v3762_v37 = vmax.f32 %v3356_v8, %v3629_v36  ;;  %v3690_v50 = vpop.f32.mrf.mxu0  ;;  %v6645_v35 = vld [vmem:[%s11125_s7 + $0x1c0] sm:$0xff]  ;;  %v6643_v36 = vld [vmem:[%s11125_s7 + $0x1b0] sm:$0xff] }
 0x635   :  { %4339 = vmatpush.msra.mxu0 %v6645_v35 }
 0x636   :  { %3877 = vmatmul.f32.gmra.mxu1 %v3762_v37  ;;  %4014 = vmatmul.f32.gmra.mxu0 %v3762_v37 }
 0x637   :  { %v3734_v60 = vpop.f32.mrf.mxu2  ;;  %4340 = vmatpush.msra.mxu0 %v6643_v36 }
 0x638   :  { %v3735_v30 = vadd.f32 %v3734_v60, %v3681_v13  ;;  %v6641_v60 = vld [vmem:[%s11125_s7 + $0x1a0] sm:$0xff] }
 0x639   :  { %v3631_v6 = vpop.f32.mrf.mxu3  ;;  %4341 = vmatpush.msra.mxu0 %v6641_v60 }
 0x63a   :  { %v3763_v14 = vmax.f32 %v3462_v57, %v3735_v30  ;;  %v3632_v24 = vadd.f32 %v3631_v6, %v3578_v1  ;;  %v6639_v57 = vld [vmem:[%s11125_s7 + $0x190] sm:$0xff]  ;;  %v6637_v30 = vld [vmem:[%s11125_s7 + $0x180] sm:$0xff] }
 0x63b   :  { %4342 = vmatpush.msra.mxu0 %v6639_v57 }
 0x63c   :  { %6587 = vmatmul.msk.f32.gmra.mxu3 %vm3800_vm4, %v3763_v14  ;;  %6599 = vmatmul.msk.f32.gmra.mxu2 %vm3800_vm4, %v3763_v14  ;;  %v3764_v11 = vmax.f32 %v3359_v63, %v3632_v24 }
 0x63d   :  { %4343 = vmatpush.msra.mxu0 %v6637_v30 }
 0x63e   :  { %3880 = vmatmul.f32.gmra.mxu1 %v3764_v11  ;;  %4017 = vmatmul.f32.gmra.mxu0 %v3764_v11  ;;  %v6633_v11 = vld [vmem:[%s11125_s7 + $0x160] sm:$0xff] }
 0x63f   :  { %v3737_v31 = vpop.f32.mrf.mxu2 }
 0x640   :  { %v3738_v39 = vadd.f32 %v3737_v31, %v3684_v0  ;;  %v6635_v0 = vld [vmem:[%s11125_s7 + $0x170] sm:$0xff]  ;;  %v6629_v31 = vld [vmem:[%s11125_s7 + $0x140] sm:$0xff] }
 0x641   :  { %v3634_v23 = vpop.f32.mrf.mxu3  ;;  %4344 = vmatpush.msra.mxu0 %v6635_v0 }
 0x642   :  { %v3765_v7 = vmax.f32 %v3465_v29, %v3738_v39  ;;  %v3635_v54 = vadd.f32 %v3634_v23, %v3581_v58  ;;  %v6631_v58 = vld [vmem:[%s11125_s7 + $0x150] sm:$0xff]  ;;  %v6625_v23 = vld [vmem:[%s11125_s7 + $0x120] sm:$0xff] }
 0x643   :  { %4345 = vmatpush.msra.mxu0 %v6633_v11  ;;  %v6627_v29 = vld [vmem:[%s11125_s7 + $0x130] sm:$0xff] }
 0x644   :  { %6588 = vmatmul.msk.f32.gmra.mxu3 %vm3800_vm4, %v3765_v7  ;;  %6600 = vmatmul.msk.f32.gmra.mxu2 %vm3800_vm4, %v3765_v7  ;;  %v3766_v38 = vmax.f32 %v3362_v61, %v3635_v54  ;;  %v6623_v54 = vld [vmem:[%s11125_s7 + $0x110] sm:$0xff] }
 0x645   :  { %4346 = vmatpush.msra.mxu0 %v6631_v58 }
 0x646   :  { %3883 = vmatmul.f32.gmra.mxu1 %v3766_v38  ;;  %4020 = vmatmul.f32.gmra.mxu0 %v3766_v38  ;;  %v6621_v38 = vld [vmem:[%s11125_s7 + $0x100] sm:$0xff] }
 0x647   :  { %v3740_v55 = vpop.f32.mrf.mxu2  ;;  %4347 = vmatpush.msra.mxu0 %v6629_v31 }
 0x648   :  { %v3741_v43 = vadd.f32 %v3740_v55, %v3687_v53  ;;  %v6619_v55 = vld [vmem:[%s11125_s7 + $0xf0] sm:$0xff] }
 0x649   :  { %v3637_v59 = vpop.f32.mrf.mxu3  ;;  %4348 = vmatpush.msra.mxu0 %v6627_v29 }
 0x64a   :  { %v3767_v2 = vmax.f32 %v3468_v47, %v3741_v43  ;;  %v3638_v45 = vadd.f32 %v3637_v59, %v3584_v51 }
 0x64b   :  { %4349 = vmatpush.msra.mxu0 %v6625_v23 }
 0x64c   :  { %6589 = vmatmul.msk.f32.gmra.mxu3 %vm3800_vm4, %v3767_v2  ;;  %6601 = vmatmul.msk.f32.gmra.mxu2 %vm3800_vm4, %v3767_v2  ;;  %v3768_v33 = vmax.f32 %v3365_v42, %v3638_v45 }
 0x64d   :  { %4350 = vmatpush.msra.mxu0 %v6623_v54 }
 0x64e   :  { %3886 = vmatmul.f32.gmra.mxu1 %v3768_v33  ;;  %4023 = vmatmul.f32.gmra.mxu0 %v3768_v33 }
 0x64f   :  { %v3743_v27 = vpop.f32.mrf.mxu2  ;;  %4351 = vmatpush.msra.mxu0 %v6621_v38 }
 0x650   :  { %v3744_v22 = vadd.f32 %v3743_v27, %v3690_v50 }
 0x651   :  { %4352 = vmatpush.msra.mxu0 %v6619_v55 }
 0x652   :  { %v3769_v48 = vmax.f32 %v3471_v56, %v3744_v22 }
 0x654   :  { %6590 = vmatmul.msk.f32.gmra.mxu3 %vm3800_vm4, %v3769_v48  ;;  %6602 = vmatmul.msk.f32.gmra.mxu2 %vm3800_vm4, %v3769_v48 }
 0x673   :  { %v10044_v46 = vpop.f32.mrf.mxu1  ;;  %v10046_v4 = vpop.f32.mrf.mxu0 }
 0x67b   :  { %v10048_v62 = vpop.f32.mrf.mxu1  ;;  %v10050_v5 = vpop.f32.mrf.mxu0 }
 0x67f   :  { %v10052_v3 = vpop.f32.mrf.mxu3  ;;  %v10054_v16 = vpop.f32.mrf.mxu2 }
 0x683   :  { %v10056_v28 = vpop.f32.mrf.mxu1  ;;  %v10058_v10 = vpop.f32.mrf.mxu0 }
 0x687   :  { %v10060_v41 = vpop.f32.mrf.mxu3  ;;  %v10062_v26 = vpop.f32.mrf.mxu2 }
 0x68b   :  { %v10064_v32 = vpop.f32.mrf.mxu1  ;;  %v10066_v9 = vpop.f32.mrf.mxu0 }
 0x68f   :  { %v10068_v17 = vpop.f32.mrf.mxu3  ;;  %v10070_v49 = vpop.f32.mrf.mxu2 }
 0x693   :  { %v10072_v18 = vpop.f32.mrf.mxu1  ;;  %v10074_v21 = vpop.f32.mrf.mxu0 }
 0x697   :  { %v10076_v19 = vpop.f32.mrf.mxu3  ;;  %v10078_v52 = vpop.f32.mrf.mxu2 }
 0x69b   :  { %v10080_v34 = vpop.f32.mrf.mxu1  ;;  %v10082_v44 = vpop.f32.mrf.mxu0 }
 0x69f   :  { %v10084_v13 = vpop.f32.mrf.mxu3  ;;  %v10086_v40 = vpop.f32.mrf.mxu2 }
 0x6a3   :  { %v10094_v15 = vpop.f32.mrf.mxu1  ;;  %v10096_v8 = vpop.f32.mrf.mxu0 }
 0x6a7   :  { %v10101_v1 = vpop.f32.mrf.mxu3  ;;  %v10103_v37 = vpop.f32.mrf.mxu2 }
 0x6ab   :  { %v3875_v14 = vpop.f32.mrf.mxu1  ;;  %v4012_v6 = vpop.f32.mrf.mxu0 }
 0x6af   :  { %v3925_v63 = vpop.f32.mrf.mxu3  ;;  %v4062_v24 = vpop.f32.mrf.mxu2 }
 0x6b0   :  { %v3926_v38 = vadd.f32 %v3925_v63, %v10094_v15  ;;  %v4063_v55 = vadd.f32 %v4062_v24, %v10096_v8  ;;  %v3920_v15 = vadd.f32 %v10084_v13, %v10072_v18  ;;  %v4057_v8 = vadd.f32 %v10086_v40, %v10074_v21  ;;  %v4208_v24 = vld [vmem:[#allocation6 + $0x40] sm:$0xff] }
 0x6b1   :  { %v3914_v21 = vadd.f32 %v10068_v17, %v10056_v28  ;;  %v4051_v13 = vadd.f32 %v10070_v49, %v10058_v10  ;;  %v3908_v10 = vadd.f32 %v10052_v3, %v10044_v46  ;;  %v4045_v17 = vadd.f32 %v10054_v16, %v10046_v4 }
 0x6b2   :  { %v4086_v63 = vmax.f32 %v3926_v38, %v4063_v55  ;;  %v4084_v40 = vmax.f32 %v3920_v15, %v4057_v8  ;;  %v4197_v38 = vld [vmem:[%s11125_s7 + $0xa0] sm:$0xff]  ;;  %v4195_v55 = vld [vmem:[%s11125_s7 + $0x90] sm:$0xff] }
 0x6b3   :  { %v3878_v61 = vpop.f32.mrf.mxu1  ;;  %v4015_v53 = vpop.f32.mrf.mxu0  ;;  %v4082_v49 = vmax.f32 %v3914_v21, %v4051_v13  ;;  %v4080_v46 = vmax.f32 %v3908_v10, %v4045_v17  ;;  %v4189_v15 = vld [vmem:[%s11125_s7 + $0x60] sm:$0xff]  ;;  %v4187_v8 = vld [vmem:[%s11125_s7 + $0x50] sm:$0xff]  ;;  %v6716_v10 = vld [vmem:[%s11125_s7 + $0x2b8] sm:$0xff] }
 0x6b4   :  { %v4181_v21 = vld [vmem:[%s11125_s7 + $0x20] sm:$0xff]  ;;  %v4179_v13 = vld [vmem:[%s11125_s7 + $0x10] sm:$0xff]  ;;  %v6714_v17 = vld [vmem:[%s11125_s7 + $0x2a8] sm:$0xff] }
 0x6b5   :  { %v10209_v4 = vmax.f32 %v4082_v49, 0.0  ;;  %v10219_v16 = vmax.f32 %v4080_v46, 0.0  ;;  %v6712_v49 = vld [vmem:[%s11125_s7 + $0x298] sm:$0xff] }
 0x6b6   :  { %v6708_v46 = vld [vmem:[%s11125_s7 + $0x278] sm:$0xff] }
 0x6b7   :  { %v3928_v39 = vpop.f32.mrf.mxu3  ;;  %v4065_v7 = vpop.f32.mrf.mxu2 }
 0x6b8   :  { %v3929_v31 = vadd.f32 %v3928_v39, %v3875_v14  ;;  %v4066_v29 = vadd.f32 %v4065_v7, %v4012_v6  ;;  %v3923_v14 = vadd.f32 %v10101_v1, %v10080_v34  ;;  %v4060_v6 = vadd.f32 %v10103_v37, %v10082_v44 }
 0x6b9   :  { %v3917_v44 = vadd.f32 %v10076_v19, %v10064_v32  ;;  %v4054_v1 = vadd.f32 %v10078_v52, %v10066_v9  ;;  %v10181_v32 = vmax.f32 %v4086_v63, 0.0  ;;  %v3911_v9 = vadd.f32 %v10060_v41, %v10048_v62  ;;  %v4185_v63 = vld [vmem:[%s11125_s7 + $0x40] sm:$0xff] }
 0x6ba   :  { %v4087_v39 = vmax.f32 %v3929_v31, %v4066_v29  ;;  %v4085_v37 = vmax.f32 %v3923_v14, %v4060_v6  ;;  %v4048_v19 = vadd.f32 %v10062_v26, %v10050_v5  ;;  %v10199_v62 = vmax.f32 %v4084_v40, 0.0  ;;  %v4104_v26 = vld [vmem:[#allocation6] sm:$0xff]  ;;  %v4199_v29 = vld [vmem:[%s11125_s7 + $0xb0] sm:$0xff]  ;;  %v4109_v14 = vld [vmem:[#allocation6 + $0x28] sm:$0xff] }
 0x6bb   :  { %v3881_v51 = vpop.f32.mrf.mxu1  ;;  %v4018_v2 = vpop.f32.mrf.mxu0  ;;  %v4083_v52 = vmax.f32 %v3917_v44, %v4054_v1  ;;  %v4108_v31 = vld [vmem:[#allocation6 + $0x20] sm:$0xff]  ;;  %v4191_v6 = vld [vmem:[%s11125_s7 + $0x70] sm:$0xff] }
 0x6bc   :  { %v10172_v18 = vmax.f32 %v4087_v39, 0.0  ;;  %v10190_v28 = vmax.f32 %v4085_v37, 0.0  ;;  %v4081_v5 = vmax.f32 %v3911_v9, %v4048_v19  ;;  %v4213_v39 = vld [vmem:[#allocation6 + $0x68] sm:$0xff]  ;;  %v4110_v44 = vld [vmem:[#allocation6 + $0x30] sm:$0xff]  ;;  %v4177_v40 = vld [vmem:[%s11125_s7] sm:$0xff] }
 0x6bd   :  { %v10204_v41 = vmax.f32 %v4083_v52, 0.0  ;;  %v4183_v1 = vld [vmem:[%s11125_s7 + $0x30] sm:$0xff]  ;;  %v4111_v9 = vld [vmem:[#allocation6 + $0x38] sm:$0xff]  ;;  %v6718_v19 = vld [vmem:[%s11125_s7 + $0x2c8] sm:$0xff] }
 0x6be   :  { %v10214_v3 = vmax.f32 %v4081_v5, 0.0  ;;  %v4214_v37 = vld [vmem:[#allocation6 + $0x70] sm:$0xff]  ;;  %v4215_v52 = vld [vmem:[#allocation6 + $0x78] sm:$0xff]  ;;  %v6710_v5 = vld [vmem:[%s11125_s7 + $0x288] sm:$0xff] }
 0x6bf   :  { %v3931_v47 = vpop.f32.mrf.mxu3  ;;  %v4068_v43 = vpop.f32.mrf.mxu2 }
 0x6c0   :  { %v3932_v30 = vadd.f32 %v3931_v47, %v3878_v61  ;;  %v4069_v0 = vadd.f32 %v4068_v43, %v4015_v53  ;;  %v4206_v61 = vld [vmem:[%s11125_s7 + $0xe8] sm:$0xff]  ;;  %v4204_v53 = vld [vmem:[%s11125_s7 + $0xd8] sm:$0xff] }
 0x6c1   :  { %v4202_v47 = vld [vmem:[%s11125_s7 + $0xc8] sm:$0xff]  ;;  %v4200_v43 = vld [vmem:[%s11125_s7 + $0xb8] sm:$0xff] }
 0x6c3   :  { %v3884_v45 = vpop.f32.mrf.mxu1  ;;  %v4021_v50 = vpop.f32.mrf.mxu0 }
 0x6c7   :  { %v3934_v59 = vpop.f32.mrf.mxu3  ;;  %v4071_v42 = vpop.f32.mrf.mxu2 }
 0x6c8   :  { %v3935_v35 = vadd.f32 %v3934_v59, %v3881_v51  ;;  %v4072_v36 = vadd.f32 %v4071_v42, %v4018_v2  ;;  %v4105_v51 = vld [vmem:[#allocation6 + $0x8] sm:$0xff]  ;;  %v4196_v42 = vld [vmem:[%s11125_s7 + $0x98] sm:$0xff] }
 0x6c9   :  { %v4209_v2 = vld [vmem:[#allocation6 + $0x48] sm:$0xff] }
 0x6ca   :  { %v4089_v23 = vmax.f32 %v3935_v35, %v4072_v36  ;;  %v4198_v59 = vld [vmem:[%s11125_s7 + $0xa8] sm:$0xff]  ;;  %v4107_v35 = vld [vmem:[#allocation6 + $0x18] sm:$0xff] }
 0x6cb   :  { %v3887_v56 = vpop.f32.mrf.mxu1  ;;  %v4024_v22 = vpop.f32.mrf.mxu0  ;;  %v4211_v36 = vld [vmem:[#allocation6 + $0x58] sm:$0xff] }
 0x6cc   :  { %v10154_v7 = vmax.f32 %v4089_v23, 0.0  ;;  %v4212_v23 = vld [vmem:[#allocation6 + $0x60] sm:$0xff] }
 0x6cf   :  { %v3937_v33 = vpop.f32.mrf.mxu3  ;;  %v4074_v27 = vpop.f32.mrf.mxu2 }
 0x6d0   :  { %v3938_v20 = vadd.f32 %v3937_v33, %v3884_v45  ;;  %v4075_v12 = vadd.f32 %v4074_v27, %v4021_v50  ;;  %v4088_v45 = vmax.f32 %v3932_v30, %v4069_v0  ;;  %v4194_v33 = vld [vmem:[%s11125_s7 + $0x88] sm:$0xff]  ;;  %v4192_v27 = vld [vmem:[%s11125_s7 + $0x78] sm:$0xff]  ;;  %v4205_v30 = vld [vmem:[%s11125_s7 + $0xe0] sm:$0xff] }
 0x6d1   :  { %v4203_v0 = vld [vmem:[%s11125_s7 + $0xd0] sm:$0xff] }
 0x6d2   :  { %v4090_v11 = vmax.f32 %v3938_v20, %v4075_v12  ;;  %v10163_v34 = vmax.f32 %v4088_v45, 0.0  ;;  %v4106_v20 = vld [vmem:[#allocation6 + $0x10] sm:$0xff]  ;;  %v4193_v45 = vld [vmem:[%s11125_s7 + $0x80] sm:$0xff] }
 0x6d3   :  { %v4210_v12 = vld [vmem:[#allocation6 + $0x50] sm:$0xff] }
 0x6d4   :  { %v10145_v50 = vmax.f32 %v4090_v11, 0.0  ;;  %v4178_v11 = vld [vmem:[%s11125_s7 + $0x8] sm:$0xff] }
 0x6d7   :  { %v3940_v48 = vpop.f32.mrf.mxu3  ;;  %v4077_v25 = vpop.f32.mrf.mxu2 }
 0x6d8   :  { %v3941_v60 = vadd.f32 %v3940_v48, %v3887_v56  ;;  %v4078_v57 = vadd.f32 %v4077_v25, %v4024_v22  ;;  %v4190_v56 = vld [vmem:[%s11125_s7 + $0x68] sm:$0xff]  ;;  %v4188_v22 = vld [vmem:[%s11125_s7 + $0x58] sm:$0xff] }
 0x6d9   :  { %v4186_v48 = vld [vmem:[%s11125_s7 + $0x48] sm:$0xff]  ;;  %v4184_v25 = vld [vmem:[%s11125_s7 + $0x38] sm:$0xff] }
 0x6da   :  { %v4091_v58 = vmax.f32 %v3941_v60, %v4078_v57  ;;  %v4182_v60 = vld [vmem:[%s11125_s7 + $0x28] sm:$0xff]  ;;  %v4180_v57 = vld [vmem:[%s11125_s7 + $0x18] sm:$0xff] }
 0x6dc   :  { %v10141_v54 = vmax.f32 %v4091_v58, 0.0  ;;  %v4201_v58 = vld [vmem:[%s11125_s7 + $0xc0] sm:$0xff] }
 0x6de   :  { %4140 = vmatpush.msra.mxu1 %v10141_v54  ;;  %4244 = vmatpush.msra.mxu3 %v10141_v54 }
 0x6df   :  { %4562 = vmatpush.msrb.mxu0 %v10141_v54 }
 0x6e0   :  { %4141 = vmatpush.msra.mxu1 %v10145_v50  ;;  %4245 = vmatpush.msra.mxu3 %v10145_v50 }
 0x6e1   :  { %4563 = vmatpush.msrb.mxu0 %v10145_v50 }
 0x6e2   :  { %4142 = vmatpush.msra.mxu1 %v10154_v7  ;;  %4246 = vmatpush.msra.mxu3 %v10154_v7 }
 0x6e3   :  { %4564 = vmatpush.msrb.mxu0 %v10154_v7 }
 0x6e4   :  { %4143 = vmatpush.msra.mxu1 %v10163_v34  ;;  %4247 = vmatpush.msra.mxu3 %v10163_v34 }
 0x6e5   :  { %4565 = vmatpush.msrb.mxu0 %v10163_v34 }
 0x6e6   :  { %4144 = vmatpush.msra.mxu1 %v10172_v18  ;;  %4248 = vmatpush.msra.mxu3 %v10172_v18 }
 0x6e7   :  { %4566 = vmatpush.msrb.mxu0 %v10172_v18 }
 0x6e8   :  { %4145 = vmatpush.msra.mxu1 %v10181_v32  ;;  %4249 = vmatpush.msra.mxu3 %v10181_v32 }
 0x6e9   :  { %4567 = vmatpush.msrb.mxu0 %v10181_v32 }
 0x6ea   :  { %4146 = vmatpush.msra.mxu1 %v10190_v28  ;;  %4250 = vmatpush.msra.mxu3 %v10190_v28 }
 0x6eb   :  { %4568 = vmatpush.msrb.mxu0 %v10190_v28 }
 0x6ec   :  { %4147 = vmatpush.msra.mxu1 %v10199_v62  ;;  %4251 = vmatpush.msra.mxu3 %v10199_v62 }
 0x6ed   :  { %4569 = vmatpush.msrb.mxu0 %v10199_v62 }
 0x6ee   :  { %4148 = vmatpush.msra.mxu1 %v10204_v41  ;;  %4252 = vmatpush.msra.mxu3 %v10204_v41 }
 0x6ef   :  { %4570 = vmatpush.msrb.mxu0 %v10204_v41 }
 0x6f0   :  { %4149 = vmatpush.msra.mxu1 %v10209_v4  ;;  %4253 = vmatpush.msra.mxu3 %v10209_v4 }
 0x6f1   :  { %4571 = vmatpush.msrb.mxu0 %v10209_v4 }
 0x6f2   :  { %4150 = vmatpush.msra.mxu1 %v10214_v3  ;;  %4254 = vmatpush.msra.mxu3 %v10214_v3 }
 0x6f3   :  { %4572 = vmatpush.msrb.mxu0 %v10214_v3 }
 0x6f4   :  { %4151 = vmatpush.msra.mxu1 %v10219_v16  ;;  %4255 = vmatpush.msra.mxu3 %v10219_v16 }
 0x6f5   :  { %4573 = vmatpush.msrb.mxu0 %v10219_v16  ;;  %6603 = vmatmul.msk.f32.vlgmr.msra.gmra.mxu1 %vm229_vm0, %v4104_v26  ;;  %v6706_v26 = vld [vmem:[%s11125_s7 + $0x268] sm:$0xff] }
 0x6f6   :  { %6611 = vmatmul.msk.f32.vlgmr.msra.gmra.mxu3 %vm229_vm0, %v4208_v24  ;;  %4444 = vmatpush.msrb.mxu1 %v4205_v30  ;;  %v6704_v24 = vld [vmem:[%s11125_s7 + $0x258] sm:$0xff]  ;;  %v6622_v30 = vld [vmem:[%s11125_s7 + $0x108] sm:$0xff] }
 0x6f7   :  { %4485 = vmatpush.msrb.mxu3 %v4206_v61  ;;  %v6702_v61 = vld [vmem:[%s11125_s7 + $0x248] sm:$0xff] }
 0x6f8   :  { %4445 = vmatpush.msrb.mxu1 %v4203_v0  ;;  %v6620_v0 = vld [vmem:[%s11125_s7 + $0xf8] sm:$0xff] }
 0x6f9   :  { %4486 = vmatpush.msrb.mxu3 %v4204_v53  ;;  %v6700_v53 = vld [vmem:[%s11125_s7 + $0x238] sm:$0xff] }
 0x6fa   :  { %4446 = vmatpush.msrb.mxu1 %v4201_v58 }
 0x6fb   :  { %4487 = vmatpush.msrb.mxu3 %v4202_v47  ;;  %v6648_v47 = vld [vmem:[%s11125_s7 + $0x1d8] sm:$0xff] }
 0x6fc   :  { %4447 = vmatpush.msrb.mxu1 %v4199_v29  ;;  %4379 = vmatpush.msra.mxu2 %v6648_v47  ;;  %v4753_v29 = vld [vmem:[#allocation6 + $0xc0] sm:$0xff] }
 0x6fd   :  { %4488 = vmatpush.msrb.mxu3 %v4200_v43  ;;  %6604 = vmatmul.msk.f32.gmra.mxu1 %vm229_vm0, %v4105_v51  ;;  %v6698_v43 = vld [vmem:[%s11125_s7 + $0x228] sm:$0xff] }
 0x6fe   :  { %6612 = vmatmul.msk.f32.gmra.mxu3 %vm229_vm0, %v4209_v2  ;;  %4448 = vmatpush.msrb.mxu1 %v4197_v38  ;;  %v6646_v51 = vld [vmem:[%s11125_s7 + $0x1c8] sm:$0xff]  ;;  %v6696_v2 = vld [vmem:[%s11125_s7 + $0x218] sm:$0xff]  ;;  %v4526_v38 = vld [vmem:[#allocation6 + $0x80] sm:$0xff] }
 0x6ff   :  { %4489 = vmatpush.msrb.mxu3 %v4198_v59  ;;  %4380 = vmatpush.msra.mxu2 %v6646_v51  ;;  %v6644_v59 = vld [vmem:[%s11125_s7 + $0x1b8] sm:$0xff]  ;;  %v6705_v51 = vld [vmem:[%s11125_s7 + $0x260] sm:$0xff] }
 0x700   :  { %4449 = vmatpush.msrb.mxu1 %v4195_v55  ;;  %v4754_v55 = vld [vmem:[#allocation6 + $0xc8] sm:$0xff] }
 0x701   :  { %4490 = vmatpush.msrb.mxu3 %v4196_v42  ;;  %4381 = vmatpush.msra.mxu2 %v6644_v59  ;;  %v6694_v42 = vld [vmem:[%s11125_s7 + $0x208] sm:$0xff]  ;;  %v6703_v59 = vld [vmem:[%s11125_s7 + $0x250] sm:$0xff] }
 0x702   :  { %4450 = vmatpush.msrb.mxu1 %v4193_v45  ;;  %v4527_v45 = vld [vmem:[#allocation6 + $0x88] sm:$0xff] }
 0x703   :  { %4491 = vmatpush.msrb.mxu3 %v4194_v33  ;;  %v6642_v33 = vld [vmem:[%s11125_s7 + $0x1a8] sm:$0xff] }
 0x704   :  { %4451 = vmatpush.msrb.mxu1 %v4191_v6  ;;  %4382 = vmatpush.msra.mxu2 %v6642_v33  ;;  %v4528_v6 = vld [vmem:[#allocation6 + $0x90] sm:$0xff]  ;;  %v6701_v33 = vld [vmem:[%s11125_s7 + $0x240] sm:$0xff] }
 0x705   :  { %4492 = vmatpush.msrb.mxu3 %v4192_v27  ;;  %6605 = vmatmul.msk.f32.gmra.mxu1 %vm229_vm0, %v4106_v20  ;;  %v6692_v27 = vld [vmem:[%s11125_s7 + $0x1f8] sm:$0xff] }
 0x706   :  { %6613 = vmatmul.msk.f32.gmra.mxu3 %vm229_vm0, %v4210_v12  ;;  %4452 = vmatpush.msrb.mxu1 %v4189_v15  ;;  %v6640_v20 = vld [vmem:[%s11125_s7 + $0x198] sm:$0xff]  ;;  %v6638_v12 = vld [vmem:[%s11125_s7 + $0x188] sm:$0xff] }
 0x707   :  { %4493 = vmatpush.msrb.mxu3 %v4190_v56  ;;  %4383 = vmatpush.msra.mxu2 %v6640_v20  ;;  %v6636_v56 = vld [vmem:[%s11125_s7 + $0x178] sm:$0xff]  ;;  %v6699_v20 = vld [vmem:[%s11125_s7 + $0x230] sm:$0xff] }
 0x708   :  { %4453 = vmatpush.msrb.mxu1 %v4187_v8  ;;  %v4529_v15 = vld [vmem:[#allocation6 + $0x98] sm:$0xff]  ;;  %v4757_v8 = vld [vmem:[#allocation6 + $0xe0] sm:$0xff] }
 0x709   :  { %4494 = vmatpush.msrb.mxu3 %v4188_v22  ;;  %4384 = vmatpush.msra.mxu2 %v6638_v12  ;;  %v6634_v22 = vld [vmem:[%s11125_s7 + $0x168] sm:$0xff]  ;;  %v6761_v12 = vld [vmem:[%s11125_s7 + $0x360] sm:$0xff] }
 0x70a   :  { %4454 = vmatpush.msrb.mxu1 %v4185_v63  ;;  %v4530_v63 = vld [vmem:[#allocation6 + $0xa0] sm:$0xff] }
 0x70b   :  { %4495 = vmatpush.msrb.mxu3 %v4186_v48  ;;  %4385 = vmatpush.msra.mxu2 %v6636_v56  ;;  %v6632_v48 = vld [vmem:[%s11125_s7 + $0x158] sm:$0xff] }
 0x70c   :  { %4455 = vmatpush.msrb.mxu1 %v4183_v1  ;;  %v4531_v1 = vld [vmem:[#allocation6 + $0xa8] sm:$0xff] }
 0x70d   :  { %4496 = vmatpush.msrb.mxu3 %v4184_v25  ;;  %6606 = vmatmul.msk.f32.gmra.mxu1 %vm229_vm0, %v4107_v35  ;;  %v6630_v25 = vld [vmem:[%s11125_s7 + $0x148] sm:$0xff]  ;;  %v6628_v35 = vld [vmem:[%s11125_s7 + $0x138] sm:$0xff] }
 0x70e   :  { %6614 = vmatmul.msk.f32.gmra.mxu3 %vm229_vm0, %v4211_v36  ;;  %4456 = vmatpush.msrb.mxu1 %v4181_v21  ;;  %v6690_v36 = vld [vmem:[%s11125_s7 + $0x1e8] sm:$0xff]  ;;  %v4532_v21 = vld [vmem:[#allocation6 + $0xb0] sm:$0xff] }
 0x70f   :  { %4497 = vmatpush.msrb.mxu3 %v4182_v60  ;;  %4386 = vmatpush.msra.mxu2 %v6634_v22  ;;  %v6626_v60 = vld [vmem:[%s11125_s7 + $0x128] sm:$0xff] }
 0x710   :  { %4457 = vmatpush.msrb.mxu1 %v4179_v13  ;;  %v4760_v13 = vld [vmem:[#allocation6 + $0xf8] sm:$0xff] }
 0x711   :  { %4498 = vmatpush.msrb.mxu3 %v4180_v57  ;;  %4387 = vmatpush.msra.mxu2 %v6632_v48  ;;  %v6624_v57 = vld [vmem:[%s11125_s7 + $0x118] sm:$0xff]  ;;  %v6697_v48 = vld [vmem:[%s11125_s7 + $0x220] sm:$0xff] }
 0x712   :  { %4458 = vmatpush.msrb.mxu1 %v4177_v40  ;;  %v4533_v40 = vld [vmem:[#allocation6 + $0xb8] sm:$0xff] }
 0x713   :  { %4499 = vmatpush.msrb.mxu3 %v4178_v11  ;;  %4388 = vmatpush.msra.mxu2 %v6630_v25  ;;  %v6759_v25 = vld [vmem:[%s11125_s7 + $0x350] sm:$0xff] }
 0x714   :  { %4696 = vmatpush.msra.mxu1 %v6718_v19 }
 0x715   :  { %4789 = vmatpush.msra.mxu3 %v10141_v54  ;;  %6607 = vmatmul.msk.f32.gmra.mxu1 %vm229_vm0, %v4108_v31 }
 0x716   :  { %6615 = vmatmul.msk.f32.gmra.mxu3 %vm229_vm0, %v4212_v23  ;;  %4697 = vmatpush.msra.mxu1 %v6716_v10  ;;  %v6715_v10 = vld [vmem:[%s11125_s7 + $0x2b0] sm:$0xff] }
 0x717   :  { %4790 = vmatpush.msra.mxu3 %v10145_v50  ;;  %4389 = vmatpush.msra.mxu2 %v6628_v35  ;;  %v6695_v35 = vld [vmem:[%s11125_s7 + $0x210] sm:$0xff] }
 0x718   :  { %4698 = vmatpush.msra.mxu1 %v6714_v17 }
 0x719   :  { %4791 = vmatpush.msra.mxu3 %v10154_v7  ;;  %4390 = vmatpush.msra.mxu2 %v6626_v60  ;;  %v6693_v60 = vld [vmem:[%s11125_s7 + $0x200] sm:$0xff] }
 0x71a   :  { %4699 = vmatpush.msra.mxu1 %v6712_v49 }
 0x71b   :  { %4792 = vmatpush.msra.mxu3 %v10163_v34  ;;  %4391 = vmatpush.msra.mxu2 %v6624_v57  ;;  %v6755_v57 = vld [vmem:[%s11125_s7 + $0x330] sm:$0xff] }
 0x71c   :  { %4700 = vmatpush.msra.mxu1 %v6710_v5  ;;  %v6713_v5 = vld [vmem:[%s11125_s7 + $0x2a0] sm:$0xff] }
 0x71d   :  { %4793 = vmatpush.msra.mxu3 %v10172_v18  ;;  %6608 = vmatmul.msk.f32.gmra.mxu1 %vm229_vm0, %v4109_v14  ;;  %v4755_v14 = vld [vmem:[#allocation6 + $0xd0] sm:$0xff] }
 0x71e   :  { %6616 = vmatmul.msk.f32.gmra.mxu3 %vm229_vm0, %v4213_v39  ;;  %4701 = vmatpush.msra.mxu1 %v6708_v46  ;;  %v4756_v39 = vld [vmem:[#allocation6 + $0xd8] sm:$0xff]  ;;  %v6711_v46 = vld [vmem:[%s11125_s7 + $0x290] sm:$0xff] }
 0x71f   :  { %4794 = vmatpush.msra.mxu3 %v10181_v32  ;;  %4392 = vmatpush.msra.mxu2 %v6622_v30  ;;  %v6691_v30 = vld [vmem:[%s11125_s7 + $0x1f0] sm:$0xff] }
 0x720   :  { %4702 = vmatpush.msra.mxu1 %v6706_v26  ;;  %v6771_v26 = vld [vmem:[%s11125_s7 + $0x3b0] sm:$0xff] }
 0x721   :  { %4795 = vmatpush.msra.mxu3 %v10190_v28  ;;  %4393 = vmatpush.msra.mxu2 %v6620_v0  ;;  %v6753_v0 = vld [vmem:[%s11125_s7 + $0x320] sm:$0xff] }
 0x722   :  { %4703 = vmatpush.msra.mxu1 %v6704_v24  ;;  %v6769_v24 = vld [vmem:[%s11125_s7 + $0x3a0] sm:$0xff] }
 0x723   :  { %4796 = vmatpush.msra.mxu3 %v10199_v62 }
 0x724   :  { %4704 = vmatpush.msra.mxu1 %v6702_v61  ;;  %v6709_v61 = vld [vmem:[%s11125_s7 + $0x280] sm:$0xff] }
 0x725   :  { %4797 = vmatpush.msra.mxu3 %v10204_v41  ;;  %6609 = vmatmul.msk.f32.gmra.mxu1 %vm229_vm0, %v4110_v44  ;;  %v4758_v44 = vld [vmem:[#allocation6 + $0xe8] sm:$0xff] }
 0x726   :  { %6617 = vmatmul.msk.f32.gmra.mxu3 %vm229_vm0, %v4214_v37  ;;  %4705 = vmatpush.msra.mxu1 %v6700_v53  ;;  %v4759_v37 = vld [vmem:[#allocation6 + $0xf0] sm:$0xff] }
 0x727   :  { %4798 = vmatpush.msra.mxu3 %v10209_v4  ;;  %v6707_v53 = vld [vmem:[%s11125_s7 + $0x270] sm:$0xff] }
 0x728   :  { %4706 = vmatpush.msra.mxu1 %v6698_v43 }
 0x729   :  { %4799 = vmatpush.msra.mxu3 %v10214_v3 }
 0x72a   :  { %4707 = vmatpush.msra.mxu1 %v6696_v2  ;;  %v6767_v2 = vld [vmem:[%s11125_s7 + $0x390] sm:$0xff] }
 0x72b   :  { %4800 = vmatpush.msra.mxu3 %v10219_v16 }
 0x72c   :  { %4708 = vmatpush.msra.mxu1 %v6694_v42  ;;  %v6765_v42 = vld [vmem:[%s11125_s7 + $0x380] sm:$0xff] }
 0x72d   :  { %6610 = vmatmul.msk.f32.gmra.mxu1 %vm229_vm0, %v4111_v9 }
 0x72e   :  { %6618 = vmatmul.msk.f32.gmra.mxu3 %vm229_vm0, %v4215_v52  ;;  %4709 = vmatpush.msra.mxu1 %v6692_v27  ;;  %v6717_v52 = vld [vmem:[%s11125_s7 + $0x2c0] sm:$0xff]  ;;  %v6763_v27 = vld [vmem:[%s11125_s7 + $0x370] sm:$0xff] }
 0x72f   :  { %4655 = vmatpush.msrb.mxu2 %v6717_v52  ;;  %v6752_v52 = vld [vmem:[%s11125_s7 + $0x318] sm:$0xff] }
 0x730   :  { %4710 = vmatpush.msra.mxu1 %v6690_v36  ;;  %v6757_v36 = vld [vmem:[%s11125_s7 + $0x340] sm:$0xff] }
 0x731   :  { %4656 = vmatpush.msrb.mxu2 %v6715_v10  ;;  %v6750_v10 = vld [vmem:[%s11125_s7 + $0x308] sm:$0xff] }
 0x733   :  { %4657 = vmatpush.msrb.mxu2 %v6713_v5  ;;  %v6748_v5 = vld [vmem:[%s11125_s7 + $0x2f8] sm:$0xff] }
 0x735   :  { %4658 = vmatpush.msrb.mxu2 %v6711_v46  ;;  %v6746_v46 = vld [vmem:[%s11125_s7 + $0x2e8] sm:$0xff] }
 0x737   :  { %4659 = vmatpush.msrb.mxu2 %v6709_v61 }
 0x739   :  { %4660 = vmatpush.msrb.mxu2 %v6707_v53 }
 0x73b   :  { %4661 = vmatpush.msrb.mxu2 %v6705_v51 }
 0x73d   :  { %4662 = vmatpush.msrb.mxu2 %v6703_v59 }
 0x73f   :  { %4663 = vmatpush.msrb.mxu2 %v6701_v33 }
 0x741   :  { %4664 = vmatpush.msrb.mxu2 %v6699_v20 }
 0x743   :  { %4665 = vmatpush.msrb.mxu2 %v6697_v48 }
 0x745   :  { %4666 = vmatpush.msrb.mxu2 %v6695_v35  ;;  %v4982_v35 = vld [vmem:[#allocation6 + $0x110] sm:$0xff] }
 0x747   :  { %4667 = vmatpush.msrb.mxu2 %v6693_v60  ;;  %v4983_v60 = vld [vmem:[#allocation6 + $0x118] sm:$0xff] }
 0x749   :  { %4668 = vmatpush.msrb.mxu2 %v6691_v30  ;;  %v4984_v30 = vld [vmem:[#allocation6 + $0x120] sm:$0xff] }
 0x772   :  { %v4153_v11 = vpop.f32.mrf.mxu1 }
 0x773   :  { %6665 = vmatmul.msk.f32.vlgmr.msrb.gmra.mxu1 %vm4312_vm5, %v4153_v11  ;;  %6673 = vmatmul.msk.f32.vlgmr.msrb.gmra.mxu3 %vm4312_vm5, %v4153_v11 }
 0x774   :  { %5016 = vmatpush.msrb.mxu1 %v10141_v54 }
 0x776   :  { %5017 = vmatpush.msrb.mxu1 %v10145_v50 }
 0x778   :  { %5018 = vmatpush.msrb.mxu1 %v10154_v7 }
 0x779   :  { %v4257_v58 = vpop.f32.mrf.mxu3 }
 0x77a   :  { %6649 = vmatmul.msk.f32.vlgmr.msra.gmra.mxu0 %vm4312_vm5, %v4257_v58  ;;  %5019 = vmatpush.msrb.mxu1 %v10163_v34  ;;  %v4156_v31 = vpop.f32.mrf.mxu1 }
 0x77b   :  { %6674 = vmatmul.msk.f32.gmra.mxu3 %vm4312_vm5, %v4156_v31  ;;  %6657 = vmatmul.msk.f32.vlgmr.msra.gmra.mxu2 %vm4312_vm5, %v4257_v58 }
 0x77c   :  { %5020 = vmatpush.msrb.mxu1 %v10172_v18  ;;  %4882 = vmatpush.msra.mxu0 %v6771_v26 }
 0x77d   :  { %6666 = vmatmul.msk.f32.gmra.mxu1 %vm4312_vm5, %v4156_v31  ;;  %v6689_v31 = vld [vmem:[%s11125_s7 + $0x1e0] sm:$0xff] }
 0x77e   :  { %5021 = vmatpush.msrb.mxu1 %v10181_v32  ;;  %4883 = vmatpush.msra.mxu0 %v6769_v24  ;;  %v6744_v24 = vld [vmem:[%s11125_s7 + $0x2d8] sm:$0xff] }
 0x77f   :  { %4669 = vmatpush.msrb.mxu2 %v6689_v31  ;;  %v4985_v31 = vld [vmem:[#allocation6 + $0x128] sm:$0xff] }
 0x780   :  { %5022 = vmatpush.msrb.mxu1 %v10190_v28  ;;  %4884 = vmatpush.msra.mxu0 %v6767_v2 }
 0x781   :  { %v4260_v54 = vpop.f32.mrf.mxu3 }
 0x782   :  { %6650 = vmatmul.msk.f32.gmra.mxu0 %vm4312_vm5, %v4260_v54  ;;  %5023 = vmatpush.msrb.mxu1 %v10199_v62  ;;  %v4159_v50 = vpop.f32.mrf.mxu1 }
 0x783   :  { %6675 = vmatmul.msk.f32.gmra.mxu3 %vm4312_vm5, %v4159_v50  ;;  %6658 = vmatmul.msk.f32.gmra.mxu2 %vm4312_vm5, %v4260_v54  ;;  %v6751_v54 = vld [vmem:[%s11125_s7 + $0x310] sm:$0xff] }
 0x784   :  { %5024 = vmatpush.msrb.mxu1 %v10204_v41  ;;  %4885 = vmatpush.msra.mxu0 %v6765_v42 }
 0x785   :  { %6667 = vmatmul.msk.f32.gmra.mxu1 %vm4312_vm5, %v4159_v50  ;;  %v6749_v50 = vld [vmem:[%s11125_s7 + $0x300] sm:$0xff] }
 0x786   :  { %5025 = vmatpush.msrb.mxu1 %v10209_v4  ;;  %4886 = vmatpush.msra.mxu0 %v6763_v27 }
 0x788   :  { %5026 = vmatpush.msrb.mxu1 %v10214_v3  ;;  %4887 = vmatpush.msra.mxu0 %v6761_v12  ;;  %v4980_v12 = vld [vmem:[#allocation6 + $0x100] sm:$0xff] }
 0x789   :  { %v4263_v7 = vpop.f32.mrf.mxu3 }
 0x78a   :  { %6651 = vmatmul.msk.f32.gmra.mxu0 %vm4312_vm5, %v4263_v7  ;;  %5027 = vmatpush.msrb.mxu1 %v10219_v16  ;;  %v4162_v34 = vpop.f32.mrf.mxu1 }
 0x78b   :  { %6676 = vmatmul.msk.f32.gmra.mxu3 %vm4312_vm5, %v4162_v34  ;;  %6659 = vmatmul.msk.f32.gmra.mxu2 %vm4312_vm5, %v4263_v7  ;;  %v6747_v7 = vld [vmem:[%s11125_s7 + $0x2f0] sm:$0xff] }
 0x78c   :  { %4888 = vmatpush.msra.mxu0 %v6759_v25  ;;  %v4981_v25 = vld [vmem:[#allocation6 + $0x108] sm:$0xff] }
 0x78d   :  { %6668 = vmatmul.msk.f32.gmra.mxu1 %vm4312_vm5, %v4162_v34  ;;  %v6745_v34 = vld [vmem:[%s11125_s7 + $0x2e0] sm:$0xff] }
 0x78e   :  { %4889 = vmatpush.msra.mxu0 %v6757_v36 }
 0x790   :  { %4890 = vmatpush.msra.mxu0 %v6755_v57 }
 0x791   :  { %v4266_v18 = vpop.f32.mrf.mxu3 }
 0x792   :  { %6652 = vmatmul.msk.f32.gmra.mxu0 %vm4312_vm5, %v4266_v18  ;;  %v4165_v32 = vpop.f32.mrf.mxu1 }
 0x793   :  { %6677 = vmatmul.msk.f32.gmra.mxu3 %vm4312_vm5, %v4165_v32  ;;  %6660 = vmatmul.msk.f32.gmra.mxu2 %vm4312_vm5, %v4266_v18 }
 0x794   :  { %4891 = vmatpush.msra.mxu0 %v6753_v0 }
 0x795   :  { %6669 = vmatmul.msk.f32.gmra.mxu1 %vm4312_vm5, %v4165_v32 }
 0x796   :  { %4892 = vmatpush.msra.mxu0 %v6751_v54 }
 0x798   :  { %4893 = vmatpush.msra.mxu0 %v6749_v50  ;;  %v4986_v50 = vld [vmem:[#allocation6 + $0x130] sm:$0xff] }
 0x799   :  { %v4269_v28 = vpop.f32.mrf.mxu3 }
 0x79a   :  { %v4168_v62 = vpop.f32.mrf.mxu1  ;;  %6653 = vmatmul.msk.f32.gmra.mxu0 %vm4312_vm5, %v4269_v28 }
 0x79b   :  { %6678 = vmatmul.msk.f32.gmra.mxu3 %vm4312_vm5, %v4168_v62  ;;  %6661 = vmatmul.msk.f32.gmra.mxu2 %vm4312_vm5, %v4269_v28  ;;  %v6743_v28 = vld [vmem:[%s11125_s7 + $0x2d0] sm:$0xff] }
 0x79c   :  { %4894 = vmatpush.msra.mxu0 %v6747_v7 }
 0x79d   :  { %6670 = vmatmul.msk.f32.gmra.mxu1 %vm4312_vm5, %v4168_v62 }
 0x79e   :  { %4895 = vmatpush.msra.mxu0 %v6745_v34  ;;  %v4987_v34 = vld [vmem:[#allocation6 + $0x138] sm:$0xff] }
 0x7a0   :  { %4896 = vmatpush.msra.mxu0 %v6743_v28 }
 0x7a1   :  { %v4272_v41 = vpop.f32.mrf.mxu3 }
 0x7a2   :  { %v4171_v4 = vpop.f32.mrf.mxu1  ;;  %6654 = vmatmul.msk.f32.gmra.mxu0 %vm4312_vm5, %v4272_v41 }
 0x7a3   :  { %6679 = vmatmul.msk.f32.gmra.mxu3 %vm4312_vm5, %v4171_v4  ;;  %6662 = vmatmul.msk.f32.gmra.mxu2 %vm4312_vm5, %v4272_v41 }
 0x7a5   :  { %6671 = vmatmul.msk.f32.gmra.mxu1 %vm4312_vm5, %v4171_v4 }
 0x7a9   :  { %v4275_v3 = vpop.f32.mrf.mxu3 }
 0x7aa   :  { %v4174_v16 = vpop.f32.mrf.mxu1  ;;  %6655 = vmatmul.msk.f32.gmra.mxu0 %vm4312_vm5, %v4275_v3 }
 0x7ab   :  { %6680 = vmatmul.msk.f32.gmra.mxu3 %vm4312_vm5, %v4174_v16  ;;  %6663 = vmatmul.msk.f32.gmra.mxu2 %vm4312_vm5, %v4275_v3 }
 0x7ad   :  { %6672 = vmatmul.msk.f32.gmra.mxu1 %vm4312_vm5, %v4174_v16 }
 0x7b1   :  { %v4278_v23 = vpop.f32.mrf.mxu3 }
 0x7b2   :  { %6656 = vmatmul.msk.f32.gmra.mxu0 %vm4312_vm5, %v4278_v23 }
 0x7b3   :  { %6735 = vmatmul.msk.f32.vlgmr.msra.gmra.mxu3 %vm229_vm0, %v4753_v29  ;;  %6664 = vmatmul.msk.f32.gmra.mxu2 %vm4312_vm5, %v4278_v23  ;;  %v6772_v23 = vld [vmem:[%s11125_s7 + $0x3b8] sm:$0xff] }
 0x7b4   :  { %4923 = vmatpush.msra.mxu2 %v6772_v23  ;;  %v6823_v23 = vld [vmem:[%s11125_s7 + $0x490] sm:$0xff] }
 0x7ba   :  { %6681 = vmatmul.msk.f32.vlgmr.msrb.gmra.mxu0 %vm229_vm0, %v4526_v38  ;;  %v6770_v38 = vld [vmem:[%s11125_s7 + $0x3a8] sm:$0xff] }
 0x7bb   :  { %6736 = vmatmul.msk.f32.gmra.mxu3 %vm229_vm0, %v4754_v55  ;;  %4924 = vmatpush.msra.mxu2 %v6770_v38  ;;  %v6824_v38 = vld [vmem:[%s11125_s7 + $0x498] sm:$0xff] }
 0x7c2   :  { %6682 = vmatmul.msk.f32.gmra.mxu0 %vm229_vm0, %v4527_v45 }
 0x7c3   :  { %6737 = vmatmul.msk.f32.gmra.mxu3 %vm229_vm0, %v4755_v14  ;;  %v6768_v14 = vld [vmem:[%s11125_s7 + $0x398] sm:$0xff] }
 0x7c4   :  { %4925 = vmatpush.msra.mxu2 %v6768_v14  ;;  %v6822_v14 = vld [vmem:[%s11125_s7 + $0x488] sm:$0xff] }
 0x7ca   :  { %6683 = vmatmul.msk.f32.gmra.mxu0 %vm229_vm0, %v4528_v6  ;;  %v6766_v6 = vld [vmem:[%s11125_s7 + $0x388] sm:$0xff] }
 0x7cb   :  { %6738 = vmatmul.msk.f32.gmra.mxu3 %vm229_vm0, %v4756_v39  ;;  %v6764_v39 = vld [vmem:[%s11125_s7 + $0x378] sm:$0xff]  ;;  %4926 = vmatpush.msra.mxu2 %v6766_v6  ;;  %v6819_v6 = vld [vmem:[%s11125_s7 + $0x470] sm:$0xff] }
 0x7cd   :  { %4927 = vmatpush.msra.mxu2 %v6764_v39  ;;  %v6820_v39 = vld [vmem:[%s11125_s7 + $0x478] sm:$0xff] }
 0x7d2   :  { %6684 = vmatmul.msk.f32.gmra.mxu0 %vm229_vm0, %v4529_v15  ;;  %v6762_v15 = vld [vmem:[%s11125_s7 + $0x368] sm:$0xff] }
 0x7d3   :  { %6739 = vmatmul.msk.f32.gmra.mxu3 %vm229_vm0, %v4757_v8  ;;  %4928 = vmatpush.msra.mxu2 %v6762_v15  ;;  %v6817_v15 = vld [vmem:[%s11125_s7 + $0x460] sm:$0xff] }
 0x7da   :  { %6685 = vmatmul.msk.f32.gmra.mxu0 %vm229_vm0, %v4530_v63 }
 0x7db   :  { %6740 = vmatmul.msk.f32.gmra.mxu3 %vm229_vm0, %v4758_v44  ;;  %v6760_v44 = vld [vmem:[%s11125_s7 + $0x358] sm:$0xff] }
 0x7dc   :  { %4929 = vmatpush.msra.mxu2 %v6760_v44  ;;  %v6815_v44 = vld [vmem:[%s11125_s7 + $0x450] sm:$0xff] }
 0x7e2   :  { %6686 = vmatmul.msk.f32.gmra.mxu0 %vm229_vm0, %v4531_v1  ;;  %v6758_v1 = vld [vmem:[%s11125_s7 + $0x348] sm:$0xff] }
 0x7e3   :  { %6741 = vmatmul.msk.f32.gmra.mxu3 %vm229_vm0, %v4759_v37  ;;  %v6756_v37 = vld [vmem:[%s11125_s7 + $0x338] sm:$0xff]  ;;  %4930 = vmatpush.msra.mxu2 %v6758_v1 }
 0x7e4   :  { %v6816_v1 = vld [vmem:[%s11125_s7 + $0x458] sm:$0xff] }
 0x7e5   :  { %4931 = vmatpush.msra.mxu2 %v6756_v37 }
 0x7ea   :  { %6687 = vmatmul.msk.f32.gmra.mxu0 %vm229_vm0, %v4532_v21  ;;  %v6754_v21 = vld [vmem:[%s11125_s7 + $0x328] sm:$0xff] }
 0x7eb   :  { %6742 = vmatmul.msk.f32.gmra.mxu3 %vm229_vm0, %v4760_v13  ;;  %4932 = vmatpush.msra.mxu2 %v6754_v21  ;;  %v6813_v21 = vld [vmem:[%s11125_s7 + $0x440] sm:$0xff] }
 0x7ed   :  { %4933 = vmatpush.msra.mxu2 %v6752_v52  ;;  %v6812_v52 = vld [vmem:[%s11125_s7 + $0x438] sm:$0xff] }
 0x7ef   :  { %4934 = vmatpush.msra.mxu2 %v6750_v10  ;;  %v6809_v10 = vld [vmem:[%s11125_s7 + $0x420] sm:$0xff] }
 0x7f0   :  { %v10687_v42 = vpop.f32.mrf.mxu1 }
 0x7f1   :  { %4935 = vmatpush.msra.mxu2 %v6748_v5  ;;  %v6810_v5 = vld [vmem:[%s11125_s7 + $0x428] sm:$0xff] }
 0x7f2   :  { %6688 = vmatmul.msk.f32.gmra.mxu0 %vm229_vm0, %v4533_v40 }
 0x7f3   :  { %4936 = vmatpush.msra.mxu2 %v6746_v46  ;;  %v6807_v46 = vld [vmem:[%s11125_s7 + $0x410] sm:$0xff] }
 0x7f5   :  { %4937 = vmatpush.msra.mxu2 %v6744_v24 }
 0x7f6   :  { %v10495_v9 = vpop.f32.mrf.mxu3 }
 0x7f7   :  { %v10497_v19 = vpop.f32.mrf.mxu0 }
 0x7fa   :  { %v10694_v20 = vpop.f32.mrf.mxu1 }
 0x7fe   :  { %v10505_v17 = vpop.f32.mrf.mxu3 }
 0x7ff   :  { %v10507_v49 = vpop.f32.mrf.mxu0 }
 0x802   :  { %v10699_v48 = vpop.f32.mrf.mxu1 }
 0x806   :  { %v10527_v47 = vpop.f32.mrf.mxu3 }
 0x807   :  { %v10529_v43 = vpop.f32.mrf.mxu0 }
 0x80a   :  { %v10704_v36 = vpop.f32.mrf.mxu1 }
 0x80e   :  { %v10555_v56 = vpop.f32.mrf.mxu3 }
 0x80f   :  { %v10557_v22 = vpop.f32.mrf.mxu0 }
 0x812   :  { %v10708_v57 = vpop.f32.mrf.mxu1 }
 0x816   :  { %v10583_v11 = vpop.f32.mrf.mxu3 }
 0x817   :  { %v10585_v58 = vpop.f32.mrf.mxu0 }
 0x81a   :  { %v10714_v0 = vpop.f32.mrf.mxu1 }
 0x81e   :  { %v10602_v18 = vpop.f32.mrf.mxu3 }
 0x81f   :  { %v10604_v32 = vpop.f32.mrf.mxu0 }
 0x822   :  { %v10718_v54 = vpop.f32.mrf.mxu1 }
 0x826   :  { %v10609_v62 = vpop.f32.mrf.mxu3 }
 0x827   :  { %v10611_v41 = vpop.f32.mrf.mxu0 }
 0x82a   :  { %v10722_v7 = vpop.f32.mrf.mxu1 }
 0x82e   :  { %v10613_v4 = vpop.f32.mrf.mxu3 }
 0x82f   :  { %v10615_v3 = vpop.f32.mrf.mxu0 }
 0x836   :  { %v10617_v16 = vpop.f32.mrf.mxu3 }
 0x837   :  { %6773 = vmatmul.msk.f32.vlgmr.msra.gmra.mxu0 %vm4312_vm5, %v10617_v16  ;;  %v4575_v29 = vpop.f32.mrf.mxu0 }
 0x838   :  { %6719 = vmatmul.msk.f32.vlgmr.msrb.gmra.mxu2 %vm4312_vm5, %v4575_v29  ;;  %6727 = vmatmul.msk.f32.vlgmr.msra.gmra.mxu1 %vm4312_vm5, %v4575_v29  ;;  %v6826_v29 = vld [vmem:[%s11125_s7 + $0x4a8] sm:$0xff] }
 0x839   :  { %5150 = vmatpush.msrb.mxu0 %v6826_v29 }
 0x83b   :  { %5151 = vmatpush.msrb.mxu0 %v6824_v38 }
 0x83d   :  { %5152 = vmatpush.msrb.mxu0 %v6822_v14 }
 0x83e   :  { %v10629_v55 = vpop.f32.mrf.mxu3 }
 0x83f   :  { %6774 = vmatmul.msk.f32.gmra.mxu0 %vm4312_vm5, %v10629_v55  ;;  %v4578_v45 = vpop.f32.mrf.mxu0 }
 0x840   :  { %6720 = vmatmul.msk.f32.gmra.mxu2 %vm4312_vm5, %v4578_v45  ;;  %6728 = vmatmul.msk.f32.gmra.mxu1 %vm4312_vm5, %v4578_v45  ;;  %v6821_v45 = vld [vmem:[%s11125_s7 + $0x480] sm:$0xff] }
 0x841   :  { %5153 = vmatpush.msrb.mxu0 %v6820_v39 }
 0x846   :  { %v4808_v8 = vpop.f32.mrf.mxu3 }
 0x847   :  { %6775 = vmatmul.msk.f32.gmra.mxu0 %vm4312_vm5, %v4808_v8  ;;  %v4581_v63 = vpop.f32.mrf.mxu0 }
 0x848   :  { %6721 = vmatmul.msk.f32.gmra.mxu2 %vm4312_vm5, %v4581_v63  ;;  %6729 = vmatmul.msk.f32.gmra.mxu1 %vm4312_vm5, %v4581_v63  ;;  %v10760_v63 = vpop.f32.mrf.mxu2 }
 0x84e   :  { %v4811_v13 = vpop.f32.mrf.mxu3 }
 0x84f   :  { %6776 = vmatmul.msk.f32.gmra.mxu0 %vm4312_vm5, %v4811_v13  ;;  %v4584_v40 = vpop.f32.mrf.mxu0 }
 0x850   :  { %6722 = vmatmul.msk.f32.gmra.mxu2 %vm4312_vm5, %v4584_v40  ;;  %6730 = vmatmul.msk.f32.gmra.mxu1 %vm4312_vm5, %v4584_v40  ;;  %v6811_v40 = vld [vmem:[%s11125_s7 + $0x430] sm:$0xff]  ;;  %v10794_v24 = vpop.f32.mrf.mxu2 }
 0x856   :  { %v4814_v26 = vpop.f32.mrf.mxu3 }
 0x857   :  { %6777 = vmatmul.msk.f32.gmra.mxu0 %vm4312_vm5, %v4814_v26  ;;  %v4587_v61 = vpop.f32.mrf.mxu0 }
 0x858   :  { %6723 = vmatmul.msk.f32.gmra.mxu2 %vm4312_vm5, %v4587_v61  ;;  %6731 = vmatmul.msk.f32.gmra.mxu1 %vm4312_vm5, %v4587_v61 }
 0x85e   :  { %v4817_v53 = vpop.f32.mrf.mxu3 }
 0x85f   :  { %6778 = vmatmul.msk.f32.gmra.mxu0 %vm4312_vm5, %v4817_v53  ;;  %v4590_v51 = vpop.f32.mrf.mxu0 }
 0x860   :  { %6724 = vmatmul.msk.f32.gmra.mxu2 %vm4312_vm5, %v4590_v51  ;;  %6732 = vmatmul.msk.f32.gmra.mxu1 %vm4312_vm5, %v4590_v51  ;;  %v6806_v51 = vld [vmem:[%s11125_s7 + $0x408] sm:$0xff] }
 0x866   :  { %v4820_v2 = vpop.f32.mrf.mxu3 }
 0x867   :  { %6779 = vmatmul.msk.f32.gmra.mxu0 %vm4312_vm5, %v4820_v2  ;;  %v4593_v59 = vpop.f32.mrf.mxu0 }
 0x868   :  { %6725 = vmatmul.msk.f32.gmra.mxu2 %vm4312_vm5, %v4593_v59  ;;  %6733 = vmatmul.msk.f32.gmra.mxu1 %vm4312_vm5, %v4593_v59  ;;  %v6804_v59 = vld [vmem:[%s11125_s7 + $0x3f8] sm:$0xff] }
 0x86e   :  { %v4823_v33 = vpop.f32.mrf.mxu3 }
 0x86f   :  { %6780 = vmatmul.msk.f32.gmra.mxu0 %vm4312_vm5, %v4823_v33  ;;  %v4596_v27 = vpop.f32.mrf.mxu0 }
 0x870   :  { %6726 = vmatmul.msk.f32.gmra.mxu2 %vm4312_vm5, %v4596_v27  ;;  %6734 = vmatmul.msk.f32.gmra.mxu1 %vm4312_vm5, %v4596_v27  ;;  %v6802_v27 = vld [vmem:[%s11125_s7 + $0x3e8] sm:$0xff] }
 0x878   :  { %6781 = vmatmul.msk.f32.vlgmr.msra.gmra.mxu2 %vm4312_vm5, %v10617_v16  ;;  %6789 = vmatmul.msk.f32.vlgmr.msrb.gmra.mxu1 %vm229_vm0, %v4980_v12  ;;  %v6825_v16 = vld [vmem:[%s11125_s7 + $0x4a0] sm:$0xff]  ;;  %v6799_v12 = vld [vmem:[%s11125_s7 + $0x3d0] sm:$0xff] }
 0x879   :  { %5109 = vmatpush.msrb.mxu3 %v6825_v16 }
 0x87b   :  { %5110 = vmatpush.msrb.mxu3 %v6823_v23 }
 0x87d   :  { %5111 = vmatpush.msrb.mxu3 %v6821_v45 }
 0x87f   :  { %5112 = vmatpush.msrb.mxu3 %v6819_v6 }
 0x880   :  { %6782 = vmatmul.msk.f32.gmra.mxu2 %vm4312_vm5, %v10629_v55  ;;  %6790 = vmatmul.msk.f32.gmra.mxu1 %vm229_vm0, %v4981_v25  ;;  %v6800_v25 = vld [vmem:[%s11125_s7 + $0x3d8] sm:$0xff] }
 0x881   :  { %5113 = vmatpush.msrb.mxu3 %v6817_v15 }
 0x883   :  { %5114 = vmatpush.msrb.mxu3 %v6815_v44 }
 0x885   :  { %5115 = vmatpush.msrb.mxu3 %v6813_v21 }
 0x887   :  { %5116 = vmatpush.msrb.mxu3 %v6811_v40 }
 0x888   :  { %6783 = vmatmul.msk.f32.gmra.mxu2 %vm4312_vm5, %v4808_v8  ;;  %6791 = vmatmul.msk.f32.gmra.mxu1 %vm229_vm0, %v4982_v35  ;;  %v6818_v8 = vld [vmem:[%s11125_s7 + $0x468] sm:$0xff] }
 0x889   :  { %5154 = vmatpush.msrb.mxu0 %v6818_v8  ;;  %5117 = vmatpush.msrb.mxu3 %v6809_v10 }
 0x88b   :  { %5155 = vmatpush.msrb.mxu0 %v6816_v1  ;;  %5118 = vmatpush.msrb.mxu3 %v6807_v46 }
 0x890   :  { %6784 = vmatmul.msk.f32.gmra.mxu2 %vm4312_vm5, %v4811_v13  ;;  %6792 = vmatmul.msk.f32.gmra.mxu1 %vm229_vm0, %v4983_v60  ;;  %v6814_v13 = vld [vmem:[%s11125_s7 + $0x448] sm:$0xff]  ;;  %v6797_v60 = vld [vmem:[%s11125_s7 + $0x3c0] sm:$0xff] }
 0x891   :  { %5156 = vmatpush.msrb.mxu0 %v6814_v13 }
 0x893   :  { %5157 = vmatpush.msrb.mxu0 %v6812_v52 }
 0x895   :  { %5158 = vmatpush.msrb.mxu0 %v6810_v5 }
 0x898   :  { %6785 = vmatmul.msk.f32.gmra.mxu2 %vm4312_vm5, %v4814_v26  ;;  %6793 = vmatmul.msk.f32.gmra.mxu1 %vm229_vm0, %v4984_v30  ;;  %v6808_v26 = vld [vmem:[%s11125_s7 + $0x418] sm:$0xff]  ;;  %v6798_v30 = vld [vmem:[%s11125_s7 + $0x3c8] sm:$0xff] }
 0x899   :  { %5159 = vmatpush.msrb.mxu0 %v6808_v26 }
 0x89b   :  { %5160 = vmatpush.msrb.mxu0 %v6806_v51 }
 0x89d   :  { %5161 = vmatpush.msrb.mxu0 %v6804_v59 }
 0x89f   :  { %5162 = vmatpush.msrb.mxu0 %v6802_v27 }
 0x8a0   :  { %6786 = vmatmul.msk.f32.gmra.mxu2 %vm4312_vm5, %v4817_v53  ;;  %6794 = vmatmul.msk.f32.gmra.mxu1 %vm229_vm0, %v4985_v31  ;;  %v6805_v53 = vld [vmem:[%s11125_s7 + $0x400] sm:$0xff]  ;;  %v10830_v31 = vpop.f32.mrf.mxu2 }
 0x8a1   :  { %5119 = vmatpush.msrb.mxu3 %v6805_v53  ;;  %5163 = vmatpush.msrb.mxu0 %v6800_v25 }
 0x8a3   :  { %5164 = vmatpush.msrb.mxu0 %v6798_v30 }
 0x8a8   :  { %6787 = vmatmul.msk.f32.gmra.mxu2 %vm4312_vm5, %v4820_v2  ;;  %6795 = vmatmul.msk.f32.gmra.mxu1 %vm229_vm0, %v4986_v50  ;;  %v6803_v2 = vld [vmem:[%s11125_s7 + $0x3f0] sm:$0xff] }
 0x8a9   :  { %5120 = vmatpush.msrb.mxu3 %v6803_v2 }
 0x8b0   :  { %6788 = vmatmul.msk.f32.gmra.mxu2 %vm4312_vm5, %v4823_v33  ;;  %6796 = vmatmul.msk.f32.gmra.mxu1 %vm229_vm0, %v4987_v34  ;;  %v6801_v33 = vld [vmem:[%s11125_s7 + $0x3e0] sm:$0xff]  ;;  %v10834_v34 = vpop.f32.mrf.mxu2 }
 0x8b1   :  { %5121 = vmatpush.msrb.mxu3 %v6801_v33 }
 0x8b3   :  { %5122 = vmatpush.msrb.mxu3 %v6799_v12 }
 0x8b4   :  { %v10860_v40 = vpop.f32.mrf.mxu0 }
 0x8b5   :  { %v10726_v28 = vpop.f32.mrf.mxu1  ;;  %5123 = vmatpush.msrb.mxu3 %v6797_v60  ;;  %11351 = vst [vmem:[#allocation27_spill] sm:$0xff] %v10860_v40 }
 0x8b8   :  { %v10838_v29 = vpop.f32.mrf.mxu2 }
 0x8bc   :  { %v10868_v46 = vpop.f32.mrf.mxu0 }
 0x8bd   :  { %v10740_v55 = vpop.f32.mrf.mxu1  ;;  %11353 = vst [vmem:[#allocation26_spill] sm:$0xff] %v10868_v46 }
 0x8c0   :  { %v10842_v38 = vpop.f32.mrf.mxu2 }
 0x8c4   :  { %v10872_v53 = vpop.f32.mrf.mxu0 }
 0x8c5   :  { %v10768_v37 = vpop.f32.mrf.mxu1  ;;  %11354 = vst [vmem:[#allocation48_spill] sm:$0xff] %v10872_v53 }
 0x8c8   :  { %v4413_v6 = vpop.f32.mrf.mxu2 }
 0x8cc   :  { %v10876_v2 = vpop.f32.mrf.mxu0 }
 0x8cd   :  { %v10796_v61 = vpop.f32.mrf.mxu1  ;;  %11355 = vst [vmem:[#allocation25_spill] sm:$0xff] %v10876_v2 }
 0x8d0   :  { %v4416_v15 = vpop.f32.mrf.mxu2 }
 0x8d4   :  { %v10878_v33 = vpop.f32.mrf.mxu0 }
 0x8d5   :  { %v10822_v35 = vpop.f32.mrf.mxu1  ;;  %11356 = vst [vmem:[#allocation46_spill] sm:$0xff] %v10878_v33 }
 0x8d8   :  { %v10852_v44 = vpop.f32.mrf.mxu2 }
 0x8d9   :  { %11349 = vst [vmem:[#allocation29_spill] sm:$0xff] %v10852_v44 }
 0x8dc   :  { %v10880_v12 = vpop.f32.mrf.mxu0 }
 0x8dd   :  { %v10832_v50 = vpop.f32.mrf.mxu1 }
 0x8e0   :  { %v10856_v21 = vpop.f32.mrf.mxu2 }
 0x8e1   :  { %11350 = vst [vmem:[#allocation50_spill] sm:$0xff] %v10856_v21 }
 0x8e4   :  { %v4916_v60 = vpop.f32.mrf.mxu0 }
 0x8e5   :  { %v10836_v16 = vpop.f32.mrf.mxu1 }
 0x8e8   :  { %v10862_v52 = vpop.f32.mrf.mxu2 }
 0x8e9   :  { %11352 = vst [vmem:[#allocation49_spill] sm:$0xff] %v10862_v52  ;;  %v4520_v52 = vadd.f32 %v10609_v62, %v4413_v6  ;;  %v4464_v62 = vadd.f32 %v10694_v20, %v10507_v49  ;;  %v4514_v49 = vadd.f32 %v10583_v11, %v10838_v29 }
 0x8ed   :  { %v10840_v23 = vpop.f32.mrf.mxu1 }
 0x8f0   :  { %v10870_v26 = vpop.f32.mrf.mxu2 }
 0x8f5   :  { %v5029_v45 = vpop.f32.mrf.mxu1 }
 0x8f6   :  { %6827 = vmatmul.msk.f32.vlgmr.msrb.gmra.mxu3 %vm4312_vm5, %v5029_v45  ;;  %6835 = vmatmul.msk.f32.vlgmr.msrb.gmra.mxu0 %vm4312_vm5, %v5029_v45  ;;  %v4919_v45 = vpop.f32.mrf.mxu0 }
 0x8f8   :  { %v10874_v51 = vpop.f32.mrf.mxu2 }
 0x8fd   :  { %v5032_v14 = vpop.f32.mrf.mxu1 }
 0x8fe   :  { %6828 = vmatmul.msk.f32.gmra.mxu3 %vm4312_vm5, %v5032_v14  ;;  %6836 = vmatmul.msk.f32.gmra.mxu0 %vm4312_vm5, %v5032_v14 }
 0x900   :  { %v4686_v59 = vpop.f32.mrf.mxu2 }
 0x905   :  { %v5035_v39 = vpop.f32.mrf.mxu1 }
 0x906   :  { %6829 = vmatmul.msk.f32.gmra.mxu3 %vm4312_vm5, %v5035_v39  ;;  %6837 = vmatmul.msk.f32.gmra.mxu0 %vm4312_vm5, %v5035_v39 }
 0x908   :  { %v4689_v27 = vpop.f32.mrf.mxu2 }
 0x90d   :  { %v5038_v8 = vpop.f32.mrf.mxu1 }
 0x90e   :  { %6830 = vmatmul.msk.f32.gmra.mxu3 %vm4312_vm5, %v5038_v8  ;;  %6838 = vmatmul.msk.f32.gmra.mxu0 %vm4312_vm5, %v5038_v8 }
 0x910   :  { %v4692_v25 = vpop.f32.mrf.mxu2 }
 0x915   :  { %v5041_v1 = vpop.f32.mrf.mxu1 }
 0x916   :  { %6831 = vmatmul.msk.f32.gmra.mxu3 %vm4312_vm5, %v5041_v1  ;;  %6839 = vmatmul.msk.f32.gmra.mxu0 %vm4312_vm5, %v5041_v1 }
 0x918   :  { %v10882_v30 = vpop.f32.mrf.mxu2 }
 0x919   :  { %11357 = vst [vmem:[#allocation24_spill] sm:$0xff] %v10882_v30 }
 0x91d   :  { %v5044_v13 = vpop.f32.mrf.mxu1 }
 0x91e   :  { %6832 = vmatmul.msk.f32.gmra.mxu3 %vm4312_vm5, %v5044_v13  ;;  %6840 = vmatmul.msk.f32.gmra.mxu0 %vm4312_vm5, %v5044_v13 }
 0x920   :  { %v10884_v14 = vpop.f32.mrf.mxu2 }
 0x921   :  { %11358 = vst [vmem:[#allocation44_spill] sm:$0xff] %v10884_v14 }
 0x925   :  { %v5047_v10 = vpop.f32.mrf.mxu1 }
 0x926   :  { %6833 = vmatmul.msk.f32.gmra.mxu3 %vm4312_vm5, %v5047_v10  ;;  %6841 = vmatmul.msk.f32.gmra.mxu0 %vm4312_vm5, %v5047_v10 }
 0x928   :  { %v10888_v8 = vpop.f32.mrf.mxu2 }
 0x929   :  { %11360 = vst [vmem:[#allocation41_spill] sm:$0xff] %v10888_v8  ;;  %v4502_v8 = vadd.f32 %v10495_v9, %v10760_v63 }
 0x92d   :  { %v5050_v5 = vpop.f32.mrf.mxu1 }
 0x92e   :  { %6834 = vmatmul.msk.f32.gmra.mxu3 %vm4312_vm5, %v5050_v5  ;;  %6842 = vmatmul.msk.f32.gmra.mxu0 %vm4312_vm5, %v5050_v5 }
 0x930   :  { %v4948_v10 = vpop.f32.mrf.mxu2 }
 0x938   :  { %v4951_v46 = vpop.f32.mrf.mxu2 }
 0x940   :  { %v4954_v2 = vpop.f32.mrf.mxu2 }
 0x973   :  { %v10886_v39 = vpop.f32.mrf.mxu0 }
 0x974   :  { %11359 = vst [vmem:[#allocation23_spill] sm:$0xff] %v10886_v39 }
 0x979   :  { %v10890_v1 = vpop.f32.mrf.mxu3 }
 0x97a   :  { %11361 = vst [vmem:[#allocation22_spill] sm:$0xff] %v10890_v1  ;;  %v4957_v1 = vpop.f32.mrf.mxu2 }
 0x97b   :  { %v10892_v13 = vpop.f32.mrf.mxu0 }
 0x97c   :  { %11362 = vst [vmem:[#allocation39_spill] sm:$0xff] %v10892_v13 }
 0x981   :  { %v10894_v5 = vpop.f32.mrf.mxu3 }
 0x982   :  { %11363 = vst [vmem:[#allocation21_spill] sm:$0xff] %v10894_v5  ;;  %v4523_v5 = vadd.f32 %v10613_v4, %v4416_v15  ;;  %v4479_v4 = vadd.f32 %v10718_v54, %v10611_v41  ;;  %v4476_v41 = vadd.f32 %v10714_v0, %v10604_v32  ;;  %v4467_v32 = vadd.f32 %v10699_v48, %v10529_v43 }
 0x983   :  { %v10896_v40 = vpop.f32.mrf.mxu0  ;;  %v4473_v0 = vadd.f32 %v10708_v57, %v10585_v58 }
 0x984   :  { %11364 = vst [vmem:[#allocation37_spill] sm:$0xff] %v10896_v40  ;;  %v4960_v40 = vpop.f32.mrf.mxu2  ;;  %v4748_v20 = vadd.f32 %v4689_v27, %v4479_v4  ;;  %v4746_v11 = vadd.f32 %v4686_v59, %v4476_v41  ;;  %v11369_v59 = vld [vmem:[#allocation41_spill] sm:$0xff] }
 0x986   :  { %v4973_v48 = vadd.f32 %v10880_v12, %v4746_v11  ;;  %v11371_v12 = vld [vmem:[#allocation49_spill] sm:$0xff] }
 0x989   :  { %v10898_v53 = vpop.f32.mrf.mxu3 }
 0x98a   :  { %11365 = vst [vmem:[#allocation20_spill] sm:$0xff] %v10898_v53  ;;  %v10910_v53 = vadd.f32 %v10687_v42, %v10497_v19  ;;  %v4482_v19 = vadd.f32 %v10722_v7, %v10615_v3 }
 0x98b   :  { %v10900_v30 = vpop.f32.mrf.mxu0  ;;  %v11375_v4 = vld [vmem:[#allocation37_spill] sm:$0xff] }
 0x98c   :  { %11366 = vst [vmem:[#allocation35_spill] sm:$0xff] %v10900_v30  ;;  %v4749_v30 = vadd.f32 %v10836_v16, %v4520_v52  ;;  %v4505_v16 = vadd.f32 %v10505_v17, %v10794_v24  ;;  %v4750_v3 = vadd.f32 %v4692_v25, %v4482_v19  ;;  %v4508_v17 = vadd.f32 %v10527_v47, %v10830_v31 }
 0x98d   :  { %v4511_v24 = vadd.f32 %v10555_v56, %v10834_v34  ;;  %v4975_v34 = vadd.f32 %v4916_v60, %v4748_v20  ;;  %v4740_v60 = vadd.f32 %v11371_v12, %v4467_v32  ;;  %v11381_v20 = vld [vmem:[#allocation48_spill] sm:$0xff] }
 0x98e   :  { %v4976_v9 = vadd.f32 %v4957_v1, %v4749_v30  ;;  %v4741_v47 = vadd.f32 %v10768_v37, %v4508_v17  ;;  %v4977_v52 = vadd.f32 %v4919_v45, %v4750_v3  ;;  %v11372_v30 = vld [vmem:[#allocation46_spill] sm:$0xff]  ;;  %v5397_v12 = vld [vmem:[#allocation9 + $0x60] sm:$0xff] }
 0x98f   :  { %v4743_v56 = vadd.f32 %v10796_v61, %v4511_v24  ;;  %v11373_v1 = vld [vmem:[#allocation50_spill] sm:$0xff]  ;;  %v4967_v3 = vadd.f32 %v11381_v20, %v4740_v60  ;;  %v5489_v60 = vld [vmem:[#allocation9 + $0x100] sm:$0xff] }
 0x990   :  { %v4968_v27 = vadd.f32 %v11369_v59, %v4741_v47  ;;  %v5399_v59 = vld [vmem:[#allocation9 + $0x70] sm:$0xff]  ;;  %v5477_v20 = vld [vmem:[#allocation9 + $0xa0] sm:$0xff] }
 0x991   :  { %v10902_v44 = vpop.f32.mrf.mxu3  ;;  %v4970_v57 = vadd.f32 %v4948_v10, %v4743_v56  ;;  %v11374_v10 = vld [vmem:[#allocation44_spill] sm:$0xff]  ;;  %v11387_v56 = vld [vmem:[#allocation21_spill] sm:$0xff] }
 0x992   :  { %11367 = vst [vmem:[#allocation19_spill] sm:$0xff] %v10902_v44  ;;  %v4517_v44 = vadd.f32 %v10602_v18, %v10842_v38  ;;  %v5206_v18 = vld [vmem:[%s11126_s8] sm:$0x3] }
 0x993   :  { %v5178_v39 = vpop.f32.mrf.mxu0  ;;  %v10934_v38 = vperm.slane %v5206_v18, 1  ;;  %v5208_v37 = vperm.slane %v5206_v18, 0  ;;  %v11385_v11 = vld [vmem:[#allocation20_spill] sm:$0xff] }
 0x994   :  { %v5194_v32 = vadd.f32 %v11385_v11, %v4967_v3  ;;  %v5404_v3 = vld [vmem:[#allocation9 + $0x98] sm:$0xff]  ;;  %v5493_v11 = vld [vmem:[#allocation9 + $0x120] sm:$0xff] }
 0x999   :  { %v10904_v14 = vpop.f32.mrf.mxu3 }
 0x99a   :  { %11368 = vst [vmem:[#allocation33_spill] sm:$0xff] %v10904_v14  ;;  %v4751_v14 = vadd.f32 %v10840_v23, %v4523_v5  ;;  %v4747_v23 = vadd.f32 %v10832_v50, %v4517_v44  ;;  %v4745_v50 = vadd.f32 %v10822_v35, %v4514_v49  ;;  %v4744_v35 = vadd.f32 %v10874_v51, %v4473_v0  ;;  %v11380_v49 = vld [vmem:[#allocation39_spill] sm:$0xff] }
 0x99b   :  { %v5181_v21 = vpop.f32.mrf.mxu0  ;;  %v4737_v51 = vadd.f32 %v10726_v28, %v4502_v8  ;;  %v5195_v28 = vadd.f32 %v11375_v4, %v4968_v27  ;;  %v11376_v8 = vld [vmem:[#allocation25_spill] sm:$0xff]  ;;  %v5491_v27 = vld [vmem:[#allocation9 + $0x110] sm:$0xff]  ;;  %v5392_v4 = vld [vmem:[#allocation9 + $0x38] sm:$0xff] }
 0x99c   :  { %v4978_v63 = vadd.f32 %v4960_v40, %v4751_v14  ;;  %v4974_v7 = vadd.f32 %v4954_v2, %v4747_v23  ;;  %v4470_v40 = vadd.f32 %v10704_v36, %v10557_v22  ;;  %v4972_v31 = vadd.f32 %v4951_v46, %v4745_v50 }
 0x99d   :  { %v4739_v2 = vadd.f32 %v10740_v55, %v4505_v16  ;;  %v4971_v45 = vadd.f32 %v11372_v30, %v4744_v35  ;;  %v5217_v24 = vadd.f32 %v10934_v38, %v5195_v28  ;;  %v5396_v30 = vld [vmem:[#allocation9 + $0x58] sm:$0xff] }
 0x99e   :  { %v5201_v29 = vadd.f32 %v5181_v21, %v4974_v7  ;;  %v4742_v58 = vadd.f32 %v10870_v26, %v4470_v40  ;;  %v5199_v22 = vadd.f32 %v5178_v39, %v4972_v31  ;;  %v11370_v26 = vld [vmem:[#allocation35_spill] sm:$0xff] }
 0x99f   :  { %v5197_v25 = vadd.f32 %v11370_v26, %v4970_v57  ;;  %v4966_v5 = vadd.f32 %v11374_v10, %v4739_v2  ;;  %v11386_v40 = vld [vmem:[#allocation27_spill] sm:$0xff]  ;;  %v5398_v26 = vld [vmem:[#allocation9 + $0x68] sm:$0xff]  ;;  %v5393_v10 = vld [vmem:[#allocation9 + $0x40] sm:$0xff] }
 0x9a0   :  { %v10960_v61 = vadd.f32 %v10934_v38, %v5201_v29  ;;  %v5221_v55 = vadd.f32 %v10934_v38, %v5199_v22  ;;  %v4969_v19 = vadd.f32 %v11376_v8, %v4742_v58  ;;  %v5303_v22 = vld [vmem:[#allocation7 + $0x20] sm:$0xff]  ;;  %v5492_v2 = vld [vmem:[#allocation9 + $0x118] sm:$0xff]  ;;  %v5483_v8 = vld [vmem:[#allocation9 + $0xd0] sm:$0xff] }
 0x9a1   :  { %v5140_v33 = vpop.f32.mrf.mxu3  ;;  %v11377_v18 = vld [vmem:[#allocation33_spill] sm:$0xff]  ;;  %v5219_v41 = vadd.f32 %v10934_v38, %v5197_v25  ;;  %v5484_v28 = vld [vmem:[#allocation9 + $0xd8] sm:$0xff] }
 0x9a2   :  { %v5200_v14 = vadd.f32 %v5140_v33, %v4973_v48  ;;  %v11378_v33 = vld [vmem:[#allocation29_spill] sm:$0xff]  ;;  %v5216_v48 = vadd.f32 %v5208_v37, %v5194_v32 }
 0x9a3   :  { %v5184_v13 = vpop.f32.mrf.mxu0  ;;  %v4736_v23 = vadd.f32 %v11378_v33, %v10910_v53  ;;  %v11384_v53 = vld [vmem:[#allocation26_spill] sm:$0xff]  ;;  %v5490_v25 = vld [vmem:[#allocation9 + $0x108] sm:$0xff]  ;;  %v5388_v33 = vld [vmem:[#allocation9 + $0x18] sm:$0xff] }
 0x9a4   :  { %v5203_v6 = vadd.f32 %v5184_v13, %v4976_v9  ;;  %v4738_v13 = vadd.f32 %v11373_v1, %v4464_v62  ;;  %v11379_v9 = vld [vmem:[#allocation24_spill] sm:$0xff]  ;;  %v5193_v62 = vadd.f32 %v11380_v49, %v4966_v5  ;;  %v5394_v1 = vld [vmem:[#allocation9 + $0x48] sm:$0xff] }
 0x9a5   :  { %v4963_v47 = vadd.f32 %v11386_v40, %v4736_v23  ;;  %v5485_v5 = vld [vmem:[#allocation9 + $0xe0] sm:$0xff]  ;;  %v5480_v23 = vld [vmem:[#allocation9 + $0xb8] sm:$0xff]  ;;  %v5386_v49 = vld [vmem:[#allocation9 + $0x8] sm:$0xff] }
 0x9a6   :  { %v10954_v43 = vadd.f32 %v10934_v38, %v5203_v6  ;;  %v5222_v6 = vadd.f32 %v5208_v37, %v5200_v14  ;;  %v4965_v50 = vadd.f32 %v11384_v53, %v4738_v13  ;;  %v5215_v29 = vadd.f32 %v10934_v38, %v5193_v62  ;;  %v5395_v14 = vld [vmem:[#allocation9 + $0x50] sm:$0xff]  ;;  %v5486_v13 = vld [vmem:[#allocation9 + $0xe8] sm:$0xff] }
 0x9a7   :  { %v5478_v62 = vld [vmem:[#allocation9 + $0xa8] sm:$0xff] }
 0x9a8   :  { %v5192_v31 = vadd.f32 %v11387_v56, %v4965_v50  ;;  %v5494_v53 = vld [vmem:[#allocation9 + $0x128] sm:$0xff]  ;;  %v5401_v50 = vld [vmem:[#allocation9 + $0x80] sm:$0xff] }
 0x9a9   :  { %v5143_v42 = vpop.f32.mrf.mxu3 }
 0x9aa   :  { %v5202_v21 = vadd.f32 %v5143_v42, %v4975_v34  ;;  %v5198_v42 = vadd.f32 %v11377_v18, %v4971_v45  ;;  %v5214_v57 = vadd.f32 %v5208_v37, %v5192_v31  ;;  %v5488_v45 = vld [vmem:[#allocation9 + $0xf8] sm:$0xff]  ;;  %v5482_v18 = vld [vmem:[#allocation9 + $0xc8] sm:$0xff] }
 0x9ab   :  { %v5187_v54 = vpop.f32.mrf.mxu0 }
 0x9ac   :  { %v5205_v15 = vadd.f32 %v5187_v54, %v4978_v63  ;;  %v5224_v16 = vadd.f32 %v5208_v37, %v5202_v21  ;;  %v4964_v63 = vadd.f32 %v11379_v9, %v4737_v51  ;;  %v11382_v54 = vld [vmem:[#allocation19_spill] sm:$0xff]  ;;  %v5220_v0 = vadd.f32 %v5208_v37, %v5198_v42  ;;  %v5228_v21 = vld [vmem:[#allocation7] sm:$0xff]  ;;  %v5387_v9 = vld [vmem:[#allocation9 + $0x10] sm:$0xff] }
 0x9ad   :  { %v5196_v7 = vadd.f32 %v11382_v54, %v4969_v19  ;;  %v5400_v51 = vld [vmem:[#allocation9 + $0x78] sm:$0xff]  ;;  %v5390_v19 = vld [vmem:[#allocation9 + $0x28] sm:$0xff]  ;;  %v5389_v42 = vld [vmem:[#allocation9 + $0x20] sm:$0xff] }
 0x9ae   :  { %v10946_v44 = vadd.f32 %v10934_v38, %v5205_v15  ;;  %v11383_v15 = vld [vmem:[#allocation23_spill] sm:$0xff]  ;;  %5418 = vmatpush.msra.mxu0 %v5400_v51 }
 0x9af   :  { %v5191_v17 = vadd.f32 %v11383_v15, %v4964_v63  ;;  %v5218_v35 = vadd.f32 %v5208_v37, %v5196_v7  ;;  %v5479_v63 = vld [vmem:[#allocation9 + $0xb0] sm:$0xff]  ;;  %v5496_v54 = vld [vmem:[#allocation9 + $0x138] sm:$0xff] }
 0x9b0   :  { %5356 = vmatpush.msra.mxu3 %v10946_v44  ;;  %5419 = vmatpush.msra.mxu0 %v5399_v59  ;;  %v5403_v7 = vld [vmem:[#allocation9 + $0x90] sm:$0xff] }
 0x9b1   :  { %v5146_v36 = vpop.f32.mrf.mxu3  ;;  %v5213_v34 = vadd.f32 %v10934_v38, %v5191_v17  ;;  %v5304_v38 = vld [vmem:[#allocation7 + $0x28] sm:$0xff] }
 0x9b2   :  { %v5204_v46 = vadd.f32 %v5146_v36, %v4977_v52  ;;  %5357 = vmatpush.msra.mxu3 %v10954_v43  ;;  %v11388_v52 = vld [vmem:[#allocation22_spill] sm:$0xff]  ;;  %5420 = vmatpush.msra.mxu0 %v5398_v26 }
 0x9b3   :  { %v5190_v58 = vadd.f32 %v11388_v52, %v4963_v47 }
 0x9b4   :  { %v5226_v39 = vadd.f32 %v5208_v37, %v5204_v46  ;;  %5358 = vmatpush.msra.mxu3 %v10960_v61  ;;  %v5229_v46 = vld [vmem:[#allocation7 + $0x8] sm:$0xff]  ;;  %5421 = vmatpush.msra.mxu0 %v5397_v12 }
 0x9b5   :  { %v5212_v36 = vadd.f32 %v5208_v37, %v5190_v58  ;;  %v5305_v37 = vld [vmem:[#allocation7 + $0x30] sm:$0xff] }
 0x9b6   :  { %5252 = vmatpush.msrb.mxu2 %v5226_v39  ;;  %5327 = vmatpush.msra.mxu1 %v5226_v39  ;;  %v5487_v39 = vld [vmem:[#allocation9 + $0xf0] sm:$0xff] }
 0x9b7   :  { %5359 = vmatpush.msra.mxu3 %v5221_v55  ;;  %5422 = vmatpush.msra.mxu0 %v5396_v30  ;;  %v5571_v30 = vld [vmem:[#allocation10 + $0x38] sm:$0xff] }
 0x9b8   :  { %5253 = vmatpush.msrb.mxu2 %v5224_v16  ;;  %5328 = vmatpush.msra.mxu1 %v5224_v16  ;;  %v5481_v16 = vld [vmem:[#allocation9 + $0xc0] sm:$0xff] }
 0x9b9   :  { %5360 = vmatpush.msra.mxu3 %v5219_v41  ;;  %5423 = vmatpush.msra.mxu0 %v5395_v14  ;;  %v5569_v14 = vld [vmem:[#allocation10 + $0x28] sm:$0xff] }
 0x9ba   :  { %5254 = vmatpush.msrb.mxu2 %v5222_v6  ;;  %5329 = vmatpush.msra.mxu1 %v5222_v6  ;;  %v5495_v6 = vld [vmem:[#allocation9 + $0x130] sm:$0xff] }
 0x9bb   :  { %5361 = vmatpush.msra.mxu3 %v5217_v24  ;;  %5424 = vmatpush.msra.mxu0 %v5394_v1  ;;  %v5622_v1 = vld [vmem:[#allocation10 + $0x68] sm:$0xff] }
 0x9bc   :  { %5255 = vmatpush.msrb.mxu2 %v5220_v0  ;;  %5330 = vmatpush.msra.mxu1 %v5220_v0 }
 0x9bd   :  { %5362 = vmatpush.msra.mxu3 %v5215_v29  ;;  %5425 = vmatpush.msra.mxu0 %v5393_v10  ;;  %v5621_v10 = vld [vmem:[#allocation10 + $0x60] sm:$0xff] }
 0x9be   :  { %5256 = vmatpush.msrb.mxu2 %v5218_v35  ;;  %5331 = vmatpush.msra.mxu1 %v5218_v35 }
 0x9bf   :  { %5363 = vmatpush.msra.mxu3 %v5213_v34  ;;  %5426 = vmatpush.msra.mxu0 %v5392_v4  ;;  %v5620_v4 = vld [vmem:[#allocation10 + $0x58] sm:$0xff] }
 0x9c0   :  { %5257 = vmatpush.msrb.mxu2 %v5216_v48  ;;  %5332 = vmatpush.msra.mxu1 %v5216_v48  ;;  %v5628_v48 = vld [vmem:[#allocation10 + $0x98] sm:$0xff] }
 0x9c1   :  { %6855 = vmatmul.msk.f32.vlgmr.msra.gmra.mxu3 %vm3224_vm3, %v5303_v22 }
 0x9c2   :  { %5258 = vmatpush.msrb.mxu2 %v5214_v57  ;;  %5333 = vmatpush.msra.mxu1 %v5214_v57  ;;  %v5627_v57 = vld [vmem:[#allocation10 + $0x90] sm:$0xff] }
 0x9c3   :  { %5538 = vmatpush.msrb.mxu3 %v5496_v54  ;;  %v5711_v54 = vld [vmem:[#allocation10 + $0xc0] sm:$0xff] }
 0x9c4   :  { %5259 = vmatpush.msrb.mxu2 %v5212_v36  ;;  %5334 = vmatpush.msra.mxu1 %v5212_v36  ;;  %v5626_v36 = vld [vmem:[#allocation10 + $0x88] sm:$0xff] }
 0x9c5   :  { %6843 = vmatmul.msk.f32.vlgmr.msrb.gmra.mxu2 %vm3224_vm3, %v5228_v21  ;;  %6851 = vmatmul.msk.f32.vlgmr.msra.gmra.mxu1 %vm3224_vm3, %v5303_v22  ;;  %v5573_v22 = vld [vmem:[#allocation10 + $0x48] sm:$0xff] }
 0x9c6   :  { %5281 = vmatpush.msra.mxu2 %v10946_v44  ;;  %v5230_v44 = vld [vmem:[#allocation7 + $0x10] sm:$0xff]  ;;  %5497 = vmatpush.msrb.mxu1 %v5492_v2 }
 0x9c7   :  { %5539 = vmatpush.msrb.mxu3 %v5495_v6 }
 0x9c8   :  { %5282 = vmatpush.msra.mxu2 %v10954_v43  ;;  %v5306_v43 = vld [vmem:[#allocation7 + $0x38] sm:$0xff]  ;;  %5498 = vmatpush.msrb.mxu1 %v5491_v27 }
 0x9c9   :  { %6856 = vmatmul.msk.f32.gmra.mxu3 %vm3224_vm3, %v5304_v38 }
 0x9ca   :  { %5283 = vmatpush.msra.mxu2 %v10960_v61  ;;  %v5231_v61 = vld [vmem:[#allocation7 + $0x18] sm:$0xff]  ;;  %5499 = vmatpush.msrb.mxu1 %v5490_v25 }
 0x9cb   :  { %5540 = vmatpush.msrb.mxu3 %v5494_v53 }
 0x9cc   :  { %5284 = vmatpush.msra.mxu2 %v5221_v55  ;;  %5500 = vmatpush.msrb.mxu1 %v5489_v60  ;;  %v5391_v55 = vld [vmem:[#allocation9 + $0x30] sm:$0xff]  ;;  %v5572_v60 = vld [vmem:[#allocation10 + $0x40] sm:$0xff] }
 0x9cd   :  { %6844 = vmatmul.msk.f32.gmra.mxu2 %vm3224_vm3, %v5229_v46  ;;  %6852 = vmatmul.msk.f32.gmra.mxu1 %vm3224_vm3, %v5304_v38 }
 0x9ce   :  { %5285 = vmatpush.msra.mxu2 %v5219_v41  ;;  %5501 = vmatpush.msrb.mxu1 %v5488_v45  ;;  %v5385_v41 = vld [vmem:[#allocation9] sm:$0xff]  ;;  %v5570_v45 = vld [vmem:[#allocation10 + $0x30] sm:$0xff] }
 0x9cf   :  { %5427 = vmatpush.msra.mxu0 %v5391_v55  ;;  %5541 = vmatpush.msrb.mxu3 %v5493_v11  ;;  %v5619_v55 = vld [vmem:[#allocation10 + $0x50] sm:$0xff]  ;;  %v5774_v11 = vld [vmem:[#allocation10 + $0xf8] sm:$0xff] }
 0x9d0   :  { %5286 = vmatpush.msra.mxu2 %v5217_v24  ;;  %5502 = vmatpush.msrb.mxu1 %v5487_v39  ;;  %v5402_v24 = vld [vmem:[#allocation9 + $0x88] sm:$0xff]  ;;  %v5568_v39 = vld [vmem:[#allocation10 + $0x20] sm:$0xff] }
 0x9d1   :  { %6857 = vmatmul.msk.f32.gmra.mxu3 %vm3224_vm3, %v5305_v37  ;;  %5428 = vmatpush.msra.mxu0 %v5390_v19  ;;  %v5782_v19 = vld [vmem:[#allocation10 + $0x138] sm:$0xff] }
 0x9d2   :  { %5287 = vmatpush.msra.mxu2 %v5215_v29  ;;  %5503 = vmatpush.msrb.mxu1 %v5486_v13  ;;  %v5567_v13 = vld [vmem:[#allocation10 + $0x18] sm:$0xff] }
 0x9d3   :  { %5429 = vmatpush.msra.mxu0 %v5389_v42  ;;  %v5781_v42 = vld [vmem:[#allocation10 + $0x130] sm:$0xff] }
 0x9d4   :  { %5288 = vmatpush.msra.mxu2 %v5213_v34  ;;  %5504 = vmatpush.msrb.mxu1 %v5485_v5  ;;  %v5566_v5 = vld [vmem:[#allocation10 + $0x10] sm:$0xff] }
 0x9d5   :  { %6845 = vmatmul.msk.f32.gmra.mxu2 %vm3224_vm3, %v5230_v44  ;;  %6853 = vmatmul.msk.f32.gmra.mxu1 %vm3224_vm3, %v5305_v37 }
 0x9d6   :  { %5505 = vmatpush.msrb.mxu1 %v5484_v28  ;;  %5430 = vmatpush.msra.mxu0 %v5388_v33  ;;  %v5565_v28 = vld [vmem:[#allocation10 + $0x8] sm:$0xff] }
 0x9d7   :  { %5459 = vmatpush.msrb.mxu2 %v5404_v3  ;;  %v5780_v33 = vld [vmem:[#allocation10 + $0x128] sm:$0xff]  ;;  %v5777_v3 = vld [vmem:[#allocation10 + $0x110] sm:$0xff] }
 0x9d8   :  { %5506 = vmatpush.msrb.mxu1 %v5483_v8  ;;  %5431 = vmatpush.msra.mxu0 %v5387_v9  ;;  %v5564_v8 = vld [vmem:[#allocation10] sm:$0xff] }
 0x9d9   :  { %6858 = vmatmul.msk.f32.gmra.mxu3 %vm3224_vm3, %v5306_v43  ;;  %5460 = vmatpush.msrb.mxu2 %v5403_v7  ;;  %v5776_v7 = vld [vmem:[#allocation10 + $0x108] sm:$0xff] }
 0x9da   :  { %5507 = vmatpush.msrb.mxu1 %v5482_v18  ;;  %5432 = vmatpush.msra.mxu0 %v5386_v49  ;;  %v5716_v18 = vld [vmem:[#allocation10 + $0xe8] sm:$0xff]  ;;  %v5779_v49 = vld [vmem:[#allocation10 + $0x120] sm:$0xff] }
 0x9db   :  { %5461 = vmatpush.msrb.mxu2 %v5402_v24  ;;  %v5710_v24 = vld [vmem:[#allocation10 + $0xb8] sm:$0xff] }
 0x9dc   :  { %5508 = vmatpush.msrb.mxu1 %v5481_v16  ;;  %5433 = vmatpush.msra.mxu0 %v5385_v41  ;;  %v5715_v16 = vld [vmem:[#allocation10 + $0xe0] sm:$0xff]  ;;  %v5778_v41 = vld [vmem:[#allocation10 + $0x118] sm:$0xff] }
 0x9dd   :  { %6846 = vmatmul.msk.f32.gmra.mxu2 %vm3224_vm3, %v5231_v61  ;;  %6854 = vmatmul.msk.f32.gmra.mxu1 %vm3224_vm3, %v5306_v43  ;;  %v5623_v43 = vld [vmem:[#allocation10 + $0x70] sm:$0xff] }
 0x9de   :  { %5509 = vmatpush.msrb.mxu1 %v5480_v23  ;;  %5462 = vmatpush.msrb.mxu2 %v5401_v50  ;;  %v5714_v23 = vld [vmem:[#allocation10 + $0xd8] sm:$0xff] }
 0x9df   :  { %5593 = vmatpush.msrb.mxu0 %v5573_v22 }
 0x9e0   :  { %5510 = vmatpush.msrb.mxu1 %v5479_v63 }
 0x9e1   :  { %5594 = vmatpush.msrb.mxu0 %v5572_v60 }
 0x9e2   :  { %5511 = vmatpush.msrb.mxu1 %v5478_v62  ;;  %v5713_v62 = vld [vmem:[#allocation10 + $0xd0] sm:$0xff] }
 0x9e3   :  { %5595 = vmatpush.msrb.mxu0 %v5571_v30 }
 0x9e4   :  { %5512 = vmatpush.msrb.mxu1 %v5477_v20  ;;  %v5712_v20 = vld [vmem:[#allocation10 + $0xc8] sm:$0xff] }
 0x9e5   :  { %6847 = vmatmul.msk.f32.vlgmr.msra.gmra.mxu2 %vm3224_vm3, %v5228_v21  ;;  %5596 = vmatpush.msrb.mxu0 %v5570_v45 }
 0x9e6   :  { %5635 = vmatpush.msra.mxu2 %v5628_v48 }
 0x9e7   :  { %5597 = vmatpush.msrb.mxu0 %v5569_v14 }
 0x9e8   :  { %5636 = vmatpush.msra.mxu2 %v5627_v57 }
 0x9e9   :  { %5598 = vmatpush.msrb.mxu0 %v5568_v39 }
 0x9ea   :  { %5637 = vmatpush.msra.mxu2 %v5626_v36 }
 0x9eb   :  { %5599 = vmatpush.msrb.mxu0 %v5567_v13 }
 0x9ed   :  { %6848 = vmatmul.msk.f32.gmra.mxu2 %vm3224_vm3, %v5229_v46  ;;  %v5625_v46 = vld [vmem:[#allocation10 + $0x80] sm:$0xff]  ;;  %5600 = vmatpush.msrb.mxu0 %v5566_v5 }
 0x9ee   :  { %5638 = vmatpush.msra.mxu2 %v5625_v46 }
 0x9ef   :  { %5601 = vmatpush.msrb.mxu0 %v5565_v28  ;;  %v6871_v28 = vld [vmem:[%s11129_s11 + $0x8] sm:$0xff] }
 0x9f1   :  { %5602 = vmatpush.msrb.mxu0 %v5564_v8 }
 0x9f5   :  { %6849 = vmatmul.msk.f32.gmra.mxu2 %vm3224_vm3, %v5230_v44  ;;  %v5624_v44 = vld [vmem:[#allocation10 + $0x78] sm:$0xff] }
 0x9f6   :  { %5639 = vmatpush.msra.mxu2 %v5624_v44 }
 0x9f8   :  { %5640 = vmatpush.msra.mxu2 %v5623_v43 }
 0x9fa   :  { %5641 = vmatpush.msra.mxu2 %v5622_v1 }
 0x9fc   :  { %5642 = vmatpush.msra.mxu2 %v5621_v10 }
 0x9fd   :  { %6850 = vmatmul.msk.f32.gmra.mxu2 %vm3224_vm3, %v5231_v61 }
 0x9fe   :  { %5643 = vmatpush.msra.mxu2 %v5620_v4 }
 0xa00   :  { %5644 = vmatpush.msra.mxu2 %v5619_v55 }
 0xa42   :  { %v5336_v15 = vpop.f32.mrf.mxu1 }
 0xa44   :  { %v5365_v52 = vpop.f32.mrf.mxu3 }
 0xa48   :  { %v5261_v17 = vpop.f32.mrf.mxu2 }
 0xa49   :  { %v5377_v32 = vmax.f32 %v5261_v17, %v5336_v15  ;;  %v5775_v17 = vld [vmem:[#allocation10 + $0x100] sm:$0xff] }
 0xa4a   :  { %v5339_v0 = vpop.f32.mrf.mxu1 }
 0xa4b   :  { %5434 = vmatmul.f32.vlgmr.msra.gmra.mxu0 %v5377_v32  ;;  %5513 = vmatmul.f32.vlgmr.msrb.gmra.mxu1 %v5377_v32  ;;  %v5709_v32 = vld [vmem:[#allocation10 + $0xb0] sm:$0xff] }
 0xa4c   :  { %v5368_v37 = vpop.f32.mrf.mxu3  ;;  %5723 = vmatpush.msra.mxu0 %v5716_v18 }
 0xa4e   :  { %5724 = vmatpush.msra.mxu0 %v5715_v16 }
 0xa50   :  { %v5264_v29 = vpop.f32.mrf.mxu2  ;;  %5725 = vmatpush.msra.mxu0 %v5714_v23  ;;  %v6878_v23 = vld [vmem:[%s11129_s11 + $0x10] sm:$0xff] }
 0xa51   :  { %v5379_v40 = vmax.f32 %v5264_v29, %v5339_v0 }
 0xa52   :  { %v5342_v47 = vpop.f32.mrf.mxu1  ;;  %5726 = vmatpush.msra.mxu0 %v5713_v62  ;;  %v5853_v62 = vld [vmem:[%s11132_s14 + $0x58] sm:$0xff] }
 0xa53   :  { %5437 = vmatmul.f32.gmra.mxu0 %v5379_v40  ;;  %5516 = vmatmul.f32.gmra.mxu1 %v5379_v40 }
 0xa54   :  { %v5371_v2 = vpop.f32.mrf.mxu3  ;;  %5727 = vmatpush.msra.mxu0 %v5712_v20  ;;  %v5851_v20 = vld [vmem:[%s11132_s14 + $0x48] sm:$0xff] }
 0xa56   :  { %5728 = vmatpush.msra.mxu0 %v5711_v54  ;;  %v5849_v54 = vld [vmem:[%s11132_s14 + $0x38] sm:$0xff] }
 0xa58   :  { %v5267_v56 = vpop.f32.mrf.mxu2  ;;  %5729 = vmatpush.msra.mxu0 %v5710_v24  ;;  %v5844_v24 = vld [vmem:[%s11132_s14 + $0x10] sm:$0xff] }
 0xa59   :  { %v5381_v31 = vmax.f32 %v5267_v56, %v5342_v47  ;;  %v5708_v47 = vld [vmem:[#allocation10 + $0xa8] sm:$0xff] }
 0xa5a   :  { %v5345_v35 = vpop.f32.mrf.mxu1  ;;  %5730 = vmatpush.msra.mxu0 %v5709_v32 }
 0xa5b   :  { %5440 = vmatmul.f32.gmra.mxu0 %v5381_v31  ;;  %5519 = vmatmul.f32.gmra.mxu1 %v5381_v31  ;;  %v5773_v31 = vld [vmem:[#allocation10 + $0xf0] sm:$0xff] }
 0xa5c   :  { %v5374_v26 = vpop.f32.mrf.mxu3  ;;  %5731 = vmatpush.msra.mxu0 %v5708_v47 }
 0xa60   :  { %v5270_v34 = vpop.f32.mrf.mxu2 }
 0xa61   :  { %v5383_v58 = vmax.f32 %v5270_v34, %v5345_v35  ;;  %v5707_v35 = vld [vmem:[#allocation10 + $0xa0] sm:$0xff] }
 0xa62   :  { %5732 = vmatpush.msra.mxu0 %v5707_v35 }
 0xa63   :  { %5443 = vmatmul.f32.gmra.mxu0 %v5383_v58  ;;  %5522 = vmatmul.f32.gmra.mxu1 %v5383_v58 }
 0xa68   :  { %v5290_v21 = vpop.f32.mrf.mxu2 }
 0xa69   :  { %v5378_v38 = vmax.f32 %v5290_v21, %v5365_v52 }
 0xa6b   :  { %6859 = vmatmul.msk.f32.vlgmr.msrb.gmra.mxu2 %vm5405_vm6, %v5378_v38  ;;  %6863 = vmatmul.msk.f32.vlgmr.msrb.gmra.mxu3 %vm5405_vm6, %v5378_v38 }
 0xa6c   :  { %5789 = vmatpush.msrb.mxu2 %v5782_v19  ;;  %v5563_v19 = vld [vmem:[%s11129_s11] sm:$0xff] }
 0xa6e   :  { %5790 = vmatpush.msrb.mxu2 %v5781_v42 }
 0xa70   :  { %v5293_v61 = vpop.f32.mrf.mxu2  ;;  %5791 = vmatpush.msrb.mxu2 %v5780_v33 }
 0xa71   :  { %v5380_v51 = vmax.f32 %v5293_v61, %v5368_v37 }
 0xa72   :  { %5792 = vmatpush.msrb.mxu2 %v5779_v49  ;;  %v6884_v49 = vld [vmem:[%s11129_s11 + $0x18] sm:$0xff] }
 0xa73   :  { %6860 = vmatmul.msk.f32.gmra.mxu2 %vm5405_vm6, %v5380_v51  ;;  %6864 = vmatmul.msk.f32.gmra.mxu3 %vm5405_vm6, %v5380_v51 }
 0xa74   :  { %5793 = vmatpush.msrb.mxu2 %v5778_v41  ;;  %v5852_v41 = vld [vmem:[%s11132_s14 + $0x50] sm:$0xff] }
 0xa76   :  { %5794 = vmatpush.msrb.mxu2 %v5777_v3  ;;  %v5850_v3 = vld [vmem:[%s11132_s14 + $0x40] sm:$0xff] }
 0xa78   :  { %v5296_v59 = vpop.f32.mrf.mxu2  ;;  %5795 = vmatpush.msrb.mxu2 %v5776_v7  ;;  %v5848_v7 = vld [vmem:[%s11132_s14 + $0x30] sm:$0xff] }
 0xa79   :  { %v5382_v27 = vmax.f32 %v5296_v59, %v5371_v2 }
 0xa7a   :  { %5796 = vmatpush.msrb.mxu2 %v5775_v17  ;;  %v5845_v17 = vld [vmem:[%s11132_s14 + $0x18] sm:$0xff] }
 0xa7b   :  { %6861 = vmatmul.msk.f32.gmra.mxu2 %vm5405_vm6, %v5382_v27  ;;  %6865 = vmatmul.msk.f32.gmra.mxu3 %vm5405_vm6, %v5382_v27 }
 0xa7c   :  { %5797 = vmatpush.msrb.mxu2 %v5774_v11  ;;  %v5890_v11 = vld [vmem:[%s11134_s16 + $0x18] sm:$0x3f] }
 0xa7e   :  { %5798 = vmatpush.msrb.mxu2 %v5773_v31 }
 0xa80   :  { %v5299_v25 = vpop.f32.mrf.mxu2 }
 0xa81   :  { %v5384_v12 = vmax.f32 %v5299_v25, %v5374_v26 }
 0xa83   :  { %6862 = vmatmul.msk.f32.gmra.mxu2 %vm5405_vm6, %v5384_v12  ;;  %6866 = vmatmul.msk.f32.gmra.mxu3 %vm5405_vm6, %v5384_v12 }
 0xac8   :  { %v5435_v9 = vpop.f32.mrf.mxu0  ;;  %v5514_v63 = vpop.f32.mrf.mxu1 }
 0xad0   :  { %v5438_v29 = vpop.f32.mrf.mxu0  ;;  %v5517_v40 = vpop.f32.mrf.mxu1 }
 0xad8   :  { %v5441_v36 = vpop.f32.mrf.mxu0  ;;  %v5520_v21 = vpop.f32.mrf.mxu1 }
 0xae0   :  { %v5444_v51 = vpop.f32.mrf.mxu0  ;;  %v5523_v2 = vpop.f32.mrf.mxu1 }
 0xaee   :  { %v5464_v6 = vpop.f32.mrf.mxu2  ;;  %v5543_v15 = vpop.f32.mrf.mxu3 }
 0xaef   :  { %v5465_v53 = vadd.f32 %v5464_v6, %v5435_v9  ;;  %v5544_v50 = vadd.f32 %v5543_v15, %v5514_v63  ;;  %v5854_v63 = vld [vmem:[%s11132_s14 + $0x60] sm:$0xf]  ;;  %v5847_v6 = vld [vmem:[%s11132_s14 + $0x28] sm:$0xff] }
 0xaf0   :  { %v5846_v15 = vld [vmem:[%s11132_s14 + $0x20] sm:$0xff] }
 0xaf1   :  { %v5555_v0 = vmax.f32 %v5465_v53, %v5544_v50  ;;  %v5843_v53 = vld [vmem:[%s11132_s14 + $0x8] sm:$0xff]  ;;  %v5842_v50 = vld [vmem:[%s11132_s14] sm:$0xff] }
 0xaf3   :  { %v5559_v56 = vmax.f32 %v5555_v0, 0.0 }
 0xaf5   :  { %6872 = vmatmul.msk.f32.vlgmr.msra.gmra.mxu2 %vm5574_vm7, %v5559_v56  ;;  %6867 = vmatmul.msk.f32.vlgmr.msrb.gmra.mxu0 %vm5574_vm7, %v5559_v56 }
 0xaf6   :  { %v5467_v34 = vpop.f32.mrf.mxu2  ;;  %v5546_v52 = vpop.f32.mrf.mxu3 }
 0xaf7   :  { %v5468_v58 = vadd.f32 %v5467_v34, %v5438_v29  ;;  %v5547_v48 = vadd.f32 %v5546_v52, %v5517_v40 }
 0xaf9   :  { %v5556_v57 = vmax.f32 %v5468_v58, %v5547_v48  ;;  %v5889_v58 = vld [vmem:[%s11134_s16 + $0x10] sm:$0xff]  ;;  %v5888_v48 = vld [vmem:[%s11134_s16 + $0x8] sm:$0xff] }
 0xafb   :  { %v5560_v22 = vmax.f32 %v5556_v57, 0.0  ;;  %v5887_v57 = vld [vmem:[%s11134_s16] sm:$0xff] }
 0xafd   :  { %6873 = vmatmul.msk.f32.gmra.mxu2 %vm5574_vm7, %v5560_v22  ;;  %6868 = vmatmul.msk.f32.gmra.mxu0 %vm5574_vm7, %v5560_v22 }
 0xafe   :  { %v5470_v38 = vpop.f32.mrf.mxu2  ;;  %v5549_v46 = vpop.f32.mrf.mxu3 }
 0xaff   :  { %v5471_v37 = vadd.f32 %v5470_v38, %v5441_v36  ;;  %v5550_v44 = vadd.f32 %v5549_v46, %v5520_v21  ;;  %v6906_v46 = vld [vmem:[%s11135_s17] ss:$0 sm:$0xff] }
 0xb01   :  { %v5557_v43 = vmax.f32 %v5471_v37, %v5550_v44 }
 0xb03   :  { %v5561_v61 = vmax.f32 %v5557_v43, 0.0 }
 0xb05   :  { %6874 = vmatmul.msk.f32.gmra.mxu2 %vm5574_vm7, %v5561_v61  ;;  %6869 = vmatmul.msk.f32.gmra.mxu0 %vm5574_vm7, %v5561_v61 }
 0xb06   :  { %v5473_v59 = vpop.f32.mrf.mxu2  ;;  %v5552_v27 = vpop.f32.mrf.mxu3 }
 0xb07   :  { %v5474_v26 = vadd.f32 %v5473_v59, %v5444_v51  ;;  %v5553_v25 = vadd.f32 %v5552_v27, %v5523_v2 }
 0xb09   :  { %v5558_v12 = vmax.f32 %v5474_v26, %v5553_v25 }
 0xb0b   :  { %v5562_v60 = vmax.f32 %v5558_v12, 0.0 }
 0xb0d   :  { %6875 = vmatmul.msk.f32.gmra.mxu2 %vm5574_vm7, %v5562_v60  ;;  %6870 = vmatmul.msk.f32.gmra.mxu0 %vm5574_vm7, %v5562_v60 }
 0xb15   :  { %6885 = vmatmul.msk.f32.vlgmr.msrb.gmra.mxu2 %vm5574_vm7, %v5559_v56  ;;  %6879 = vmatmul.msk.f32.vlgmr.msra.gmra.mxu0 %vm5574_vm7, %v5559_v56  ;;  %v6904_v56 = vld [vmem:[%s11131_s13] ss:$0 sm:$0xff] }
 0xb1d   :  { %6886 = vmatmul.msk.f32.gmra.mxu2 %vm5574_vm7, %v5560_v22  ;;  %6880 = vmatmul.msk.f32.gmra.mxu0 %vm5574_vm7, %v5560_v22  ;;  %v6905_v22 = vld [vmem:[%s11133_s15] ss:$0 sm:$0xff] }
 0xb25   :  { %6887 = vmatmul.msk.f32.gmra.mxu2 %vm5574_vm7, %v5561_v61  ;;  %6881 = vmatmul.msk.f32.gmra.mxu0 %vm5574_vm7, %v5561_v61 }
 0xb2d   :  { %6888 = vmatmul.msk.f32.gmra.mxu2 %vm5574_vm7, %v5562_v60  ;;  %6882 = vmatmul.msk.f32.gmra.mxu0 %vm5574_vm7, %v5562_v60 }
 0xb72   :  { %v5604_v30 = vpop.f32.mrf.mxu0 }
 0xb78   :  { %v5646_v45 = vpop.f32.mrf.mxu2 }
 0xb7a   :  { %v5607_v14 = vpop.f32.mrf.mxu0 }
 0xb80   :  { %v5649_v39 = vpop.f32.mrf.mxu2 }
 0xb82   :  { %v5610_v1 = vpop.f32.mrf.mxu0 }
 0xb88   :  { %v5652_v13 = vpop.f32.mrf.mxu2 }
 0xb8a   :  { %v5613_v10 = vpop.f32.mrf.mxu0 }
 0xb90   :  { %v5655_v5 = vpop.f32.mrf.mxu2 }
 0xb91   :  { %5673 = vmatpush.msra.mxu3 %v5655_v5 }
 0xb92   :  { %v5734_v4 = vpop.f32.mrf.mxu0 }
 0xb93   :  { %5674 = vmatpush.msra.mxu3 %v5652_v13 }
 0xb95   :  { %5675 = vmatpush.msra.mxu3 %v5649_v39 }
 0xb97   :  { %5676 = vmatpush.msra.mxu3 %v5646_v45 }
 0xb98   :  { %v5800_v55 = vpop.f32.mrf.mxu2  ;;  %6876 = vmatmul.msk.f32.vlgmr.msra.gmra.mxu3 %vm5405_vm6, %v6871_v28 }
 0xb99   :  { %5696 = vmatpush.msrb.mxu3 %v5613_v10 }
 0xb9a   :  { %v5737_v8 = vpop.f32.mrf.mxu0 }
 0xb9b   :  { %5697 = vmatpush.msrb.mxu3 %v5610_v1 }
 0xb9d   :  { %5698 = vmatpush.msrb.mxu3 %v5607_v14 }
 0xb9f   :  { %5699 = vmatpush.msrb.mxu3 %v5604_v30 }
 0xba0   :  { %v5803_v18 = vpop.f32.mrf.mxu2  ;;  %6877 = vmatmul.msk.f32.vlgmr.msrb.gmra.mxu3 %vm5405_vm6, %v5563_v19 }
 0xba2   :  { %v5740_v42 = vpop.f32.mrf.mxu0 }
 0xba8   :  { %v5806_v16 = vpop.f32.mrf.mxu2 }
 0xbaa   :  { %v5743_v33 = vpop.f32.mrf.mxu0 }
 0xbab   :  { %5761 = vmatpush.msra.mxu1 %v5743_v33 }
 0xbad   :  { %5762 = vmatpush.msra.mxu1 %v5740_v42 }
 0xbaf   :  { %5763 = vmatpush.msra.mxu1 %v5737_v8 }
 0xbb0   :  { %v5809_v9 = vpop.f32.mrf.mxu2 }
 0xbb1   :  { %5827 = vmatpush.msra.mxu3 %v5809_v9  ;;  %5764 = vmatpush.msra.mxu1 %v5734_v4 }
 0xbb2   :  { %6883 = vmatmul.msk.f32.vlgmr.msra.gmra.mxu1 %vm5405_vm6, %v6878_v23 }
 0xbb3   :  { %5828 = vmatpush.msra.mxu3 %v5806_v16  ;;  %6890 = vmatpush.msk.msrb.mxu1 %vm869_vm1, %v5854_v63 }
 0xbb5   :  { %5829 = vmatpush.msra.mxu3 %v5803_v18  ;;  %5870 = vmatpush.msrb.mxu1 %v5853_v62 }
 0xbb7   :  { %5830 = vmatpush.msra.mxu3 %v5800_v55  ;;  %5871 = vmatpush.msrb.mxu1 %v5852_v41 }
 0xbb8   :  { %6889 = vmatmul.msk.f32.vlgmr.msra.gmra.mxu3 %vm5405_vm6, %v6884_v49 }
 0xbb9   :  { %5872 = vmatpush.msrb.mxu1 %v5851_v20  ;;  %6892 = vmatpush.msk.msrb.mxu3 %vm5899_vm8, %v5890_v11 }
 0xbbb   :  { %5873 = vmatpush.msrb.mxu1 %v5850_v3  ;;  %5916 = vmatpush.msrb.mxu3 %v5889_v58 }
 0xbbd   :  { %5874 = vmatpush.msrb.mxu1 %v5849_v54  ;;  %5917 = vmatpush.msrb.mxu3 %v5888_v48 }
 0xbbf   :  { %5875 = vmatpush.msrb.mxu1 %v5848_v7  ;;  %5918 = vmatpush.msrb.mxu3 %v5887_v57 }
 0xbc1   :  { %5876 = vmatpush.msrb.mxu1 %v5847_v6 }
 0xbc3   :  { %5877 = vmatpush.msrb.mxu1 %v5846_v15 }
 0xbc5   :  { %5878 = vmatpush.msrb.mxu1 %v5845_v17 }
 0xbc7   :  { %5879 = vmatpush.msrb.mxu1 %v5844_v24 }
 0xbc9   :  { %5880 = vmatpush.msrb.mxu1 %v5843_v53 }
 0xbcb   :  { %5881 = vmatpush.msrb.mxu1 %v5842_v50 }
 0xc1b   :  { %v5678_v32 = vpop.f32.mrf.mxu3 }
 0xc23   :  { %v5701_v0 = vpop.f32.mrf.mxu3 }
 0xc24   :  { %v5702_v40 = vadd.f32 %v5701_v0, %v5678_v32 }
 0xc2f   :  { %v5766_v29 = vpop.f32.mrf.mxu1 }
 0xc30   :  { %v5769_v47 = vadd.f32 %v5766_v29, %v5702_v40 }
 0xc3b   :  { %v5832_v31 = vpop.f32.mrf.mxu3 }
 0xc3c   :  { %v5835_v35 = vadd.f32 %v5832_v31, %v5769_v47 }
 0xc3e   :  { %v5840_v34 = vadd.f32 %v6904_v56, %v5835_v35 }
 0xc40   :  { %v5841_v52 = vmax.f32 %v5840_v34, 0.0 }
 0xc42   :  { %6891 = vmatmul.msk.f32.vlgmr.msrb.gmra.mxu1 %vm5859_vm9, %v5841_v52 }
 0xcbf   :  { %v5883_v36 = vpop.f32.mrf.mxu1 }
 0xcc0   :  { %v5884_v21 = vadd.f32 %v6905_v22, %v5883_v36 }
 0xcc2   :  { %v5886_v38 = vmax.f32 %v5884_v21, 0.0 }
 0xcc4   :  { %6893 = vmatmul.msk.f32.vlgmr.msrb.gmra.mxu3 %vm5895_vm10, %v5886_v38 }
 0xd47   :  { %v5920_v37 = vpop.f32.mrf.mxu3 }
 0xd48   :  { %v5921_v44 = vadd.f32 %v6906_v46, %v5920_v37 }
 0xd4a   :  { %v5924_v43 = vsel %vm5923_vm11, %v5921_v44, -inf }
 0xd4b   :  { %5925 = vmax.xlane.f32.xlu0 %v5924_v43 }
 0xdbe   :  { %v5926_v61 = vpop.xlane.xlu0 %5925 }
 0xdbf   :  { %v5927_v51 = vsub.f32 %v5921_v44, %v5926_v61 }
 0xdc1   :  { %v5928_v2 = vmul.f32 1.442695, %v5927_v51 }
 0xdc3   :  { %6907 = vpow2.f32 %v5928_v2 }
 0xdc9   :  { %v6908_v59 = vpop.eup %6907 }
 0xdca   :  { %v5930_v27 = vsel %vm5923_vm11, %v6908_v59, 0.0 }
 0xdcb   :  { %5931 = vadd.xlane.f32.xlu0 %v5930_v27 }
 0xe3e   :  { %v5932_v26 = vpop.xlane.xlu0 %5931 }
 0xe3f   :  { %6909 = vlog2.f32 %v5932_v26 }
 0xe45   :  { %v6910_v25 = vpop.eup %6909 }
 0xe46   :  { %v5934_v12 = vmul.f32 0.6931472, %v6910_v25 }
 0xe48   :  { %v5935_v60 = vsub.f32 %v5927_v51, %v5934_v12 }
 0xe4a   :  { %5936 = vst.msk [vmem:[%s11136_s18] sm:$0xff] %vm5923_vm11, %v5935_v60 }
 0xe4b   :  { %5941 = vsyncpa [#allocation3], 1 }
 0xe4c   :  { %5942 = vsyncpa [#allocation5], 1 }
 0xe4d   :  { %5943 = vsyncpa [#allocation8], 1 }
 0xe4e   :  { %5944 = vsyncpa [#allocation11], 1 }

</bundles_post_ra>
